<compile_context>
chip_gen: v7x
topology: tpu7x:2x2x1
jax: 0.10.0
libtpu: 0.0.40
codegen_flags: <defaults>
</compile_context>

<pallas_src>
import numpy as np
import jax
import jax.numpy as jnp
from jax import lax
from jax.experimental import pallas as pl
from jax.experimental.pallas import tpu as pltpu

N_QUBITS = 8
N_LAYERS = 4
N_CLASSES = 3
DIM = 2 ** N_QUBITS          # 256
HALF = 2 ** (N_QUBITS // 2)  # 16
OUT_PAD = 128                # lane-dense output width (real outputs in cols 0..2)
TB_MAX = 1024                # max batch tile (multiple of 256)


# ----------------------------------------------------------------------------
# Pallas kernel: per-batch-tile forward pass
# ----------------------------------------------------------------------------
def quantum_forward_kernel(x_ref, el_ref, er_ref, wcat_ref, zcat_ref, fcb_ref,
                           out_ref):
    """RX product-state magnitudes (half-split) -> bf16 MXU matmuls -> folded head."""
    x = x_ref[...]                                   # (TB, Q) angles, f32
    half = x * 0.5
    cos_h = jnp.cos(half)                            # (TB, Q)
    sin_h = jnp.sin(half)                            # (TB, Q)

    # Batch-invariant nibble index 0..15 (one vreg worth of masks).
    k16 = lax.broadcasted_iota(jnp.int32, (1, HALF), 1)

    # mag_half[b, j] = prod_{t<4} (cos(x_{q0+t}/2) if bit_t(j)==0 else sin(...));
    # wire 0 is the MSB, so magL indexes the high nibble, magR the low nibble.
    def half_mag(q0):
        m = None
        for t in range(4):                           # static unroll, narrow (TB,16) ops
            q = q0 + t
            bit = ((k16 >> (3 - t)) & 1) == 1        # (1, 16) bool, batch-invariant
            f = jnp.where(bit, sin_h[:, q:q + 1], cos_h[:, q:q + 1])   # (TB, 16)
            m = f if m is None else m * f
        return m

    magL = half_mag(0).astype(jnp.bfloat16)          # (TB, 16)  wires 0..3 (high nibble)
    magR = half_mag(4).astype(jnp.bfloat16)          # (TB, 16)  wires 4..7 (low nibble)

    # Expand each half to full 256 basis states via tiny 0/1 matmuls (MXU slot,
    # guaranteed lowering), then a single wide f32 multiply combines them.
    magL_full = jnp.dot(magL, el_ref[...], preferred_element_type=jnp.float32)  # (TB,256)
    magR_full = jnp.dot(magR, er_ref[...], preferred_element_type=jnp.float32)  # (TB,256)
    mag = (magL_full * magR_full).astype(jnp.bfloat16)                          # (TB,256)

    # phi = mag @ [Re(W')^T | Im(W')^T]  — single bf16 MXU stream, f32 accumulate.
    phi = jnp.dot(mag, wcat_ref[...], preferred_element_type=jnp.float32)       # (TB,512)

    # |phi|^2 fused into the head: out = [Re^2 | Im^2] @ [Zfc; Zfc] + b.
    phi2 = (phi * phi).astype(jnp.bfloat16)                                     # (TB,512)
    out_ref[...] = (jnp.dot(phi2, zcat_ref[...], preferred_element_type=jnp.float32)
                    + fcb_ref[...])


# ----------------------------------------------------------------------------
# Host-side folding of the weight-only circuit (done ONCE, outside the hot path)
# ----------------------------------------------------------------------------
def build_variational_unitary(weights_np):
    """weights_np: (n_layers, n_qubits, 4); only [..., 0:3] (phi, theta, omega) used."""
    def cnot_matrix(ctrl, tgt):
        C = np.zeros((DIM, DIM), dtype=np.complex128)
        for j in range(DIM):
            cbit = (j >> (N_QUBITS - 1 - ctrl)) & 1
            jp = j ^ (1 << (N_QUBITS - 1 - tgt)) if cbit else j
            C[jp, j] = 1.0
        return C

    chain = np.eye(DIM, dtype=np.complex128)
    for q in range(N_QUBITS - 1):                    # CNOT(q, q+1) in order
        chain = cnot_matrix(q, q + 1) @ chain

    U = np.eye(DIM, dtype=np.complex128)
    for layer in range(N_LAYERS):
        layer_mat = np.array([[1.0]], dtype=np.complex128)
        for q in range(N_QUBITS):                    # wire 0 = leftmost (MSB)
            phi = float(weights_np[layer, q, 0])
            theta = float(weights_np[layer, q, 1])
            omega = float(weights_np[layer, q, 2])
            c, s = np.cos(theta / 2.0), np.sin(theta / 2.0)
            g = np.array(
                [[np.exp(-0.5j * (phi + omega)) * c, -np.exp(0.5j * (phi - omega)) * s],
                 [np.exp(-0.5j * (phi - omega)) * s, np.exp(0.5j * (phi + omega)) * c]],
                dtype=np.complex128)
            layer_mat = np.kron(layer_mat, g)
        U = chain @ layer_mat @ U
    return U


def make_z_table():
    ks = np.arange(DIM)
    cols = [1.0 - 2.0 * ((ks >> (N_QUBITS - 1 - i)) & 1) for i in range(N_QUBITS)]
    return np.stack(cols, axis=1).astype(np.float64)  # (DIM, Q)


def prepare_params(circuit_unitary, fc_w, fc_b):
    """Fold phases / Z-table / Linear head; build half-split expansion matrices.

    Returns device-resident arrays; call once and reuse across forward passes.
    """
    pop = np.array([bin(int(kk)).count("1") for kk in range(DIM)])
    phase = np.array([1.0 + 0j, -1j, -1.0 + 0j, 1j])[pop % 4]          # (-i)^popcount(k)
    wpt = phase[:, None] * circuit_unitary.T                            # diag(phase) @ U^T
    wcat = np.concatenate([np.real(wpt), np.imag(wpt)], axis=1)         # (DIM, 2*DIM)

    # Head: PauliZ table folded into the Linear weight, duplicated over the
    # [Re^2 | Im^2] halves of phi, zero-padded to 128 output lanes.
    zf = make_z_table() @ np.asarray(fc_w, np.float64)                  # (DIM, C)
    zcat = np.zeros((2 * DIM, OUT_PAD), np.float64)
    zcat[:DIM, :N_CLASSES] = zf
    zcat[DIM:, :N_CLASSES] = zf
    fcb = np.zeros((1, OUT_PAD), np.float32)
    fcb[0, :N_CLASSES] = np.asarray(fc_b, np.float32)

    # 0/1 expansion matrices: EL[j,k]=1 iff high nibble of k == j (wires 0..3),
    #                         ER[j,k]=1 iff low  nibble of k == j (wires 4..7).
    ks = np.arange(DIM)
    el = ((ks[None, :] >> 4) == np.arange(HALF)[:, None]).astype(np.float64)
    er = ((ks[None, :] & (HALF - 1)) == np.arange(HALF)[:, None]).astype(np.float64)

    return (jnp.asarray(el, jnp.bfloat16),
            jnp.asarray(er, jnp.bfloat16),
            jnp.asarray(wcat, jnp.bfloat16),
            jnp.asarray(zcat, jnp.bfloat16),
            jnp.asarray(fcb, jnp.float32))


def _round_up(n, m):
    return ((n + m - 1) // m) * m


def _choose_tile(batch):
    """Batch tile: multiple of 256, <= TB_MAX, and >=2 grid steps when the batch
    is large enough (so both v7x TensorCores get work under 'parallel')."""
    b_ceil = _round_up(max(batch, 1), 256)
    if b_ceil <= 256:
        return 256
    if b_ceil <= 2 * TB_MAX:
        return _round_up(b_ceil // 2, 256)       # exactly 2 tiles
    return TB_MAX


def quantum_ml_forward(x, params):
    """x: (B, n_qubits) or (n_qubits,).  params: output of prepare_params.
    Returns (B, n_classes) float32."""
    el, er, wcat, zcat, fcb = params
    x = jnp.asarray(x, jnp.float32)
    if x.ndim == 1:
        x = x[None, :]
    B = x.shape[0]

    tb = _choose_tile(B)
    # Pad batch to a multiple of the tile (padded rows are angle 0 -> valid
    # normalized state, sliced off at the end).
    b_pad = tb * pl.cdiv(B, tb)
    if b_pad != B:
        x = jnp.pad(x, ((0, b_pad - B), (0, 0)))

    out = pl.pallas_call(
        quantum_forward_kernel,
        out_shape=jax.ShapeDtypeStruct((b_pad, OUT_PAD), jnp.float32),
        grid=(b_pad // tb,),
        in_specs=[
            pl.BlockSpec((tb, N_QUBITS), lambda i: (i, 0)),        # x: batch-tiled
            pl.BlockSpec((HALF, DIM), lambda i: (0, 0)),           # EL: resident
            pl.BlockSpec((HALF, DIM), lambda i: (0, 0)),           # ER: resident
            pl.BlockSpec((DIM, 2 * DIM), lambda i: (0, 0)),        # folded unitary: resident
            pl.BlockSpec((2 * DIM, OUT_PAD), lambda i: (0, 0)),    # folded Z/FC head
            pl.BlockSpec((1, OUT_PAD), lambda i: (0, 0)),          # padded bias
        ],
        out_specs=pl.BlockSpec((tb, OUT_PAD), lambda i: (i, 0)),   # lane-dense output
        compiler_params=pltpu.CompilerParams(
            dimension_semantics=("parallel",),
            vmem_limit_bytes=32 * 1024 * 1024),
    )(x, el, er, wcat, zcat, fcb)
    return out[:B, :N_CLASSES]


# ----------------------------------------------------------------------------
# Pure NumPy reference (full-precision complex statevector) for correctness check
# ----------------------------------------------------------------------------
def reference_forward(x_np, circuit_unitary, fc_w, fc_b):
    B = x_np.shape[0]
    half = x_np.astype(np.float64) * 0.5
    psi = np.ones((B, 1), dtype=np.complex128)
    for q in range(N_QUBITS):
        amp = np.stack([np.cos(half[:, q]), -1j * np.sin(half[:, q])], axis=1)
        psi = (psi[:, :, None] * amp[:, None, :]).reshape(B, -1)
    phi = psi @ circuit_unitary.T
    probs = np.abs(phi) ** 2
    expvals = probs @ make_z_table()
    return expvals @ np.asarray(fc_w, np.float64) + np.asarray(fc_b, np.float64)


if __name__ == "__main__":
    key = jax.random.PRNGKey(0)
    k_w, k_fcw, k_fcb, k_x, k_x2 = jax.random.split(key, 5)

    # Deterministic "parameters" (shapes match the torch module's __init__).
    weights = jax.random.normal(k_w, (N_LAYERS, N_QUBITS, 4), jnp.float32)  # [...,3] unused
    bound = 1.0 / np.sqrt(N_QUBITS)
    fc_w = jax.random.uniform(k_fcw, (N_QUBITS, N_CLASSES), jnp.float32, -bound, bound)
    fc_b = jax.random.uniform(k_fcb, (N_CLASSES,), jnp.float32, -bound, bound)

    # Fold everything input-independent once, host-side.
    U = build_variational_unitary(np.asarray(weights, np.float64))
    params = prepare_params(U, np.asarray(fc_w), np.asarray(fc_b))

    # Primary small example (batch=2) plus a multi-tile batch (padding + 2 grid steps).
    x_small = jax.random.normal(k_x, (2, N_QUBITS), jnp.float32)
    x_big = jax.random.normal(k_x2, (384, N_QUBITS), jnp.float32)

    out_small = jax.block_until_ready(quantum_ml_forward(x_small, params))
    out_big = jax.block_until_ready(quantum_ml_forward(x_big, params))

    ref_small = reference_forward(np.asarray(x_small, np.float64), U,
                                  np.asarray(fc_w), np.asarray(fc_b))
    ref_big = reference_forward(np.asarray(x_big, np.float64), U,
                                np.asarray(fc_w), np.asarray(fc_b))

    assert out_small.shape == (2, N_CLASSES)
    assert out_big.shape == (384, N_CLASSES)
    assert np.all(np.isfinite(np.asarray(out_small)))
    assert np.all(np.isfinite(np.asarray(out_big)))
    # Folded unitary / probs / head run in bf16 on the MXU with f32 accumulation;
    # observed error vs the complex128 reference is ~1e-3..1e-2 (intentional trade-off).
    assert np.allclose(np.asarray(out_small, np.float64), ref_small, atol=5e-2, rtol=5e-2), (
        f"mismatch: pallas={np.asarray(out_small)} ref={ref_small}")
    assert np.allclose(np.asarray(out_big, np.float64), ref_big, atol=5e-2, rtol=5e-2)

    # TODO(synk): logging / try-except error handling from the torch module is not
    # reproduced; the PennyLane device itself is replaced by exact statevector math.
    print("KERNEL_OK")
</pallas_src>

<mosaic_0001>
module attributes {stable_mosaic.version = 11 : i64} {
  func.func @quantum_forward_kernel(%arg0: i32, %arg1: memref<256x8xf32, #tpu.memory_space<vmem>>, %arg2: memref<16x256xbf16, #tpu.memory_space<vmem>>, %arg3: memref<16x256xbf16, #tpu.memory_space<vmem>>, %arg4: memref<256x512xbf16, #tpu.memory_space<vmem>>, %arg5: memref<512x128xbf16, #tpu.memory_space<vmem>>, %arg6: memref<1x128xf32, #tpu.memory_space<vmem>>, %arg7: memref<256x128xf32, #tpu.memory_space<vmem>>) attributes {dimension_semantics = [#tpu.dimension_semantics<parallel>], iteration_bounds = array<i64: 1>, scalar_prefetch = 0 : i64, scratch_operands = 0 : i64, tpu.core_type = #tpu.core_type<tc>, window_params = [{transform_indices = @transform_0, window_bounds = array<i64: 256, 8>}, {pipeline_mode = #tpu.pipeline_mode<synchronous>, transform_indices = @transform_1, window_bounds = array<i64: 16, 256>}, {pipeline_mode = #tpu.pipeline_mode<synchronous>, transform_indices = @transform_2, window_bounds = array<i64: 16, 256>}, {pipeline_mode = #tpu.pipeline_mode<synchronous>, transform_indices = @transform_3, window_bounds = array<i64: 256, 512>}, {pipeline_mode = #tpu.pipeline_mode<synchronous>, transform_indices = @transform_4, window_bounds = array<i64: 512, 128>}, {pipeline_mode = #tpu.pipeline_mode<synchronous>, transform_indices = @transform_5, window_bounds = array<i64: 1, 128>}, {transform_indices = @transform_6, window_bounds = array<i64: 256, 128>}]} {
    %c0 = arith.constant 0 : index
    %c0_0 = arith.constant 0 : index
    %0 = vector.load %arg1[%c0, %c0_0] : memref<256x8xf32, #tpu.memory_space<vmem>>, vector<256x8xf32>
    %cst = arith.constant 5.000000e-01 : f32
    %1 = vector.broadcast %cst : f32 to vector<256x8xf32>
    %2 = arith.mulf %0, %1 : vector<256x8xf32>
    %3 = math.cos %2 : vector<256x8xf32>
    %4 = math.sin %2 : vector<256x8xf32>
    %5 = tpu.iota {dimensions = array<i32: 1>} : vector<1x16xi32>
    %c3_i32 = arith.constant 3 : i32
    %6 = vector.broadcast %c3_i32 : i32 to vector<1x16xi32>
    %7 = arith.shrsi %5, %6 : vector<1x16xi32>
    %c1_i32 = arith.constant 1 : i32
    %8 = vector.broadcast %c1_i32 : i32 to vector<1x16xi32>
    %9 = arith.andi %7, %8 : vector<1x16xi32>
    %c1_i32_1 = arith.constant 1 : i32
    %10 = vector.broadcast %c1_i32_1 : i32 to vector<1x16xi32>
    %11 = arith.cmpi eq, %9, %10 : vector<1x16xi32>
    %12 = vector.extract_strided_slice %4 {offsets = [0, 0], sizes = [256, 1], strides = [1, 1]} : vector<256x8xf32> to vector<256x1xf32>
    %13 = vector.extract_strided_slice %3 {offsets = [0, 0], sizes = [256, 1], strides = [1, 1]} : vector<256x8xf32> to vector<256x1xf32>
    %14 = vector.shape_cast %11 : vector<1x16xi1> to vector<1x16xi1>
    %15 = vector.broadcast %14 : vector<1x16xi1> to vector<256x16xi1>
    %16 = vector.shape_cast %12 : vector<256x1xf32> to vector<256x1xf32>
    %17 = vector.broadcast %16 : vector<256x1xf32> to vector<256x16xf32>
    %18 = vector.shape_cast %13 : vector<256x1xf32> to vector<256x1xf32>
    %19 = vector.broadcast %18 : vector<256x1xf32> to vector<256x16xf32>
    %20 = arith.select %15, %17, %19 : vector<256x16xi1>, vector<256x16xf32>
    %c2_i32 = arith.constant 2 : i32
    %21 = vector.broadcast %c2_i32 : i32 to vector<1x16xi32>
    %22 = arith.shrsi %5, %21 : vector<1x16xi32>
    %c1_i32_2 = arith.constant 1 : i32
    %23 = vector.broadcast %c1_i32_2 : i32 to vector<1x16xi32>
    %24 = arith.andi %22, %23 : vector<1x16xi32>
    %c1_i32_3 = arith.constant 1 : i32
    %25 = vector.broadcast %c1_i32_3 : i32 to vector<1x16xi32>
    %26 = arith.cmpi eq, %24, %25 : vector<1x16xi32>
    %27 = vector.extract_strided_slice %4 {offsets = [0, 1], sizes = [256, 1], strides = [1, 1]} : vector<256x8xf32> to vector<256x1xf32>
    %28 = vector.extract_strided_slice %3 {offsets = [0, 1], sizes = [256, 1], strides = [1, 1]} : vector<256x8xf32> to vector<256x1xf32>
    %29 = vector.shape_cast %26 : vector<1x16xi1> to vector<1x16xi1>
    %30 = vector.broadcast %29 : vector<1x16xi1> to vector<256x16xi1>
    %31 = vector.shape_cast %27 : vector<256x1xf32> to vector<256x1xf32>
    %32 = vector.broadcast %31 : vector<256x1xf32> to vector<256x16xf32>
    %33 = vector.shape_cast %28 : vector<256x1xf32> to vector<256x1xf32>
    %34 = vector.broadcast %33 : vector<256x1xf32> to vector<256x16xf32>
    %35 = arith.select %30, %32, %34 : vector<256x16xi1>, vector<256x16xf32>
    %36 = arith.mulf %20, %35 : vector<256x16xf32>
    %c1_i32_4 = arith.constant 1 : i32
    %37 = vector.broadcast %c1_i32_4 : i32 to vector<1x16xi32>
    %38 = arith.shrsi %5, %37 : vector<1x16xi32>
    %c1_i32_5 = arith.constant 1 : i32
    %39 = vector.broadcast %c1_i32_5 : i32 to vector<1x16xi32>
    %40 = arith.andi %38, %39 : vector<1x16xi32>
    %c1_i32_6 = arith.constant 1 : i32
    %41 = vector.broadcast %c1_i32_6 : i32 to vector<1x16xi32>
    %42 = arith.cmpi eq, %40, %41 : vector<1x16xi32>
    %43 = vector.extract_strided_slice %4 {offsets = [0, 2], sizes = [256, 1], strides = [1, 1]} : vector<256x8xf32> to vector<256x1xf32>
    %44 = vector.extract_strided_slice %3 {offsets = [0, 2], sizes = [256, 1], strides = [1, 1]} : vector<256x8xf32> to vector<256x1xf32>
    %45 = vector.shape_cast %42 : vector<1x16xi1> to vector<1x16xi1>
    %46 = vector.broadcast %45 : vector<1x16xi1> to vector<256x16xi1>
    %47 = vector.shape_cast %43 : vector<256x1xf32> to vector<256x1xf32>
    %48 = vector.broadcast %47 : vector<256x1xf32> to vector<256x16xf32>
    %49 = vector.shape_cast %44 : vector<256x1xf32> to vector<256x1xf32>
    %50 = vector.broadcast %49 : vector<256x1xf32> to vector<256x16xf32>
    %51 = arith.select %46, %48, %50 : vector<256x16xi1>, vector<256x16xf32>
    %52 = arith.mulf %36, %51 : vector<256x16xf32>
    %c0_i32 = arith.constant 0 : i32
    %53 = vector.broadcast %c0_i32 : i32 to vector<1x16xi32>
    %54 = arith.shrsi %5, %53 : vector<1x16xi32>
    %c1_i32_7 = arith.constant 1 : i32
    %55 = vector.broadcast %c1_i32_7 : i32 to vector<1x16xi32>
    %56 = arith.andi %54, %55 : vector<1x16xi32>
    %c1_i32_8 = arith.constant 1 : i32
    %57 = vector.broadcast %c1_i32_8 : i32 to vector<1x16xi32>
    %58 = arith.cmpi eq, %56, %57 : vector<1x16xi32>
    %59 = vector.extract_strided_slice %4 {offsets = [0, 3], sizes = [256, 1], strides = [1, 1]} : vector<256x8xf32> to vector<256x1xf32>
    %60 = vector.extract_strided_slice %3 {offsets = [0, 3], sizes = [256, 1], strides = [1, 1]} : vector<256x8xf32> to vector<256x1xf32>
    %61 = vector.shape_cast %58 : vector<1x16xi1> to vector<1x16xi1>
    %62 = vector.broadcast %61 : vector<1x16xi1> to vector<256x16xi1>
    %63 = vector.shape_cast %59 : vector<256x1xf32> to vector<256x1xf32>
    %64 = vector.broadcast %63 : vector<256x1xf32> to vector<256x16xf32>
    %65 = vector.shape_cast %60 : vector<256x1xf32> to vector<256x1xf32>
    %66 = vector.broadcast %65 : vector<256x1xf32> to vector<256x16xf32>
    %67 = arith.select %62, %64, %66 : vector<256x16xi1>, vector<256x16xf32>
    %68 = arith.mulf %52, %67 : vector<256x16xf32>
    %69 = arith.truncf %68 : vector<256x16xf32> to vector<256x16xbf16>
    %c3_i32_9 = arith.constant 3 : i32
    %70 = vector.broadcast %c3_i32_9 : i32 to vector<1x16xi32>
    %71 = arith.shrsi %5, %70 : vector<1x16xi32>
    %c1_i32_10 = arith.constant 1 : i32
    %72 = vector.broadcast %c1_i32_10 : i32 to vector<1x16xi32>
    %73 = arith.andi %71, %72 : vector<1x16xi32>
    %c1_i32_11 = arith.constant 1 : i32
    %74 = vector.broadcast %c1_i32_11 : i32 to vector<1x16xi32>
    %75 = arith.cmpi eq, %73, %74 : vector<1x16xi32>
    %76 = vector.extract_strided_slice %4 {offsets = [0, 4], sizes = [256, 1], strides = [1, 1]} : vector<256x8xf32> to vector<256x1xf32>
    %77 = vector.extract_strided_slice %3 {offsets = [0, 4], sizes = [256, 1], strides = [1, 1]} : vector<256x8xf32> to vector<256x1xf32>
    %78 = vector.shape_cast %75 : vector<1x16xi1> to vector<1x16xi1>
    %79 = vector.broadcast %78 : vector<1x16xi1> to vector<256x16xi1>
    %80 = vector.shape_cast %76 : vector<256x1xf32> to vector<256x1xf32>
    %81 = vector.broadcast %80 : vector<256x1xf32> to vector<256x16xf32>
    %82 = vector.shape_cast %77 : vector<256x1xf32> to vector<256x1xf32>
    %83 = vector.broadcast %82 : vector<256x1xf32> to vector<256x16xf32>
    %84 = arith.select %79, %81, %83 : vector<256x16xi1>, vector<256x16xf32>
    %c2_i32_12 = arith.constant 2 : i32
    %85 = vector.broadcast %c2_i32_12 : i32 to vector<1x16xi32>
    %86 = arith.shrsi %5, %85 : vector<1x16xi32>
    %c1_i32_13 = arith.constant 1 : i32
    %87 = vector.broadcast %c1_i32_13 : i32 to vector<1x16xi32>
    %88 = arith.andi %86, %87 : vector<1x16xi32>
    %c1_i32_14 = arith.constant 1 : i32
    %89 = vector.broadcast %c1_i32_14 : i32 to vector<1x16xi32>
    %90 = arith.cmpi eq, %88, %89 : vector<1x16xi32>
    %91 = vector.extract_strided_slice %4 {offsets = [0, 5], sizes = [256, 1], strides = [1, 1]} : vector<256x8xf32> to vector<256x1xf32>
    %92 = vector.extract_strided_slice %3 {offsets = [0, 5], sizes = [256, 1], strides = [1, 1]} : vector<256x8xf32> to vector<256x1xf32>
    %93 = vector.shape_cast %90 : vector<1x16xi1> to vector<1x16xi1>
    %94 = vector.broadcast %93 : vector<1x16xi1> to vector<256x16xi1>
    %95 = vector.shape_cast %91 : vector<256x1xf32> to vector<256x1xf32>
    %96 = vector.broadcast %95 : vector<256x1xf32> to vector<256x16xf32>
    %97 = vector.shape_cast %92 : vector<256x1xf32> to vector<256x1xf32>
    %98 = vector.broadcast %97 : vector<256x1xf32> to vector<256x16xf32>
    %99 = arith.select %94, %96, %98 : vector<256x16xi1>, vector<256x16xf32>
    %100 = arith.mulf %84, %99 : vector<256x16xf32>
    %c1_i32_15 = arith.constant 1 : i32
    %101 = vector.broadcast %c1_i32_15 : i32 to vector<1x16xi32>
    %102 = arith.shrsi %5, %101 : vector<1x16xi32>
    %c1_i32_16 = arith.constant 1 : i32
    %103 = vector.broadcast %c1_i32_16 : i32 to vector<1x16xi32>
    %104 = arith.andi %102, %103 : vector<1x16xi32>
    %c1_i32_17 = arith.constant 1 : i32
    %105 = vector.broadcast %c1_i32_17 : i32 to vector<1x16xi32>
    %106 = arith.cmpi eq, %104, %105 : vector<1x16xi32>
    %107 = vector.extract_strided_slice %4 {offsets = [0, 6], sizes = [256, 1], strides = [1, 1]} : vector<256x8xf32> to vector<256x1xf32>
    %108 = vector.extract_strided_slice %3 {offsets = [0, 6], sizes = [256, 1], strides = [1, 1]} : vector<256x8xf32> to vector<256x1xf32>
    %109 = vector.shape_cast %106 : vector<1x16xi1> to vector<1x16xi1>
    %110 = vector.broadcast %109 : vector<1x16xi1> to vector<256x16xi1>
    %111 = vector.shape_cast %107 : vector<256x1xf32> to vector<256x1xf32>
    %112 = vector.broadcast %111 : vector<256x1xf32> to vector<256x16xf32>
    %113 = vector.shape_cast %108 : vector<256x1xf32> to vector<256x1xf32>
    %114 = vector.broadcast %113 : vector<256x1xf32> to vector<256x16xf32>
    %115 = arith.select %110, %112, %114 : vector<256x16xi1>, vector<256x16xf32>
    %116 = arith.mulf %100, %115 : vector<256x16xf32>
    %c0_i32_18 = arith.constant 0 : i32
    %117 = vector.broadcast %c0_i32_18 : i32 to vector<1x16xi32>
    %118 = arith.shrsi %5, %117 : vector<1x16xi32>
    %c1_i32_19 = arith.constant 1 : i32
    %119 = vector.broadcast %c1_i32_19 : i32 to vector<1x16xi32>
    %120 = arith.andi %118, %119 : vector<1x16xi32>
    %c1_i32_20 = arith.constant 1 : i32
    %121 = vector.broadcast %c1_i32_20 : i32 to vector<1x16xi32>
    %122 = arith.cmpi eq, %120, %121 : vector<1x16xi32>
    %123 = vector.extract_strided_slice %4 {offsets = [0, 7], sizes = [256, 1], strides = [1, 1]} : vector<256x8xf32> to vector<256x1xf32>
    %124 = vector.extract_strided_slice %3 {offsets = [0, 7], sizes = [256, 1], strides = [1, 1]} : vector<256x8xf32> to vector<256x1xf32>
    %125 = vector.shape_cast %122 : vector<1x16xi1> to vector<1x16xi1>
    %126 = vector.broadcast %125 : vector<1x16xi1> to vector<256x16xi1>
    %127 = vector.shape_cast %123 : vector<256x1xf32> to vector<256x1xf32>
    %128 = vector.broadcast %127 : vector<256x1xf32> to vector<256x16xf32>
    %129 = vector.shape_cast %124 : vector<256x1xf32> to vector<256x1xf32>
    %130 = vector.broadcast %129 : vector<256x1xf32> to vector<256x16xf32>
    %131 = arith.select %126, %128, %130 : vector<256x16xi1>, vector<256x16xf32>
    %132 = arith.mulf %116, %131 : vector<256x16xf32>
    %133 = arith.truncf %132 : vector<256x16xf32> to vector<256x16xbf16>
    %c0_21 = arith.constant 0 : index
    %c0_22 = arith.constant 0 : index
    %134 = vector.load %arg2[%c0_21, %c0_22] : memref<16x256xbf16, #tpu.memory_space<vmem>>, vector<16x256xbf16>
    %cst_23 = arith.constant dense<0.000000e+00> : vector<256x256xf32>
    %135 = tpu.matmul %69, %134, %cst_23 {dimension_numbers = #tpu.dot_dimension_numbers<[1], [0], [0], [1], [0, 0, 1, 1], [], []>} : vector<256x16xbf16>, vector<16x256xbf16>, vector<256x256xf32> -> vector<256x256xf32>
    %c0_24 = arith.constant 0 : index
    %c0_25 = arith.constant 0 : index
    %136 = vector.load %arg3[%c0_24, %c0_25] : memref<16x256xbf16, #tpu.memory_space<vmem>>, vector<16x256xbf16>
    %cst_26 = arith.constant dense<0.000000e+00> : vector<256x256xf32>
    %137 = tpu.matmul %133, %136, %cst_26 {dimension_numbers = #tpu.dot_dimension_numbers<[1], [0], [0], [1], [0, 0, 1, 1], [], []>} : vector<256x16xbf16>, vector<16x256xbf16>, vector<256x256xf32> -> vector<256x256xf32>
    %138 = arith.mulf %135, %137 : vector<256x256xf32>
    %139 = arith.truncf %138 : vector<256x256xf32> to vector<256x256xbf16>
    %c0_27 = arith.constant 0 : index
    %c0_28 = arith.constant 0 : index
    %140 = vector.load %arg4[%c0_27, %c0_28] : memref<256x512xbf16, #tpu.memory_space<vmem>>, vector<256x512xbf16>
    %cst_29 = arith.constant dense<0.000000e+00> : vector<256x512xf32>
    %141 = tpu.matmul %139, %140, %cst_29 {dimension_numbers = #tpu.dot_dimension_numbers<[1], [0], [0], [1], [0, 0, 1, 1], [], []>} : vector<256x256xbf16>, vector<256x512xbf16>, vector<256x512xf32> -> vector<256x512xf32>
    %142 = arith.mulf %141, %141 : vector<256x512xf32>
    %143 = arith.truncf %142 : vector<256x512xf32> to vector<256x512xbf16>
    %c0_30 = arith.constant 0 : index
    %c0_31 = arith.constant 0 : index
    %144 = vector.load %arg5[%c0_30, %c0_31] : memref<512x128xbf16, #tpu.memory_space<vmem>>, vector<512x128xbf16>
    %cst_32 = arith.constant dense<0.000000e+00> : vector<256x128xf32>
    %145 = tpu.matmul %143, %144, %cst_32 {dimension_numbers = #tpu.dot_dimension_numbers<[1], [0], [0], [1], [0, 0, 1, 1], [], []>} : vector<256x512xbf16>, vector<512x128xbf16>, vector<256x128xf32> -> vector<256x128xf32>
    %c0_33 = arith.constant 0 : index
    %c0_34 = arith.constant 0 : index
    %146 = vector.load %arg6[%c0_33, %c0_34] : memref<1x128xf32, #tpu.memory_space<vmem>>, vector<1x128xf32>
    %147 = vector.broadcast %146 : vector<1x128xf32> to vector<256x128xf32>
    %148 = arith.addf %145, %147 : vector<256x128xf32>
    %c0_35 = arith.constant 0 : index
    %c0_36 = arith.constant 0 : index
    %149 = vector.load %arg7[%c0_35, %c0_36] : memref<256x128xf32, #tpu.memory_space<vmem>>, vector<256x128xf32>
    tpu.vector_store %arg7[%c0_35, %c0_36], %148 {strides = array<i32>} : memref<256x128xf32, #tpu.memory_space<vmem>>, vector<256x128xf32>,
    return
  }
  func.func @transform_0(%arg0: i32) -> (i32, i32) {
    %c0_i32 = arith.constant 0 : i32
    %c0_i32_0 = arith.constant 0 : i32
    return %arg0, %c0_i32 : i32, i32
  }
  func.func @transform_1(%arg0: i32) -> (i32, i32) {
    %c0_i32 = arith.constant 0 : i32
    %c0_i32_0 = arith.constant 0 : i32
    %c0_i32_1 = arith.constant 0 : i32
    return %c0_i32, %c0_i32_0 : i32, i32
  }
  func.func @transform_2(%arg0: i32) -> (i32, i32) {
    %c0_i32 = arith.constant 0 : i32
    %c0_i32_0 = arith.constant 0 : i32
    %c0_i32_1 = arith.constant 0 : i32
    return %c0_i32, %c0_i32_0 : i32, i32
  }
  func.func @transform_3(%arg0: i32) -> (i32, i32) {
    %c0_i32 = arith.constant 0 : i32
    %c0_i32_0 = arith.constant 0 : i32
    %c0_i32_1 = arith.constant 0 : i32
    return %c0_i32, %c0_i32_0 : i32, i32
  }
  func.func @transform_4(%arg0: i32) -> (i32, i32) {
    %c0_i32 = arith.constant 0 : i32
    %c0_i32_0 = arith.constant 0 : i32
    %c0_i32_1 = arith.constant 0 : i32
    return %c0_i32, %c0_i32_0 : i32, i32
  }
  func.func @transform_5(%arg0: i32) -> (i32, i32) {
    %c0_i32 = arith.constant 0 : i32
    %c0_i32_0 = arith.constant 0 : i32
    %c0_i32_1 = arith.constant 0 : i32
    return %c0_i32, %c0_i32_0 : i32, i32
  }
  func.func @transform_6(%arg0: i32) -> (i32, i32) {
    %c0_i32 = arith.constant 0 : i32
    %c0_i32_0 = arith.constant 0 : i32
    return %arg0, %c0_i32 : i32, i32
  }
}

</mosaic_0001>

<bundles_post_ra>
// kernel: tpu_custom_call.1
= control target key start
LH: loop header
LB: loop body
LE: loop exit
PB: predicated region body
PF: predicated region fallthrough
CT: control target
= control target key end

     0   :  { %11 = vsyncpa [#allocation3], 0  ;;  %s19407_s0 = inlined_call_operand.vmem [shape: f32[256,8], index: 0, kind: input, shape index: {}]   ;;  %s19408_s1 = inlined_call_operand.vmem [shape: bf16[16,256], index: 1, kind: input, shape index: {}]   ;;  %s19409_s2 = inlined_call_operand.hbm [shape: bf16[16,256], index: 2, kind: input, shape index: {}]   ;;  %s19410_s3 = inlined_call_operand.hbm [shape: bf16[256,512], index: 3, kind: input, shape index: {}]   ;;  %s19411_s4 = inlined_call_operand.vmem [shape: bf16[512,128], index: 4, kind: input, shape index: {}]   ;;  %s19412_s5 = inlined_call_operand.vmem [shape: f32[1,128], index: 5, kind: input, shape index: {}]   ;;  %s19413_s6 = inlined_call_operand.hbm [shape: f32[256,128], index: 6, kind: output, shape index: {}]  }
   0x1   :  { %12 = vsyncpa [#allocation6], 0 }
   0x2   :  { %13 = vsyncpa [#allocation4], 0  ;;  %s12723_s21 = smov [#allocation2]   ;;  %s12651_s25 = scalar_lea.hbm %s19409_s2, 256 }
   0x3   :  { %s23_s22 = sshll.u32 %s12723_s21, 4  ;;  %p12652_p0 = scmp.ne.s32.totalorder %s19409_s2, %s12651_s25  ;;  %s24_s22 = int_to_ptr.vmem [resolvable:$true] %s23_s22 }
   0x4   :  { %p12655_p1 = scmp.lt.u32.totalorder %s12651_s25, %s19409_s2 }
   0x6   :  { %p12657_p2 = pnand %p12655_p1, %p12652_p0 }
   0x8   :  { %12660 = shalt.err (!%p12657_p2)
}
   0x9   :  { %s12661_s30 = scalar_lea.vmem %s24_s22, 256  ;;  %p12666_p4 = scmp.lt.s32.totalorder %s24_s22, %s24_s22 }
   0xa   :  { %p12662_p3 = scmp.ne.s32.totalorder %s24_s22, %s12661_s30  ;;  %p12667_p5 = scmp.lt.s32.totalorder %s12661_s30, %s12661_s30 }
   0xc   :  { %p12668_p6 = por %p12667_p5, %p12666_p4 }
   0xe   :  { %p12669_p7 = pnand %p12668_p6, %p12662_p3 }
  0x10   :  { %12672 = shalt.err (!%p12669_p7)
}
  0x11   :  { %s12724_s7 = smov 128   ;;  %s12725_s8 = smov 8  }
  0x12   :  { %29 = dma.hbm_to_vmem [thread:$0]  %s19409_s2, 256, %s24_s22, [#allocation3], %s12724_s7, %s12724_s7, %s12725_s8  }
  0x13   :  { %s12726_s11 = smov [#allocation5]   ;;  %s12673_s15 = scalar_lea.hbm %s19410_s3, 8192 }
  0x14   :  { %s35_s12 = sshll.u32 %s12726_s11, 4  ;;  %p12674_p8 = scmp.ne.s32.totalorder %s19410_s3, %s12673_s15  ;;  %s36_s12 = int_to_ptr.vmem [resolvable:$true] %s35_s12 }
  0x15   :  { %p12677_p9 = scmp.lt.u32.totalorder %s12673_s15, %s19410_s3 }
  0x17   :  { %p12679_p10 = pnand %p12677_p9, %p12674_p8 }
  0x19   :  { %12682 = shalt.err (!%p12679_p10)
}
  0x1a   :  { %s12683_s20 = scalar_lea.vmem %s36_s12, 8192  ;;  %p12688_p12 = scmp.lt.s32.totalorder %s36_s12, %s36_s12 }
  0x1b   :  { %p12684_p11 = scmp.ne.s32.totalorder %s36_s12, %s12683_s20  ;;  %p12689_p13 = scmp.lt.s32.totalorder %s12683_s20, %s12683_s20 }
  0x1d   :  { %p12690_p0 = por %p12689_p13, %p12688_p12 }
  0x1f   :  { %p12691_p1 = pnand %p12690_p0, %p12684_p11 }
  0x21   :  { %12694 = shalt.err (!%p12691_p1)
}
  0x22   :  { %s12727_s2 = smov 256   ;;  %s12728_s21 = smov 16  }
  0x23   :  { %41 = dma.hbm_to_vmem [thread:$0]  %s19410_s3, 8192, %s36_s12, [#allocation6], %s12727_s2, %s12727_s2, %s12728_s21  }
  0x24   :  { %12717 = dma.done.wait [#allocation3], 256  }
  0x25   :  { %12718 = vsyncadd [#allocation3], 4294967040 }
  0x26   :  { %12719 = dma.done.wait [#allocation6], 8192  }
  0x27   :  { %12720 = vsyncadd [#allocation6], 4294959104  ;;  %v19414_v0 = vmov 0   ;;  %v55_v1 = vld [vmem:[%s19407_s0 + $0x10] sm:$0xff]  ;;  %v53_v2 = vld [vmem:[%s19407_s0] sm:$0xff] }
  0x28   :  { %12317 = vset.pattern.permute.xlu1 %v19414_v0  ;;  %12316 = vset.pattern.permute.xlu0 %v19414_v0  ;;  %v56_v3 = vld [vmem:[%s19407_s0 + $0x18] sm:$0xff]  ;;  %v12819_v4 = vmul.f32 0.5, %v55_v1  ;;  %v12821_v5 = vmul.f32 0.5, %v53_v2  ;;  %v54_v13 = vld [vmem:[%s19407_s0 + $0x8] sm:$0xff]  ;;  %v19441_v41 = vmov 683565275  }
  0x29   :  { %9447 = vmatprep.mubr.bf16.mxu0 %v19414_v0  ;;  %9700 = vmatprep.mubr.bf16.mxu1 %v19414_v0  ;;  %v12823_v6 = vmul.f32 0.5, %v56_v3  ;;  %v12838_v22 = vmul.f32 0.5, %v54_v13  ;;  %v19436_v43 = vmov 2475754826   ;;  %v19425_v45 = vmov 2131351028  }
  0x2a   :  { %19824 = vst [vmem:[#allocation11_spill] sm:$0xff] %v12819_v4  ;;  %19825 = vst [vmem:[#allocation12_spill] sm:$0xff] %v12821_v5  ;;  %v323_v7 = vand.u32 2147483647, %v12819_v4  ;;  %v326_v8 = vand.u32 2139095040, %v12819_v4  ;;  %v120_v10 = vand.u32 2139095040, %v12821_v5 }
  0x2b   :  { %v117_v9 = vand.u32 2147483647, %v12821_v5  ;;  %v429_v16 = vand.u32 2139095040, %v12823_v6  ;;  %v426_v18 = vand.u32 2147483647, %v12823_v6  ;;  %v223_v31 = vand.u32 2139095040, %v12838_v22 }
  0x2c   :  { %v327_v11 = vshrl.u32 %v326_v8, 23  ;;  %v330_v12 = vand.u32 8388607, %v323_v7  ;;  %v121_v14 = vshrl.u32 %v120_v10, 23  ;;  %v220_v28 = vand.u32 2147483647, %v12838_v22 }
  0x2d   :  { %v124_v15 = vand.u32 8388607, %v117_v9  ;;  %v430_v21 = vshrl.u32 %v429_v16, 23  ;;  %v12842_v27 = vand.u32 8388607, %v426_v18  ;;  %v12860_v51 = vshrl.u32 %v223_v31, 23 }
  0x2e   :  { %v11562_v17 = vadd.s32 4294967169, %v327_v11  ;;  %v331_v19 = vor.u32 8388608, %v330_v12  ;;  %v11554_v20 = vadd.s32 4294967169, %v121_v14  ;;  %v19430_v47 = vmov 2102212464  }
  0x2f   :  { %v125_v24 = vor.u32 8388608, %v124_v15  ;;  %v11566_v26 = vadd.s32 4294967169, %v430_v21  ;;  %v434_v38 = vor.u32 8388608, %v12842_v27  ;;  %v19434_v49 = vmov 920167782  }
  0x30   :  { %v333_v23 = vadd.s32 1, %v11562_v17  ;;  %v127_v25 = vadd.s32 1, %v11554_v20  ;;  %v12845_v30 = vshll.u32 %v331_v19, 8  ;;  %v19432_v57 = vmov 1326507024  }
  0x31   :  { %v12848_v35 = vshll.u32 %v125_v24, 8  ;;  %v12853_v39 = vadd.s32 1, %v11566_v26  ;;  %vm325_vm12 = vcmp.lt.s32.totalorder %v12819_v4, 0  ;;  %vm12956_vm13 = vcmp.le.f32.partialorder %v323_v7, 0.7853982 }
  0x32   :  { %vm334_vm0 = vcmp.gt.s32.totalorder %v333_v23, 0  ;;  %vm128_vm1 = vcmp.gt.s32.totalorder %v127_v25, 0 }
  0x33   :  { %v335_v29 = vsel %vm334_vm0, %v333_v23, 0  ;;  %v129_v34 = vsel %vm128_vm1, %v127_v25, 0  ;;  %vm437_vm6 = vcmp.gt.s32.totalorder %v12853_v39, 0 }
  0x34   :  { %v336_v32 = vshrl.u32 %v335_v29, 5  ;;  %v337_v33 = vand.u32 31, %v335_v29  ;;  %v12850_v36 = vshrl.u32 %v129_v34, 5  ;;  %v131_v37 = vand.u32 31, %v129_v34 }
  0x36   :  { %v338_v40 = vsub.s32 32, %v337_v33  ;;  %v340_v42 = vshll.u32 %v19441_v41, %v337_v33  ;;  %v343_v44 = vshll.u32 %v19436_v43, %v337_v33  ;;  %v346_v46 = vshll.u32 %v19425_v45, %v337_v33 }
  0x37   :  { %v349_v48 = vshll.u32 %v19430_v47, %v337_v33  ;;  %v352_v50 = vshll.u32 %v19434_v49, %v337_v33  ;;  %vm355_vm2 = vcmp.lt.s32.totalorder %v336_v32, 1  ;;  %vm356_vm3 = vcmp.lt.s32.totalorder %v336_v32, 2 }
  0x38   :  { %v339_v52 = vshrl.u32 %v19441_v41, %v338_v40  ;;  %v341_v53 = vshrl.u32 %v19436_v43, %v338_v40  ;;  %v344_v54 = vshrl.u32 %v19425_v45, %v338_v40  ;;  %v347_v55 = vshrl.u32 %v19430_v47, %v338_v40 }
  0x39   :  { %v350_v56 = vshrl.u32 %v19434_v49, %v338_v40  ;;  %v353_v58 = vshrl.u32 %v19432_v57, %v338_v40  ;;  %vm358_vm4 = vcmp.lt.s32.totalorder %v336_v32, 4  ;;  %v132_v62 = vsub.s32 32, %v131_v37 }
  0x3a   :  { %v342_v59 = vor.u32 %v341_v53, %v340_v42  ;;  %v345_v60 = vor.u32 %v344_v54, %v343_v44  ;;  %v348_v61 = vor.u32 %v347_v55, %v346_v46  ;;  %vm357_vm5 = vcmp.lt.s32.totalorder %v336_v32, 3 }
  0x3b   :  { %v351_v63 = vor.u32 %v350_v56, %v349_v48  ;;  %v354_v1 = vor.u32 %v353_v58, %v352_v50  ;;  %v134_v2 = vshll.u32 %v19441_v41, %v131_v37  ;;  %v137_v15 = vshll.u32 %v19436_v43, %v131_v37 }
  0x3c   :  { %v359_v3 = vsel %vm355_vm2, %v339_v52, %v342_v59  ;;  %v360_v8 = vsel %vm358_vm4, %v348_v61, 2102212464  ;;  %v363_v10 = vsel %vm355_vm2, %v342_v59, %v345_v60  ;;  %v367_v11 = vsel %vm355_vm2, %v345_v60, %v348_v61 }
  0x3d   :  { %v361_v12 = vsel %vm357_vm5, %v345_v60, %v360_v8  ;;  %v364_v13 = vsel %vm358_vm4, %v351_v63, 920167782  ;;  %v368_v14 = vsel %vm358_vm4, %v354_v1, 1326507024  ;;  %v133_v19 = vshrl.u32 %v19441_v41, %v132_v62 }
  0x3e   :  { %v365_v16 = vsel %vm357_vm5, %v348_v61, %v364_v13  ;;  %v369_v17 = vsel %vm357_vm5, %v351_v63, %v368_v14  ;;  %v135_v20 = vshrl.u32 %v19436_v43, %v132_v62  ;;  %v362_v21 = vsel %vm356_vm3, %v359_v3, %v361_v12  ;;  %v57_v13 = vld [vmem:[%s19407_s0 + $0x20] sm:$0xff] }
  0x3f   :  { %v366_v23 = vsel %vm356_vm3, %v363_v10, %v365_v16  ;;  %v370_v24 = vsel %vm356_vm3, %v367_v11, %v369_v17  ;;  %v138_v25 = vshrl.u32 %v19425_v45, %v132_v62  ;;  %v140_v42 = vshll.u32 %v19425_v45, %v131_v37 }
  0x40   :  { %v12881_v26 = vmul.u32.u64.low %v12845_v30, %v370_v24  ;;  %v12882_v29 = vmul.u32.u64.high %v12845_v30, %v370_v24, %v12881_v26  ;;  %v12885_v31 = vmul.u32.u64.low %v12845_v30, %v366_v23  ;;  %v12886_v33 = vmul.u32.u64.high %v12845_v30, %v366_v23, %v12885_v31 }
  0x41   :  { %v136_v34 = vor.u32 %v135_v20, %v134_v2  ;;  %v139_v40 = vor.u32 %v138_v25, %v137_v15  ;;  %v141_v44 = vshrl.u32 %v19430_v47, %v132_v62  ;;  %v143_v32 = vshll.u32 %v19430_v47, %v131_v37 }
  0x42   :  { %v144_v46 = vshrl.u32 %v19434_v49, %v132_v62  ;;  %v146_v48 = vshll.u32 %v19434_v49, %v131_v37  ;;  %v147_v50 = vshrl.u32 %v19432_v57, %v132_v62  ;;  %v378_v52 = vmul.u32 %v12845_v30, %v362_v21  ;;  %v58_v30 = vld [vmem:[%s19407_s0 + $0x28] sm:$0xff] }
  0x43   :  { %v142_v53 = vor.u32 %v141_v44, %v140_v42  ;;  %vm149_vm7 = vcmp.lt.s32.totalorder %v12850_v36, 1  ;;  %vm150_vm8 = vcmp.lt.s32.totalorder %v12850_v36, 2  ;;  %vm380_vm9 = vc.u32 %v12882_v29, %v12885_v31 }
  0x44   :  { %v381_v54 = vadd.s32 1, %v12886_v33  ;;  %v145_v55 = vor.u32 %v144_v46, %v143_v32  ;;  %vm151_vm10 = vcmp.lt.s32.totalorder %v12850_v36, 3  ;;  %v148_v56 = vor.u32 %v147_v50, %v146_v48 }
  0x45   :  { %vm152_vm11 = vcmp.lt.s32.totalorder %v12850_v36, 4  ;;  %v153_v37 = vsel %vm149_vm7, %v133_v19, %v136_v34  ;;  %v157_v58 = vsel %vm149_vm7, %v136_v34, %v139_v40  ;;  %v161_v62 = vsel %vm149_vm7, %v139_v40, %v142_v53 }
  0x46   :  { %v382_v59 = vsel %vm380_vm9, %v381_v54, %v12886_v33  ;;  %v154_v60 = vsel %vm152_vm11, %v142_v53, 2102212464  ;;  %v158_v61 = vsel %vm152_vm11, %v145_v55, 920167782  ;;  %v162_v3 = vsel %vm152_vm11, %v148_v56, 1326507024 }
  0x47   :  { %v383_v63 = vadd.s32 %v382_v59, %v378_v52  ;;  %v155_v1 = vsel %vm151_vm10, %v139_v40, %v154_v60  ;;  %v159_v2 = vsel %vm151_vm10, %v142_v53, %v158_v61  ;;  %v163_v11 = vsel %vm151_vm10, %v145_v55, %v162_v3 }
  0x48   :  { %v156_v8 = vsel %vm150_vm8, %v153_v37, %v155_v1  ;;  %v160_v10 = vsel %vm150_vm8, %v157_v58, %v159_v2  ;;  %v438_v12 = vsel %vm437_vm6, %v12853_v39, 0  ;;  %v164_v15 = vsel %vm150_vm8, %v161_v62, %v163_v11 }
  0x49   :  { %v384_v14 = vadd.s32 536870912, %v383_v63  ;;  %v12926_v16 = vmul.u32.u64.low %v12848_v35, %v160_v10  ;;  %v12927_v17 = vmul.u32.u64.high %v12848_v35, %v160_v10, %v12926_v16  ;;  %v12934_v21 = vshrl.u32 %v438_v12, 5 }
  0x4a   :  { %v12931_v19 = vmul.u32.u64.low %v12848_v35, %v164_v15  ;;  %v12932_v20 = vmul.u32.u64.high %v12848_v35, %v164_v15, %v12931_v19  ;;  %v12936_v39 = vmul.f32 0.5, %v58_v30  ;;  %v440_v24 = vand.u32 31, %v438_v12 }
  0x4b   :  { %v385_v23 = vshrl.u32 %v384_v14, 30  ;;  %v12939_v25 = vmul.f32 0.5, %v57_v13  ;;  %v172_v36 = vmul.u32 %v12848_v35, %v156_v8  ;;  %v12944_v26 = vshll.u32 %v434_v38, 8 }
  0x4c   :  { %19826 = vst [vmem:[#allocation13_spill] sm:$0xff] %v12936_v39  ;;  %v12947_v33 = vadd.s32 4294967169, %v12860_v51  ;;  %v12951_v34 = vand.u32 8388607, %v220_v28  ;;  %v175_v44 = vadd.s32 1, %v12927_v17  ;;  %v441_v32 = vsub.s32 32, %v440_v24 }
  0x4d   :  { %19827 = vst [vmem:[#allocation14_spill] sm:$0xff] %v12939_v25  ;;  %v386_v40 = vshll.u32 %v385_v23, 30  ;;  %v409_v42 = vsub.s32 4, %v385_v23  ;;  %vm174_vm14 = vc.u32 %v12932_v20, %v12926_v16  ;;  %vm458_vm15 = vcmp.lt.s32.totalorder %v12934_v21, 1 }
  0x4e   :  { %v176_v38 = vsel %vm174_vm14, %v175_v44, %v12927_v17  ;;  %v443_v46 = vshll.u32 %v19441_v41, %v440_v24  ;;  %v444_v48 = vshrl.u32 %v19436_v43, %v441_v32  ;;  %v446_v50 = vshll.u32 %v19436_v43, %v440_v24 }
  0x4f   :  { %v387_v27 = vsub.s32 %v383_v63, %v386_v40  ;;  %v177_v51 = vadd.s32 %v176_v38, %v172_v36  ;;  %v447_v7 = vshrl.u32 %v19425_v45, %v441_v32  ;;  %v449_v53 = vshll.u32 %v19425_v45, %v440_v24 }
  0x50   :  { %v450_v54 = vshrl.u32 %v19430_v47, %v441_v32  ;;  %v452_v56 = vshll.u32 %v19430_v47, %v440_v24  ;;  %vm459_vm0 = vcmp.lt.s32.totalorder %v12934_v21, 2  ;;  %v410_v58 = vsel %vm325_vm12, %v409_v42, %v385_v23 }
  0x51   :  { %v389_v52 = vsub.s32 0, %v387_v27  ;;  %v178_v55 = vadd.s32 536870912, %v177_v51  ;;  %v453_v30 = vshrl.u32 %v19434_v49, %v441_v32  ;;  %vm461_vm1 = vcmp.lt.s32.totalorder %v12934_v21, 4 }
  0x52   :  { %v442_v60 = vshrl.u32 %v19441_v41, %v441_v32  ;;  %v455_v61 = vshll.u32 %v19434_v49, %v440_v24  ;;  %v456_v62 = vshrl.u32 %v19432_v57, %v441_v32  ;;  %v445_v1 = vor.u32 %v444_v48, %v443_v46 }
  0x53   :  { %v11563_v37 = vmin.u32 %v389_v52, %v387_v27  ;;  %v12976_v59 = vshrl.u32 %v178_v55, 30  ;;  %v448_v2 = vor.u32 %v447_v7, %v446_v50  ;;  %v451_v3 = vor.u32 %v450_v54, %v449_v53 }
  0x54   :  { %v454_v10 = vor.u32 %v453_v30, %v452_v56  ;;  %vm460_vm2 = vcmp.lt.s32.totalorder %v12934_v21, 3  ;;  %v12985_v12 = vsel %vm12956_vm13, 0, %v410_v58  ;;  %v457_v13 = vor.u32 %v456_v62, %v455_v61 }
  0x55   :  { %v391_v63 = vclz %v11563_v37  ;;  %v180_v8 = vshll.u32 %v12976_v59, 30  ;;  %v463_v14 = vsel %vm461_vm1, %v451_v3, 2102212464  ;;  %v379_v15 = vadd.s32 %v12885_v31, %v12882_v29 }
  0x56   :  { %v467_v19 = vsel %vm461_vm1, %v454_v10, 920167782  ;;  %v462_v23 = vsel %vm458_vm15, %v442_v60, %v445_v1  ;;  %v466_v24 = vsel %vm458_vm15, %v445_v1, %v448_v2  ;;  %v464_v29 = vsel %vm460_vm2, %v448_v2, %v463_v14 }
  0x57   :  { %v11564_v11 = vadd.s32 4294967294, %v391_v63  ;;  %v12991_v17 = vsub.s32 %v177_v51, %v180_v8  ;;  %v468_v36 = vsel %vm460_vm2, %v451_v3, %v467_v19  ;;  %v470_v31 = vsel %vm458_vm15, %v448_v2, %v451_v3 }
  0x58   :  { %v471_v51 = vsel %vm461_vm1, %v457_v13, 1326507024  ;;  %vm119_vm4 = vcmp.lt.s32.totalorder %v12821_v5, 0  ;;  %v469_v48 = vsel %vm459_vm0, %v466_v24, %v468_v36  ;;  %v3714_v54 = vadd.s32 3, %v12985_v12 }
  0x59   :  { %vm11565_vm3 = vcmp.lt.s32.totalorder %v11564_v11, 0  ;;  %v183_v42 = vsub.s32 0, %v12991_v17  ;;  %v472_v50 = vsel %vm460_vm2, %v454_v10, %v471_v51  ;;  %v465_v56 = vsel %vm459_vm0, %v462_v23, %v464_v29 }
  0x5a   :  { %v394_v40 = vsel %vm11565_vm3, 0, %v11564_v11  ;;  %v473_v53 = vsel %vm459_vm0, %v470_v31, %v472_v50  ;;  %v228_v37 = vor.u32 8388608, %v12951_v34  ;;  %v203_v21 = vsub.s32 4, %v12976_v59 }
  0x5b   :  { %v395_v44 = vsub.s32 32, %v394_v40  ;;  %v396_v32 = vshll.u32 %v387_v27, %v394_v40  ;;  %v399_v38 = vsub.s32 4294967266, %v394_v40  ;;  %v11555_v46 = vmin.u32 %v183_v42, %v12991_v17 }
  0x5c   :  { %v230_v27 = vadd.s32 1, %v12947_v33  ;;  %v13022_v60 = vmul.u32.u64.low %v12944_v26, %v473_v53  ;;  %v13023_v61 = vmul.u32.u64.high %v12944_v26, %v473_v53, %v13022_v60  ;;  %v13031_v8 = vand.u32 3, %v3714_v54 }
  0x5d   :  { %v397_v52 = vshrl.u32 %v379_v15, %v395_v44  ;;  %v400_v7 = vadd.s32 127, %v399_v38  ;;  %v185_v55 = vclz %v11555_v46  ;;  %v173_v10 = vadd.s32 %v12926_v16, %v12932_v20 }
  0x5e   :  { %v13026_v63 = vmul.u32.u64.low %v12944_v26, %v469_v48  ;;  %v13027_v1 = vmul.u32.u64.high %v12944_v26, %v469_v48, %v13026_v63  ;;  %vm231_vm5 = vcmp.gt.s32.totalorder %v230_v27, 0  ;;  %v481_v15 = vmul.u32 %v12944_v26, %v465_v56 }
  0x5f   :  { %v398_v58 = vor.u32 %v397_v52, %v396_v32  ;;  %v401_v30 = vshll.u32 %v400_v7, 23  ;;  %v11556_v62 = vadd.s32 4294967294, %v185_v55  ;;  %v232_v3 = vsel %vm231_vm5, %v230_v27, 0 }
  0x60   :  { %v234_v11 = vand.u32 31, %v232_v3  ;;  %vm483_vm7 = vc.u32 %v13023_v61, %v13026_v63  ;;  %vm13040_vm8 = vcmp.le.f32.partialorder %v117_v9, 0.7853982  ;;  %v484_v16 = vadd.s32 1, %v13027_v1 }
  0x61   :  { %v402_v33 = vor.u32 4788187, %v401_v30  ;;  %v405_v2 = vcvt.s32.f32 %v398_v58  ;;  %vm11557_vm6 = vcmp.lt.s32.totalorder %v11556_v62, 0  ;;  %v204_v26 = vsel %vm119_vm4, %v203_v21, %v12976_v59 }
  0x62   :  { %v188_v14 = vsel %vm11557_vm6, 0, %v11556_v62  ;;  %v13049_v40 = vshrl.u32 %v232_v3, 5  ;;  %v235_v42 = vsub.s32 32, %v234_v11  ;;  %v485_v9 = vsel %vm483_vm7, %v484_v16, %v13027_v1 }
  0x63   :  { %v403_v13 = vand.u32 2147483647, %v402_v33  ;;  %v189_v23 = vsub.s32 32, %v188_v14  ;;  %v190_v24 = vshll.u32 %v12991_v17, %v188_v14  ;;  %v193_v36 = vsub.s32 4294967266, %v188_v14 }
  0x64   :  { %v237_v44 = vshll.u32 %v19441_v41, %v234_v11  ;;  %v486_v38 = vadd.s32 %v485_v9, %v481_v15  ;;  %v238_v17 = vshrl.u32 %v19436_v43, %v235_v42  ;;  %v240_v51 = vshll.u32 %v19436_v43, %v234_v11 }
  0x65   :  { %v406_v20 = vmul.f32 %v405_v2, %v403_v13  ;;  %v191_v29 = vshrl.u32 %v173_v10, %v189_v23  ;;  %v194_v31 = vadd.s32 127, %v193_v36  ;;  %v241_v50 = vshrl.u32 %v19425_v45, %v235_v42 }
  0x66   :  { %v243_v59 = vshll.u32 %v19425_v45, %v234_v11  ;;  %v487_v7 = vadd.s32 536870912, %v486_v38  ;;  %v244_v53 = vshrl.u32 %v19430_v47, %v235_v42  ;;  %v246_v27 = vshll.u32 %v19430_v47, %v234_v11 }
  0x67   :  { %v407_v32 = vxor.u32 2147483648, %v406_v20  ;;  %v192_v46 = vor.u32 %v191_v29, %v190_v24  ;;  %v195_v48 = vshll.u32 %v194_v31, 23  ;;  %v239_v58 = vor.u32 %v238_v17, %v237_v44 }
  0x68   :  { %v13064_v30 = vshrl.u32 %v487_v7, 30  ;;  %v242_v60 = vor.u32 %v241_v50, %v240_v51  ;;  %v247_v62 = vshrl.u32 %v19434_v49, %v235_v42  ;;  %v249_v33 = vshll.u32 %v19434_v49, %v234_v11 }
  0x69   :  { %v408_v52 = vsel %vm325_vm12, %v407_v32, %v406_v20  ;;  %v196_v55 = vor.u32 4788187, %v195_v48  ;;  %v199_v56 = vcvt.s32.f32 %v192_v46  ;;  %v250_v2 = vshrl.u32 %v19432_v57, %v235_v42 }
  0x6a   :  { %v411_v54 = vsel %vm12956_vm13, %v12819_v4, %v408_v52  ;;  %v13071_v21 = vsel %vm13040_vm8, 0, %v204_v26  ;;  %v489_v35 = vshll.u32 %v13064_v30, 30  ;;  %v248_v3 = vor.u32 %v247_v62, %v246_v27 }
  0x6b   :  { %12523 = vcosq.f32 %v411_v54  ;;  %v197_v1 = vand.u32 2147483647, %v196_v55  ;;  %vm252_vm9 = vcmp.lt.s32.totalorder %v13049_v40, 1  ;;  %v236_v13 = vshrl.u32 %v19441_v41, %v235_v42 }
  0x6c   :  { %12525 = vsinq.f32 %v411_v54  ;;  %v245_v14 = vor.u32 %v244_v53, %v243_v59  ;;  %v13078_v15 = vshll.u32 %v228_v37, 8  ;;  %vm3716_vm10 = vcmp.lt.s32.totalorder %v13031_v8, 2 }
  0x6d   :  { %v200_v10 = vmul.f32 %v199_v56, %v197_v1  ;;  %v13081_v11 = vsub.s32 %v486_v38, %v489_v35  ;;  %v251_v23 = vor.u32 %v250_v2, %v249_v33  ;;  %vm254_vm11 = vcmp.lt.s32.totalorder %v13049_v40, 3 }
  0x6e   :  { %vm255_vm12 = vcmp.lt.s32.totalorder %v13049_v40, 4  ;;  %vm19482_vm13 = vweird.f32 %v12819_v4  ;;  %vm428_vm14 = vcmp.lt.s32.totalorder %v12823_v6, 0  ;;  %vm253_vm15 = vcmp.lt.s32.totalorder %v13049_v40, 2 }
  0x6f   :  { %v201_v24 = vxor.u32 2147483648, %v200_v10  ;;  %v257_v34 = vsel %vm255_vm12, %v245_v14, 2102212464  ;;  %v260_v37 = vsel %vm252_vm9, %v239_v58, %v242_v60  ;;  %vm3717_vm0 = vcmp.eq.s32.totalorder %v13031_v8, 0 }
  0x70   :  { %v3506_v36 = vadd.s32 3, %v13071_v21  ;;  %v492_v16 = vsub.s32 0, %v13081_v11  ;;  %v261_v20 = vsel %vm255_vm12, %v248_v3, 920167782  ;;  %v256_v42 = vsel %vm252_vm9, %v236_v13, %v239_v58 }
  0x71   :  { %v202_v26 = vsel %vm119_vm4, %v201_v24, %v200_v10  ;;  %v258_v29 = vsel %vm254_vm11, %v242_v60, %v257_v34  ;;  %v262_v31 = vsel %vm254_vm11, %v245_v14, %v261_v20  ;;  %vm13110_vm1 = vcmp.le.f32.partialorder %v426_v18, 0.7853982 }
  0x72   :  { %v205_v9 = vsel %vm13040_vm8, %v12821_v5, %v202_v26  ;;  %v11567_v32 = vmin.u32 %v492_v16, %v13081_v11  ;;  %v263_v38 = vsel %vm253_vm15, %v260_v37, %v262_v31  ;;  %v264_v17 = vsel %vm252_vm9, %v242_v60, %v245_v14 }
  0x73   :  { %12527 = vcosq.f32 %v205_v9  ;;  %v265_v51 = vsel %vm255_vm12, %v251_v23, 1326507024  ;;  %v13122_v19 = vmul.u32.u64.low %v13078_v15, %v263_v38  ;;  %v13123_v46 = vmul.u32.u64.high %v13078_v15, %v263_v38, %v13122_v19 }
  0x74   :  { %vm3720_vm2 = vcmp.eq.s32.totalorder %v13031_v8, 2  ;;  %12529 = vsinq.f32 %v205_v9  ;;  %v494_v48 = vclz %v11567_v32  ;;  %v512_v50 = vsub.s32 4, %v13064_v30 }
  0x75   :  { %v13126_v18 = vpop.eup %12523  ;;  %v3507_v7 = vand.u32 3, %v3506_v36  ;;  %v482_v53 = vadd.s32 %v13026_v63, %v13023_v61  ;;  %v266_v27 = vsel %vm254_vm11, %v248_v3, %v265_v51  ;;  %v259_v56 = vsel %vm253_vm15, %v256_v42, %v258_v29 }
  0x76   :  { %v13130_v59 = vpop.eup %12525  ;;  %v19416_v52 = vxor.u32 2147483648, %v13126_v18  ;;  %v11568_v55 = vadd.s32 4294967294, %v494_v48  ;;  %v267_v58 = vsel %vm253_vm15, %v264_v17, %v266_v27  ;;  %v632_v61 = vand.u32 2147483647, %v12936_v39 }
  0x77   :  { %v19417_v54 = vxor.u32 2147483648, %v13130_v59  ;;  %v13146_v62 = vmul.u32.u64.low %v13078_v15, %v267_v58  ;;  %v13147_v1 = vmul.u32.u64.high %v13078_v15, %v267_v58, %v13146_v62  ;;  %vm19509_vm3 = vweird.f32 %v12821_v5 }
  0x78   :  { %v3722_v60 = vsel %vm3720_vm2, %v19416_v52, %v13130_v59  ;;  %vm11569_vm4 = vcmp.lt.s32.totalorder %v11568_v55, 0  ;;  %v513_v40 = vsel %vm428_vm14, %v512_v50, %v13064_v30  ;;  %v278_v33 = vadd.s32 1, %v13123_v46 }
  0x79   :  { %v3719_v63 = vsel %vm3717_vm0, %v13126_v18, %v19417_v54  ;;  %v497_v35 = vsel %vm11569_vm4, 0, %v11568_v55  ;;  %v275_v3 = vmul.u32 %v13078_v15, %v259_v56  ;;  %v635_v10 = vand.u32 2139095040, %v12936_v39 }
  0x7a   :  { %v3723_v2 = vsel %vm3716_vm10, %v3719_v63, %v3722_v60  ;;  %v498_v14 = vsub.s32 32, %v497_v35  ;;  %v499_v23 = vshll.u32 %v13081_v11, %v497_v35  ;;  %v502_v24 = vsub.s32 4294967266, %v497_v35 }
  0x7b   :  { %v13166_v13 = vsel %vm19482_vm13, nan, %v3723_v2  ;;  %v13172_v30 = vsel %vm13110_vm1, 0, %v513_v40  ;;  %vm277_vm5 = vc.u32 %v13147_v1, %v13122_v19  ;;  %v636_v8 = vshrl.u32 %v635_v10, 23 }
  0x7c   :  { %19834 = vst [vmem:[#allocation15_spill] sm:$0xff] %v13166_v13  ;;  %6760 = vperm.xlu1 %12317, %v13166_v13   ;;  %v639_v15 = vand.u32 8388607, %v632_v61  ;;  %vm3508_vm6 = vcmp.lt.s32.totalorder %v3507_v7, 2  ;;  %v500_v34 = vshrl.u32 %v482_v53, %v498_v14  ;;  %v503_v37 = vadd.s32 127, %v502_v24 }
  0x7d   :  { %v279_v36 = vsel %vm277_vm5, %v278_v33, %v13123_v46  ;;  %v13179_v11 = vpop.eup %12527  ;;  %vm3509_vm7 = vcmp.eq.s32.totalorder %v3507_v7, 0  ;;  %vm3512_vm8 = vcmp.eq.s32.totalorder %v3507_v7, 2  ;;  %v11574_v20 = vadd.s32 4294967169, %v636_v8 }
  0x7e   :  { %v280_v16 = vadd.s32 %v279_v36, %v275_v3  ;;  %v13181_v26 = vpop.eup %12529  ;;  %v19418_v42 = vxor.u32 2147483648, %v13179_v11  ;;  %v501_v29 = vor.u32 %v500_v34, %v499_v23  ;;  %v504_v31 = vshll.u32 %v503_v37, 23 }
  0x7f   :  { %v3818_v9 = vadd.s32 3, %v13172_v30  ;;  %v19419_v32 = vxor.u32 2147483648, %v13181_v26  ;;  %v640_v17 = vor.u32 8388608, %v639_v15  ;;  %v642_v51 = vadd.s32 1, %v11574_v20 }
  0x80   :  { %v281_v38 = vadd.s32 536870912, %v280_v16  ;;  %v3514_v46 = vsel %vm3512_vm8, %v19418_v42, %v13181_v26  ;;  %v505_v48 = vor.u32 4788187, %v504_v31  ;;  %v508_v50 = vcvt.s32.f32 %v501_v29 }
  0x81   :  { %v532_v53 = vand.u32 2139095040, %v12939_v25  ;;  %v3511_v27 = vsel %vm3509_vm7, %v13179_v11, %v19419_v32  ;;  %vm643_vm9 = vcmp.gt.s32.totalorder %v642_v51, 0  ;;  %v529_v56 = vand.u32 2147483647, %v12939_v25 }
  0x82   :  { %v282_v55 = vshrl.u32 %v281_v38, 30  ;;  %v3515_v58 = vsel %vm3508_vm6, %v3511_v27, %v3514_v46  ;;  %v506_v60 = vand.u32 2147483647, %v505_v48  ;;  %v644_v62 = vsel %vm643_vm9, %v642_v51, 0 }
  0x83   :  { %v13198_v63 = vsel %vm19509_vm3, nan, %v3515_v58  ;;  %v533_v33 = vshrl.u32 %v532_v53, 23  ;;  %v13201_v35 = vand.u32 3, %v3818_v9  ;;  %vm222_vm10 = vcmp.lt.s32.totalorder %v12838_v22, 0 }
  0x84   :  { %19835 = vst [vmem:[#allocation16_spill] sm:$0xff] %v13198_v63  ;;  %v283_v40 = vshll.u32 %v282_v55, 30  ;;  %6750 = vperm.xlu0 %12316, %v13198_v63   ;;  %v509_v2 = vmul.f32 %v508_v50, %v506_v60  ;;  %v646_v3 = vand.u32 31, %v644_v62  ;;  %v276_v7 = vadd.s32 %v13122_v19, %v13147_v1 }
  0x85   :  { %v13208_v14 = vshll.u32 %v640_v17, 8  ;;  %v13212_v23 = vand.u32 8388607, %v529_v56  ;;  %v306_v8 = vsub.s32 4, %v282_v55  ;;  %v13214_v15 = vshrl.u32 %v644_v62, 5 }
  0x86   :  { %v13206_v10 = vsub.s32 %v280_v16, %v283_v40  ;;  %v510_v24 = vxor.u32 2147483648, %v509_v2  ;;  %v647_v34 = vsub.s32 32, %v646_v3  ;;  %v649_v36 = vshll.u32 %v19441_v41, %v646_v3 }
  0x87   :  { %v652_v20 = vshll.u32 %v19436_v43, %v646_v3  ;;  %v11570_v19 = vadd.s32 4294967169, %v533_v33  ;;  %v655_v31 = vshll.u32 %v19425_v45, %v646_v3  ;;  %v537_v51 = vor.u32 8388608, %v13212_v23 }
  0x88   :  { %v286_v37 = vsub.s32 0, %v13206_v10  ;;  %v511_v1 = vsel %vm428_vm14, %v510_v24, %v509_v2  ;;  %v650_v16 = vshrl.u32 %v19436_v43, %v647_v34  ;;  %v653_v29 = vshrl.u32 %v19425_v45, %v647_v34 }
  0x89   :  { %v514_v9 = vsel %vm13110_vm1, %v12823_v6, %v511_v1  ;;  %v656_v17 = vshrl.u32 %v19430_v47, %v647_v34  ;;  %v307_v46 = vsel %vm222_vm10, %v306_v8, %v282_v55  ;;  %v648_v48 = vshrl.u32 %v19441_v41, %v647_v34 }
  0x8a   :  { %v11559_v38 = vmin.u32 %v286_v37, %v13206_v10  ;;  %12531 = vcosq.f32 %v514_v9  ;;  %v658_v50 = vshll.u32 %v19430_v47, %v646_v3  ;;  %vm13236_vm11 = vcmp.le.f32.partialorder %v220_v28, 0.7853982 }
  0x8b   :  { %12533 = vsinq.f32 %v514_v9  ;;  %v651_v27 = vor.u32 %v650_v16, %v649_v36  ;;  %v654_v58 = vor.u32 %v653_v29, %v652_v20  ;;  %vm3824_vm12 = vcmp.eq.s32.totalorder %v13201_v35, 2 }
  0x8c   :  { %v288_v53 = vclz %v11559_v38  ;;  %v657_v60 = vor.u32 %v656_v17, %v655_v31  ;;  %v659_v62 = vshrl.u32 %v19434_v49, %v647_v34  ;;  %v661_v55 = vshll.u32 %v19434_v49, %v646_v3 }
  0x8d   :  { %vm664_vm14 = vcmp.lt.s32.totalorder %v13214_v15, 1  ;;  %vm3821_vm15 = vcmp.eq.s32.totalorder %v13201_v35, 0  ;;  %v662_v28 = vshrl.u32 %v19432_v57, %v647_v34  ;;  %vm665_vm0 = vcmp.lt.s32.totalorder %v13214_v15, 2 }
  0x8e   :  { %v11560_v40 = vadd.s32 4294967294, %v288_v53  ;;  %vm667_vm1 = vcmp.lt.s32.totalorder %v13214_v15, 4  ;;  %vm3820_vm2 = vcmp.lt.s32.totalorder %v13201_v35, 2  ;;  %v660_v33 = vor.u32 %v659_v62, %v658_v50 }
  0x8f   :  { %vm666_vm4 = vcmp.lt.s32.totalorder %v13214_v15, 3  ;;  %v668_v2 = vsel %vm664_vm14, %v648_v48, %v651_v27  ;;  %v669_v3 = vsel %vm667_vm1, %v657_v60, 2102212464  ;;  %vm518_vm5 = vweird.f32 %v12823_v6 }
  0x90   :  { %vm11561_vm6 = vcmp.lt.s32.totalorder %v11560_v40, 0  ;;  %v663_v24 = vor.u32 %v662_v28, %v661_v55  ;;  %v670_v8 = vsel %vm666_vm4, %v654_v58, %v669_v3  ;;  %v672_v34 = vsel %vm664_vm14, %v651_v27, %v654_v58 }
  0x91   :  { %v291_v37 = vsel %vm11561_vm6, 0, %v11560_v40  ;;  %v673_v36 = vsel %vm667_vm1, %v660_v33, 920167782  ;;  %v676_v20 = vsel %vm664_vm14, %v654_v58, %v657_v60  ;;  %v539_v1 = vadd.s32 1, %v11570_v19 }
  0x92   :  { %v292_v16 = vsub.s32 32, %v291_v37  ;;  %v293_v29 = vshll.u32 %v13206_v10, %v291_v37  ;;  %v296_v31 = vsub.s32 4294967266, %v291_v37  ;;  %v674_v9 = vsel %vm666_vm4, %v657_v60, %v673_v36 }
  0x93   :  { %v671_v38 = vsel %vm665_vm0, %v668_v2, %v670_v8  ;;  %v675_v17 = vsel %vm665_vm0, %v672_v34, %v674_v9  ;;  %v677_v48 = vsel %vm667_vm1, %v663_v24, 1326507024  ;;  %vm540_vm7 = vcmp.gt.s32.totalorder %v539_v1, 0 }
  0x94   :  { %v294_v50 = vshrl.u32 %v276_v7, %v292_v16  ;;  %v297_v53 = vadd.s32 127, %v296_v31  ;;  %v678_v19 = vsel %vm666_vm4, %v660_v33, %v677_v48  ;;  %v541_v10 = vsel %vm540_vm7, %v539_v1, 0  ;;  %v13274_v27 = vpop.eup %12531 }
  0x95   :  { %v13278_v58 = vsel %vm13236_vm11, 0, %v307_v46  ;;  %v679_v60 = vsel %vm665_vm0, %v676_v20, %v678_v19  ;;  %v13283_v62 = vmul.u32.u64.low %v13208_v14, %v675_v17  ;;  %v13284_v55 = vmul.u32.u64.high %v13208_v14, %v675_v17, %v13283_v62  ;;  %v13287_v7 = vpop.eup %12533 }
  0x96   :  { %v19420_v40 = vxor.u32 2147483648, %v13274_v27  ;;  %v295_v28 = vor.u32 %v294_v50, %v293_v29  ;;  %v298_v33 = vshll.u32 %v297_v53, 23  ;;  %v543_v2 = vand.u32 31, %v541_v10 }
  0x97   :  { %v19421_v3 = vxor.u32 2147483648, %v13287_v7  ;;  %v13292_v46 = vmul.u32.u64.low %v13208_v14, %v679_v60  ;;  %v13293_v24 = vmul.u32.u64.high %v13208_v14, %v679_v60, %v13292_v46  ;;  %v687_v15 = vmul.u32 %v13208_v14, %v671_v38 }
  0x98   :  { %v3826_v8 = vsel %vm3824_vm12, %v19420_v40, %v13287_v7  ;;  %v299_v34 = vor.u32 4788187, %v298_v33  ;;  %v302_v37 = vcvt.s32.f32 %v295_v28  ;;  %v544_v36 = vsub.s32 32, %v543_v2 }
  0x99   :  { %v3823_v20 = vsel %vm3821_vm15, %v13274_v27, %v19421_v3  ;;  %v690_v1 = vadd.s32 1, %v13284_v55  ;;  %v546_v16 = vshll.u32 %v19441_v41, %v543_v2  ;;  %v549_v14 = vshll.u32 %v19436_v43, %v543_v2 }
  0x9a   :  { %v3827_v29 = vsel %vm3820_vm2, %v3823_v20, %v3826_v8  ;;  %v300_v31 = vand.u32 2147483647, %v299_v34  ;;  %v3610_v9 = vadd.s32 3, %v13278_v58  ;;  %v547_v38 = vshrl.u32 %v19436_v43, %v544_v36 }
  0x9b   :  { %v13315_v17 = vsel %vm518_vm5, nan, %v3827_v29  ;;  %vm689_vm8 = vc.u32 %v13293_v24, %v13283_v62  ;;  %v542_v48 = vshrl.u32 %v541_v10, 5  ;;  %v550_v50 = vshrl.u32 %v19425_v45, %v544_v36 }
  0x9c   :  { %19838 = vst [vmem:[#allocation17_spill] sm:$0xff] %v13315_v17  ;;  %6765 = vperm.xlu1 %12317, %v13315_v17   ;;  %v303_v53 = vmul.f32 %v302_v37, %v300_v31  ;;  %v691_v35 = vsel %vm689_vm8, %v690_v1, %v13284_v55  ;;  %v548_v19 = vor.u32 %v547_v38, %v546_v16  ;;  %vm634_vm1 = vcmp.lt.s32.totalorder %v12936_v39, 0 }
  0x9d   :  { %v552_v60 = vshll.u32 %v19425_v45, %v543_v2  ;;  %v692_v28 = vadd.s32 %v691_v35, %v687_v15  ;;  %v551_v33 = vor.u32 %v550_v50, %v549_v14  ;;  %v553_v46 = vshrl.u32 %v19430_v47, %v544_v36 }
  0x9e   :  { %v555_v8 = vshll.u32 %v19430_v47, %v543_v2  ;;  %v304_v34 = vxor.u32 2147483648, %v303_v53  ;;  %v556_v20 = vshrl.u32 %v19434_v49, %v544_v36  ;;  %v558_v10 = vshll.u32 %v19434_v49, %v543_v2 }
  0x9f   :  { %v559_v29 = vshrl.u32 %v19432_v57, %v544_v36  ;;  %v693_v0 = vadd.s32 536870912, %v692_v28  ;;  %v545_v37 = vshrl.u32 %v19441_v41, %v544_v36  ;;  %v554_v55 = vor.u32 %v553_v46, %v552_v60 }
  0xa0   :  { %vm561_vm9 = vcmp.lt.s32.totalorder %v542_v48, 1  ;;  %v305_v15 = vsel %vm222_vm10, %v304_v34, %v303_v53  ;;  %v557_v1 = vor.u32 %v556_v20, %v555_v8  ;;  %vm564_vm12 = vcmp.lt.s32.totalorder %v542_v48, 4 }
  0xa1   :  { %v560_v16 = vor.u32 %v559_v29, %v558_v10  ;;  %v308_v14 = vsel %vm13236_vm11, %v12838_v22, %v305_v15  ;;  %v694_v31 = vshrl.u32 %v693_v0, 30  ;;  %vm563_vm14 = vcmp.lt.s32.totalorder %v542_v48, 3 }
  0xa2   :  { %v566_v2 = vsel %vm564_vm12, %v554_v55, 2102212464  ;;  %12535 = vcosq.f32 %v308_v14  ;;  %vm562_vm15 = vcmp.lt.s32.totalorder %v542_v48, 2  ;;  %v569_v38 = vsel %vm561_vm9, %v548_v19, %v551_v33 }
  0xa3   :  { %v570_v36 = vsel %vm564_vm12, %v557_v1, 920167782  ;;  %12537 = vsinq.f32 %v308_v14  ;;  %v695_v50 = vshll.u32 %v694_v31, 30  ;;  %v565_v35 = vsel %vm561_vm9, %v545_v37, %v548_v19  ;;  %v60_v19 = vld [vmem:[%s19407_s0 + $0x38] sm:$0xff] }
  0xa4   :  { %v567_v53 = vsel %vm563_vm14, %v551_v33, %v566_v2  ;;  %v571_v60 = vsel %vm563_vm14, %v554_v55, %v570_v36  ;;  %v573_v46 = vsel %vm561_vm9, %v551_v33, %v554_v55  ;;  %v574_v44 = vsel %vm564_vm12, %v560_v16, 1326507024 }
  0xa5   :  { %v577_v0 = vshll.u32 %v537_v51, 8  ;;  %v13341_v8 = vsub.s32 %v692_v28, %v695_v50  ;;  %v572_v34 = vsel %vm562_vm15, %v569_v38, %v571_v60  ;;  %v575_v20 = vsel %vm563_vm14, %v557_v1, %v574_v44 }
  0xa6   :  { %v3611_v10 = vand.u32 3, %v3610_v9  ;;  %v576_v29 = vsel %vm562_vm15, %v573_v46, %v575_v20  ;;  %v568_v51 = vsel %vm562_vm15, %v565_v35, %v567_v53  ;;  %v718_v55 = vsub.s32 4, %v694_v31 }
  0xa7   :  { %v13349_v37 = vmul.u32.u64.low %v577_v0, %v572_v34  ;;  %v13350_v15 = vmul.u32.u64.high %v577_v0, %v572_v34, %v13349_v37  ;;  %v698_v23 = vsub.s32 0, %v13341_v8  ;;  %v13358_v1 = vmul.f32 0.5, %v60_v19 }
  0xa8   :  { %v13355_v28 = vmul.u32.u64.low %v577_v0, %v576_v29  ;;  %v13356_v33 = vmul.u32.u64.high %v577_v0, %v576_v29, %v13355_v28  ;;  %vm312_vm10 = vweird.f32 %v12838_v22  ;;  %vm13364_vm11 = vcmp.le.f32.partialorder %v632_v61, 0.7853982 }
  0xa9   :  { %19839 = vst [vmem:[#allocation18_spill] sm:$0xff] %v13358_v1  ;;  %v11575_v9 = vmin.u32 %v698_v23, %v13341_v8  ;;  %v584_v14 = vmul.u32 %v577_v0, %v568_v51  ;;  %v587_v48 = vadd.s32 1, %v13350_v15  ;;  %v841_v2 = vand.u32 2139095040, %v13358_v1 }
  0xaa   :  { %vm3612_vm0 = vcmp.lt.s32.totalorder %v3611_v10, 2  ;;  %v19424_v36 = vand.u32 2147483647, %v13358_v1  ;;  %vm3616_vm2 = vcmp.eq.s32.totalorder %v3611_v10, 2  ;;  %v719_v61 = vsel %vm634_vm1, %v718_v55, %v694_v31 }
  0xab   :  { %v700_v38 = vclz %v11575_v9  ;;  %vm586_vm4 = vc.u32 %v13356_v33, %v13349_v37  ;;  %v842_v35 = vshrl.u32 %v841_v2, 23  ;;  %vm3613_vm6 = vcmp.eq.s32.totalorder %v3611_v10, 0 }
  0xac   :  { %v13372_v50 = vpop.eup %12535  ;;  %v588_v44 = vsel %vm586_vm4, %v587_v48, %v13350_v15  ;;  %v688_v34 = vadd.s32 %v13283_v62, %v13293_v24  ;;  %v13390_v29 = vsel %vm13364_vm11, 0, %v719_v61  ;;  %v845_v23 = vand.u32 8388607, %v19424_v36 }
  0xad   :  { %v13378_v53 = vpop.eup %12537  ;;  %v19422_v60 = vxor.u32 2147483648, %v13372_v50  ;;  %v11576_v46 = vadd.s32 4294967294, %v700_v38  ;;  %v589_v20 = vadd.s32 %v588_v44, %v584_v14  ;;  %v11582_v19 = vadd.s32 4294967169, %v842_v35 }
  0xae   :  { %v19423_v0 = vxor.u32 2147483648, %v13378_v53  ;;  %v4026_v2 = vadd.s32 3, %v13390_v29  ;;  %vm531_vm9 = vcmp.lt.s32.totalorder %v12939_v25, 0  ;;  %v19860_v17 = vmov 683565275  }
  0xaf   :  { %v3618_v31 = vsel %vm3616_vm2, %v19422_v60, %v13378_v53  ;;  %vm11577_vm7 = vcmp.lt.s32.totalorder %v11576_v46, 0  ;;  %v590_v62 = vadd.s32 536870912, %v589_v20  ;;  %v848_v24 = vadd.s32 1, %v11582_v19 }
  0xb0   :  { %v3615_v15 = vsel %vm3613_vm6, %v13372_v50, %v19423_v0  ;;  %v703_v51 = vsel %vm11577_vm7, 0, %v11576_v46  ;;  %v846_v46 = vor.u32 8388608, %v845_v23  ;;  %v585_v23 = vadd.s32 %v13349_v37, %v13356_v33 }
  0xb1   :  { %v3619_v28 = vsel %vm3612_vm0, %v3615_v15, %v3618_v31  ;;  %v704_v55 = vsub.s32 32, %v703_v51  ;;  %v705_v9 = vshll.u32 %v13341_v8, %v703_v51  ;;  %v708_v14 = vsub.s32 4294967266, %v703_v51  ;;  %v59_v8 = vld [vmem:[%s19407_s0 + $0x30] sm:$0xff] }
  0xb2   :  { %v13401_v48 = vsel %vm312_vm10, nan, %v3619_v28  ;;  %v13404_v38 = vshrl.u32 %v590_v62, 30  ;;  %vm849_vm8 = vcmp.gt.s32.totalorder %v848_v24, 0  ;;  %v13411_v51 = vand.u32 3, %v4026_v2 }
  0xb3   :  { %19842 = vst [vmem:[#allocation19_spill] sm:$0xff] %v13401_v48  ;;  %6755 = vperm.xlu0 %12316, %v13401_v48   ;;  %v706_v61 = vshrl.u32 %v688_v34, %v704_v55  ;;  %v709_v35 = vadd.s32 127, %v708_v14  ;;  %v850_v10 = vsel %vm849_vm8, %v848_v24, 0  ;;  %v13415_v52 = vmul.f32 0.5, %v59_v8 }
  0xb4   :  { %v592_v44 = vshll.u32 %v13404_v38, 30  ;;  %v852_v19 = vand.u32 31, %v850_v10  ;;  %v13419_v24 = vshll.u32 %v846_v46, 8  ;;  %v615_v33 = vsub.s32 4, %v13404_v38 }
  0xb5   :  { %v707_v31 = vor.u32 %v706_v61, %v705_v9  ;;  %v710_v15 = vshll.u32 %v709_v35, 23  ;;  %19843 = vst [vmem:[#allocation20_spill] sm:$0xff] %v13415_v52  ;;  %v851_v46 = vshrl.u32 %v850_v10, 5  ;;  %v738_v42 = vand.u32 2139095040, %v13415_v52 }
  0xb6   :  { %v13413_v62 = vsub.s32 %v589_v20, %v592_v44  ;;  %v853_v28 = vsub.s32 32, %v852_v19  ;;  %v855_v54 = vshll.u32 %v19441_v41, %v852_v19  ;;  %v858_v2 = vshll.u32 %v19436_v43, %v852_v19 }
  0xb7   :  { %v711_v34 = vor.u32 4788187, %v710_v15  ;;  %v714_v55 = vcvt.s32.f32 %v707_v31  ;;  %v861_v35 = vshll.u32 %v19425_v45, %v852_v19  ;;  %v864_v44 = vshll.u32 %v19430_v47, %v852_v19 }
  0xb8   :  { %v595_v14 = vsub.s32 0, %v13413_v62  ;;  %v856_v9 = vshrl.u32 %v19436_v43, %v853_v28  ;;  %v859_v61 = vshrl.u32 %v19425_v45, %v853_v28  ;;  %v862_v8 = vshrl.u32 %v19430_v47, %v853_v28 }
  0xb9   :  { %v712_v20 = vand.u32 2147483647, %v711_v34  ;;  %v854_v15 = vshrl.u32 %v19441_v41, %v853_v28  ;;  %v865_v34 = vshrl.u32 %v19434_v49, %v853_v28  ;;  %v868_v45 = vshrl.u32 %v19432_v57, %v853_v28 }
  0xba   :  { %v11571_v37 = vmin.u32 %v595_v14, %v13413_v62  ;;  %v857_v40 = vor.u32 %v856_v9, %v855_v54  ;;  %v860_v3 = vor.u32 %v859_v61, %v858_v2  ;;  %v863_v60 = vor.u32 %v862_v8, %v861_v35 }
  0xbb   :  { %v715_v31 = vmul.f32 %v714_v55, %v712_v20  ;;  %v866_v36 = vor.u32 %v865_v34, %v864_v44  ;;  %v867_v14 = vshll.u32 %v19434_v49, %v852_v19  ;;  %vm870_vm12 = vcmp.lt.s32.totalorder %v851_v46, 1 }
  0xbc   :  { %v597_v32 = vclz %v11571_v37  ;;  %vm871_vm14 = vcmp.lt.s32.totalorder %v851_v46, 2  ;;  %vm872_vm15 = vcmp.lt.s32.totalorder %v851_v46, 3  ;;  %vm873_vm0 = vcmp.lt.s32.totalorder %v851_v46, 4 }
  0xbd   :  { %v716_v0 = vxor.u32 2147483648, %v715_v31  ;;  %v869_v20 = vor.u32 %v868_v45, %v867_v14  ;;  %v874_v37 = vsel %vm870_vm12, %v854_v15, %v857_v40  ;;  %v875_v19 = vsel %vm873_vm0, %v863_v60, 2102212464 }
  0xbe   :  { %v11572_v10 = vadd.s32 4294967294, %v597_v32  ;;  %v878_v28 = vsel %vm870_vm12, %v857_v40, %v860_v3  ;;  %v876_v9 = vsel %vm872_vm15, %v860_v3, %v875_v19  ;;  %v879_v2 = vsel %vm873_vm0, %v866_v36, 920167782 }
  0xbf   :  { %v717_v55 = vsel %vm634_vm1, %v716_v0, %v715_v31  ;;  %v616_v16 = vsel %vm531_vm9, %v615_v33, %v13404_v38  ;;  %v880_v35 = vsel %vm872_vm15, %v863_v60, %v879_v2  ;;  %v882_v8 = vsel %vm870_vm12, %v860_v3, %v863_v60 }
  0xc0   :  { %v720_v54 = vsel %vm13364_vm11, %v12936_v39, %v717_v55  ;;  %vm11573_vm2 = vcmp.lt.s32.totalorder %v11572_v10, 0  ;;  %v883_v40 = vsel %vm873_vm0, %v869_v20, 1326507024  ;;  %v881_v15 = vsel %vm871_vm14, %v878_v28, %v880_v35 }
  0xc1   :  { %12539 = vcosq.f32 %v720_v54  ;;  %v600_v32 = vsel %vm11573_vm2, 0, %v11572_v10  ;;  %v884_v34 = vsel %vm872_vm15, %v866_v36, %v883_v40  ;;  %v877_v14 = vsel %vm871_vm14, %v874_v37, %v876_v9 }
  0xc2   :  { %12541 = vsinq.f32 %v720_v54  ;;  %v601_v45 = vsub.s32 32, %v600_v32  ;;  %v602_v0 = vshll.u32 %v13413_v62, %v600_v32  ;;  %v605_v61 = vsub.s32 4294967266, %v600_v32  ;;  %v62_v62 = vld [vmem:[%s19407_s0 + $0x48] sm:$0xff] }
  0xc3   :  { %v885_v38 = vsel %vm871_vm14, %v882_v8, %v884_v34  ;;  %v13462_v33 = vmul.u32.u64.low %v13419_v24, %v881_v15  ;;  %v13463_v10 = vmul.u32.u64.high %v13419_v24, %v881_v15, %v13462_v33  ;;  %vm13472_vm11 = vcmp.le.f32.partialorder %v529_v56, 0.7853982 }
  0xc4   :  { %v603_v44 = vshrl.u32 %v585_v23, %v601_v45  ;;  %v606_v31 = vadd.s32 127, %v605_v61  ;;  %v13467_v23 = vmul.u32.u64.low %v13419_v24, %v885_v38  ;;  %v13468_v55 = vmul.u32.u64.high %v13419_v24, %v885_v38, %v13467_v23 }
  0xc5   :  { %v739_v20 = vshrl.u32 %v738_v42, 23  ;;  %v13476_v46 = vmul.f32 0.5, %v62_v62  ;;  %v13480_v19 = vsel %vm13472_vm11, 0, %v616_v16  ;;  %v893_v28 = vmul.u32 %v13419_v24, %v877_v14 }
  0xc6   :  { %v604_v3 = vor.u32 %v603_v44, %v602_v0  ;;  %v607_v60 = vshll.u32 %v606_v31, 23  ;;  %v896_v32 = vadd.s32 1, %v13463_v10  ;;  %v19429_v9 = vand.u32 2147483647, %v13415_v52 }
  0xc7   :  { %19846 = vst [vmem:[#allocation21_spill] sm:$0xff] %v13476_v46  ;;  %v11578_v2 = vadd.s32 4294967169, %v739_v20  ;;  %vm724_vm1 = vweird.f32 %v12936_v39  ;;  %vm4029_vm4 = vcmp.eq.s32.totalorder %v13411_v51, 0  ;;  %vm895_vm6 = vc.u32 %v13468_v55, %v13462_v33 }
  0xc8   :  { %v608_v37 = vor.u32 4788187, %v607_v60  ;;  %v611_v54 = vcvt.s32.f32 %v604_v3  ;;  %vm4032_vm7 = vcmp.eq.s32.totalorder %v13411_v51, 2  ;;  %v3922_v45 = vadd.s32 3, %v13480_v19 }
  0xc9   :  { %v897_v24 = vsel %vm895_vm6, %v896_v32, %v13463_v10  ;;  %v745_v0 = vadd.s32 1, %v11578_v2  ;;  %v1047_v40 = vand.u32 2139095040, %v13476_v46  ;;  %vm4028_vm8 = vcmp.lt.s32.totalorder %v13411_v51, 2 }
  0xca   :  { %v609_v42 = vand.u32 2147483647, %v608_v37  ;;  %v898_v8 = vadd.s32 %v897_v24, %v893_v28  ;;  %v742_v31 = vand.u32 8388607, %v19429_v9  ;;  %v13510_v10 = vand.u32 3, %v3922_v45 }
  0xcb   :  { %v13489_v56 = vpop.eup %12539  ;;  %vm746_vm12 = vcmp.gt.s32.totalorder %v745_v0, 0  ;;  %v1048_v37 = vshrl.u32 %v1047_v40, 23  ;;  %vm19480_vm0 = vweird.f32 %v12939_v25 }
  0xcc   :  { %v13494_v61 = vpop.eup %12541  ;;  %v19427_v16 = vxor.u32 2147483648, %v13489_v56  ;;  %v612_v35 = vmul.f32 %v611_v54, %v609_v42  ;;  %v899_v62 = vadd.s32 536870912, %v898_v8  ;;  %v747_v14 = vsel %vm746_vm12, %v745_v0, 0 }
  0xcd   :  { %v19428_v44 = vxor.u32 2147483648, %v13494_v61  ;;  %v749_v3 = vand.u32 31, %v747_v14  ;;  %v743_v51 = vor.u32 8388608, %v742_v31  ;;  %v748_v24 = vshrl.u32 %v747_v14, 5 }
  0xce   :  { %v4034_v15 = vsel %vm4032_vm7, %v19427_v16, %v13494_v61  ;;  %v613_v34 = vxor.u32 2147483648, %v612_v35  ;;  %v13514_v20 = vshrl.u32 %v899_v62, 30  ;;  %vm3925_vm14 = vcmp.eq.s32.totalorder %v13510_v10, 0 }
  0xcf   :  { %v4031_v38 = vsel %vm4029_vm4, %v13489_v56, %v19428_v44  ;;  %v750_v32 = vsub.s32 32, %v749_v3  ;;  %v752_v42 = vshll.u32 %v19441_v41, %v749_v3  ;;  %v755_v45 = vshll.u32 %v19436_v43, %v749_v3 }
  0xd0   :  { %v4035_v60 = vsel %vm4028_vm8, %v4031_v38, %v4034_v15  ;;  %v614_v23 = vsel %vm531_vm9, %v613_v34, %v612_v35  ;;  %v901_v2 = vshll.u32 %v13514_v20, 30  ;;  %v19848_v35 = vmov 2131351028  }
  0xd1   :  { %v13518_v54 = vsel %vm724_vm1, nan, %v4035_v60  ;;  %v617_v28 = vsel %vm13472_vm11, %v12939_v25, %v614_v23  ;;  %v753_v0 = vshrl.u32 %v19436_v43, %v750_v32  ;;  %v756_v40 = vshrl.u32 %v19848_v35, %v750_v32 }
  0xd2   :  { %19847 = vst [vmem:[#allocation22_spill] sm:$0xff] %v13518_v54  ;;  %6775 = vperm.xlu1 %12317, %v13518_v54   ;;  %12543 = vcosq.f32 %v617_v28  ;;  %vm3928_vm9 = vcmp.eq.s32.totalorder %v13510_v10, 2  ;;  %v13530_v36 = vsub.s32 %v898_v8, %v901_v2  ;;  %v758_v31 = vshll.u32 %v19848_v35, %v749_v3 }
  0xd3   :  { %12545 = vsinq.f32 %v617_v28  ;;  %v759_v15 = vshrl.u32 %v19430_v47, %v750_v32  ;;  %v11590_v34 = vadd.s32 4294967169, %v1048_v37  ;;  %v894_v62 = vadd.s32 %v13462_v33, %v13468_v55 }
  0xd4   :  { %v751_v14 = vshrl.u32 %v19441_v41, %v750_v32  ;;  %v761_v38 = vshll.u32 %v19430_v47, %v749_v3  ;;  %v19440_v60 = vand.u32 2147483647, %v13476_v46  ;;  %vm3924_vm15 = vcmp.lt.s32.totalorder %v13510_v10, 2 }
  0xd5   :  { %v904_v8 = vsub.s32 0, %v13530_v36  ;;  %v754_v23 = vor.u32 %v753_v0, %v752_v42  ;;  %v757_v28 = vor.u32 %v756_v40, %v755_v45  ;;  %v762_v2 = vshrl.u32 %v19434_v49, %v750_v32 }
  0xd6   :  { %v760_v37 = vor.u32 %v759_v15, %v758_v31  ;;  %v764_v16 = vshll.u32 %v19434_v49, %v749_v3  ;;  %v765_v33 = vshrl.u32 %v19432_v57, %v750_v32  ;;  %vm767_vm2 = vcmp.lt.s32.totalorder %v748_v24, 1 }
  0xd7   :  { %vm840_vm11 = vcmp.lt.s32.totalorder %v13358_v1, 0  ;;  %v11583_v55 = vmin.u32 %v904_v8, %v13530_v36  ;;  %v763_v44 = vor.u32 %v762_v2, %v761_v38  ;;  %v783_v9 = vshll.u32 %v743_v51, 8 }
  0xd8   :  { %v1054_v47 = vadd.s32 1, %v11590_v34  ;;  %v924_v42 = vsub.s32 4, %v13514_v20  ;;  %v766_v45 = vor.u32 %v765_v33, %v764_v16  ;;  %vm769_vm4 = vcmp.lt.s32.totalorder %v748_v24, 3 }
  0xd9   :  { %vm770_vm6 = vcmp.lt.s32.totalorder %v748_v24, 4  ;;  %v906_v0 = vclz %v11583_v55  ;;  %vm768_vm7 = vcmp.lt.s32.totalorder %v748_v24, 2  ;;  %v771_v40 = vsel %vm767_vm2, %v751_v14, %v754_v23 }
  0xda   :  { %v775_v3 = vsel %vm767_vm2, %v754_v23, %v757_v28  ;;  %v772_v32 = vsel %vm770_vm6, %v760_v37, 2102212464  ;;  %v776_v31 = vsel %vm770_vm6, %v763_v44, 920167782  ;;  %v779_v15 = vsel %vm767_vm2, %v757_v28, %v760_v37 }
  0xdb   :  { %v780_v57 = vsel %vm770_vm6, %v766_v45, 1326507024  ;;  %v11584_v51 = vadd.s32 4294967294, %v906_v0  ;;  %v773_v34 = vsel %vm769_vm4, %v757_v28, %v772_v32  ;;  %v777_v38 = vsel %vm769_vm4, %v760_v37, %v776_v31 }
  0xdc   :  { %v13552_v8 = vpop.eup %12543  ;;  %v781_v2 = vsel %vm769_vm4, %v763_v44, %v780_v57  ;;  %v774_v55 = vsel %vm768_vm7, %v771_v40, %v773_v34  ;;  %v778_v14 = vsel %vm768_vm7, %v775_v3, %v777_v38  ;;  %v925_v31 = vsel %vm840_vm11, %v924_v42, %v13514_v20 }
  0xdd   :  { %19849 = vst [vmem:[#allocation23_spill] sm:$0xff] %v13552_v8  ;;  %v13554_v16 = vpop.eup %12545  ;;  %v19438_v33 = vxor.u32 2147483648, %v13552_v8  ;;  %v782_v23 = vsel %vm768_vm7, %v779_v15, %v781_v2  ;;  %vm11585_vm8 = vcmp.lt.s32.totalorder %v11584_v51, 0  ;;  %v1051_v15 = vand.u32 8388607, %v19440_v60 }
  0xde   :  { %19850 = vst [vmem:[#allocation24_spill] sm:$0xff] %v13554_v16  ;;  %v19439_v49 = vxor.u32 2147483648, %v13554_v16  ;;  %v13561_v45 = vmul.u32.u64.low %v783_v9, %v782_v23  ;;  %v13562_v43 = vmul.u32.u64.high %v783_v9, %v782_v23, %v13561_v45  ;;  %v909_v44 = vsel %vm11585_vm8, 0, %v11584_v51 }
  0xdf   :  { %v3930_v57 = vsel %vm3928_vm9, %v19438_v33, %v13554_v16  ;;  %v13569_v28 = vmul.u32.u64.low %v783_v9, %v778_v14  ;;  %v13570_v37 = vmul.u32.u64.high %v783_v9, %v778_v14, %v13569_v28  ;;  %v910_v0 = vsub.s32 32, %v909_v44 }
  0xe0   :  { %v3927_v24 = vsel %vm3925_vm14, %v13552_v8, %v19439_v49  ;;  %v911_v40 = vshll.u32 %v13530_v36, %v909_v44  ;;  %v914_v3 = vsub.s32 4294967266, %v909_v44  ;;  %vm1055_vm12 = vcmp.gt.s32.totalorder %v1054_v47, 0 }
  0xe1   :  { %v3931_v32 = vsel %vm3924_vm15, %v3927_v24, %v3930_v57  ;;  %v912_v34 = vshrl.u32 %v894_v62, %v910_v0  ;;  %v790_v2 = vmul.u32 %v783_v9, %v774_v55  ;;  %vm792_vm9 = vc.u32 %v13562_v43, %v13569_v28 }
  0xe2   :  { %v13588_v51 = vsel %vm19480_vm0, nan, %v3931_v32  ;;  %v915_v38 = vadd.s32 127, %v914_v3  ;;  %v793_v10 = vadd.s32 1, %v13570_v37  ;;  %v1056_v36 = vsel %vm1055_vm12, %v1054_v47, 0 }
  0xe3   :  { %19851 = vst [vmem:[#allocation25_spill] sm:$0xff] %v13588_v51  ;;  %6770 = vperm.xlu0 %12316, %v13588_v51   ;;  %v19852_v20 = vand.u32 2147483647, %v13358_v1  ;;  %v913_v14 = vor.u32 %v912_v34, %v911_v40  ;;  %v1058_v45 = vand.u32 31, %v1056_v36  ;;  %v1052_v55 = vor.u32 8388608, %v1051_v15  ;;  %v61_v34 = vld [vmem:[%s19407_s0 + $0x40] sm:$0xff] }
  0xe4   :  { %v916_v23 = vshll.u32 %v915_v38, 23  ;;  %v794_v62 = vsel %vm792_vm9, %v793_v10, %v13570_v37  ;;  %v1057_v0 = vshrl.u32 %v1056_v36, 5  ;;  %v19855_v32 = vmov 2475754826  }
  0xe5   :  { %vm13596_vm14 = vcmp.le.f32.partialorder %v19852_v20, 0.7853982  ;;  %v920_v44 = vcvt.s32.f32 %v913_v14  ;;  %v795_v24 = vadd.s32 %v794_v62, %v790_v2  ;;  %v1059_v47 = vsub.s32 32, %v1058_v45 }
  0xe6   :  { %v13602_v9 = vsel %vm13596_vm14, 0, %v925_v31  ;;  %v917_v57 = vor.u32 4788187, %v916_v23  ;;  %v1061_v3 = vshll.u32 %v19441_v41, %v1058_v45  ;;  %v1064_v20 = vshll.u32 %v19855_v32, %v1058_v45 }
  0xe7   :  { %v1067_v40 = vshll.u32 %v19848_v35, %v1058_v45  ;;  %v796_v38 = vadd.s32 536870912, %v795_v24  ;;  %v1062_v37 = vshrl.u32 %v19855_v32, %v1059_v47  ;;  %v19856_v15 = vmov 2102212464  }
  0xe8   :  { %v918_v31 = vand.u32 2147483647, %v917_v57  ;;  %v1070_v10 = vshll.u32 %v19856_v15, %v1058_v45  ;;  %v1065_v2 = vshrl.u32 %v19848_v35, %v1059_v47  ;;  %v1068_v36 = vshrl.u32 %v19856_v15, %v1059_v47 }
  0xe9   :  { %v19857_v14 = vmov 920167782   ;;  %v13617_v49 = vshrl.u32 %v796_v38, 30  ;;  %v19858_v60 = vmov 1326507024   ;;  %v13620_v54 = vmul.f32 0.5, %v61_v34 }
  0xea   :  { %v1071_v23 = vshrl.u32 %v19857_v14, %v1059_v47  ;;  %v1073_v62 = vshll.u32 %v19857_v14, %v1058_v45  ;;  %v921_v33 = vmul.f32 %v920_v44, %v918_v31  ;;  %v1074_v41 = vshrl.u32 %v19858_v60, %v1059_v47 }
  0xeb   :  { %19859 = vst [vmem:[#allocation26_spill] sm:$0xff] %v13620_v54  ;;  %v4234_v57 = vadd.s32 3, %v13602_v9  ;;  %v1060_v63 = vshrl.u32 %v19860_v17, %v1059_v47  ;;  %v1063_v51 = vor.u32 %v1062_v37, %v1061_v3  ;;  %v13624_v13 = vshll.u32 %v1052_v55, 8 }
  0xec   :  { %v922_v48 = vxor.u32 2147483648, %v921_v33  ;;  %v798_v25 = vshll.u32 %v13617_v49, 30  ;;  %v1066_v4 = vor.u32 %v1065_v2, %v1064_v20  ;;  %v1069_v5 = vor.u32 %v1068_v36, %v1067_v40 }
  0xed   :  { %v1072_v45 = vor.u32 %v1071_v23, %v1070_v10  ;;  %v1075_v44 = vor.u32 %v1074_v41, %v1073_v62  ;;  %vm1076_vm15 = vcmp.lt.s32.totalorder %v1057_v0, 1  ;;  %vm1079_vm2 = vcmp.lt.s32.totalorder %v1057_v0, 4 }
  0xee   :  { %v923_v34 = vsel %vm840_vm11, %v922_v48, %v921_v33  ;;  %v799_v31 = vsub.s32 %v795_v24, %v798_v25  ;;  %v1081_v38 = vsel %vm1079_vm2, %v1069_v5, 2102212464  ;;  %v944_v47 = vand.u32 2139095040, %v13620_v54 }
  0xef   :  { %v926_v55 = vsel %vm13596_vm14, %v13358_v1, %v923_v34  ;;  %vm1077_vm4 = vcmp.lt.s32.totalorder %v1057_v0, 2  ;;  %vm1078_vm6 = vcmp.lt.s32.totalorder %v1057_v0, 3  ;;  %v1080_v3 = vsel %vm1076_vm15, %v1060_v63, %v1063_v51 }
  0xf0   :  { %12547 = vcosq.f32 %v926_v55  ;;  %v801_v41 = vsub.s32 0, %v799_v31  ;;  %v1082_v20 = vsel %vm1078_vm6, %v1066_v4, %v1081_v38  ;;  %v1084_v40 = vsel %vm1076_vm15, %v1063_v51, %v1066_v4 }
  0xf1   :  { %12549 = vsinq.f32 %v926_v55  ;;  %v1085_v25 = vsel %vm1079_vm2, %v1072_v45, 920167782  ;;  %v1088_v48 = vsel %vm1076_vm15, %v1066_v4, %v1069_v5  ;;  %v1089_v33 = vsel %vm1079_vm2, %v1075_v44, 1326507024 }
  0xf2   :  { %v11579_v24 = vmin.u32 %v801_v41, %v799_v31  ;;  %v1086_v37 = vsel %vm1078_vm6, %v1069_v5, %v1085_v25  ;;  %v1090_v42 = vsel %vm1078_vm6, %v1072_v45, %v1089_v33  ;;  %v4235_v10 = vand.u32 3, %v4234_v57 }
  0xf3   :  { %v1087_v2 = vsel %vm1077_vm4, %v1084_v40, %v1086_v37  ;;  %v1091_v63 = vsel %vm1077_vm4, %v1088_v48, %v1090_v42  ;;  %v945_v36 = vshrl.u32 %v944_v47, 23  ;;  %v1083_v62 = vsel %vm1077_vm4, %v1080_v3, %v1082_v20 }
  0xf4   :  { %v803_v23 = vclz %v11579_v24  ;;  %v13643_v51 = vmul.u32.u64.low %v13624_v13, %v1091_v63  ;;  %v13644_v34 = vmul.u32.u64.high %v13624_v13, %v1091_v63, %v13643_v51  ;;  %vm930_vm11 = vweird.f32 %v13358_v1 }
  0xf5   :  { %v13647_v4 = vmul.u32.u64.low %v13624_v13, %v1087_v2  ;;  %v13648_v38 = vmul.u32.u64.high %v13624_v13, %v1087_v2, %v13647_v4  ;;  %v11586_v45 = vadd.s32 4294967169, %v945_v36  ;;  %vm4236_vm7 = vcmp.lt.s32.totalorder %v4235_v10, 2 }
  0xf6   :  { %v11580_v5 = vadd.s32 4294967294, %v803_v23  ;;  %vm4240_vm8 = vcmp.eq.s32.totalorder %v4235_v10, 2  ;;  %v791_v57 = vadd.s32 %v13569_v28, %v13562_v43  ;;  %v1099_v0 = vmul.u32 %v13624_v13, %v1083_v62 }
  0xf7   :  { %v951_v44 = vadd.s32 1, %v11586_v45  ;;  %vm1101_vm9 = vc.u32 %v13644_v34, %v13647_v4  ;;  %v1102_v55 = vadd.s32 1, %v13648_v38  ;;  %v19460_v3 = vand.u32 2147483647, %v13620_v54 }
  0xf8   :  { %vm11581_vm12 = vcmp.lt.s32.totalorder %v11580_v5, 0  ;;  %vm4237_vm15 = vcmp.eq.s32.totalorder %v4235_v10, 0  ;;  %v19863_v13 = vand.u32 2147483647, %v13415_v52  ;;  %v821_v36 = vsub.s32 4, %v13617_v49 }
  0xf9   :  { %v806_v47 = vsel %vm11581_vm12, 0, %v11580_v5  ;;  %vm952_vm14 = vcmp.gt.s32.totalorder %v951_v44, 0  ;;  %v1103_v33 = vsel %vm1101_vm9, %v1102_v55, %v13648_v38  ;;  %v948_v23 = vand.u32 8388607, %v19460_v3 }
  0xfa   :  { %v13659_v41 = vpop.eup %12547  ;;  %v807_v20 = vsub.s32 32, %v806_v47  ;;  %v808_v40 = vshll.u32 %v799_v31, %v806_v47  ;;  %v811_v25 = vsub.s32 4294967266, %v806_v47  ;;  %vm13666_vm2 = vcmp.le.f32.partialorder %v19863_v13, 0.7853982 }
  0xfb   :  { %19861 = vst [vmem:[#allocation27_spill] sm:$0xff] %v13659_v41  ;;  %v13661_v48 = vpop.eup %12549  ;;  %v19458_v43 = vxor.u32 2147483648, %v13659_v41  ;;  %v953_v24 = vsel %vm952_vm14, %v951_v44, 0  ;;  %v1104_v2 = vadd.s32 %v1103_v33, %v1099_v0  ;;  %vm737_vm4 = vcmp.lt.s32.totalorder %v13415_v52, 0 }
  0xfc   :  { %19862 = vst [vmem:[#allocation28_spill] sm:$0xff] %v13661_v48  ;;  %v19459_v37 = vxor.u32 2147483648, %v13661_v48  ;;  %v809_v42 = vshrl.u32 %v791_v57, %v807_v20  ;;  %v812_v31 = vadd.s32 127, %v811_v25  ;;  %v955_v62 = vand.u32 31, %v953_v24 }
  0xfd   :  { %v4242_v63 = vsel %vm4240_vm8, %v19458_v43, %v13661_v48  ;;  %v1105_v45 = vadd.s32 536870912, %v1104_v2  ;;  %vm1046_vm6 = vcmp.lt.s32.totalorder %v13476_v46, 0  ;;  %vm19508_vm0 = vweird.f32 %v13476_v46 }
  0xfe   :  { %v4239_v51 = vsel %vm4237_vm15, %v13659_v41, %v19459_v37  ;;  %v810_v38 = vor.u32 %v809_v42, %v808_v40  ;;  %v813_v5 = vshll.u32 %v812_v31, 23  ;;  %v956_v0 = vsub.s32 32, %v955_v62 }
  0xff   :  { %v4243_v57 = vsel %vm4236_vm7, %v4239_v51, %v4242_v63  ;;  %v958_v44 = vshll.u32 %v19860_v17, %v955_v62  ;;  %v1106_v25 = vshrl.u32 %v1105_v45, 30  ;;  %v822_v40 = vsel %vm737_vm4, %v821_v36, %v13617_v49 }
 0x100   :  { %v13687_v47 = vsel %vm930_vm11, nan, %v4243_v57  ;;  %v814_v55 = vor.u32 4788187, %v813_v5  ;;  %v817_v20 = vcvt.s32.f32 %v810_v38  ;;  %v959_v10 = vshrl.u32 %v19855_v32, %v956_v0 }
 0x101   :  { %19866 = vst [vmem:[#allocation29_spill] sm:$0xff] %v13687_v47  ;;  %6785 = vperm.xlu1 %12317, %v13687_v47   ;;  %v961_v13 = vshll.u32 %v19855_v32, %v955_v62  ;;  %v962_v33 = vshrl.u32 %v19848_v35, %v956_v0  ;;  %v1107_v31 = vshll.u32 %v1106_v25, 30  ;;  %v949_v63 = vor.u32 8388608, %v948_v23 }
 0x102   :  { %v815_v42 = vand.u32 2147483647, %v814_v55  ;;  %v954_v51 = vshrl.u32 %v953_v24, 5  ;;  %v964_v5 = vshll.u32 %v19848_v35, %v955_v62  ;;  %v965_v38 = vshrl.u32 %v19856_v15, %v956_v0 }
 0x103   :  { %v967_v45 = vshll.u32 %v19856_v15, %v955_v62  ;;  %v968_v57 = vshrl.u32 %v19857_v14, %v956_v0  ;;  %v13702_v49 = vsel %vm13666_vm2, 0, %v822_v40  ;;  %v13704_v36 = vsub.s32 %v1104_v2, %v1107_v31  ;;  %v20058_v6 = vld [vmem:[#allocation28_spill] sm:$0xff] }
 0x104   :  { %v818_v43 = vmul.f32 %v817_v20, %v815_v42  ;;  %19867 = vst [vmem:[#allocation30_spill] sm:$0xff] %v13702_v49  ;;  %v960_v37 = vor.u32 %v959_v10, %v958_v44  ;;  %v963_v23 = vor.u32 %v962_v33, %v961_v13  ;;  %v970_v55 = vshll.u32 %v19857_v14, %v955_v62  ;;  %v64_v44 = vld [vmem:[%s19407_s0 + $0x58] sm:$0xff] }
 0x105   :  { %v969_v24 = vor.u32 %v968_v57, %v967_v45  ;;  %v971_v3 = vshrl.u32 %v19858_v60, %v956_v0  ;;  %v1110_v8 = vsub.s32 0, %v13704_v36  ;;  %vm973_vm7 = vcmp.lt.s32.totalorder %v954_v51, 1 }
 0x106   :  { %v819_v47 = vxor.u32 2147483648, %v818_v43  ;;  %v13710_v20 = vshll.u32 %v949_v63, 8  ;;  %v957_v40 = vshrl.u32 %v19860_v17, %v956_v0  ;;  %v966_v42 = vor.u32 %v965_v38, %v964_v5 }
 0x107   :  { %v972_v2 = vor.u32 %v971_v3, %v970_v55  ;;  %vm976_vm8 = vcmp.lt.s32.totalorder %v954_v51, 4  ;;  %v19868_v10 = vand.u32 2147483647, %v13476_v46  ;;  %v11591_v33 = vmin.u32 %v1110_v8, %v13704_v36 }
 0x108   :  { %v820_v62 = vsel %vm737_vm4, %v819_v47, %v818_v43  ;;  %vm974_vm9 = vcmp.lt.s32.totalorder %v954_v51, 2  ;;  %vm975_vm14 = vcmp.lt.s32.totalorder %v954_v51, 3  ;;  %v978_v0 = vsel %vm976_vm8, %v966_v42, 2102212464 }
 0x109   :  { %vm13720_vm12 = vcmp.le.f32.partialorder %v19868_v10, 0.7853982  ;;  %v823_v3 = vsel %vm13666_vm2, %v13415_v52, %v820_v62  ;;  %v981_v31 = vsel %vm973_vm7, %v960_v37, %v963_v23  ;;  %v982_v43 = vsel %vm976_vm8, %v969_v24, 920167782 }
 0x10a   :  { %12551 = vcosq.f32 %v823_v3  ;;  %v1112_v47 = vclz %v11591_v33  ;;  %v1130_v63 = vsub.s32 4, %v1106_v25  ;;  %v13731_v5 = vmul.f32 0.5, %v64_v44 }
 0x10b   :  { %12553 = vsinq.f32 %v823_v3  ;;  %v4130_v8 = vadd.s32 3, %v13702_v49  ;;  %v977_v38 = vsel %vm973_vm7, %v957_v40, %v960_v37  ;;  %v983_v45 = vsel %vm975_vm14, %v966_v42, %v982_v43 }
 0x10c   :  { %19871 = vst [vmem:[#allocation31_spill] sm:$0xff] %v13731_v5  ;;  %v11592_v28 = vadd.s32 4294967294, %v1112_v47  ;;  %v979_v57 = vsel %vm975_vm14, %v963_v23, %v978_v0  ;;  %v984_v55 = vsel %vm974_vm9, %v981_v31, %v983_v45  ;;  %v985_v62 = vsel %vm973_vm7, %v963_v23, %v966_v42 }
 0x10d   :  { %v1100_v10 = vadd.s32 %v13647_v4, %v13644_v34  ;;  %v986_v44 = vsel %vm976_vm8, %v972_v2, 1326507024  ;;  %v13743_v33 = vmul.u32.u64.low %v13710_v20, %v984_v55  ;;  %v13744_v3 = vmul.u32.u64.high %v13710_v20, %v984_v55, %v13743_v33 }
 0x10e   :  { %vm11593_vm15 = vcmp.lt.s32.totalorder %v11592_v28, 0  ;;  %v1131_v37 = vsel %vm1046_vm6, %v1130_v63, %v1106_v25  ;;  %v987_v40 = vsel %vm975_vm14, %v969_v24, %v986_v44  ;;  %v1253_v0 = vand.u32 2139095040, %v13731_v5  ;;  %v63_v25 = vld [vmem:[%s19407_s0 + $0x50] sm:$0xff] }
 0x10f   :  { %vm19479_vm2 = vweird.f32 %v13415_v52  ;;  %v4131_v23 = vand.u32 3, %v4130_v8  ;;  %v1115_v42 = vsel %vm11593_vm15, 0, %v11592_v28  ;;  %v980_v34 = vsel %vm974_vm9, %v977_v38, %v979_v57 }
 0x110   :  { %v988_v4 = vsel %vm974_vm9, %v985_v62, %v987_v40  ;;  %v1116_v2 = vsub.s32 32, %v1115_v42  ;;  %v1117_v31 = vshll.u32 %v13704_v36, %v1115_v42  ;;  %v1120_v43 = vsub.s32 4294967266, %v1115_v42 }
 0x111   :  { %v1254_v47 = vshrl.u32 %v1253_v0, 23  ;;  %v13760_v24 = vsel %vm13720_vm12, 0, %v1131_v37  ;;  %v13763_v63 = vmul.u32.u64.low %v13710_v20, %v988_v4  ;;  %v13764_v8 = vmul.u32.u64.high %v13710_v20, %v988_v4, %v13763_v63 }
 0x112   :  { %v19466_v51 = vand.u32 2147483647, %v13731_v5  ;;  %v1118_v38 = vshrl.u32 %v1100_v10, %v1116_v2  ;;  %v1121_v45 = vadd.s32 127, %v1120_v43  ;;  %v999_v36 = vadd.s32 1, %v13744_v3 }
 0x113   :  { %v11598_v28 = vadd.s32 4294967169, %v1254_v47  ;;  %vm4132_vm4 = vcmp.lt.s32.totalorder %v4131_v23, 2  ;;  %vm4133_vm7 = vcmp.eq.s32.totalorder %v4131_v23, 0  ;;  %v996_v57 = vmul.u32 %v13710_v20, %v980_v34 }
 0x114   :  { %v13769_v55 = vmul.f32 0.5, %v63_v25  ;;  %v13771_v62 = vpop.eup %12551  ;;  %vm4136_vm8 = vcmp.eq.s32.totalorder %v4131_v23, 2  ;;  %v1119_v44 = vor.u32 %v1118_v38, %v1117_v31  ;;  %v1122_v37 = vshll.u32 %v1121_v45, 23 }
 0x115   :  { %19873 = vst [vmem:[#allocation33_spill] sm:$0xff] %v13771_v62  ;;  %v1260_v40 = vadd.s32 1, %v11598_v28  ;;  %v13773_v0 = vpop.eup %12553  ;;  %v19465_v10 = vxor.u32 2147483648, %v13771_v62  ;;  %v4442_v42 = vadd.s32 3, %v13760_v24  ;;  %vm998_vm9 = vc.u32 %v13764_v8, %v13743_v33 }
 0x116   :  { %19872 = vst [vmem:[#allocation32_spill] sm:$0xff] %v13769_v55  ;;  %19874 = vst [vmem:[#allocation34_spill] sm:$0xff] %v13773_v0  ;;  %v1257_v20 = vand.u32 8388607, %v19466_v51  ;;  %v19467_v34 = vxor.u32 2147483648, %v13773_v0  ;;  %v1126_v2 = vcvt.s32.f32 %v1119_v44  ;;  %v1000_v31 = vsel %vm998_vm9, %v999_v36, %v13744_v3 }
 0x117   :  { %v1123_v4 = vor.u32 4788187, %v1122_v37  ;;  %v4138_v43 = vsel %vm4136_vm8, %v19465_v10, %v13773_v0  ;;  %v1001_v47 = vadd.s32 %v1000_v31, %v996_v57  ;;  %vm1261_vm14 = vcmp.gt.s32.totalorder %v1260_v40, 0 }
 0x118   :  { %v1150_v25 = vand.u32 2139095040, %v13769_v55  ;;  %v4135_v63 = vsel %vm4133_vm7, %v13771_v62, %v19467_v34  ;;  %v1262_v45 = vsel %vm1261_vm14, %v1260_v40, 0  ;;  %v13796_v57 = vand.u32 3, %v4442_v42 }
 0x119   :  { %v1124_v38 = vand.u32 2147483647, %v1123_v4  ;;  %v4139_v28 = vsel %vm4132_vm4, %v4135_v63, %v4138_v43  ;;  %v1002_v44 = vadd.s32 536870912, %v1001_v47  ;;  %v1264_v37 = vand.u32 31, %v1262_v45 }
 0x11a   :  { %v13794_v3 = vsel %vm19479_vm2, nan, %v4139_v28  ;;  %v1258_v31 = vor.u32 8388608, %v1257_v20  ;;  %v1151_v40 = vshrl.u32 %v1150_v25, 23  ;;  %v1263_v43 = vshrl.u32 %v1262_v45, 5 }
 0x11b   :  { %19875 = vst [vmem:[#allocation35_spill] sm:$0xff] %v13794_v3  ;;  %v1127_v36 = vmul.f32 %v1126_v2, %v1124_v38  ;;  %6780 = vperm.xlu0 %12316, %v13794_v3   ;;  %v13799_v10 = vshrl.u32 %v1002_v44, 30  ;;  %v1265_v51 = vsub.s32 32, %v1264_v37  ;;  %v1267_v63 = vshll.u32 %v19860_v17, %v1264_v37 }
 0x11c   :  { %v1270_v34 = vshll.u32 %v19855_v32, %v1264_v37  ;;  %v1273_v20 = vshll.u32 %v19848_v35, %v1264_v37  ;;  %v1276_v2 = vshll.u32 %v19856_v15, %v1264_v37  ;;  %v13818_v52 = vshll.u32 %v1258_v31, 8 }
 0x11d   :  { %v1128_v23 = vxor.u32 2147483648, %v1127_v36  ;;  %v1004_v28 = vshll.u32 %v13799_v10, 30  ;;  %v1268_v42 = vshrl.u32 %v19855_v32, %v1265_v51  ;;  %v1271_v44 = vshrl.u32 %v19848_v35, %v1265_v51 }
 0x11e   :  { %v1274_v25 = vshrl.u32 %v19856_v15, %v1265_v51  ;;  %v1277_v45 = vshrl.u32 %v19857_v14, %v1265_v51  ;;  %v11594_v62 = vadd.s32 4294967169, %v1151_v40  ;;  %v1266_v16 = vshrl.u32 %v19860_v17, %v1265_v51 }
 0x11f   :  { %v1129_v38 = vsel %vm1046_vm6, %v1128_v23, %v1127_v36  ;;  %v13816_v3 = vsub.s32 %v1001_v47, %v1004_v28  ;;  %v1269_v0 = vor.u32 %v1268_v42, %v1267_v63  ;;  %v1272_v49 = vor.u32 %v1271_v44, %v1270_v34 }
 0x120   :  { %v1132_v4 = vsel %vm13720_vm12, %v13476_v46, %v1129_v38  ;;  %v1279_v36 = vshll.u32 %v19857_v14, %v1264_v37  ;;  %vm943_vm6 = vcmp.lt.s32.totalorder %v13620_v54, 0  ;;  %v1278_v1 = vor.u32 %v1277_v45, %v1276_v2 }
 0x121   :  { %12555 = vcosq.f32 %v1132_v4  ;;  %v1007_v23 = vsub.s32 0, %v13816_v3  ;;  %vm4448_vm12 = vcmp.eq.s32.totalorder %v13796_v57, 2  ;;  %v1275_v13 = vor.u32 %v1274_v25, %v1273_v20 }
 0x122   :  { %12557 = vsinq.f32 %v1132_v4  ;;  %v1280_v47 = vshrl.u32 %v19858_v60, %v1265_v51  ;;  %vm1282_vm15 = vcmp.lt.s32.totalorder %v1263_v43, 1  ;;  %v19876_v31 = vand.u32 2147483647, %v13769_v55 }
 0x123   :  { %vm4445_vm4 = vcmp.eq.s32.totalorder %v13796_v57, 0  ;;  %v11587_v34 = vmin.u32 %v1007_v23, %v13816_v3  ;;  %vm1283_vm7 = vcmp.lt.s32.totalorder %v1263_v43, 2  ;;  %vm1284_vm8 = vcmp.lt.s32.totalorder %v1263_v43, 3 }
 0x124   :  { %v13828_v40 = vand.u32 8388607, %v19876_v31  ;;  %vm1285_vm9 = vcmp.lt.s32.totalorder %v1263_v43, 4  ;;  %vm4444_vm14 = vcmp.lt.s32.totalorder %v13796_v57, 2  ;;  %v19877_v37 = vand.u32 2147483647, %v13620_v54 }
 0x125   :  { %v1281_v51 = vor.u32 %v1280_v47, %v1279_v36  ;;  %v1287_v63 = vsel %vm1285_vm9, %v1275_v13, 2102212464  ;;  %v1290_v28 = vsel %vm1282_vm15, %v1269_v0, %v1272_v49  ;;  %v1291_v42 = vsel %vm1285_vm9, %v1278_v1, 920167782 }
 0x126   :  { %vm13835_vm2 = vcmp.le.f32.partialorder %v19877_v37, 0.7853982  ;;  %v1009_v20 = vclz %v11587_v34  ;;  %v1027_v2 = vsub.s32 4, %v13799_v10  ;;  %v1286_v38 = vsel %vm1282_vm15, %v1266_v16, %v1269_v0 }
 0x127   :  { %v1157_v44 = vadd.s32 1, %v11594_v62  ;;  %v1288_v25 = vsel %vm1284_vm8, %v1272_v49, %v1287_v63  ;;  %v1292_v45 = vsel %vm1284_vm8, %v1275_v13, %v1291_v42  ;;  %v1294_v23 = vsel %vm1282_vm15, %v1272_v49, %v1275_v13 }
 0x128   :  { %v1295_v31 = vsel %vm1285_vm9, %v1281_v51, 1326507024  ;;  %v997_v36 = vadd.s32 %v13743_v33, %v13764_v8  ;;  %v11588_v47 = vadd.s32 4294967294, %v1009_v20  ;;  %v1293_v37 = vsel %vm1283_vm7, %v1290_v28, %v1292_v45 }
 0x129   :  { %v1296_v34 = vsel %vm1284_vm8, %v1278_v1, %v1295_v31  ;;  %v1289_v39 = vsel %vm1283_vm7, %v1286_v38, %v1288_v25  ;;  %v13853_v62 = vmul.u32.u64.low %v13818_v52, %v1293_v37  ;;  %v13854_v0 = vmul.u32.u64.high %v13818_v52, %v1293_v37, %v13853_v62 }
 0x12a   :  { %v1297_v16 = vsel %vm1283_vm7, %v1294_v23, %v1296_v34  ;;  %vm11589_vm13 = vcmp.lt.s32.totalorder %v11588_v47, 0  ;;  %vm1158_vm15 = vcmp.gt.s32.totalorder %v1157_v44, 0  ;;  %v1028_v1 = vsel %vm943_vm6, %v1027_v2, %v13799_v10 }
 0x12b   :  { %v13858_v49 = vmul.u32.u64.low %v13818_v52, %v1297_v16  ;;  %v13859_v13 = vmul.u32.u64.high %v13818_v52, %v1297_v16, %v13858_v49  ;;  %v13861_v33 = vpop.eup %12555  ;;  %v1012_v8 = vsel %vm11589_vm13, 0, %v11588_v47  ;;  %v1159_v51 = vsel %vm1158_vm15, %v1157_v44, 0 }
 0x12c   :  { %19880 = vst [vmem:[#allocation36_spill] sm:$0xff] %v13861_v33  ;;  %v13867_v63 = vpop.eup %12557  ;;  %v19483_v28 = vxor.u32 2147483648, %v13861_v33  ;;  %v1013_v42 = vsub.s32 32, %v1012_v8  ;;  %v1014_v20 = vshll.u32 %v13816_v3, %v1012_v8  ;;  %v1017_v38 = vsub.s32 4294967266, %v1012_v8 }
 0x12d   :  { %19881 = vst [vmem:[#allocation37_spill] sm:$0xff] %v13867_v63  ;;  %v19484_v25 = vxor.u32 2147483648, %v13867_v63  ;;  %v1305_v45 = vmul.u32 %v13818_v52, %v1289_v39  ;;  %v1308_v23 = vadd.s32 1, %v13854_v0  ;;  %v1161_v31 = vand.u32 31, %v1159_v51 }
 0x12e   :  { %v4450_v10 = vsel %vm4448_vm12, %v19483_v28, %v13867_v63  ;;  %v1015_v2 = vshrl.u32 %v997_v36, %v1013_v42  ;;  %v1018_v44 = vadd.s32 127, %v1017_v38  ;;  %v13881_v47 = vsel %vm13835_vm2, 0, %v1028_v1 }
 0x12f   :  { %19882 = vst [vmem:[#allocation38_spill] sm:$0xff] %v13881_v47  ;;  %v4447_v39 = vsel %vm4445_vm4, %v13861_v33, %v19484_v25  ;;  %vm1307_vm13 = vc.u32 %v13859_v13, %v13853_v62  ;;  %v1162_v52 = vsub.s32 32, %v1161_v31  ;;  %v1164_v3 = vshll.u32 %v19860_v17, %v1161_v31 }
 0x130   :  { %v4451_v36 = vsel %vm4444_vm14, %v4447_v39, %v4450_v10  ;;  %v1016_v37 = vor.u32 %v1015_v2, %v1014_v20  ;;  %v1019_v34 = vshll.u32 %v1018_v44, 23  ;;  %v1309_v16 = vsel %vm1307_vm13, %v1308_v23, %v13854_v0  ;;  %v66_v39 = vld [vmem:[%s19407_s0 + $0x68] sm:$0xff] }
 0x131   :  { %v13896_v49 = vsel %vm19508_vm0, nan, %v4451_v36  ;;  %v1310_v8 = vadd.s32 %v1309_v16, %v1305_v45  ;;  %v1160_v1 = vshrl.u32 %v1159_v51, 5  ;;  %v1165_v42 = vshrl.u32 %v19855_v32, %v1162_v52 }
 0x132   :  { %19883 = vst [vmem:[#allocation39_spill] sm:$0xff] %v13896_v49  ;;  %6795 = vperm.xlu1 %12317, %v13896_v49   ;;  %v1020_v38 = vor.u32 4788187, %v1019_v34  ;;  %v1023_v28 = vcvt.s32.f32 %v1016_v37  ;;  %v1167_v25 = vshll.u32 %v19855_v32, %v1161_v31  ;;  %v1168_v57 = vshrl.u32 %v19848_v35, %v1162_v52 }
 0x133   :  { %v4338_v20 = vadd.s32 3, %v13881_v47  ;;  %v1311_v10 = vadd.s32 536870912, %v1310_v8  ;;  %v1170_v0 = vshll.u32 %v19848_v35, %v1161_v31  ;;  %v1171_v23 = vshrl.u32 %v19856_v15, %v1162_v52 }
 0x134   :  { %v1021_v2 = vand.u32 2147483647, %v1020_v38  ;;  %v1166_v45 = vor.u32 %v1165_v42, %v1164_v3  ;;  %v1173_v51 = vshll.u32 %v19856_v15, %v1161_v31  ;;  %v1174_v44 = vshrl.u32 %v19857_v14, %v1162_v52 }
 0x135   :  { %v1312_v36 = vshrl.u32 %v1311_v10, 30  ;;  %v1169_v37 = vor.u32 %v1168_v57, %v1167_v25  ;;  %v1176_v34 = vshll.u32 %v19857_v14, %v1161_v31  ;;  %v1177_v16 = vshrl.u32 %v19858_v60, %v1162_v52 }
 0x136   :  { %v1024_v43 = vmul.f32 %v1023_v28, %v1021_v2  ;;  %v1172_v49 = vor.u32 %v1171_v23, %v1170_v0  ;;  %v1175_v47 = vor.u32 %v1174_v44, %v1173_v51  ;;  %vm1179_vm12 = vcmp.lt.s32.totalorder %v1160_v1, 1 }
 0x137   :  { %v1313_v38 = vshll.u32 %v1312_v36, 30  ;;  %v1163_v3 = vshrl.u32 %v19860_v17, %v1162_v52  ;;  %vm1181_vm4 = vcmp.lt.s32.totalorder %v1160_v1, 3  ;;  %v13913_v42 = vmul.f32 0.5, %v66_v39 }
 0x138   :  { %v1025_v46 = vxor.u32 2147483648, %v1024_v43  ;;  %v1178_v33 = vor.u32 %v1177_v16, %v1176_v34  ;;  %vm1180_vm7 = vcmp.lt.s32.totalorder %v1160_v1, 2  ;;  %vm1182_vm8 = vcmp.lt.s32.totalorder %v1160_v1, 4 }
 0x139   :  { %19884 = vst [vmem:[#allocation40_spill] sm:$0xff] %v13913_v42  ;;  %v13915_v10 = vsub.s32 %v1310_v8, %v1313_v38  ;;  %v1184_v25 = vsel %vm1182_vm8, %v1172_v49, 2102212464  ;;  %v1187_v31 = vsel %vm1179_vm12, %v1166_v45, %v1169_v37  ;;  %v1188_v28 = vsel %vm1182_vm8, %v1175_v47, 920167782 }
 0x13a   :  { %v1026_v57 = vsel %vm943_vm6, %v1025_v46, %v1024_v43  ;;  %v13922_v0 = vand.u32 3, %v4338_v20  ;;  %v1189_v52 = vsel %vm1181_vm4, %v1172_v49, %v1188_v28  ;;  %v19885_v23 = vor.u32 8388608, %v13828_v40  ;;  %v65_v46 = vld [vmem:[%s19407_s0 + $0x60] sm:$0xff] }
 0x13b   :  { %v1029_v8 = vsel %vm13835_vm2, %v13620_v54, %v1026_v57  ;;  %v1316_v51 = vsub.s32 0, %v13915_v10  ;;  %v1183_v44 = vsel %vm1179_vm12, %v1163_v3, %v1166_v45  ;;  %v1185_v39 = vsel %vm1181_vm4, %v1169_v37, %v1184_v25 }
 0x13c   :  { %v1195_v2 = vshll.u32 %v19885_v23, 8  ;;  %12559 = vcosq.f32 %v1029_v8  ;;  %v1190_v43 = vsel %vm1180_vm7, %v1187_v31, %v1189_v52  ;;  %v1191_v40 = vsel %vm1179_vm12, %v1169_v37, %v1172_v49 }
 0x13d   :  { %v1192_v20 = vsel %vm1182_vm8, %v1178_v33, 1326507024  ;;  %12561 = vsinq.f32 %v1029_v8  ;;  %v11599_v4 = vmin.u32 %v1316_v51, %v13915_v10  ;;  %v1336_v34 = vsub.s32 4, %v1312_v36 }
 0x13e   :  { %v1193_v16 = vsel %vm1181_vm4, %v1175_v47, %v1192_v20  ;;  %v13942_v38 = vmul.u32.u64.low %v1195_v2, %v1190_v43  ;;  %v13943_v3 = vmul.u32.u64.high %v1195_v2, %v1190_v43, %v13942_v38  ;;  %v13946_v25 = vmul.f32 0.5, %v65_v46 }
 0x13f   :  { %v1194_v45 = vsel %vm1180_vm7, %v1191_v40, %v1193_v16  ;;  %v19887_v31 = vand.u32 2147483647, %v13731_v5  ;;  %v1318_v33 = vclz %v11599_v4  ;;  %v1186_v37 = vsel %vm1180_vm7, %v1183_v44, %v1185_v39 }
 0x140   :  { %19886 = vst [vmem:[#allocation41_spill] sm:$0xff] %v13946_v25  ;;  %vm1252_vm6 = vcmp.lt.s32.totalorder %v13731_v5, 0  ;;  %v13956_v47 = vmul.u32.u64.low %v1195_v2, %v1194_v45  ;;  %v13957_v28 = vmul.u32.u64.high %v1195_v2, %v1194_v45, %v13956_v47  ;;  %v19494_v57 = vand.u32 2147483647, %v13913_v42 }
 0x141   :  { %vm13950_vm2 = vcmp.le.f32.partialorder %v19887_v31, 0.7853982  ;;  %vm19507_vm9 = vweird.f32 %v13620_v54  ;;  %vm4340_vm14 = vcmp.lt.s32.totalorder %v13922_v0, 2  ;;  %v11600_v52 = vadd.s32 4294967294, %v1318_v33 }
 0x142   :  { %v1337_v23 = vsel %vm1252_vm6, %v1336_v34, %v1312_v36  ;;  %v1459_v8 = vand.u32 2139095040, %v13913_v42  ;;  %vm4341_vm15 = vcmp.eq.s32.totalorder %v13922_v0, 0  ;;  %v1202_v1 = vmul.u32 %v1195_v2, %v1186_v37 }
 0x143   :  { %v1205_v51 = vadd.s32 1, %v13943_v3  ;;  %v1356_v44 = vand.u32 2139095040, %v13946_v25  ;;  %vm4344_vm13 = vcmp.eq.s32.totalorder %v13922_v0, 2  ;;  %v1306_v39 = vadd.s32 %v13853_v62, %v13859_v13 }
 0x144   :  { %vm11601_vm12 = vcmp.lt.s32.totalorder %v11600_v52, 0  ;;  %v1460_v46 = vshrl.u32 %v1459_v8, 23  ;;  %v13973_v36 = vsel %vm13950_vm2, 0, %v1337_v23  ;;  %vm1204_vm4 = vc.u32 %v13957_v28, %v13942_v38 }
 0x145   :  { %v1321_v43 = vsel %vm11601_vm12, 0, %v11600_v52  ;;  %19890 = vst [vmem:[#allocation42_spill] sm:$0xff] %v13973_v36  ;;  %v1463_v2 = vand.u32 8388607, %v19494_v57  ;;  %v1206_v34 = vsel %vm1204_vm4, %v1205_v51, %v13943_v3  ;;  %v19493_v45 = vand.u32 2147483647, %v13946_v25 }
 0x146   :  { %v1322_v40 = vsub.s32 32, %v1321_v43  ;;  %v1323_v20 = vshll.u32 %v13915_v10, %v1321_v43  ;;  %v1326_v4 = vsub.s32 4294967266, %v1321_v43  ;;  %v13981_v62 = vpop.eup %12559  ;;  %v1207_v13 = vadd.s32 %v1206_v34, %v1202_v1 }
 0x147   :  { %19891 = vst [vmem:[#allocation43_spill] sm:$0xff] %v13981_v62  ;;  %v11606_v16 = vadd.s32 4294967169, %v1460_v46  ;;  %v1357_v31 = vshrl.u32 %v1356_v44, 23  ;;  %v13984_v33 = vpop.eup %12561  ;;  %v19491_v37 = vxor.u32 2147483648, %v13981_v62  ;;  %v4650_v23 = vadd.s32 3, %v13973_v36 }
 0x148   :  { %19892 = vst [vmem:[#allocation44_spill] sm:$0xff] %v13984_v33  ;;  %v1324_v47 = vshrl.u32 %v1306_v39, %v1322_v40  ;;  %v1327_v52 = vadd.s32 127, %v1326_v4  ;;  %v19492_v10 = vxor.u32 2147483648, %v13984_v33  ;;  %v1208_v8 = vadd.s32 536870912, %v1207_v13 }
 0x149   :  { %v1466_v43 = vadd.s32 1, %v11606_v16  ;;  %v11602_v3 = vadd.s32 4294967169, %v1357_v31  ;;  %v4346_v1 = vsel %vm4344_vm13, %v19491_v37, %v13984_v33  ;;  %v1464_v46 = vor.u32 8388608, %v1463_v2 }
 0x14a   :  { %v1325_v51 = vor.u32 %v1324_v47, %v1323_v20  ;;  %v1328_v44 = vshll.u32 %v1327_v52, 23  ;;  %v4343_v39 = vsel %vm4341_vm15, %v13981_v62, %v19492_v10  ;;  %v1209_v40 = vshrl.u32 %v1208_v8, 30 }
 0x14b   :  { %vm1467_vm7 = vcmp.gt.s32.totalorder %v1466_v43, 0  ;;  %v1360_v4 = vand.u32 8388607, %v19493_v45  ;;  %v4347_v34 = vsel %vm4340_vm14, %v4343_v39, %v4346_v1  ;;  %v14007_v47 = vadd.s32 1, %v11602_v3 }
 0x14c   :  { %v1329_v16 = vor.u32 4788187, %v1328_v44  ;;  %v1332_v31 = vcvt.s32.f32 %v1325_v51  ;;  %v1468_v37 = vsel %vm1467_vm7, %v1466_v43, 0  ;;  %v14005_v2 = vsel %vm19507_vm9, nan, %v4347_v34 }
 0x14d   :  { %19893 = vst [vmem:[#allocation45_spill] sm:$0xff] %v14005_v2  ;;  %v1210_v20 = vshll.u32 %v1209_v40, 30  ;;  %6790 = vperm.xlu0 %12316, %v14005_v2   ;;  %v14010_v8 = vand.u32 3, %v4650_v23  ;;  %vm1149_vm8 = vcmp.lt.s32.totalorder %v13769_v55, 0  ;;  %v1470_v10 = vand.u32 31, %v1468_v37 }
 0x14e   :  { %v1330_v52 = vand.u32 2147483647, %v1329_v16  ;;  %v1203_v0 = vadd.s32 %v13942_v38, %v13957_v28  ;;  %v14017_v43 = vshll.u32 %v1464_v46, 8  ;;  %v1361_v51 = vor.u32 8388608, %v1360_v4  ;;  %v68_v4 = vld [vmem:[%s19407_s0 + $0x78] sm:$0xff] }
 0x14f   :  { %v14015_v1 = vsub.s32 %v1207_v13, %v1210_v20  ;;  %v1233_v39 = vsub.s32 4, %v1209_v40  ;;  %v1471_v3 = vsub.s32 32, %v1470_v10  ;;  %v1473_v34 = vshll.u32 %v19860_v17, %v1470_v10 }
 0x150   :  { %v1333_v44 = vmul.f32 %v1332_v31, %v1330_v52  ;;  %v1469_v23 = vshrl.u32 %v1468_v37, 5  ;;  %v1476_v45 = vshll.u32 %v19855_v32, %v1470_v10  ;;  %vm1364_vm14 = vcmp.gt.s32.totalorder %v14007_v47, 0 }
 0x151   :  { %v1213_v16 = vsub.s32 0, %v14015_v1  ;;  %v1474_v38 = vshrl.u32 %v19855_v32, %v1471_v3  ;;  %v1477_v28 = vshrl.u32 %v19848_v35, %v1471_v3  ;;  %v1479_v13 = vshll.u32 %v19848_v35, %v1470_v10 }
 0x152   :  { %v1334_v57 = vxor.u32 2147483648, %v1333_v44  ;;  %v19894_v46 = vand.u32 2147483647, %v13769_v55  ;;  %v1480_v37 = vshrl.u32 %v19856_v15, %v1471_v3  ;;  %v1482_v20 = vshll.u32 %v19856_v15, %v1470_v10 }
 0x153   :  { %v11595_v31 = vmin.u32 %v1213_v16, %v14015_v1  ;;  %v14035_v52 = vshll.u32 %v1361_v51, 8  ;;  %v1475_v54 = vor.u32 %v1474_v38, %v1473_v34  ;;  %v1478_v62 = vor.u32 %v1477_v28, %v1476_v45 }
 0x154   :  { %vm14028_vm15 = vcmp.le.f32.partialorder %v19894_v46, 0.7853982  ;;  %v1335_v2 = vsel %vm1252_vm6, %v1334_v57, %v1333_v44  ;;  %v1483_v33 = vshrl.u32 %v19857_v14, %v1471_v3  ;;  %v1234_v16 = vsel %vm1149_vm8, %v1233_v39, %v1209_v40 }
 0x155   :  { %v1338_v46 = vsel %vm13950_vm2, %v13731_v5, %v1335_v2  ;;  %v1215_v63 = vclz %v11595_v31  ;;  %vm1488_vm13 = vcmp.lt.s32.totalorder %v1469_v23, 1  ;;  %v1472_v51 = vshrl.u32 %v19860_v17, %v1471_v3 }
 0x156   :  { %12563 = vcosq.f32 %v1338_v46  ;;  %v1481_v36 = vor.u32 %v1480_v37, %v1479_v13  ;;  %v1484_v41 = vor.u32 %v1483_v33, %v1482_v20  ;;  %v1485_v45 = vshll.u32 %v19857_v14, %v1470_v10 }
 0x157   :  { %12565 = vsinq.f32 %v1338_v46  ;;  %v11596_v57 = vadd.s32 4294967294, %v1215_v63  ;;  %v1486_v44 = vshrl.u32 %v19858_v60, %v1471_v3  ;;  %vm4656_vm6 = vcmp.eq.s32.totalorder %v14010_v8, 2 }
 0x158   :  { %vm1489_vm12 = vcmp.lt.s32.totalorder %v1469_v23, 2  ;;  %vm1490_vm2 = vcmp.lt.s32.totalorder %v1469_v23, 3  ;;  %vm1491_vm4 = vcmp.lt.s32.totalorder %v1469_v23, 4  ;;  %v1496_v49 = vsel %vm1488_vm13, %v1475_v54, %v1478_v62 }
 0x159   :  { %vm4653_vm7 = vcmp.eq.s32.totalorder %v14010_v8, 0  ;;  %vm11597_vm9 = vcmp.lt.s32.totalorder %v11596_v57, 0  ;;  %v1487_v40 = vor.u32 %v1486_v44, %v1485_v45  ;;  %v1493_v2 = vsel %vm1491_vm4, %v1481_v36, 2102212464 }
 0x15a   :  { %v1497_v33 = vsel %vm1491_vm4, %v1484_v41, 920167782  ;;  %vm4652_vm0 = vcmp.lt.s32.totalorder %v14010_v8, 2  ;;  %v1218_v63 = vsel %vm11597_vm9, 0, %v11596_v57  ;;  %v1492_v10 = vsel %vm1488_vm13, %v1472_v51, %v1475_v54 }
 0x15b   :  { %v1494_v39 = vsel %vm1490_vm2, %v1478_v62, %v1493_v2  ;;  %v1498_v3 = vsel %vm1490_vm2, %v1481_v36, %v1497_v33  ;;  %vm1342_vm3 = vweird.f32 %v13731_v5  ;;  %v1219_v34 = vsub.s32 32, %v1218_v63 }
 0x15c   :  { %v1220_v38 = vshll.u32 %v14015_v1, %v1218_v63  ;;  %v1223_v28 = vsub.s32 4294967266, %v1218_v63  ;;  %v1500_v13 = vsel %vm1488_vm13, %v1478_v62, %v1481_v36  ;;  %v14062_v31 = vsel %vm14028_vm15, 0, %v1234_v16 }
 0x15d   :  { %19897 = vst [vmem:[#allocation46_spill] sm:$0xff] %v14062_v31  ;;  %v1499_v37 = vsel %vm1489_vm12, %v1496_v49, %v1498_v3  ;;  %v1501_v54 = vsel %vm1491_vm4, %v1487_v40, 1326507024  ;;  %v1365_v20 = vsel %vm1364_vm14, %v14007_v47, 0  ;;  %v1221_v46 = vshrl.u32 %v1203_v0, %v1219_v34 }
 0x15e   :  { %v1224_v51 = vadd.s32 127, %v1223_v28  ;;  %v1495_v57 = vsel %vm1489_vm12, %v1492_v10, %v1494_v39  ;;  %v1502_v1 = vsel %vm1490_vm2, %v1484_v41, %v1501_v54  ;;  %v1367_v45 = vand.u32 31, %v1365_v20 }
 0x15f   :  { %v1503_v36 = vsel %vm1489_vm12, %v1500_v13, %v1502_v1  ;;  %v14073_v62 = vmul.u32.u64.low %v14017_v43, %v1499_v37  ;;  %v14074_v16 = vmul.u32.u64.high %v14017_v43, %v1499_v37, %v14073_v62  ;;  %v1222_v44 = vor.u32 %v1221_v46, %v1220_v38 }
 0x160   :  { %v1225_v49 = vshll.u32 %v1224_v51, 23  ;;  %v14078_v40 = vmul.u32.u64.low %v14017_v43, %v1503_v36  ;;  %v14079_v2 = vmul.u32.u64.high %v14017_v43, %v1503_v36, %v14078_v40  ;;  %v14081_v47 = vpop.eup %12563  ;;  %v1511_v0 = vmul.u32 %v14017_v43, %v1495_v57 }
 0x161   :  { %19898 = vst [vmem:[#allocation47_spill] sm:$0xff] %v14081_v47  ;;  %v14084_v33 = vshrl.u32 %v1365_v20, 5  ;;  %v1368_v41 = vsub.s32 32, %v1367_v45  ;;  %v1370_v23 = vshll.u32 %v19860_v17, %v1367_v45  ;;  %v14087_v63 = vpop.eup %12565  ;;  %v19510_v10 = vxor.u32 2147483648, %v14081_v47 }
 0x162   :  { %19899 = vst [vmem:[#allocation48_spill] sm:$0xff] %v14087_v63  ;;  %v1226_v39 = vor.u32 4788187, %v1225_v49  ;;  %v1229_v3 = vcvt.s32.f32 %v1222_v44  ;;  %v1373_v34 = vshll.u32 %v19855_v32, %v1367_v45  ;;  %v19511_v38 = vxor.u32 2147483648, %v14087_v63 }
 0x163   :  { %v1514_v28 = vadd.s32 1, %v14074_v16  ;;  %v1371_v13 = vshrl.u32 %v19855_v32, %v1368_v41  ;;  %v1376_v43 = vshll.u32 %v19848_v35, %v1367_v45  ;;  %v4658_v37 = vsel %vm4656_vm6, %v19510_v10, %v14087_v63 }
 0x164   :  { %v1227_v54 = vand.u32 2147483647, %v1226_v39  ;;  %vm1513_vm9 = vc.u32 %v14079_v2, %v14073_v62  ;;  %v1379_v20 = vshll.u32 %v19856_v15, %v1367_v45  ;;  %v4655_v46 = vsel %vm4653_vm7, %v14081_v47, %v19511_v38 }
 0x165   :  { %v1515_v51 = vsel %vm1513_vm9, %v1514_v28, %v14074_v16  ;;  %v1369_v57 = vshrl.u32 %v19860_v17, %v1368_v41  ;;  %v1374_v1 = vshrl.u32 %v19848_v35, %v1368_v41  ;;  %v4659_v36 = vsel %vm4652_vm0, %v4655_v46, %v4658_v37 }
 0x166   :  { %v1230_v44 = vmul.f32 %v1229_v3, %v1227_v54  ;;  %v1516_v49 = vadd.s32 %v1515_v51, %v1511_v0  ;;  %v1377_v40 = vshrl.u32 %v19856_v15, %v1368_v41  ;;  %v14116_v39 = vsel %vm1342_vm3, nan, %v4659_v36 }
 0x167   :  { %19900 = vst [vmem:[#allocation49_spill] sm:$0xff] %v14116_v39  ;;  %v1372_v10 = vor.u32 %v1371_v13, %v1370_v23  ;;  %v1380_v38 = vshrl.u32 %v19857_v14, %v1368_v41  ;;  %v1382_v16 = vshll.u32 %v19857_v14, %v1367_v45  ;;  %6805 = vperm.xlu1 %12317, %v14116_v39   ;;  %v4546_v0 = vadd.s32 3, %v14062_v31 }
 0x168   :  { %v1231_v28 = vxor.u32 2147483648, %v1230_v44  ;;  %v1517_v47 = vadd.s32 536870912, %v1516_v49  ;;  %v1375_v63 = vor.u32 %v1374_v1, %v1373_v34  ;;  %v1383_v8 = vshrl.u32 %v19858_v60, %v1368_v41 }
 0x169   :  { %v1378_v3 = vor.u32 %v1377_v40, %v1376_v43  ;;  %v1381_v37 = vor.u32 %v1380_v38, %v1379_v20  ;;  %vm1385_vm0 = vcmp.lt.s32.totalorder %v14084_v33, 1  ;;  %vm1388_vm14 = vcmp.lt.s32.totalorder %v14084_v33, 4 }
 0x16a   :  { %v1232_v23 = vsel %vm1149_vm8, %v1231_v28, %v1230_v44  ;;  %v1518_v13 = vshrl.u32 %v1517_v47, 30  ;;  %v1384_v54 = vor.u32 %v1383_v8, %v1382_v16  ;;  %vm1386_vm13 = vcmp.lt.s32.totalorder %v14084_v33, 2 }
 0x16b   :  { %v1235_v45 = vsel %vm14028_vm15, %v13769_v55, %v1232_v23  ;;  %vm1387_vm6 = vcmp.lt.s32.totalorder %v14084_v33, 3  ;;  %v1390_v41 = vsel %vm1388_vm14, %v1378_v3, 2102212464  ;;  %v1389_v38 = vsel %vm1385_vm0, %v1369_v57, %v1372_v10 }
 0x16c   :  { %12567 = vcosq.f32 %v1235_v45  ;;  %v1519_v34 = vshll.u32 %v1518_v13, 30  ;;  %v1393_v47 = vsel %vm1385_vm0, %v1372_v10, %v1375_v63  ;;  %v1391_v43 = vsel %vm1387_vm6, %v1375_v63, %v1390_v41 }
 0x16d   :  { %12569 = vsinq.f32 %v1235_v45  ;;  %v1394_v20 = vsel %vm1388_vm14, %v1381_v37, 920167782  ;;  %v1397_v46 = vsel %vm1385_vm0, %v1375_v63, %v1378_v3  ;;  %v1398_v10 = vsel %vm1388_vm14, %v1384_v54, 1326507024 }
 0x16e   :  { %v14147_v51 = vsub.s32 %v1516_v49, %v1519_v34  ;;  %v1395_v57 = vsel %vm1387_vm6, %v1378_v3, %v1394_v20  ;;  %v4547_v1 = vand.u32 3, %v4546_v0  ;;  %v1399_v44 = vsel %vm1387_vm6, %v1381_v37, %v1398_v10 }
 0x16f   :  { %v1396_v36 = vsel %vm1386_vm13, %v1393_v47, %v1395_v57  ;;  %v14157_v40 = vmul.f32 0.5, %v68_v4  ;;  %v1542_v63 = vsub.s32 4, %v1518_v13  ;;  %v1392_v49 = vsel %vm1386_vm13, %v1389_v38, %v1391_v43  ;;  %v67_v47 = vld [vmem:[%s19407_s0 + $0x70] sm:$0xff] }
 0x170   :  { %v1522_v16 = vsub.s32 0, %v14147_v51  ;;  %v1400_v28 = vsel %vm1386_vm13, %v1397_v46, %v1399_v44  ;;  %v14169_v3 = vmul.u32.u64.low %v14035_v52, %v1396_v36  ;;  %v14170_v23 = vmul.u32.u64.high %v14035_v52, %v1396_v36, %v14169_v3 }
 0x171   :  { %19901 = vst [vmem:[#allocation50_spill] sm:$0xff] %v14157_v40  ;;  %v14165_v8 = vmul.u32.u64.low %v14035_v52, %v1400_v28  ;;  %v14166_v0 = vmul.u32.u64.high %v14035_v52, %v1400_v28, %v14165_v8  ;;  %vm19585_vm8 = vweird.f32 %v13769_v55  ;;  %v19902_v54 = vand.u32 2147483647, %v13913_v42 }
 0x172   :  { %v11607_v37 = vmin.u32 %v1522_v16, %v14147_v51  ;;  %vm1458_vm12 = vcmp.lt.s32.totalorder %v13913_v42, 0  ;;  %v1665_v33 = vand.u32 2139095040, %v14157_v40  ;;  %vm4548_vm2 = vcmp.lt.s32.totalorder %v4547_v1, 2 }
 0x173   :  { %vm14176_vm15 = vcmp.le.f32.partialorder %v19902_v54, 0.7853982  ;;  %v1543_v34 = vsel %vm1458_vm12, %v1542_v63, %v1518_v13  ;;  %v1408_v38 = vmul.u32 %v14035_v52, %v1392_v49  ;;  %vm1410_vm4 = vc.u32 %v14166_v0, %v14169_v3 }
 0x174   :  { %v1524_v41 = vclz %v11607_v37  ;;  %v1411_v4 = vadd.s32 1, %v14170_v23  ;;  %v19518_v43 = vand.u32 2147483647, %v14157_v40  ;;  %v1666_v20 = vshrl.u32 %v1665_v33, 23 }
 0x175   :  { %vm4549_vm7 = vcmp.eq.s32.totalorder %v4547_v1, 0  ;;  %vm4552_vm9 = vcmp.eq.s32.totalorder %v4547_v1, 2  ;;  %v1512_v13 = vadd.s32 %v14073_v62, %v14079_v2  ;;  %v14199_v16 = vmul.f32 0.5, %v67_v47 }
 0x176   :  { %v14191_v46 = vpop.eup %12567  ;;  %v11608_v57 = vadd.s32 4294967294, %v1524_v41  ;;  %v1412_v36 = vsel %vm1410_vm4, %v1411_v4, %v14170_v23  ;;  %v11614_v44 = vadd.s32 4294967169, %v1666_v20  ;;  %v14204_v49 = vsel %vm14176_vm15, 0, %v1543_v34 }
 0x177   :  { %19905 = vst [vmem:[#allocation51_spill] sm:$0xff] %v14191_v46  ;;  %v14195_v52 = vpop.eup %12569  ;;  %v19516_v10 = vxor.u32 2147483648, %v14191_v46  ;;  %19907 = vst [vmem:[#allocation53_spill] sm:$0xff] %v14199_v16  ;;  %v1413_v28 = vadd.s32 %v1412_v36, %v1408_v38  ;;  %v1669_v8 = vand.u32 8388607, %v19518_v43  ;;  %v1562_v47 = vand.u32 2139095040, %v14199_v16 }
 0x178   :  { %19906 = vst [vmem:[#allocation52_spill] sm:$0xff] %v14195_v52  ;;  %v19517_v63 = vxor.u32 2147483648, %v14195_v52  ;;  %vm11609_vm0 = vcmp.lt.s32.totalorder %v11608_v57, 0  ;;  %19908 = vst [vmem:[#allocation54_spill] sm:$0xff] %v14204_v49  ;;  %v1672_v23 = vadd.s32 1, %v11614_v44  ;;  %vm1355_vm13 = vcmp.lt.s32.totalorder %v13946_v25, 0 }
 0x179   :  { %v4554_v62 = vsel %vm4552_vm9, %v19516_v10, %v14195_v52  ;;  %v1527_v2 = vsel %vm11609_vm0, 0, %v11608_v57  ;;  %v1414_v38 = vadd.s32 536870912, %v1413_v28  ;;  %v14225_v1 = vadd.s32 3, %v14204_v49 }
 0x17a   :  { %v4551_v37 = vsel %vm4549_vm7, %v14191_v46, %v19517_v63  ;;  %v1528_v54 = vsub.s32 32, %v1527_v2  ;;  %v1529_v33 = vshll.u32 %v14147_v51, %v1527_v2  ;;  %v1532_v41 = vsub.s32 4294967266, %v1527_v2 }
 0x17b   :  { %v4555_v34 = vsel %vm4548_vm2, %v4551_v37, %v4554_v62  ;;  %vm1673_vm14 = vcmp.gt.s32.totalorder %v1672_v23, 0  ;;  %v1415_v44 = vshrl.u32 %v1414_v38, 30  ;;  %v1409_v62 = vadd.s32 %v14169_v3, %v14166_v0 }
 0x17c   :  { %v14220_v4 = vsel %vm19585_vm8, nan, %v4555_v34  ;;  %v1530_v20 = vshrl.u32 %v1512_v13, %v1528_v54  ;;  %v1533_v57 = vadd.s32 127, %v1532_v41  ;;  %v1674_v36 = vsel %vm1673_vm14, %v1672_v23, 0 }
 0x17d   :  { %19909 = vst [vmem:[#allocation55_spill] sm:$0xff] %v14220_v4  ;;  %6800 = vperm.xlu0 %12316, %v14220_v4   ;;  %v1676_v10 = vand.u32 31, %v1674_v36  ;;  %v1416_v2 = vshll.u32 %v1415_v44, 30  ;;  %v1670_v13 = vor.u32 8388608, %v1669_v8  ;;  %v1563_v54 = vshrl.u32 %v1562_v47, 23 }
 0x17e   :  { %v1531_v63 = vor.u32 %v1530_v20, %v1529_v33  ;;  %v1534_v51 = vshll.u32 %v1533_v57, 23  ;;  %v1439_v41 = vsub.s32 4, %v1415_v44  ;;  %v1675_v38 = vshrl.u32 %v1674_v36, 5 }
 0x17f   :  { %v1677_v37 = vsub.s32 32, %v1676_v10  ;;  %v14228_v23 = vsub.s32 %v1413_v28, %v1416_v2  ;;  %v1679_v33 = vshll.u32 %v19860_v17, %v1676_v10  ;;  %v1682_v39 = vshll.u32 %v19855_v32, %v1676_v10 }
 0x180   :  { %v1535_v34 = vor.u32 4788187, %v1534_v51  ;;  %v1538_v43 = vcvt.s32.f32 %v1531_v63  ;;  %v1685_v3 = vshll.u32 %v19848_v35, %v1676_v10  ;;  %v1688_v28 = vshll.u32 %v19856_v15, %v1676_v10 }
 0x181   :  { %v1680_v57 = vshrl.u32 %v19855_v32, %v1677_v37  ;;  %v1683_v4 = vshrl.u32 %v19848_v35, %v1677_v37  ;;  %v1419_v0 = vsub.s32 0, %v14228_v23  ;;  %v1686_v63 = vshrl.u32 %v19856_v15, %v1677_v37 }
 0x182   :  { %v1536_v20 = vand.u32 2147483647, %v1535_v34  ;;  %v1689_v47 = vshrl.u32 %v19857_v14, %v1677_v37  ;;  %v14239_v36 = vshll.u32 %v1670_v13, 8  ;;  %v11610_v51 = vadd.s32 4294967169, %v1563_v54 }
 0x183   :  { %v11603_v2 = vmin.u32 %v1419_v0, %v14228_v23  ;;  %v1678_v34 = vshrl.u32 %v19860_v17, %v1677_v37  ;;  %v1691_v55 = vshll.u32 %v19857_v14, %v1676_v10  ;;  %v1692_v46 = vshrl.u32 %v19858_v60, %v1677_v37 }
 0x184   :  { %v1539_v8 = vmul.f32 %v1538_v43, %v1536_v20  ;;  %v1681_v31 = vor.u32 %v1680_v57, %v1679_v33  ;;  %v1684_v5 = vor.u32 %v1683_v4, %v1682_v39  ;;  %v1690_v49 = vor.u32 %v1689_v47, %v1688_v28 }
 0x185   :  { %v1421_v48 = vclz %v11603_v2  ;;  %v1440_v43 = vsel %vm1355_vm13, %v1439_v41, %v1415_v44  ;;  %v1687_v20 = vor.u32 %v1686_v63, %v1685_v3  ;;  %vm1694_vm6 = vcmp.lt.s32.totalorder %v1675_v38, 1 }
 0x186   :  { %v1540_v52 = vxor.u32 2147483648, %v1539_v8  ;;  %v1693_v54 = vor.u32 %v1692_v46, %v1691_v55  ;;  %vm1696_vm2 = vcmp.lt.s32.totalorder %v1675_v38, 3  ;;  %vm1697_vm4 = vcmp.lt.s32.totalorder %v1675_v38, 4 }
 0x187   :  { %v11604_v37 = vadd.s32 4294967294, %v1421_v48  ;;  %vm1695_vm7 = vcmp.lt.s32.totalorder %v1675_v38, 2  ;;  %v1699_v39 = vsel %vm1697_vm4, %v1687_v20, 2102212464  ;;  %v1698_v4 = vsel %vm1694_vm6, %v1678_v34, %v1681_v31 }
 0x188   :  { %v1541_v13 = vsel %vm1458_vm12, %v1540_v52, %v1539_v8  ;;  %v1702_v44 = vsel %vm1694_vm6, %v1681_v31, %v1684_v5  ;;  %v1703_v41 = vsel %vm1697_vm4, %v1690_v49, 920167782  ;;  %v1700_v55 = vsel %vm1696_vm2, %v1684_v5, %v1699_v39 }
 0x189   :  { %v1544_v10 = vsel %vm14176_vm15, %v13913_v42, %v1541_v13  ;;  %vm11605_vm12 = vcmp.lt.s32.totalorder %v11604_v37, 0  ;;  %v1704_v46 = vsel %vm1696_vm2, %v1687_v20, %v1703_v41  ;;  %v1706_v48 = vsel %vm1694_vm6, %v1684_v5, %v1687_v20 }
 0x18a   :  { %12571 = vcosq.f32 %v1544_v10  ;;  %v1424_v52 = vsel %vm11605_vm12, 0, %v11604_v37  ;;  %v1705_v45 = vsel %vm1695_vm7, %v1702_v44, %v1704_v46  ;;  %v1707_v33 = vsel %vm1697_vm4, %v1693_v54, 1326507024 }
 0x18b   :  { %12573 = vsinq.f32 %v1544_v10  ;;  %v1425_v57 = vsub.s32 32, %v1424_v52  ;;  %v1426_v0 = vshll.u32 %v14228_v23, %v1424_v52  ;;  %v1429_v3 = vsub.s32 4294967266, %v1424_v52 }
 0x18c   :  { %v1708_v31 = vsel %vm1696_vm2, %v1690_v49, %v1707_v33  ;;  %v1701_v63 = vsel %vm1695_vm7, %v1698_v4, %v1700_v55  ;;  %v14266_v8 = vmul.u32.u64.low %v14239_v36, %v1705_v45  ;;  %v14267_v47 = vmul.u32.u64.high %v14239_v36, %v1705_v45, %v14266_v8 }
 0x18d   :  { %v1709_v28 = vsel %vm1695_vm7, %v1706_v48, %v1708_v31  ;;  %v1427_v2 = vshrl.u32 %v1409_v62, %v1425_v57  ;;  %v1430_v34 = vadd.s32 127, %v1429_v3  ;;  %v4859_v23 = vand.u32 3, %v14225_v1 }
 0x18e   :  { %v14271_v5 = vmul.u32.u64.low %v14239_v36, %v1709_v28  ;;  %v14272_v20 = vmul.u32.u64.high %v14239_v36, %v1709_v28, %v14271_v5  ;;  %v19910_v13 = vand.u32 2147483647, %v13946_v25  ;;  %v1569_v38 = vadd.s32 1, %v11610_v51 }
 0x18f   :  { %v1428_v54 = vor.u32 %v1427_v2, %v1426_v0  ;;  %v1431_v10 = vshll.u32 %v1430_v34, 23  ;;  %v1717_v62 = vmul.u32 %v14239_v36, %v1701_v63  ;;  %v1720_v39 = vadd.s32 1, %v14267_v47 }
 0x190   :  { %vm14277_vm15 = vcmp.le.f32.partialorder %v19910_v13, 0.7853982  ;;  %vm1570_vm9 = vcmp.gt.s32.totalorder %v1569_v38, 0  ;;  %vm1719_vm0 = vc.u32 %v14272_v20, %v14266_v8  ;;  %v19538_v44 = vand.u32 2147483647, %v14199_v16 }
 0x191   :  { %v14283_v37 = vsel %vm14277_vm15, 0, %v1440_v43  ;;  %v1432_v4 = vor.u32 4788187, %v1431_v10  ;;  %v1435_v1 = vcvt.s32.f32 %v1428_v54  ;;  %vm4864_vm14 = vcmp.eq.s32.totalorder %v4859_v23, 2 }
 0x192   :  { %19913 = vst [vmem:[#allocation56_spill] sm:$0xff] %v14283_v37  ;;  %v4754_v51 = vadd.s32 3, %v14283_v37  ;;  %v1721_v43 = vsel %vm1719_vm0, %v1720_v39, %v14267_v47  ;;  %v1571_v55 = vsel %vm1570_vm9, %v1569_v38, 0  ;;  %vm4861_vm6 = vcmp.eq.s32.totalorder %v4859_v23, 0  ;;  %v70_v38 = vld [vmem:[%s19407_s0 + $0x88] sm:$0xff] }
 0x193   :  { %v1433_v52 = vand.u32 2147483647, %v1432_v4  ;;  %v1722_v45 = vadd.s32 %v1721_v43, %v1717_v62  ;;  %vm1548_vm2 = vweird.f32 %v13913_v42  ;;  %vm4860_vm4 = vcmp.lt.s32.totalorder %v4859_v23, 2 }
 0x194   :  { %v14290_v41 = vpop.eup %12571  ;;  %v1573_v33 = vand.u32 31, %v1571_v55  ;;  %v1566_v31 = vand.u32 8388607, %v19538_v44  ;;  %v14307_v28 = vand.u32 3, %v4754_v51  ;;  %v14309_v47 = vshrl.u32 %v1571_v55, 5 }
 0x195   :  { %19914 = vst [vmem:[#allocation57_spill] sm:$0xff] %v14290_v41  ;;  %v14294_v46 = vpop.eup %12573  ;;  %v19533_v36 = vxor.u32 2147483648, %v14290_v41  ;;  %v1436_v0 = vmul.f32 %v1435_v1, %v1433_v52  ;;  %v1723_v3 = vadd.s32 536870912, %v1722_v45 }
 0x196   :  { %19915 = vst [vmem:[#allocation58_spill] sm:$0xff] %v14294_v46  ;;  %v19534_v48 = vxor.u32 2147483648, %v14294_v46  ;;  %v1574_v2 = vsub.s32 32, %v1573_v33  ;;  %v1576_v13 = vshll.u32 %v19860_v17, %v1573_v33  ;;  %v1579_v62 = vshll.u32 %v19855_v32, %v1573_v33 }
 0x197   :  { %v4866_v57 = vsel %vm4864_vm14, %v19533_v36, %v14294_v46  ;;  %v1437_v5 = vxor.u32 2147483648, %v1436_v0  ;;  %v14311_v23 = vshrl.u32 %v1723_v3, 30  ;;  %v1582_v51 = vshll.u32 %v19848_v35, %v1573_v33 }
 0x198   :  { %v4863_v63 = vsel %vm4861_vm6, %v14290_v41, %v19534_v48  ;;  %v1577_v10 = vshrl.u32 %v19855_v32, %v1574_v2  ;;  %v1580_v39 = vshrl.u32 %v19848_v35, %v1574_v2  ;;  %v1583_v43 = vshrl.u32 %v19856_v15, %v1574_v2 }
 0x199   :  { %v4867_v34 = vsel %vm4860_vm4, %v4863_v63, %v4866_v57  ;;  %v1438_v4 = vsel %vm1355_vm13, %v1437_v5, %v1436_v0  ;;  %v1725_v1 = vshll.u32 %v14311_v23, 30  ;;  %v1567_v52 = vor.u32 8388608, %v1566_v31 }
 0x19a   :  { %v14319_v54 = vsel %vm1548_vm2, nan, %v4867_v34  ;;  %v1441_v55 = vsel %vm14277_vm15, %v13946_v25, %v1438_v4  ;;  %v1585_v57 = vshll.u32 %v19856_v15, %v1573_v33  ;;  %v14334_v3 = vmul.f32 0.5, %v70_v38 }
 0x19b   :  { %19916 = vst [vmem:[#allocation59_spill] sm:$0xff] %v14319_v54  ;;  %6815 = vperm.xlu1 %12317, %v14319_v54   ;;  %12575 = vcosq.f32 %v1441_v55  ;;  %v14336_v63 = vsub.s32 %v1722_v45, %v1725_v1  ;;  %v1578_v34 = vor.u32 %v1577_v10, %v1576_v13  ;;  %vm1591_vm13 = vcmp.lt.s32.totalorder %v14309_v47, 1 }
 0x19c   :  { %19917 = vst [vmem:[#allocation60_spill] sm:$0xff] %v14334_v3  ;;  %12577 = vsinq.f32 %v1441_v55  ;;  %v1581_v0 = vor.u32 %v1580_v39, %v1579_v62  ;;  %v1586_v5 = vshrl.u32 %v19857_v14, %v1574_v2  ;;  %v1588_v36 = vshll.u32 %v19857_v14, %v1573_v33 }
 0x19d   :  { %v1728_v49 = vsub.s32 0, %v14336_v63  ;;  %v1575_v31 = vshrl.u32 %v19860_v17, %v1574_v2  ;;  %v1584_v4 = vor.u32 %v1583_v43, %v1582_v51  ;;  %v1589_v38 = vshrl.u32 %v19858_v60, %v1574_v2 }
 0x19e   :  { %vm4757_vm7 = vcmp.eq.s32.totalorder %v14307_v28, 0  ;;  %vm4760_vm12 = vcmp.eq.s32.totalorder %v14307_v28, 2  ;;  %v1587_v45 = vor.u32 %v1586_v5, %v1585_v57  ;;  %vm1594_vm15 = vcmp.lt.s32.totalorder %v14309_v47, 4 }
 0x19f   :  { %v1871_v13 = vand.u32 2139095040, %v14334_v3  ;;  %vm4756_vm9 = vcmp.lt.s32.totalorder %v14307_v28, 2  ;;  %v11615_v33 = vmin.u32 %v1728_v49, %v14336_v63  ;;  %v1590_v10 = vor.u32 %v1589_v38, %v1588_v36 }
 0x1a0   :  { %vm1593_vm0 = vcmp.lt.s32.totalorder %v14309_v47, 3  ;;  %v1596_v62 = vsel %vm1594_vm15, %v1584_v4, 2102212464  ;;  %vm19563_vm14 = vweird.f32 %v13946_v25  ;;  %vm1592_vm6 = vcmp.lt.s32.totalorder %v14309_v47, 2 }
 0x1a1   :  { %v1599_v2 = vsel %vm1591_vm13, %v1578_v34, %v1581_v0  ;;  %v1600_v39 = vsel %vm1594_vm15, %v1587_v45, 920167782  ;;  %v1607_v1 = vshll.u32 %v1567_v52, 8  ;;  %vm1664_vm4 = vcmp.lt.s32.totalorder %v14157_v40, 0 }
 0x1a2   :  { %v1730_v51 = vclz %v11615_v33  ;;  %v1595_v36 = vsel %vm1591_vm13, %v1575_v31, %v1578_v34  ;;  %v1603_v43 = vsel %vm1591_vm13, %v1581_v0, %v1584_v4  ;;  %v19537_v55 = vand.u32 2147483647, %v14334_v3 }
 0x1a3   :  { %v1597_v57 = vsel %vm1593_vm0, %v1581_v0, %v1596_v62  ;;  %v1601_v5 = vsel %vm1593_vm0, %v1584_v4, %v1600_v39  ;;  %v1604_v52 = vsel %vm1594_vm15, %v1590_v10, 1326507024  ;;  %v1872_v49 = vshrl.u32 %v1871_v13, 23 }
 0x1a4   :  { %v1718_v38 = vadd.s32 %v14266_v8, %v14272_v20  ;;  %v11616_v33 = vadd.s32 4294967294, %v1730_v51  ;;  %v1602_v34 = vsel %vm1592_vm6, %v1599_v2, %v1601_v5  ;;  %v1605_v31 = vsel %vm1593_vm0, %v1587_v45, %v1604_v52 }
 0x1a5   :  { %v1606_v0 = vsel %vm1592_vm6, %v1603_v43, %v1605_v31  ;;  %v14379_v62 = vmul.u32.u64.low %v1607_v1, %v1602_v34  ;;  %v14380_v48 = vmul.u32.u64.high %v1607_v1, %v1602_v34, %v14379_v62  ;;  %v11622_v4 = vadd.s32 4294967169, %v1872_v49  ;;  %v14383_v10 = vpop.eup %12575 }
 0x1a6   :  { %19918 = vst [vmem:[#allocation61_spill] sm:$0xff] %v14383_v10  ;;  %vm11617_vm13 = vcmp.lt.s32.totalorder %v11616_v33, 0  ;;  %v1598_v8 = vsel %vm1592_vm6, %v1595_v36, %v1597_v57  ;;  %v14387_v20 = vmul.u32.u64.low %v1607_v1, %v1606_v0  ;;  %v14388_v13 = vmul.u32.u64.high %v1607_v1, %v1606_v0, %v14387_v20  ;;  %v14390_v2 = vpop.eup %12577 }
 0x1a7   :  { %19919 = vst [vmem:[#allocation62_spill] sm:$0xff] %v14390_v2  ;;  %v19535_v45 = vxor.u32 2147483648, %v14383_v10  ;;  %v1733_v39 = vsel %vm11617_vm13, 0, %v11616_v33  ;;  %v1748_v51 = vsub.s32 4, %v14311_v23  ;;  %v1878_v43 = vadd.s32 1, %v11622_v4  ;;  %v69_v4 = vld [vmem:[%s19407_s0 + $0x80] sm:$0xff] }
 0x1a8   :  { %v19536_v5 = vxor.u32 2147483648, %v14390_v2  ;;  %v1734_v52 = vsub.s32 32, %v1733_v39  ;;  %v1735_v49 = vshll.u32 %v14336_v63, %v1733_v39  ;;  %v1738_v34 = vsub.s32 4294967266, %v1733_v39 }
 0x1a9   :  { %v4762_v47 = vsel %vm4760_vm12, %v19535_v45, %v14390_v2  ;;  %v1614_v36 = vmul.u32 %v1607_v1, %v1598_v8  ;;  %v1617_v57 = vadd.s32 1, %v14380_v48  ;;  %vm1879_vm15 = vcmp.gt.s32.totalorder %v1878_v43, 0 }
 0x1aa   :  { %v4759_v33 = vsel %vm4757_vm7, %v14383_v10, %v19536_v5  ;;  %v1736_v31 = vshrl.u32 %v1718_v38, %v1734_v52  ;;  %v1739_v0 = vadd.s32 127, %v1738_v34  ;;  %v1875_v63 = vand.u32 8388607, %v19537_v55 }
 0x1ab   :  { %v4763_v1 = vsel %vm4756_vm9, %v4759_v33, %v4762_v47  ;;  %v1749_v8 = vsel %vm1664_vm4, %v1748_v51, %v14311_v23  ;;  %vm1616_vm12 = vc.u32 %v14388_v13, %v14379_v62  ;;  %v1880_v20 = vsel %vm1879_vm15, %v1878_v43, 0 }
 0x1ac   :  { %v14421_v38 = vsel %vm19563_vm14, nan, %v4763_v1  ;;  %v1737_v39 = vor.u32 %v1736_v31, %v1735_v49  ;;  %v1740_v52 = vshll.u32 %v1739_v0, 23  ;;  %v1618_v34 = vsel %vm1616_vm12, %v1617_v57, %v14380_v48 }
 0x1ad   :  { %19920 = vst [vmem:[#allocation63_spill] sm:$0xff] %v14421_v38  ;;  %6810 = vperm.xlu0 %12316, %v14421_v38   ;;  %v19921_v28 = vand.u32 2147483647, %v14157_v40  ;;  %v1619_v23 = vadd.s32 %v1618_v34, %v1614_v36  ;;  %v1882_v51 = vand.u32 31, %v1880_v20  ;;  %v14431_v33 = vmul.f32 0.5, %v69_v4 }
 0x1ae   :  { %v1741_v43 = vor.u32 4788187, %v1740_v52  ;;  %v1744_v45 = vcvt.s32.f32 %v1737_v39  ;;  %v1876_v31 = vor.u32 8388608, %v1875_v63  ;;  %v1881_v57 = vshrl.u32 %v1880_v20, 5 }
 0x1af   :  { %vm14427_vm7 = vcmp.le.f32.partialorder %v19921_v28, 0.7853982  ;;  %19924 = vst [vmem:[#allocation64_spill] sm:$0xff] %v14431_v33  ;;  %v1620_v48 = vadd.s32 536870912, %v1619_v23  ;;  %v1883_v0 = vsub.s32 32, %v1882_v51  ;;  %v1885_v1 = vshll.u32 %v19860_v17, %v1882_v51 }
 0x1b0   :  { %v14435_v49 = vsel %vm14427_vm7, 0, %v1749_v8  ;;  %v1742_v28 = vand.u32 2147483647, %v1741_v43  ;;  %v1888_v5 = vshll.u32 %v19855_v32, %v1882_v51  ;;  %v1891_v36 = vshll.u32 %v19848_v35, %v1882_v51 }
 0x1b1   :  { %19925 = vst [vmem:[#allocation65_spill] sm:$0xff] %v14435_v49  ;;  %v1894_v4 = vshll.u32 %v19856_v15, %v1882_v51  ;;  %v1621_v34 = vshrl.u32 %v1620_v48, 30  ;;  %v1886_v39 = vshrl.u32 %v19855_v32, %v1883_v0  ;;  %v1889_v52 = vshrl.u32 %v19848_v35, %v1883_v0 }
 0x1b2   :  { %v1897_v8 = vshll.u32 %v19857_v14, %v1882_v51  ;;  %v1745_v63 = vmul.f32 %v1744_v45, %v1742_v28  ;;  %v1892_v20 = vshrl.u32 %v19856_v15, %v1883_v0  ;;  %v1895_v55 = vshrl.u32 %v19857_v14, %v1883_v0 }
 0x1b3   :  { %v1898_v43 = vshrl.u32 %v19858_v60, %v1883_v0  ;;  %v5066_v44 = vadd.s32 3, %v14435_v49  ;;  %v1622_v54 = vshll.u32 %v1621_v34, 30  ;;  %v14448_v38 = vshll.u32 %v1876_v31, 8 }
 0x1b4   :  { %v1746_v25 = vxor.u32 2147483648, %v1745_v63  ;;  %v1884_v48 = vshrl.u32 %v19860_v17, %v1883_v0  ;;  %v1896_v10 = vor.u32 %v1895_v55, %v1894_v4  ;;  %v1768_v2 = vand.u32 2139095040, %v14431_v33 }
 0x1b5   :  { %v14452_v37 = vsub.s32 %v1619_v23, %v1622_v54  ;;  %v1887_v45 = vor.u32 %v1886_v39, %v1885_v1  ;;  %v1890_v51 = vor.u32 %v1889_v52, %v1888_v5  ;;  %v1893_v28 = vor.u32 %v1892_v20, %v1891_v36  ;;  %v72_v23 = vld [vmem:[%s19407_s0 + $0x98] sm:$0xff] }
 0x1b6   :  { %v1747_v42 = vsel %vm1664_vm4, %v1746_v25, %v1745_v63  ;;  %vm1561_vm9 = vcmp.lt.s32.totalorder %v14199_v16, 0  ;;  %v1899_v41 = vor.u32 %v1898_v43, %v1897_v8  ;;  %vm1900_vm0 = vcmp.lt.s32.totalorder %v1881_v57, 1 }
 0x1b7   :  { %vm1903_vm6 = vcmp.lt.s32.totalorder %v1881_v57, 4  ;;  %v1750_v31 = vsel %vm14427_vm7, %v14157_v40, %v1747_v42  ;;  %v1625_v55 = vsub.s32 0, %v14452_v37  ;;  %vm1901_vm13 = vcmp.lt.s32.totalorder %v1881_v57, 2 }
 0x1b8   :  { %vm1902_vm15 = vcmp.lt.s32.totalorder %v1881_v57, 3  ;;  %12579 = vcosq.f32 %v1750_v31  ;;  %v1904_v54 = vsel %vm1900_vm0, %v1884_v48, %v1887_v45  ;;  %v1905_v5 = vsel %vm1903_vm6, %v1893_v28, 2102212464 }
 0x1b9   :  { %v1909_v25 = vsel %vm1903_vm6, %v1896_v10, 920167782  ;;  %12581 = vsinq.f32 %v1750_v31  ;;  %v11611_v0 = vmin.u32 %v1625_v55, %v14452_v37  ;;  %v1906_v42 = vsel %vm1902_vm15, %v1890_v51, %v1905_v5 }
 0x1ba   :  { %v1908_v47 = vsel %vm1900_vm0, %v1887_v45, %v1890_v51  ;;  %v19926_v1 = vand.u32 2147483647, %v14199_v16  ;;  %v1910_v4 = vsel %vm1902_vm15, %v1893_v28, %v1909_v25  ;;  %v1912_v39 = vsel %vm1900_vm0, %v1890_v51, %v1893_v28 }
 0x1bb   :  { %v1913_v52 = vsel %vm1903_vm6, %v1899_v41, 1326507024  ;;  %v5067_v8 = vand.u32 3, %v5066_v44  ;;  %v1627_v63 = vclz %v11611_v0  ;;  %v1645_v20 = vsub.s32 4, %v1621_v34 }
 0x1bc   :  { %vm14472_vm4 = vcmp.le.f32.partialorder %v19926_v1, 0.7853982  ;;  %v14479_v43 = vmul.f32 0.5, %v72_v23  ;;  %v1907_v48 = vsel %vm1901_vm13, %v1904_v54, %v1906_v42  ;;  %v1911_v45 = vsel %vm1901_vm13, %v1908_v47, %v1910_v4 }
 0x1bd   :  { %v1914_v31 = vsel %vm1902_vm15, %v1896_v10, %v1913_v52  ;;  %v1769_v55 = vshrl.u32 %v1768_v2, 23  ;;  %v11612_v5 = vadd.s32 4294967294, %v1627_v63  ;;  %v19554_v28 = vand.u32 2147483647, %v14431_v33 }
 0x1be   :  { %19929 = vst [vmem:[#allocation66_spill] sm:$0xff] %v14479_v43  ;;  %v1915_v1 = vsel %vm1901_vm13, %v1912_v39, %v1914_v31  ;;  %v14486_v25 = vmul.u32.u64.low %v14448_v38, %v1911_v45  ;;  %v14487_v51 = vmul.u32.u64.high %v14448_v38, %v1911_v45, %v14486_v25  ;;  %vm5069_vm12 = vcmp.eq.s32.totalorder %v5067_v8, 0 }
 0x1bf   :  { %v14491_v44 = vmul.u32.u64.low %v14448_v38, %v1915_v1  ;;  %v14492_v41 = vmul.u32.u64.high %v14448_v38, %v1915_v1, %v14491_v44  ;;  %v11618_v54 = vadd.s32 4294967169, %v1769_v55  ;;  %v1615_v10 = vadd.s32 %v14379_v62, %v14388_v13 }
 0x1c0   :  { %vm11613_vm7 = vcmp.lt.s32.totalorder %v11612_v5, 0  ;;  %v1646_v2 = vsel %vm1561_vm9, %v1645_v20, %v1621_v34  ;;  %vm5072_vm0 = vcmp.eq.s32.totalorder %v5067_v8, 2  ;;  %v1923_v23 = vmul.u32 %v14448_v38, %v1907_v48 }
 0x1c1   :  { %v1630_v57 = vsel %vm11613_vm7, 0, %v11612_v5  ;;  %v1775_v0 = vadd.s32 1, %v11618_v54  ;;  %v1926_v39 = vadd.s32 1, %v14487_v51  ;;  %v14506_v62 = vsel %vm14472_vm4, 0, %v1646_v2 }
 0x1c2   :  { %v1631_v42 = vsub.s32 32, %v1630_v57  ;;  %v1632_v47 = vshll.u32 %v14452_v37, %v1630_v57  ;;  %v1635_v4 = vsub.s32 4294967266, %v1630_v57  ;;  %v14502_v52 = vpop.eup %12579  ;;  %19931 = vst [vmem:[#allocation68_spill] sm:$0xff] %v14506_v62  ;;  %vm1925_vm6 = vc.u32 %v14492_v41, %v14486_v25 }
 0x1c3   :  { %19930 = vst [vmem:[#allocation67_spill] sm:$0xff] %v14502_v52  ;;  %v1772_v13 = vand.u32 8388607, %v19554_v28  ;;  %vm1776_vm13 = vcmp.gt.s32.totalorder %v1775_v0, 0  ;;  %v14512_v38 = vpop.eup %12581  ;;  %v19552_v37 = vxor.u32 2147483648, %v14502_v52  ;;  %v1927_v20 = vsel %vm1925_vm6, %v1926_v39, %v14487_v51 }
 0x1c4   :  { %19932 = vst [vmem:[#allocation69_spill] sm:$0xff] %v14512_v38  ;;  %v1633_v34 = vshrl.u32 %v1615_v10, %v1631_v42  ;;  %v1636_v63 = vadd.s32 127, %v1635_v4  ;;  %v19553_v48 = vxor.u32 2147483648, %v14512_v38  ;;  %vm5068_vm15 = vcmp.lt.s32.totalorder %v5067_v8, 2 }
 0x1c5   :  { %v1928_v45 = vadd.s32 %v1927_v20, %v1923_v23  ;;  %v1777_v31 = vsel %vm1776_vm13, %v1775_v0, 0  ;;  %vm19610_vm7 = vweird.f32 %v14157_v40  ;;  %v5074_v55 = vsel %vm5072_vm0, %v19552_v37, %v14512_v38 }
 0x1c6   :  { %v1634_v5 = vor.u32 %v1633_v34, %v1632_v47  ;;  %v1637_v1 = vshll.u32 %v1636_v63, 23  ;;  %v5071_v44 = vsel %vm5069_vm12, %v14502_v52, %v19553_v48  ;;  %v4962_v51 = vadd.s32 3, %v14506_v62 }
 0x1c7   :  { %v1929_v54 = vadd.s32 536870912, %v1928_v45  ;;  %v1779_v10 = vand.u32 31, %v1777_v31  ;;  %v5075_v2 = vsel %vm5068_vm15, %v5071_v44, %v5074_v55  ;;  %v1773_v0 = vor.u32 8388608, %v1772_v13 }
 0x1c8   :  { %v1638_v57 = vor.u32 4788187, %v1637_v1  ;;  %v1641_v23 = vcvt.s32.f32 %v1634_v5  ;;  %v14529_v42 = vsel %vm19610_vm7, nan, %v5075_v2  ;;  %v2077_v39 = vand.u32 2139095040, %v14479_v43 }
 0x1c9   :  { %19933 = vst [vmem:[#allocation70_spill] sm:$0xff] %v14529_v42  ;;  %v1930_v4 = vshrl.u32 %v1929_v54, 30  ;;  %v1780_v47 = vsub.s32 32, %v1779_v10  ;;  %6825 = vperm.xlu1 %12317, %v14529_v42   ;;  %v1778_v34 = vshrl.u32 %v1777_v31, 5  ;;  %v1782_v63 = vshll.u32 %v19860_v17, %v1779_v10 }
 0x1ca   :  { %v1639_v8 = vand.u32 2147483647, %v1638_v57  ;;  %v1785_v20 = vshll.u32 %v19855_v32, %v1779_v10  ;;  %v1788_v13 = vshll.u32 %v19848_v35, %v1779_v10  ;;  %v1791_v1 = vshll.u32 %v19856_v15, %v1779_v10 }
 0x1cb   :  { %v1931_v55 = vshll.u32 %v1930_v4, 30  ;;  %v1783_v5 = vshrl.u32 %v19855_v32, %v1780_v47  ;;  %v1786_v54 = vshrl.u32 %v19848_v35, %v1780_v47  ;;  %v1789_v2 = vshrl.u32 %v19856_v15, %v1780_v47 }
 0x1cc   :  { %v1642_v44 = vmul.f32 %v1641_v23, %v1639_v8  ;;  %v1792_v37 = vshrl.u32 %v19857_v14, %v1780_v47  ;;  %v14541_v57 = vand.u32 3, %v4962_v51  ;;  %v1794_v48 = vshll.u32 %v19857_v14, %v1779_v10 }
 0x1cd   :  { %v14543_v31 = vsub.s32 %v1928_v45, %v1931_v55  ;;  %v1781_v42 = vshrl.u32 %v19860_v17, %v1780_v47  ;;  %v14547_v62 = vshll.u32 %v1773_v0, 8  ;;  %v2078_v40 = vshrl.u32 %v2077_v39, 23 }
 0x1ce   :  { %v1643_v28 = vxor.u32 2147483648, %v1642_v44  ;;  %vm1870_vm12 = vcmp.lt.s32.totalorder %v14334_v3, 0  ;;  %v1784_v8 = vor.u32 %v1783_v5, %v1782_v63  ;;  %v1787_v52 = vor.u32 %v1786_v54, %v1785_v20 }
 0x1cf   :  { %v1934_v23 = vsub.s32 0, %v14543_v31  ;;  %v1795_v38 = vshrl.u32 %v19858_v60, %v1780_v47  ;;  %v1790_v51 = vor.u32 %v1789_v2, %v1788_v13  ;;  %v1793_v55 = vor.u32 %v1792_v37, %v1791_v1 }
 0x1d0   :  { %v1644_v45 = vsel %vm1561_vm9, %v1643_v28, %v1642_v44  ;;  %vm1797_vm0 = vcmp.lt.s32.totalorder %v1778_v34, 1  ;;  %vm1800_vm6 = vcmp.lt.s32.totalorder %v1778_v34, 4  ;;  %vm1798_vm13 = vcmp.lt.s32.totalorder %v1778_v34, 2 }
 0x1d1   :  { %v1647_v10 = vsel %vm14472_vm4, %v14199_v16, %v1644_v45  ;;  %v11623_v0 = vmin.u32 %v1934_v23, %v14543_v31  ;;  %v1796_v39 = vor.u32 %v1795_v38, %v1794_v48  ;;  %vm1799_vm15 = vcmp.lt.s32.totalorder %v1778_v34, 3 }
 0x1d2   :  { %12583 = vcosq.f32 %v1647_v10  ;;  %v1802_v63 = vsel %vm1800_vm6, %v1790_v51, 2102212464  ;;  %v1801_v28 = vsel %vm1797_vm0, %v1781_v42, %v1784_v8  ;;  %v1805_v37 = vsel %vm1797_vm0, %v1784_v8, %v1787_v52 }
 0x1d3   :  { %12585 = vsinq.f32 %v1647_v10  ;;  %v1936_v47 = vclz %v11623_v0  ;;  %v1954_v20 = vsub.s32 4, %v1930_v4  ;;  %v1803_v5 = vsel %vm1799_vm15, %v1787_v52, %v1802_v63 }
 0x1d4   :  { %v1806_v36 = vsel %vm1800_vm6, %v1793_v55, 920167782  ;;  %v1809_v13 = vsel %vm1797_vm0, %v1787_v52, %v1790_v51  ;;  %v1924_v38 = vadd.s32 %v14486_v25, %v14492_v41  ;;  %v1810_v44 = vsel %vm1800_vm6, %v1796_v39, 1326507024 }
 0x1d5   :  { %v11624_v48 = vadd.s32 4294967294, %v1936_v47  ;;  %v1807_v1 = vsel %vm1799_vm15, %v1790_v51, %v1806_v36  ;;  %v1804_v54 = vsel %vm1798_vm13, %v1801_v28, %v1803_v5  ;;  %v1811_v2 = vsel %vm1799_vm15, %v1793_v55, %v1810_v44 }
 0x1d6   :  { %v1808_v42 = vsel %vm1798_vm13, %v1805_v37, %v1807_v1  ;;  %v11630_v23 = vadd.s32 4294967169, %v2078_v40  ;;  %vm19575_vm9 = vweird.f32 %v14199_v16  ;;  %v1812_v52 = vsel %vm1798_vm13, %v1809_v13, %v1811_v2 }
 0x1d7   :  { %vm11625_vm4 = vcmp.lt.s32.totalorder %v11624_v48, 0  ;;  %v14574_v8 = vmul.u32.u64.low %v14547_v62, %v1808_v42  ;;  %v14575_v25 = vmul.u32.u64.high %v14547_v62, %v1808_v42, %v14574_v8  ;;  %v1955_v45 = vsel %vm1870_vm12, %v1954_v20, %v1930_v4 }
 0x1d8   :  { %v1939_v41 = vsel %vm11625_vm4, 0, %v11624_v48  ;;  %v14581_v51 = vmul.u32.u64.low %v14547_v62, %v1812_v52  ;;  %v14582_v10 = vmul.u32.u64.high %v14547_v62, %v1812_v52, %v14581_v51  ;;  %v2084_v39 = vadd.s32 1, %v11630_v23 }
 0x1d9   :  { %v1940_v55 = vsub.s32 32, %v1939_v41  ;;  %v1941_v40 = vshll.u32 %v14543_v31, %v1939_v41  ;;  %v1944_v0 = vsub.s32 4294967266, %v1939_v41  ;;  %vm4965_vm0 = vcmp.eq.s32.totalorder %v14541_v57, 0 }
 0x1da   :  { %vm4968_vm6 = vcmp.eq.s32.totalorder %v14541_v57, 2  ;;  %v19934_v34 = vand.u32 2147483647, %v14334_v3  ;;  %v1820_v4 = vmul.u32 %v14547_v62, %v1804_v54  ;;  %v1823_v37 = vadd.s32 1, %v14575_v25  ;;  %v71_v62 = vld [vmem:[%s19407_s0 + $0x90] sm:$0xff] }
 0x1db   :  { %v1942_v47 = vshrl.u32 %v1924_v38, %v1940_v55  ;;  %v1945_v28 = vadd.s32 127, %v1944_v0  ;;  %vm2085_vm15 = vcmp.gt.s32.totalorder %v2084_v39, 0  ;;  %vm1822_vm4 = vc.u32 %v14582_v10, %v14574_v8 }
 0x1dc   :  { %vm14589_vm13 = vcmp.le.f32.partialorder %v19934_v34, 0.7853982  ;;  %v14595_v31 = vpop.eup %12583  ;;  %v19566_v5 = vand.u32 2147483647, %v14479_v43  ;;  %v2086_v36 = vsel %vm2085_vm15, %v2084_v39, 0  ;;  %v1824_v44 = vsel %vm1822_vm4, %v1823_v37, %v14575_v25 }
 0x1dd   :  { %19937 = vst [vmem:[#allocation71_spill] sm:$0xff] %v14595_v31  ;;  %v14599_v20 = vsel %vm14589_vm13, 0, %v1955_v45  ;;  %v14607_v13 = vpop.eup %12585  ;;  %v19564_v38 = vxor.u32 2147483648, %v14595_v31  ;;  %v1943_v48 = vor.u32 %v1942_v47, %v1941_v40  ;;  %v1946_v1 = vshll.u32 %v1945_v28, 23 }
 0x1de   :  { %19938 = vst [vmem:[#allocation72_spill] sm:$0xff] %v14599_v20  ;;  %19939 = vst [vmem:[#allocation73_spill] sm:$0xff] %v14607_v13  ;;  %v19565_v54 = vxor.u32 2147483648, %v14607_v13  ;;  %vm4964_vm14 = vcmp.lt.s32.totalorder %v14541_v57, 2  ;;  %v1825_v42 = vadd.s32 %v1824_v44, %v1820_v4  ;;  %v2088_v2 = vand.u32 31, %v2086_v36 }
 0x1df   :  { %v4970_v23 = vsel %vm4968_vm6, %v19564_v38, %v14607_v13  ;;  %v1947_v52 = vor.u32 4788187, %v1946_v1  ;;  %v1950_v41 = vcvt.s32.f32 %v1943_v48  ;;  %v14618_v45 = vmul.f32 0.5, %v71_v62 }
 0x1e0   :  { %v4967_v25 = vsel %vm4965_vm0, %v14595_v31, %v19565_v54  ;;  %v5274_v51 = vadd.s32 3, %v14599_v20  ;;  %v1826_v55 = vadd.s32 536870912, %v1825_v42  ;;  %v2089_v40 = vsub.s32 32, %v2088_v2 }
 0x1e1   :  { %19940 = vst [vmem:[#allocation74_spill] sm:$0xff] %v14618_v45  ;;  %v4971_v0 = vsel %vm4964_vm14, %v4967_v25, %v4970_v23  ;;  %v1948_v39 = vand.u32 2147483647, %v1947_v52  ;;  %v2081_v34 = vand.u32 8388607, %v19566_v5  ;;  %v2087_v4 = vshrl.u32 %v2086_v36, 5 }
 0x1e2   :  { %v14630_v47 = vsel %vm19575_vm9, nan, %v4971_v0  ;;  %v1827_v28 = vshrl.u32 %v1826_v55, 30  ;;  %v2091_v37 = vshll.u32 %v19860_v17, %v2088_v2  ;;  %v2094_v57 = vshll.u32 %v19855_v32, %v2088_v2 }
 0x1e3   :  { %19941 = vst [vmem:[#allocation75_spill] sm:$0xff] %v14630_v47  ;;  %6820 = vperm.xlu0 %12316, %v14630_v47   ;;  %v1951_v62 = vmul.f32 %v1950_v41, %v1948_v39  ;;  %v2092_v48 = vshrl.u32 %v19855_v32, %v2089_v40  ;;  %v2095_v1 = vshrl.u32 %v19848_v35, %v2089_v40  ;;  %v14641_v0 = vand.u32 3, %v5274_v51 }
 0x1e4   :  { %v2100_v44 = vshll.u32 %v19856_v15, %v2088_v2  ;;  %v1828_v23 = vshll.u32 %v1827_v28, 30  ;;  %v2097_v36 = vshll.u32 %v19848_v35, %v2088_v2  ;;  %v2098_v52 = vshrl.u32 %v19856_v15, %v2089_v40 }
 0x1e5   :  { %v2101_v25 = vshrl.u32 %v19857_v14, %v2089_v40  ;;  %v1952_v55 = vxor.u32 2147483648, %v1951_v62  ;;  %vm1767_vm14 = vcmp.lt.s32.totalorder %v14431_v33, 0  ;;  %v2103_v41 = vshll.u32 %v19857_v14, %v2088_v2 }
 0x1e6   :  { %v14645_v39 = vsub.s32 %v1825_v42, %v1828_v23  ;;  %v2082_v38 = vor.u32 8388608, %v2081_v34  ;;  %v2090_v54 = vshrl.u32 %v19860_v17, %v2089_v40  ;;  %v2104_v5 = vshrl.u32 %v19858_v60, %v2089_v40 }
 0x1e7   :  { %v1953_v47 = vsel %vm1870_vm12, %v1952_v55, %v1951_v62  ;;  %v2093_v16 = vor.u32 %v2092_v48, %v2091_v37  ;;  %v2096_v31 = vor.u32 %v2095_v1, %v2094_v57  ;;  %v2102_v13 = vor.u32 %v2101_v25, %v2100_v44 }
 0x1e8   :  { %v1956_v51 = vsel %vm14589_vm13, %v14334_v3, %v1953_v47  ;;  %v1831_v20 = vsub.s32 0, %v14645_v39  ;;  %v2099_v2 = vor.u32 %v2098_v52, %v2097_v36  ;;  %vm2106_vm0 = vcmp.lt.s32.totalorder %v2087_v4, 1 }
 0x1e9   :  { %12587 = vcosq.f32 %v1956_v51  ;;  %v19942_v42 = vand.u32 2147483647, %v14431_v33  ;;  %v1851_v40 = vsub.s32 4, %v1827_v28  ;;  %v2105_v62 = vor.u32 %v2104_v5, %v2103_v41 }
 0x1ea   :  { %vm2109_vm12 = vcmp.lt.s32.totalorder %v2087_v4, 4  ;;  %12589 = vsinq.f32 %v1956_v51  ;;  %v11619_v37 = vmin.u32 %v1831_v20, %v14645_v39  ;;  %vm2108_vm15 = vcmp.lt.s32.totalorder %v2087_v4, 3 }
 0x1eb   :  { %vm14657_vm6 = vcmp.le.f32.partialorder %v19942_v42, 0.7853982  ;;  %v2111_v63 = vsel %vm2109_vm12, %v2099_v2, 2102212464  ;;  %vm2107_vm13 = vcmp.lt.s32.totalorder %v2087_v4, 2  ;;  %v2114_v47 = vsel %vm2106_vm0, %v2093_v16, %v2096_v31 }
 0x1ec   :  { %v2115_v57 = vsel %vm2109_vm12, %v2102_v13, 920167782  ;;  %v2122_v48 = vshll.u32 %v2082_v38, 8  ;;  %v1821_v1 = vadd.s32 %v14574_v8, %v14582_v10  ;;  %v1833_v44 = vclz %v11619_v37 }
 0x1ed   :  { %v2110_v23 = vsel %vm2106_vm0, %v2090_v54, %v2093_v16  ;;  %v2118_v36 = vsel %vm2106_vm0, %v2096_v31, %v2099_v2  ;;  %v2112_v5 = vsel %vm2108_vm15, %v2096_v31, %v2111_v63  ;;  %v2116_v52 = vsel %vm2108_vm15, %v2099_v2, %v2115_v57 }
 0x1ee   :  { %v2119_v20 = vsel %vm2109_vm12, %v2105_v62, 1326507024  ;;  %v1974_v25 = vand.u32 2139095040, %v14618_v45  ;;  %vm19609_vm4 = vweird.f32 %v14334_v3  ;;  %v11620_v55 = vadd.s32 4294967294, %v1833_v44 }
 0x1ef   :  { %v1852_v38 = vsel %vm1767_vm14, %v1851_v40, %v1827_v28  ;;  %v2117_v8 = vsel %vm2107_vm13, %v2114_v47, %v2116_v52  ;;  %v2120_v10 = vsel %vm2108_vm15, %v2102_v13, %v2119_v20  ;;  %v2113_v51 = vsel %vm2107_vm13, %v2110_v23, %v2112_v5 }
 0x1f0   :  { %v2121_v16 = vsel %vm2107_vm13, %v2118_v36, %v2120_v10  ;;  %v14676_v54 = vmul.u32.u64.low %v2122_v48, %v2117_v8  ;;  %v14677_v41 = vmul.u32.u64.high %v2122_v48, %v2117_v8, %v14676_v54  ;;  %v1975_v31 = vshrl.u32 %v1974_v25, 23 }
 0x1f1   :  { %vm11621_vm0 = vcmp.lt.s32.totalorder %v11620_v55, 0  ;;  %v14681_v2 = vmul.u32.u64.low %v2122_v48, %v2121_v16  ;;  %v14682_v42 = vmul.u32.u64.high %v2122_v48, %v2121_v16, %v14681_v2  ;;  %vm5276_vm12 = vcmp.lt.s32.totalorder %v14641_v0, 2 }
 0x1f2   :  { %vm5277_vm9 = vcmp.eq.s32.totalorder %v14641_v0, 0  ;;  %v1836_v28 = vsel %vm11621_vm0, 0, %v11620_v55  ;;  %v11626_v40 = vadd.s32 4294967169, %v1975_v31  ;;  %v14689_v63 = vsel %vm14657_vm6, 0, %v1852_v38 }
 0x1f3   :  { %v1837_v13 = vsub.s32 32, %v1836_v28  ;;  %v1838_v62 = vshll.u32 %v14645_v39, %v1836_v28  ;;  %v1841_v37 = vsub.s32 4294967266, %v1836_v28  ;;  %19945 = vst [vmem:[#allocation76_spill] sm:$0xff] %v14689_v63  ;;  %v14691_v47 = vpop.eup %12587  ;;  %vm5280_vm15 = vcmp.eq.s32.totalorder %v14641_v0, 2  ;;  %v74_v28 = vld [vmem:[%s19407_s0 + $0xa8] sm:$0xff] }
 0x1f4   :  { %19946 = vst [vmem:[#allocation77_spill] sm:$0xff] %v14691_v47  ;;  %v2129_v4 = vmul.u32 %v2122_v48, %v2113_v51  ;;  %v2132_v57 = vadd.s32 1, %v14677_v41  ;;  %v1981_v44 = vadd.s32 1, %v11626_v40  ;;  %v14695_v23 = vpop.eup %12589  ;;  %v19576_v36 = vxor.u32 2147483648, %v14691_v47 }
 0x1f5   :  { %19947 = vst [vmem:[#allocation78_spill] sm:$0xff] %v14695_v23  ;;  %v1839_v5 = vshrl.u32 %v1821_v1, %v1837_v13  ;;  %v1842_v52 = vadd.s32 127, %v1841_v37  ;;  %v19578_v39 = vand.u32 2147483647, %v14618_v45  ;;  %v19577_v20 = vxor.u32 2147483648, %v14695_v23 }
 0x1f6   :  { %v5170_v25 = vadd.s32 3, %v14689_v63  ;;  %vm2131_vm13 = vc.u32 %v14682_v42, %v14676_v54  ;;  %vm1982_vm0 = vcmp.gt.s32.totalorder %v1981_v44, 0  ;;  %v5282_v48 = vsel %vm5280_vm15, %v19576_v36, %v14695_v23 }
 0x1f7   :  { %v1840_v55 = vor.u32 %v1839_v5, %v1838_v62  ;;  %v1843_v38 = vshll.u32 %v1842_v52, 23  ;;  %v2133_v8 = vsel %vm2131_vm13, %v2132_v57, %v14677_v41  ;;  %v5279_v1 = vsel %vm5277_vm9, %v14691_v47, %v19577_v20 }
 0x1f8   :  { %v2134_v10 = vadd.s32 %v2133_v8, %v2129_v4  ;;  %v1983_v16 = vsel %vm1982_vm0, %v1981_v44, 0  ;;  %v5283_v31 = vsel %vm5276_vm12, %v5279_v1, %v5282_v48  ;;  %v14722_v37 = vand.u32 3, %v5170_v25 }
 0x1f9   :  { %v1844_v51 = vor.u32 4788187, %v1843_v38  ;;  %v1847_v2 = vcvt.s32.f32 %v1840_v55  ;;  %v14719_v41 = vsel %vm19609_vm4, nan, %v5283_v31  ;;  %v1985_v13 = vand.u32 31, %v1983_v16 }
 0x1fa   :  { %19948 = vst [vmem:[#allocation79_spill] sm:$0xff] %v14719_v41  ;;  %v2135_v40 = vadd.s32 536870912, %v2134_v10  ;;  %6835 = vperm.xlu1 %12317, %v14719_v41   ;;  %v1978_v0 = vand.u32 8388607, %v19578_v39  ;;  %v1984_v57 = vshrl.u32 %v1983_v16, 5  ;;  %v14728_v5 = vmul.f32 0.5, %v74_v28 }
 0x1fb   :  { %v1845_v62 = vand.u32 2147483647, %v1844_v51  ;;  %v1986_v44 = vsub.s32 32, %v1985_v13  ;;  %v1988_v48 = vshll.u32 %v19860_v17, %v1985_v13  ;;  %v1991_v55 = vshll.u32 %v19855_v32, %v1985_v13 }
 0x1fc   :  { %v14726_v4 = vshrl.u32 %v2135_v40, 30  ;;  %19949 = vst [vmem:[#allocation80_spill] sm:$0xff] %v14728_v5  ;;  %v1994_v38 = vshll.u32 %v19848_v35, %v1985_v13  ;;  %v1997_v1 = vshll.u32 %v19856_v15, %v1985_v13  ;;  %v2000_v31 = vshll.u32 %v19857_v14, %v1985_v13 }
 0x1fd   :  { %v1848_v52 = vmul.f32 %v1847_v2, %v1845_v62  ;;  %v1989_v25 = vshrl.u32 %v19855_v32, %v1986_v44  ;;  %v1992_v16 = vshrl.u32 %v19848_v35, %v1986_v44  ;;  %v1995_v28 = vshrl.u32 %v19856_v15, %v1986_v44 }
 0x1fe   :  { %v2137_v8 = vshll.u32 %v14726_v4, 30  ;;  %v1998_v2 = vshrl.u32 %v19857_v14, %v1986_v44  ;;  %v1979_v62 = vor.u32 8388608, %v1978_v0  ;;  %v2001_v36 = vshrl.u32 %v19858_v60, %v1986_v44 }
 0x1ff   :  { %v1849_v51 = vxor.u32 2147483648, %v1848_v52  ;;  %vm2003_vm9 = vcmp.lt.s32.totalorder %v1984_v57, 1  ;;  %v1987_v39 = vshrl.u32 %v19860_v17, %v1986_v44  ;;  %v1990_v41 = vor.u32 %v1989_v25, %v1988_v48 }
 0x200   :  { %v14740_v40 = vsub.s32 %v2134_v10, %v2137_v8  ;;  %v1993_v13 = vor.u32 %v1992_v16, %v1991_v55  ;;  %v1996_v47 = vor.u32 %v1995_v28, %v1994_v38  ;;  %v1999_v10 = vor.u32 %v1998_v2, %v1997_v1 }
 0x201   :  { %v1850_v20 = vsel %vm1767_vm14, %v1849_v51, %v1848_v52  ;;  %v2002_v0 = vor.u32 %v2001_v36, %v2000_v31  ;;  %vm2006_vm12 = vcmp.lt.s32.totalorder %v1984_v57, 4  ;;  %v2283_v8 = vand.u32 2139095040, %v14728_v5 }
 0x202   :  { %v1853_v63 = vsel %vm14657_vm6, %v14431_v33, %v1850_v20  ;;  %v2140_v3 = vsub.s32 0, %v14740_v40  ;;  %vm2005_vm14 = vcmp.lt.s32.totalorder %v1984_v57, 3  ;;  %v2008_v44 = vsel %vm2006_vm12, %v1996_v47, 2102212464 }
 0x203   :  { %12591 = vcosq.f32 %v1853_v63  ;;  %vm2076_vm15 = vcmp.lt.s32.totalorder %v14479_v43, 0  ;;  %vm2004_vm13 = vcmp.lt.s32.totalorder %v1984_v57, 2  ;;  %v2011_v34 = vsel %vm2003_vm9, %v1990_v41, %v1993_v13 }
 0x204   :  { %12593 = vsinq.f32 %v1853_v63  ;;  %v11631_v52 = vmin.u32 %v2140_v3, %v14740_v40  ;;  %v2012_v20 = vsel %vm2006_vm12, %v1999_v10, 920167782  ;;  %v2019_v48 = vshll.u32 %v1979_v62, 8 }
 0x205   :  { %v2130_v36 = vadd.s32 %v14676_v54, %v14682_v42  ;;  %v2007_v38 = vsel %vm2003_vm9, %v1987_v39, %v1990_v41  ;;  %v2015_v63 = vsel %vm2003_vm9, %v1993_v13, %v1996_v47  ;;  %v2009_v3 = vsel %vm2005_vm14, %v1993_v13, %v2008_v44 }
 0x206   :  { %v2142_v55 = vclz %v11631_v52  ;;  %v2013_v25 = vsel %vm2005_vm14, %v1996_v47, %v2012_v20  ;;  %v2016_v1 = vsel %vm2006_vm12, %v2002_v0, 1326507024  ;;  %v2284_v31 = vshrl.u32 %v2283_v8, 23 }
 0x207   :  { %vm19601_vm6 = vweird.f32 %v14431_v33  ;;  %v2160_v16 = vsub.s32 4, %v14726_v4  ;;  %v2014_v28 = vsel %vm2004_vm13, %v2011_v34, %v2013_v25  ;;  %v2017_v54 = vsel %vm2005_vm14, %v1999_v10, %v2016_v1 }
 0x208   :  { %v11632_v51 = vadd.s32 4294967294, %v2142_v55  ;;  %v2018_v42 = vsel %vm2004_vm13, %v2015_v63, %v2017_v54  ;;  %v14768_v39 = vmul.u32.u64.low %v2019_v48, %v2014_v28  ;;  %v14769_v41 = vmul.u32.u64.high %v2019_v48, %v2014_v28, %v14768_v39 }
 0x209   :  { %v11638_v2 = vadd.s32 4294967169, %v2284_v31  ;;  %v2010_v47 = vsel %vm2004_vm13, %v2007_v38, %v2009_v3  ;;  %v14773_v62 = vmul.u32.u64.low %v2019_v48, %v2018_v42  ;;  %v14774_v13 = vmul.u32.u64.high %v2019_v48, %v2018_v42, %v14773_v62 }
 0x20a   :  { %vm11633_vm0 = vcmp.lt.s32.totalorder %v11632_v51, 0  ;;  %vm5173_vm9 = vcmp.eq.s32.totalorder %v14722_v37, 0  ;;  %v19950_v0 = vand.u32 2147483647, %v14479_v43  ;;  %vm5176_vm14 = vcmp.eq.s32.totalorder %v14722_v37, 2 }
 0x20b   :  { %v2145_v10 = vsel %vm11633_vm0, 0, %v11632_v51  ;;  %v2290_v52 = vadd.s32 1, %v11638_v2  ;;  %v2026_v55 = vmul.u32 %v2019_v48, %v2010_v47  ;;  %v2029_v38 = vadd.s32 1, %v14769_v41 }
 0x20c   :  { %vm14779_vm12 = vcmp.le.f32.partialorder %v19950_v0, 0.7853982  ;;  %v2146_v44 = vsub.s32 32, %v2145_v10  ;;  %v2147_v34 = vshll.u32 %v14740_v40, %v2145_v10  ;;  %v2150_v57 = vsub.s32 4294967266, %v2145_v10 }
 0x20d   :  { %v14785_v20 = vpop.eup %12591  ;;  %v19588_v63 = vand.u32 2147483647, %v14728_v5  ;;  %vm2291_vm13 = vcmp.gt.s32.totalorder %v2290_v52, 0  ;;  %v2161_v51 = vsel %vm2076_vm15, %v2160_v16, %v14726_v4  ;;  %vm5172_vm0 = vcmp.lt.s32.totalorder %v14722_v37, 2 }
 0x20e   :  { %19953 = vst [vmem:[#allocation81_spill] sm:$0xff] %v14785_v20  ;;  %v14789_v3 = vpop.eup %12593  ;;  %v19586_v25 = vxor.u32 2147483648, %v14785_v20  ;;  %v2148_v1 = vshrl.u32 %v2130_v36, %v2146_v44  ;;  %v2151_v31 = vadd.s32 127, %v2150_v57  ;;  %vm2028_vm8 = vc.u32 %v14774_v13, %v14768_v39 }
 0x20f   :  { %19954 = vst [vmem:[#allocation82_spill] sm:$0xff] %v14789_v3  ;;  %v19587_v40 = vxor.u32 2147483648, %v14789_v3  ;;  %v2292_v48 = vsel %vm2291_vm13, %v2290_v52, 0  ;;  %v2030_v42 = vsel %vm2028_vm8, %v2029_v38, %v14769_v41  ;;  %v14812_v16 = vsel %vm14779_vm12, 0, %v2161_v51 }
 0x210   :  { %v5178_v28 = vsel %vm5176_vm14, %v19586_v25, %v14789_v3  ;;  %v2149_v36 = vor.u32 %v2148_v1, %v2147_v34  ;;  %v2152_v54 = vshll.u32 %v2151_v31, 23  ;;  %19955 = vst [vmem:[#allocation83_spill] sm:$0xff] %v14812_v16  ;;  %v2031_v2 = vadd.s32 %v2030_v42, %v2026_v55 }
 0x211   :  { %v5175_v4 = vsel %vm5173_vm9, %v14785_v20, %v19587_v40  ;;  %v2294_v47 = vand.u32 31, %v2292_v48  ;;  %v2287_v52 = vand.u32 8388607, %v19588_v63  ;;  %v2293_v34 = vshrl.u32 %v2292_v48, 5  ;;  %v73_v48 = vld [vmem:[%s19407_s0 + $0xa0] sm:$0xff] }
 0x212   :  { %v5179_v62 = vsel %vm5172_vm0, %v5175_v4, %v5178_v28  ;;  %v2153_v0 = vor.u32 4788187, %v2152_v54  ;;  %v2156_v10 = vcvt.s32.f32 %v2149_v36  ;;  %v2032_v44 = vadd.s32 536870912, %v2031_v2 }
 0x213   :  { %v14818_v41 = vsel %vm19601_vm6, nan, %v5179_v62  ;;  %v2295_v37 = vsub.s32 32, %v2294_v47  ;;  %v2297_v38 = vshll.u32 %v19860_v17, %v2294_v47  ;;  %v2300_v55 = vshll.u32 %v19855_v32, %v2294_v47 }
 0x214   :  { %19956 = vst [vmem:[#allocation84_spill] sm:$0xff] %v14818_v41  ;;  %6830 = vperm.xlu0 %12316, %v14818_v41   ;;  %v2154_v57 = vand.u32 2147483647, %v2153_v0  ;;  %v2303_v1 = vshll.u32 %v19848_v35, %v2294_v47  ;;  %v2033_v31 = vshrl.u32 %v2032_v44, 30  ;;  %v2306_v36 = vshll.u32 %v19856_v15, %v2294_v47 }
 0x215   :  { %v2298_v51 = vshrl.u32 %v19855_v32, %v2295_v37  ;;  %v2301_v28 = vshrl.u32 %v19848_v35, %v2295_v37  ;;  %v2304_v42 = vshrl.u32 %v19856_v15, %v2295_v37  ;;  %v2307_v4 = vshrl.u32 %v19857_v14, %v2295_v37 }
 0x216   :  { %v2157_v54 = vmul.f32 %v2156_v10, %v2154_v57  ;;  %v2309_v62 = vshll.u32 %v19857_v14, %v2294_v47  ;;  %v5482_v0 = vadd.s32 3, %v14812_v16  ;;  %v2034_v44 = vshll.u32 %v2033_v31, 30 }
 0x217   :  { %v2288_v25 = vor.u32 8388608, %v2287_v52  ;;  %v2296_v63 = vshrl.u32 %v19860_v17, %v2295_v37  ;;  %v2310_v41 = vshrl.u32 %v19858_v60, %v2295_v37  ;;  %v14836_v33 = vmul.f32 0.5, %v73_v48 }
 0x218   :  { %v2158_v40 = vxor.u32 2147483648, %v2157_v54  ;;  %v14838_v20 = vsub.s32 %v2031_v2, %v2034_v44  ;;  %v2299_v10 = vor.u32 %v2298_v51, %v2297_v38  ;;  %v2302_v57 = vor.u32 %v2301_v28, %v2300_v55 }
 0x219   :  { %19957 = vst [vmem:[#allocation85_spill] sm:$0xff] %v14836_v33  ;;  %v2305_v3 = vor.u32 %v2304_v42, %v2303_v1  ;;  %v2308_v47 = vor.u32 %v2307_v4, %v2306_v36  ;;  %v2311_v46 = vor.u32 %v2310_v41, %v2309_v62  ;;  %vm2312_vm8 = vcmp.lt.s32.totalorder %v2293_v34, 1 }
 0x21a   :  { %v2159_v23 = vsel %vm2076_vm15, %v2158_v40, %v2157_v54  ;;  %v2037_v16 = vsub.s32 0, %v14838_v20  ;;  %vm2315_vm9 = vcmp.lt.s32.totalorder %v2293_v34, 4  ;;  %v2328_v37 = vshll.u32 %v2288_v25, 8 }
 0x21b   :  { %v2162_v52 = vsel %vm14779_vm12, %v14479_v43, %v2159_v23  ;;  %vm2313_vm14 = vcmp.lt.s32.totalorder %v2293_v34, 2  ;;  %vm2314_vm13 = vcmp.lt.s32.totalorder %v2293_v34, 3  ;;  %v2317_v2 = vsel %vm2315_vm9, %v2305_v3, 2102212464 }
 0x21c   :  { %12595 = vcosq.f32 %v2162_v52  ;;  %v11627_v38 = vmin.u32 %v2037_v16, %v14838_v20  ;;  %v2316_v55 = vsel %vm2312_vm8, %v2296_v63, %v2299_v10  ;;  %v2320_v40 = vsel %vm2312_vm8, %v2299_v10, %v2302_v57 }
 0x21d   :  { %12597 = vsinq.f32 %v2162_v52  ;;  %v2318_v41 = vsel %vm2314_vm13, %v2302_v57, %v2317_v2  ;;  %v2321_v1 = vsel %vm2315_vm9, %v2308_v47, 920167782  ;;  %v2324_v51 = vsel %vm2312_vm8, %v2302_v57, %v2305_v3 }
 0x21e   :  { %v2325_v28 = vsel %vm2315_vm9, %v2311_v46, 1326507024  ;;  %v19958_v23 = vand.u32 2147483647, %v14618_v45  ;;  %vm1973_vm12 = vcmp.lt.s32.totalorder %v14618_v45, 0  ;;  %v2039_v25 = vclz %v11627_v38 }
 0x21f   :  { %v2057_v36 = vsub.s32 4, %v2033_v31  ;;  %v5483_v48 = vand.u32 3, %v5482_v0  ;;  %v2322_v16 = vsel %vm2314_vm13, %v2305_v3, %v2321_v1  ;;  %v2326_v63 = vsel %vm2314_vm13, %v2308_v47, %v2325_v28 }
 0x220   :  { %vm14850_vm15 = vcmp.le.f32.partialorder %v19958_v23, 0.7853982  ;;  %v2180_v54 = vand.u32 2139095040, %v14836_v33  ;;  %vm19608_vm0 = vweird.f32 %v14479_v43  ;;  %v11628_v46 = vadd.s32 4294967294, %v2039_v25  ;;  %v76_v25 = vld [vmem:[%s19407_s0 + $0xb8] sm:$0xff] }
 0x221   :  { %v2319_v42 = vsel %vm2313_vm14, %v2316_v55, %v2318_v41  ;;  %v2323_v4 = vsel %vm2313_vm14, %v2320_v40, %v2322_v16  ;;  %v2327_v62 = vsel %vm2313_vm14, %v2324_v51, %v2326_v63  ;;  %v2027_v3 = vadd.s32 %v14768_v39, %v14774_v13 }
 0x222   :  { %v14862_v44 = vmul.u32.u64.low %v2328_v37, %v2327_v62  ;;  %v14863_v10 = vmul.u32.u64.high %v2328_v37, %v2327_v62, %v14862_v44  ;;  %v14865_v57 = vmul.u32.u64.low %v2328_v37, %v2323_v4  ;;  %v14866_v0 = vmul.u32.u64.high %v2328_v37, %v2323_v4, %v14865_v57 }
 0x223   :  { %vm11629_vm8 = vcmp.lt.s32.totalorder %v11628_v46, 0  ;;  %v2058_v47 = vsel %vm1973_vm12, %v2057_v36, %v2033_v31  ;;  %v2181_v52 = vshrl.u32 %v2180_v54, 23  ;;  %vm5485_vm9 = vcmp.eq.s32.totalorder %v5483_v48, 0 }
 0x224   :  { %v2042_v2 = vsel %vm11629_vm8, 0, %v11628_v46  ;;  %v2335_v38 = vmul.u32 %v2328_v37, %v2319_v42  ;;  %v19604_v34 = vand.u32 2147483647, %v14836_v33  ;;  %vm5488_vm14 = vcmp.eq.s32.totalorder %v5483_v48, 2 }
 0x225   :  { %v2043_v55 = vsub.s32 32, %v2042_v2  ;;  %v2044_v40 = vshll.u32 %v14838_v20, %v2042_v2  ;;  %v2047_v41 = vsub.s32 4294967266, %v2042_v2  ;;  %v11634_v1 = vadd.s32 4294967169, %v2181_v52 }
 0x226   :  { %v14874_v51 = vpop.eup %12595  ;;  %v14878_v39 = vsel %vm14850_vm15, 0, %v2058_v47  ;;  %vm2337_vm13 = vc.u32 %v14863_v10, %v14865_v57  ;;  %v2338_v13 = vadd.s32 1, %v14866_v0  ;;  %vm5484_vm8 = vcmp.lt.s32.totalorder %v5483_v48, 2 }
 0x227   :  { %19961 = vst [vmem:[#allocation86_spill] sm:$0xff] %v14874_v51  ;;  %19962 = vst [vmem:[#allocation87_spill] sm:$0xff] %v14878_v39  ;;  %v14882_v31 = vpop.eup %12597  ;;  %v19602_v37 = vxor.u32 2147483648, %v14874_v51  ;;  %v2045_v28 = vshrl.u32 %v2027_v3, %v2043_v55  ;;  %v2048_v23 = vadd.s32 127, %v2047_v41  ;;  %v2187_v20 = vadd.s32 1, %v11634_v1 }
 0x228   :  { %19963 = vst [vmem:[#allocation88_spill] sm:$0xff] %v14882_v31  ;;  %v19603_v36 = vxor.u32 2147483648, %v14882_v31  ;;  %v2339_v16 = vsel %vm2337_vm13, %v2338_v13, %v14866_v0  ;;  %v2184_v63 = vand.u32 8388607, %v19604_v34  ;;  %v5378_v44 = vadd.s32 3, %v14878_v39 }
 0x229   :  { %v5490_v54 = vsel %vm5488_vm14, %v19602_v37, %v14882_v31  ;;  %v2046_v46 = vor.u32 %v2045_v28, %v2044_v40  ;;  %v2049_v42 = vshll.u32 %v2048_v23, 23  ;;  %v2340_v4 = vadd.s32 %v2339_v16, %v2335_v38 }
 0x22a   :  { %v5487_v62 = vsel %vm5485_vm9, %v14874_v51, %v19603_v36  ;;  %vm2188_vm6 = vcmp.gt.s32.totalorder %v2187_v20, 0  ;;  %v14900_v3 = vmul.f32 0.5, %v76_v25  ;;  %v2185_v40 = vor.u32 8388608, %v2184_v63 }
 0x22b   :  { %v5491_v0 = vsel %vm5484_vm8, %v5487_v62, %v5490_v54  ;;  %v2050_v47 = vor.u32 4788187, %v2049_v42  ;;  %v2053_v52 = vcvt.s32.f32 %v2046_v46  ;;  %v2341_v2 = vadd.s32 536870912, %v2340_v4 }
 0x22c   :  { %19964 = vst [vmem:[#allocation89_spill] sm:$0xff] %v14900_v3  ;;  %v14904_v55 = vsel %vm19608_vm0, nan, %v5491_v0  ;;  %v2189_v38 = vsel %vm2188_vm6, %v2187_v20, 0  ;;  %v14907_v13 = vand.u32 3, %v5378_v44  ;;  %v2489_v16 = vand.u32 2139095040, %v14900_v3 }
 0x22d   :  { %19965 = vst [vmem:[#allocation90_spill] sm:$0xff] %v14904_v55  ;;  %6845 = vperm.xlu1 %12317, %v14904_v55   ;;  %v2051_v41 = vand.u32 2147483647, %v2050_v47  ;;  %v2342_v48 = vshrl.u32 %v2341_v2, 30  ;;  %v2191_v1 = vand.u32 31, %v2189_v38  ;;  %v14911_v54 = vadd.s32 %v14865_v57, %v14863_v10 }
 0x22e   :  { %v14915_v20 = vshll.u32 %v2185_v40, 8  ;;  %vm2282_vm6 = vcmp.lt.s32.totalorder %v14728_v5, 0  ;;  %v2190_v47 = vshrl.u32 %v2189_v38, 5  ;;  %vm5380_vm0 = vcmp.lt.s32.totalorder %v14907_v13, 2 }
 0x22f   :  { %v2054_v28 = vmul.f32 %v2053_v52, %v2051_v41  ;;  %v2343_v23 = vshll.u32 %v2342_v48, 30  ;;  %v2192_v25 = vsub.s32 32, %v2191_v1  ;;  %v2194_v46 = vshll.u32 %v19860_v17, %v2191_v1 }
 0x230   :  { %v2197_v63 = vshll.u32 %v19855_v32, %v2191_v1  ;;  %v2200_v44 = vshll.u32 %v19848_v35, %v2191_v1  ;;  %v2203_v0 = vshll.u32 %v19856_v15, %v2191_v1  ;;  %v2490_v41 = vshrl.u32 %v2489_v16, 23 }
 0x231   :  { %v2055_v42 = vxor.u32 2147483648, %v2054_v28  ;;  %v14917_v62 = vsub.s32 %v2340_v4, %v2343_v23  ;;  %v2195_v52 = vshrl.u32 %v19855_v32, %v2192_v25  ;;  %v2198_v10 = vshrl.u32 %v19848_v35, %v2192_v25 }
 0x232   :  { %v2201_v57 = vshrl.u32 %v19856_v15, %v2192_v25  ;;  %v2204_v4 = vshrl.u32 %v19857_v14, %v2192_v25  ;;  %v2193_v38 = vshrl.u32 %v19860_v17, %v2192_v25  ;;  %v19966_v16 = vand.u32 2147483647, %v14728_v5 }
 0x233   :  { %v2056_v2 = vsel %vm1973_vm12, %v2055_v42, %v2054_v28  ;;  %v2346_v40 = vsub.s32 0, %v14917_v62  ;;  %v2196_v37 = vor.u32 %v2195_v52, %v2194_v46  ;;  %v2199_v36 = vor.u32 %v2198_v10, %v2197_v63 }
 0x234   :  { %v2059_v23 = vsel %vm14850_vm15, %v14618_v45, %v2056_v2  ;;  %v2202_v55 = vor.u32 %v2201_v57, %v2200_v44  ;;  %v2205_v39 = vor.u32 %v2204_v4, %v2203_v0  ;;  %v2206_v28 = vshll.u32 %v19857_v14, %v2191_v1 }
 0x235   :  { %12599 = vcosq.f32 %v2059_v23  ;;  %v11639_v34 = vmin.u32 %v2346_v40, %v14917_v62  ;;  %v2207_v42 = vshrl.u32 %v19858_v60, %v2192_v25  ;;  %vm2209_vm12 = vcmp.lt.s32.totalorder %v2190_v47, 1 }
 0x236   :  { %12601 = vsinq.f32 %v2059_v23  ;;  %vm14938_vm9 = vcmp.le.f32.partialorder %v19966_v16, 0.7853982  ;;  %v2366_v46 = vsub.s32 4, %v2342_v48  ;;  %v11646_v52 = vadd.s32 4294967169, %v2490_v41 }
 0x237   :  { %v2348_v2 = vclz %v11639_v34  ;;  %vm5381_vm15 = vcmp.eq.s32.totalorder %v14907_v13, 0  ;;  %v2208_v44 = vor.u32 %v2207_v42, %v2206_v28  ;;  %vm2210_vm14 = vcmp.lt.s32.totalorder %v2190_v47, 2 }
 0x238   :  { %vm2211_vm13 = vcmp.lt.s32.totalorder %v2190_v47, 3  ;;  %vm2212_vm8 = vcmp.lt.s32.totalorder %v2190_v47, 4  ;;  %v2213_v25 = vsel %vm2209_vm12, %v2193_v38, %v2196_v37  ;;  %v2217_v10 = vsel %vm2209_vm12, %v2196_v37, %v2199_v36 }
 0x239   :  { %v11640_v1 = vadd.s32 4294967294, %v2348_v2  ;;  %v2214_v0 = vsel %vm2212_vm8, %v2202_v55, 2102212464  ;;  %vm19638_vm4 = vweird.f32 %v14618_v45  ;;  %v2218_v57 = vsel %vm2212_vm8, %v2205_v39, 920167782 }
 0x23a   :  { %v2215_v34 = vsel %vm2211_vm13, %v2199_v36, %v2214_v0  ;;  %v2221_v40 = vsel %vm2209_vm12, %v2199_v36, %v2202_v55  ;;  %v2222_v4 = vsel %vm2212_vm8, %v2208_v44, 1326507024  ;;  %v2367_v41 = vsel %vm2282_vm6, %v2366_v46, %v2342_v48 }
 0x23b   :  { %vm11641_vm7 = vcmp.lt.s32.totalorder %v11640_v1, 0  ;;  %v2219_v23 = vsel %vm2211_vm13, %v2202_v55, %v2218_v57  ;;  %v2223_v28 = vsel %vm2211_vm13, %v2205_v39, %v2222_v4  ;;  %v2216_v16 = vsel %vm2210_vm14, %v2213_v25, %v2215_v34 }
 0x23c   :  { %v2351_v42 = vsel %vm11641_vm7, 0, %v11640_v1  ;;  %v2220_v38 = vsel %vm2210_vm14, %v2217_v10, %v2219_v23  ;;  %v2224_v37 = vsel %vm2210_vm14, %v2221_v40, %v2223_v28  ;;  %v2496_v43 = vadd.s32 1, %v11646_v52 }
 0x23d   :  { %v2352_v2 = vsub.s32 32, %v2351_v42  ;;  %v2353_v0 = vshll.u32 %v14917_v62, %v2351_v42  ;;  %v2356_v63 = vsub.s32 4294967266, %v2351_v42  ;;  %vm5384_vm7 = vcmp.eq.s32.totalorder %v14907_v13, 2  ;;  %v75_v62 = vld [vmem:[%s19407_s0 + $0xb0] sm:$0xff] }
 0x23e   :  { %v14956_v36 = vmul.u32.u64.low %v14915_v20, %v2224_v37  ;;  %v14957_v44 = vmul.u32.u64.high %v14915_v20, %v2224_v37, %v14956_v36  ;;  %v14960_v48 = vmul.u32.u64.low %v14915_v20, %v2220_v38  ;;  %v14961_v55 = vmul.u32.u64.high %v14915_v20, %v2220_v38, %v14960_v48 }
 0x23f   :  { %v14964_v39 = vpop.eup %12599  ;;  %v2354_v47 = vshrl.u32 %v14911_v54, %v2352_v2  ;;  %v2357_v46 = vadd.s32 127, %v2356_v63  ;;  %vm2497_vm12 = vcmp.gt.s32.totalorder %v2496_v43, 0  ;;  %v14976_v25 = vsel %vm14938_vm9, 0, %v2367_v41 }
 0x240   :  { %19969 = vst [vmem:[#allocation91_spill] sm:$0xff] %v14964_v39  ;;  %v14971_v52 = vpop.eup %12601  ;;  %v19612_v1 = vxor.u32 2147483648, %v14964_v39  ;;  %19971 = vst [vmem:[#allocation93_spill] sm:$0xff] %v14976_v25  ;;  %v19972_v10 = vand.u32 2147483647, %v14900_v3  ;;  %v2498_v57 = vsel %vm2497_vm12, %v2496_v43, 0  ;;  %v2232_v4 = vmul.u32 %v14915_v20, %v2216_v16 }
 0x241   :  { %19970 = vst [vmem:[#allocation92_spill] sm:$0xff] %v14971_v52  ;;  %v19613_v54 = vxor.u32 2147483648, %v14971_v52  ;;  %v2355_v63 = vor.u32 %v2354_v47, %v2353_v0  ;;  %v2358_v40 = vshll.u32 %v2357_v46, 23  ;;  %vm2234_vm14 = vc.u32 %v14957_v44, %v14960_v48 }
 0x242   :  { %v2493_v34 = vand.u32 8388607, %v19972_v10  ;;  %v5386_v23 = vsel %vm5384_vm7, %v19612_v1, %v14971_v52  ;;  %v2235_v41 = vadd.s32 1, %v14961_v55  ;;  %v14990_v28 = vmul.f32 0.5, %v75_v62 }
 0x243   :  { %v5383_v43 = vsel %vm5381_vm15, %v14964_v39, %v19613_v54  ;;  %v2359_v20 = vor.u32 4788187, %v2358_v40  ;;  %v2362_v42 = vcvt.s32.f32 %v2355_v63  ;;  %v2500_v16 = vand.u32 31, %v2498_v57 }
 0x244   :  { %19973 = vst [vmem:[#allocation94_spill] sm:$0xff] %v14990_v28  ;;  %v5387_v38 = vsel %vm5380_vm0, %v5383_v43, %v5386_v23  ;;  %v5690_v37 = vadd.s32 3, %v14976_v25  ;;  %v2236_v2 = vsel %vm2234_vm14, %v2235_v41, %v14961_v55  ;;  %v2494_v0 = vor.u32 8388608, %v2493_v34 }
 0x245   :  { %v15003_v36 = vsel %vm19638_vm4, nan, %v5387_v38  ;;  %v2360_v47 = vand.u32 2147483647, %v2359_v20  ;;  %v2237_v46 = vadd.s32 %v2236_v2, %v2232_v4  ;;  %v2501_v62 = vsub.s32 32, %v2500_v16 }
 0x246   :  { %19974 = vst [vmem:[#allocation95_spill] sm:$0xff] %v15003_v36  ;;  %6840 = vperm.xlu0 %12316, %v15003_v36   ;;  %v2499_v10 = vshrl.u32 %v2498_v57, 5  ;;  %v2503_v63 = vshll.u32 %v19860_v17, %v2500_v16  ;;  %v2506_v13 = vshll.u32 %v19855_v32, %v2500_v16  ;;  %v2512_v40 = vshll.u32 %v19856_v15, %v2500_v16 }
 0x247   :  { %v2363_v23 = vmul.f32 %v2362_v42, %v2360_v47  ;;  %vm2179_vm0 = vcmp.lt.s32.totalorder %v14836_v33, 0  ;;  %v2238_v55 = vadd.s32 536870912, %v2237_v46  ;;  %v2504_v34 = vshrl.u32 %v19855_v32, %v2501_v62 }
 0x248   :  { %v2509_v41 = vshll.u32 %v19848_v35, %v2500_v16  ;;  %v2507_v4 = vshrl.u32 %v19848_v35, %v2501_v62  ;;  %v2510_v43 = vshrl.u32 %v19856_v15, %v2501_v62  ;;  %v2513_v57 = vshrl.u32 %v19857_v14, %v2501_v62 }
 0x249   :  { %v2515_v20 = vshll.u32 %v19857_v14, %v2500_v16  ;;  %v2364_v38 = vxor.u32 2147483648, %v2363_v23  ;;  %v2239_v2 = vshrl.u32 %v2238_v55, 30  ;;  %v2505_v1 = vor.u32 %v2504_v34, %v2503_v63 }
 0x24a   :  { %v2516_v42 = vshrl.u32 %v19858_v60, %v2501_v62  ;;  %v2502_v47 = vshrl.u32 %v19860_v17, %v2501_v62  ;;  %v2508_v54 = vor.u32 %v2507_v4, %v2506_v13  ;;  %v2514_v36 = vor.u32 %v2513_v57, %v2512_v40 }
 0x24b   :  { %vm2518_vm15 = vcmp.lt.s32.totalorder %v2499_v10, 1  ;;  %v2365_v45 = vsel %vm2282_vm6, %v2364_v38, %v2363_v23  ;;  %v2240_v39 = vshll.u32 %v2239_v2, 30  ;;  %v2511_v52 = vor.u32 %v2510_v43, %v2509_v41 }
 0x24c   :  { %vm2520_vm13 = vcmp.lt.s32.totalorder %v2499_v10, 3  ;;  %v2368_v16 = vsel %vm14938_vm9, %v14728_v5, %v2365_v45  ;;  %v2263_v51 = vsub.s32 4, %v2239_v2  ;;  %v2517_v55 = vor.u32 %v2516_v42, %v2515_v20 }
 0x24d   :  { %vm2521_vm8 = vcmp.lt.s32.totalorder %v2499_v10, 4  ;;  %12603 = vcosq.f32 %v2368_v16  ;;  %v15023_v63 = vsub.s32 %v2237_v46, %v2240_v39  ;;  %vm2519_vm7 = vcmp.lt.s32.totalorder %v2499_v10, 2 }
 0x24e   :  { %v2526_v62 = vsel %vm2518_vm15, %v2505_v1, %v2508_v54  ;;  %12605 = vsinq.f32 %v2368_v16  ;;  %v2523_v13 = vsel %vm2521_vm8, %v2511_v52, 2102212464  ;;  %v2527_v40 = vsel %vm2521_vm8, %v2514_v36, 920167782 }
 0x24f   :  { %v2534_v23 = vshll.u32 %v2494_v0, 8  ;;  %v5691_v34 = vand.u32 3, %v5690_v37  ;;  %v2243_v41 = vsub.s32 0, %v15023_v63  ;;  %v2522_v45 = vsel %vm2518_vm15, %v2502_v47, %v2505_v1  ;;  %v78_v0 = vld [vmem:[%s19407_s0 + $0xc8] sm:$0xff] }
 0x250   :  { %v2528_v8 = vsel %vm2520_vm13, %v2511_v52, %v2527_v40  ;;  %v2264_v39 = vsel %vm2179_vm0, %v2263_v51, %v2239_v2  ;;  %v2530_v4 = vsel %vm2518_vm15, %v2508_v54, %v2511_v52  ;;  %v2531_v43 = vsel %vm2521_vm8, %v2517_v55, 1326507024 }
 0x251   :  { %v2529_v46 = vsel %vm2519_vm7, %v2526_v62, %v2528_v8  ;;  %v11635_v37 = vmin.u32 %v2243_v41, %v15023_v63  ;;  %v2524_v57 = vsel %vm2520_vm13, %v2508_v54, %v2523_v13  ;;  %v2532_v1 = vsel %vm2520_vm13, %v2514_v36, %v2531_v43 }
 0x252   :  { %v2386_v20 = vand.u32 2139095040, %v14990_v28  ;;  %v19975_v51 = vand.u32 2147483647, %v14836_v33  ;;  %v2533_v52 = vsel %vm2519_vm7, %v2530_v4, %v2532_v1  ;;  %v19623_v54 = vand.u32 2147483647, %v14990_v28 }
 0x253   :  { %v15050_v2 = vmul.u32.u64.low %v2534_v23, %v2529_v46  ;;  %v15051_v42 = vmul.u32.u64.high %v2534_v23, %v2529_v46, %v15050_v2  ;;  %v2245_v47 = vclz %v11635_v37  ;;  %v15058_v36 = vmul.f32 0.5, %v78_v0 }
 0x254   :  { %vm15045_vm6 = vcmp.le.f32.partialorder %v19975_v51, 0.7853982  ;;  %v2525_v55 = vsel %vm2519_vm7, %v2522_v45, %v2524_v57  ;;  %v15061_v62 = vmul.u32.u64.low %v2534_v23, %v2533_v52  ;;  %v15062_v13 = vmul.u32.u64.high %v2534_v23, %v2533_v52, %v15061_v62 }
 0x255   :  { %v15055_v16 = vsel %vm15045_vm6, 0, %v2264_v39  ;;  %19979 = vst [vmem:[#allocation97_spill] sm:$0xff] %v15058_v36  ;;  %v2387_v40 = vshrl.u32 %v2386_v20, 23  ;;  %vm2372_vm9 = vweird.f32 %v14728_v5  ;;  %vm5692_vm12 = vcmp.lt.s32.totalorder %v5691_v34, 2 }
 0x256   :  { %19978 = vst [vmem:[#allocation96_spill] sm:$0xff] %v15055_v16  ;;  %vm5693_vm14 = vcmp.eq.s32.totalorder %v5691_v34, 0  ;;  %v11636_v41 = vadd.s32 4294967294, %v2245_v47  ;;  %vm5696_vm15 = vcmp.eq.s32.totalorder %v5691_v34, 2  ;;  %v2233_v8 = vadd.s32 %v14960_v48, %v14957_v44 }
 0x257   :  { %v2544_v39 = vadd.s32 1, %v15051_v42  ;;  %v11642_v46 = vadd.s32 4294967169, %v2387_v40  ;;  %v15068_v4 = vpop.eup %12603  ;;  %v5586_v10 = vadd.s32 3, %v15055_v16  ;;  %v2541_v45 = vmul.u32 %v2534_v23, %v2525_v55 }
 0x258   :  { %19980 = vst [vmem:[#allocation98_spill] sm:$0xff] %v15068_v4  ;;  %vm11637_vm13 = vcmp.lt.s32.totalorder %v11636_v41, 0  ;;  %v2390_v43 = vand.u32 8388607, %v19623_v54  ;;  %v15073_v0 = vpop.eup %12605  ;;  %v19625_v37 = vxor.u32 2147483648, %v15068_v4  ;;  %vm2543_vm8 = vc.u32 %v15062_v13, %v15050_v2 }
 0x259   :  { %19981 = vst [vmem:[#allocation99_spill] sm:$0xff] %v15073_v0  ;;  %v2248_v57 = vsel %vm11637_vm13, 0, %v11636_v41  ;;  %v2695_v44 = vand.u32 2139095040, %v15058_v36  ;;  %v19626_v48 = vxor.u32 2147483648, %v15073_v0  ;;  %v2545_v52 = vsel %vm2543_vm8, %v2544_v39, %v15051_v42 }
 0x25a   :  { %v2249_v1 = vsub.s32 32, %v2248_v57  ;;  %v2250_v20 = vshll.u32 %v15023_v63, %v2248_v57  ;;  %v2253_v51 = vsub.s32 4294967266, %v2248_v57  ;;  %v5698_v23 = vsel %vm5696_vm15, %v19625_v37, %v15073_v0 }
 0x25b   :  { %v2393_v47 = vadd.s32 1, %v11642_v46  ;;  %v5695_v62 = vsel %vm5693_vm14, %v15068_v4, %v19626_v48  ;;  %v2546_v54 = vadd.s32 %v2545_v52, %v2541_v45  ;;  %v2391_v57 = vor.u32 8388608, %v2390_v43 }
 0x25c   :  { %v2251_v40 = vshrl.u32 %v2233_v8, %v2249_v1  ;;  %v2254_v41 = vadd.s32 127, %v2253_v51  ;;  %v5699_v63 = vsel %vm5692_vm12, %v5695_v62, %v5698_v23  ;;  %v2696_v16 = vshrl.u32 %v2695_v44, 23 }
 0x25d   :  { %vm2394_vm7 = vcmp.gt.s32.totalorder %v2393_v47, 0  ;;  %v15093_v37 = vsel %vm2372_vm9, nan, %v5699_v63  ;;  %v2547_v46 = vadd.s32 536870912, %v2546_v54  ;;  %v19983_v48 = vand.u32 2147483647, %v15058_v36 }
 0x25e   :  { %19982 = vst [vmem:[#allocation100_spill] sm:$0xff] %v15093_v37  ;;  %v2252_v42 = vor.u32 %v2251_v40, %v2250_v20  ;;  %v2255_v39 = vshll.u32 %v2254_v41, 23  ;;  %6855 = vperm.xlu1 %12317, %v15093_v37   ;;  %v2395_v55 = vsel %vm2394_vm7, %v2393_v47, 0  ;;  %v15100_v43 = vand.u32 3, %v5586_v10 }
 0x25f   :  { %v15098_v8 = vand.u32 8388607, %v19983_v48  ;;  %v2548_v1 = vshrl.u32 %v2547_v46, 30  ;;  %v2397_v44 = vand.u32 31, %v2395_v55  ;;  %v15102_v52 = vshll.u32 %v2391_v57, 8 }
 0x260   :  { %v2256_v45 = vor.u32 4788187, %v2255_v39  ;;  %v2259_v34 = vcvt.s32.f32 %v2252_v42  ;;  %v11654_v20 = vadd.s32 4294967169, %v2696_v16  ;;  %v2542_v62 = vadd.s32 %v15050_v2, %v15062_v13 }
 0x261   :  { %v2549_v23 = vshll.u32 %v2548_v1, 30  ;;  %v2396_v40 = vshrl.u32 %v2395_v55, 5  ;;  %v2398_v41 = vsub.s32 32, %v2397_v44  ;;  %v2400_v42 = vshll.u32 %v19860_v17, %v2397_v44 }
 0x262   :  { %v2257_v51 = vand.u32 2147483647, %v2256_v45  ;;  %v2403_v10 = vshll.u32 %v19855_v32, %v2397_v44  ;;  %v2406_v57 = vshll.u32 %v19848_v35, %v2397_v44  ;;  %v2409_v16 = vshll.u32 %v19856_v15, %v2397_v44 }
 0x263   :  { %v15106_v48 = vsub.s32 %v2546_v54, %v2549_v23  ;;  %v2401_v39 = vshrl.u32 %v19855_v32, %v2398_v41  ;;  %v2404_v46 = vshrl.u32 %v19848_v35, %v2398_v41  ;;  %vm2488_vm12 = vcmp.lt.s32.totalorder %v14900_v3, 0 }
 0x264   :  { %v2260_v63 = vmul.f32 %v2259_v34, %v2257_v51  ;;  %v2407_v54 = vshrl.u32 %v19856_v15, %v2398_v41  ;;  %v2702_v55 = vadd.s32 1, %v11654_v20  ;;  %v2399_v45 = vshrl.u32 %v19860_v17, %v2398_v41 }
 0x265   :  { %v2552_v13 = vsub.s32 0, %v15106_v48  ;;  %v2410_v34 = vshrl.u32 %v19857_v14, %v2398_v41  ;;  %v2412_v51 = vshll.u32 %v19857_v14, %v2397_v44  ;;  %vm2415_vm14 = vcmp.lt.s32.totalorder %v2396_v40, 1 }
 0x266   :  { %v2261_v2 = vxor.u32 2147483648, %v2260_v63  ;;  %v2402_v37 = vor.u32 %v2401_v39, %v2400_v42  ;;  %v2405_v5 = vor.u32 %v2404_v46, %v2403_v10  ;;  %v2408_v0 = vor.u32 %v2407_v54, %v2406_v57 }
 0x267   :  { %v11647_v47 = vmin.u32 %v2552_v13, %v15106_v48  ;;  %v2411_v20 = vor.u32 %v2410_v34, %v2409_v16  ;;  %v2413_v31 = vshrl.u32 %v19858_v60, %v2398_v41  ;;  %v2572_v49 = vsub.s32 4, %v2548_v1 }
 0x268   :  { %v2262_v23 = vsel %vm2179_vm0, %v2261_v2, %v2260_v63  ;;  %vm2703_vm15 = vcmp.gt.s32.totalorder %v2702_v55, 0  ;;  %v19984_v44 = vand.u32 2147483647, %v14900_v3  ;;  %vm2416_vm13 = vcmp.lt.s32.totalorder %v2396_v40, 2 }
 0x269   :  { %v2265_v4 = vsel %vm15045_vm6, %v14836_v33, %v2262_v23  ;;  %v2554_v25 = vclz %v11647_v47  ;;  %v2414_v42 = vor.u32 %v2413_v31, %v2412_v51  ;;  %vm2417_vm8 = vcmp.lt.s32.totalorder %v2396_v40, 3 }
 0x26a   :  { %12607 = vcosq.f32 %v2265_v4  ;;  %vm15129_vm0 = vcmp.le.f32.partialorder %v19984_v44, 0.7853982  ;;  %vm2418_vm6 = vcmp.lt.s32.totalorder %v2396_v40, 4  ;;  %v2419_v10 = vsel %vm2415_vm14, %v2399_v45, %v2402_v37  ;;  %v77_v40 = vld [vmem:[%s19407_s0 + $0xc0] sm:$0xff] }
 0x26b   :  { %12609 = vsinq.f32 %v2265_v4  ;;  %v11648_v38 = vadd.s32 4294967294, %v2554_v25  ;;  %v2423_v41 = vsel %vm2415_vm14, %v2402_v37, %v2405_v5  ;;  %v2420_v39 = vsel %vm2418_vm6, %v2408_v0, 2102212464 }
 0x26c   :  { %v2424_v47 = vsel %vm2418_vm6, %v2411_v20, 920167782  ;;  %v2427_v46 = vsel %vm2415_vm14, %v2405_v5, %v2408_v0  ;;  %v2428_v4 = vsel %vm2418_vm6, %v2414_v42, 1326507024  ;;  %v2421_v57 = vsel %vm2417_vm8, %v2405_v5, %v2420_v39 }
 0x26d   :  { %vm11649_vm7 = vcmp.lt.s32.totalorder %v11648_v38, 0  ;;  %v2425_v16 = vsel %vm2417_vm8, %v2408_v0, %v2424_v47  ;;  %v2429_v2 = vsel %vm2417_vm8, %v2411_v20, %v2428_v4  ;;  %vm19657_vm4 = vweird.f32 %v14836_v33 }
 0x26e   :  { %v2557_v31 = vsel %vm11649_vm7, 0, %v11648_v38  ;;  %v2573_v25 = vsel %vm2488_vm12, %v2572_v49, %v2548_v1  ;;  %v2426_v13 = vsel %vm2416_vm13, %v2423_v41, %v2425_v16  ;;  %v2430_v54 = vsel %vm2416_vm13, %v2427_v46, %v2429_v2 }
 0x26f   :  { %v2558_v37 = vsub.s32 32, %v2557_v31  ;;  %v2559_v45 = vshll.u32 %v15106_v48, %v2557_v31  ;;  %v2562_v34 = vsub.s32 4294967266, %v2557_v31  ;;  %v2422_v51 = vsel %vm2416_vm13, %v2419_v10, %v2421_v57 }
 0x270   :  { %v15144_v5 = vmul.u32.u64.low %v15102_v52, %v2430_v54  ;;  %v15145_v0 = vmul.u32.u64.high %v15102_v52, %v2430_v54, %v15144_v5  ;;  %v15148_v23 = vmul.u32.u64.low %v15102_v52, %v2426_v13  ;;  %v15149_v20 = vmul.u32.u64.high %v15102_v52, %v2426_v13, %v15148_v23 }
 0x271   :  { %vm5588_vm14 = vcmp.lt.s32.totalorder %v15100_v43, 2  ;;  %v2560_v49 = vshrl.u32 %v2542_v62, %v2558_v37  ;;  %v2563_v1 = vadd.s32 127, %v2562_v34  ;;  %v2704_v44 = vsel %vm2703_vm15, %v2702_v55, 0 }
 0x272   :  { %vm5589_vm13 = vcmp.eq.s32.totalorder %v15100_v43, 0  ;;  %vm5592_vm8 = vcmp.eq.s32.totalorder %v15100_v43, 2  ;;  %v2706_v48 = vand.u32 31, %v2704_v44  ;;  %v19987_v42 = vor.u32 8388608, %v15098_v8 }
 0x273   :  { %v2561_v41 = vor.u32 %v2560_v49, %v2559_v45  ;;  %v2564_v62 = vshll.u32 %v2563_v1, 23  ;;  %v15167_v55 = vsel %vm15129_vm0, 0, %v2573_v25  ;;  %v2438_v39 = vmul.u32 %v15102_v52, %v2422_v51 }
 0x274   :  { %v15161_v38 = vshll.u32 %v19987_v42, 8  ;;  %v15163_v10 = vpop.eup %12607  ;;  %19989 = vst [vmem:[#allocation102_spill] sm:$0xff] %v15167_v55  ;;  %vm2440_vm15 = vc.u32 %v15145_v0, %v15148_v23  ;;  %v2441_v8 = vadd.s32 1, %v15149_v20  ;;  %v15176_v4 = vmul.f32 0.5, %v77_v40 }
 0x275   :  { %19988 = vst [vmem:[#allocation101_spill] sm:$0xff] %v15163_v10  ;;  %v15170_v47 = vpop.eup %12609  ;;  %v19639_v46 = vxor.u32 2147483648, %v15163_v10  ;;  %v2565_v16 = vor.u32 4788187, %v2564_v62  ;;  %v2568_v2 = vcvt.s32.f32 %v2561_v41  ;;  %v2707_v31 = vsub.s32 32, %v2706_v48 }
 0x276   :  { %19990 = vst [vmem:[#allocation103_spill] sm:$0xff] %v15170_v47  ;;  %19991 = vst [vmem:[#allocation104_spill] sm:$0xff] %v15176_v4  ;;  %v19640_v57 = vxor.u32 2147483648, %v15170_v47  ;;  %v5898_v25 = vadd.s32 3, %v15167_v55  ;;  %v2442_v13 = vsel %vm2440_vm15, %v2441_v8, %v15149_v20  ;;  %v2709_v51 = vshll.u32 %v19860_v17, %v2706_v48 }
 0x277   :  { %v5594_v52 = vsel %vm5592_vm8, %v19639_v46, %v15170_v47  ;;  %v2566_v45 = vand.u32 2147483647, %v2565_v16  ;;  %v2443_v34 = vadd.s32 %v2442_v13, %v2438_v39  ;;  %v2710_v49 = vshrl.u32 %v19855_v32, %v2707_v31 }
 0x278   :  { %v5591_v37 = vsel %vm5589_vm13, %v15163_v10, %v19640_v57  ;;  %v2712_v1 = vshll.u32 %v19855_v32, %v2706_v48  ;;  %v2713_v20 = vshrl.u32 %v19848_v35, %v2707_v31  ;;  %v2705_v62 = vshrl.u32 %v2704_v44, 5 }
 0x279   :  { %v5595_v5 = vsel %vm5588_vm14, %v5591_v37, %v5594_v52  ;;  %v2569_v42 = vmul.f32 %v2568_v2, %v2566_v45  ;;  %v2444_v41 = vadd.s32 536870912, %v2443_v34  ;;  %v2715_v39 = vshll.u32 %v19848_v35, %v2706_v48 }
 0x27a   :  { %v15200_v40 = vsel %vm19657_vm4, nan, %v5595_v5  ;;  %v2716_v43 = vshrl.u32 %v19856_v15, %v2707_v31  ;;  %v2718_v8 = vshll.u32 %v19856_v15, %v2706_v48  ;;  %v2719_v16 = vshrl.u32 %v19857_v14, %v2707_v31 }
 0x27b   :  { %19992 = vst [vmem:[#allocation105_spill] sm:$0xff] %v15200_v40  ;;  %6850 = vperm.xlu0 %12316, %v15200_v40   ;;  %v2570_v52 = vxor.u32 2147483648, %v2569_v42  ;;  %v15207_v13 = vand.u32 3, %v5898_v25  ;;  %v2445_v37 = vshrl.u32 %v2444_v41, 30  ;;  %v2721_v5 = vshll.u32 %v19857_v14, %v2706_v48 }
 0x27c   :  { %vm2385_vm6 = vcmp.lt.s32.totalorder %v14990_v28, 0  ;;  %v2708_v44 = vshrl.u32 %v19860_v17, %v2707_v31  ;;  %v2711_v2 = vor.u32 %v2710_v49, %v2709_v51  ;;  %v2714_v45 = vor.u32 %v2713_v20, %v2712_v1  ;;  %v80_v51 = vld [vmem:[%s19407_s0 + $0xd8] sm:$0xff] }
 0x27d   :  { %v2722_v46 = vshrl.u32 %v19858_v60, %v2707_v31  ;;  %v2571_v57 = vsel %vm2488_vm12, %v2570_v52, %v2569_v42  ;;  %v2446_v54 = vshll.u32 %v2445_v37, 30  ;;  %v2720_v40 = vor.u32 %v2719_v16, %v2718_v8 }
 0x27e   :  { %vm2724_vm7 = vcmp.lt.s32.totalorder %v2705_v62, 1  ;;  %v2574_v25 = vsel %vm15129_vm0, %v14900_v3, %v2571_v57  ;;  %v2717_v41 = vor.u32 %v2716_v43, %v2715_v39  ;;  %vm2727_vm14 = vcmp.lt.s32.totalorder %v2705_v62, 4 }
 0x27f   :  { %v2723_v48 = vor.u32 %v2722_v46, %v2721_v5  ;;  %12611 = vcosq.f32 %v2574_v25  ;;  %v15221_v49 = vsub.s32 %v2443_v34, %v2446_v54  ;;  %vm2726_vm13 = vcmp.lt.s32.totalorder %v2705_v62, 3 }
 0x280   :  { %v2592_v31 = vand.u32 2139095040, %v15176_v4  ;;  %12613 = vsinq.f32 %v2574_v25  ;;  %vm2725_vm12 = vcmp.lt.s32.totalorder %v2705_v62, 2  ;;  %v2729_v1 = vsel %vm2727_vm14, %v2717_v41, 2102212464 }
 0x281   :  { %v2732_v63 = vsel %vm2724_vm7, %v2711_v2, %v2714_v45  ;;  %v2449_v57 = vsub.s32 0, %v15221_v49  ;;  %v2469_v46 = vsub.s32 4, %v2445_v37  ;;  %v2733_v20 = vsel %vm2727_vm14, %v2720_v40, 920167782 }
 0x282   :  { %v15228_v42 = vmul.f32 0.5, %v80_v51  ;;  %v2728_v39 = vsel %vm2724_vm7, %v2708_v44, %v2711_v2  ;;  %v2734_v54 = vsel %vm2726_vm13, %v2717_v41, %v2733_v20  ;;  %v2736_v34 = vsel %vm2724_vm7, %v2714_v45, %v2717_v41 }
 0x283   :  { %v2737_v43 = vsel %vm2727_vm14, %v2723_v48, 1326507024  ;;  %v11643_v8 = vmin.u32 %v2449_v57, %v15221_v49  ;;  %v2730_v16 = vsel %vm2726_vm13, %v2714_v45, %v2729_v1  ;;  %v2735_v52 = vsel %vm2725_vm12, %v2732_v63, %v2734_v54 }
 0x284   :  { %19993 = vst [vmem:[#allocation106_spill] sm:$0xff] %v15228_v42  ;;  %v2738_v5 = vsel %vm2726_vm13, %v2720_v40, %v2737_v43  ;;  %v15240_v51 = vmul.u32.u64.low %v15161_v38, %v2735_v52  ;;  %v15241_v33 = vmul.u32.u64.high %v15161_v38, %v2735_v52, %v15240_v51  ;;  %v2593_v44 = vshrl.u32 %v2592_v31, 23 }
 0x285   :  { %v2739_v25 = vsel %vm2725_vm12, %v2736_v34, %v2738_v5  ;;  %vm19658_vm0 = vweird.f32 %v14900_v3  ;;  %v19994_v2 = vand.u32 2147483647, %v14990_v28  ;;  %v2451_v45 = vclz %v11643_v8 }
 0x286   :  { %v2470_v40 = vsel %vm2385_vm6, %v2469_v46, %v2445_v37  ;;  %v2731_v48 = vsel %vm2725_vm12, %v2728_v39, %v2730_v16  ;;  %v15255_v1 = vmul.u32.u64.low %v15161_v38, %v2739_v25  ;;  %v15256_v63 = vmul.u32.u64.high %v15161_v38, %v2739_v25, %v15255_v1 }
 0x287   :  { %vm15247_vm8 = vcmp.le.f32.partialorder %v19994_v2, 0.7853982  ;;  %v11650_v57 = vadd.s32 4294967169, %v2593_v44  ;;  %vm5900_vm15 = vcmp.lt.s32.totalorder %v15207_v13, 2  ;;  %vm5901_vm7 = vcmp.eq.s32.totalorder %v15207_v13, 0 }
 0x288   :  { %v11644_v31 = vadd.s32 4294967294, %v2451_v45  ;;  %v2901_v20 = vand.u32 2139095040, %v15228_v42  ;;  %vm5904_vm14 = vcmp.eq.s32.totalorder %v15207_v13, 2  ;;  %v2750_v54 = vadd.s32 1, %v15241_v33 }
 0x289   :  { %v19997_v37 = vand.u32 2147483647, %v15176_v4  ;;  %v2599_v46 = vadd.s32 1, %v11650_v57  ;;  %v15265_v39 = vpop.eup %12611  ;;  %v2439_v34 = vadd.s32 %v15148_v23, %v15145_v0  ;;  %v15271_v43 = vsel %vm15247_vm8, 0, %v2470_v40 }
 0x28a   :  { %19998 = vst [vmem:[#allocation107_spill] sm:$0xff] %v15265_v39  ;;  %vm11645_vm13 = vcmp.lt.s32.totalorder %v11644_v31, 0  ;;  %19999 = vst [vmem:[#allocation108_spill] sm:$0xff] %v15271_v43  ;;  %v2747_v8 = vmul.u32 %v15161_v38, %v2731_v48  ;;  %v15274_v16 = vpop.eup %12613  ;;  %v19644_v52 = vxor.u32 2147483648, %v15265_v39  ;;  %vm2749_vm12 = vc.u32 %v15256_v63, %v15240_v51 }
 0x28b   :  { %v2596_v62 = vand.u32 8388607, %v19997_v37  ;;  %20000 = vst [vmem:[#allocation109_spill] sm:$0xff] %v15274_v16  ;;  %v2454_v5 = vsel %vm11645_vm13, 0, %v11644_v31  ;;  %v2902_v25 = vshrl.u32 %v2901_v20, 23  ;;  %v19647_v44 = vxor.u32 2147483648, %v15274_v16 }
 0x28c   :  { %v2455_v2 = vsub.s32 32, %v2454_v5  ;;  %v2456_v0 = vshll.u32 %v15221_v49, %v2454_v5  ;;  %v2459_v23 = vsub.s32 4294967266, %v2454_v5  ;;  %v5906_v38 = vsel %vm5904_vm14, %v19644_v52, %v15274_v16 }
 0x28d   :  { %v5794_v45 = vadd.s32 3, %v15271_v43  ;;  %v2751_v40 = vsel %vm2749_vm12, %v2750_v54, %v15241_v33  ;;  %vm2600_vm13 = vcmp.gt.s32.totalorder %v2599_v46, 0  ;;  %v5903_v48 = vsel %vm5901_vm7, %v15265_v39, %v19647_v44 }
 0x28e   :  { %v2457_v1 = vshrl.u32 %v2439_v34, %v2455_v2  ;;  %v2460_v49 = vadd.s32 127, %v2459_v23  ;;  %v2752_v57 = vadd.s32 %v2751_v40, %v2747_v8  ;;  %v5907_v31 = vsel %vm5900_vm15, %v5903_v48, %v5906_v38 }
 0x28f   :  { %v2601_v20 = vsel %vm2600_vm13, %v2599_v46, 0  ;;  %v19648_v37 = vand.u32 2147483647, %v15228_v42  ;;  %v11662_v5 = vadd.s32 4294967169, %v2902_v25  ;;  %v15298_v33 = vsel %vm19658_vm0, nan, %v5907_v31 }
 0x290   :  { %20001 = vst [vmem:[#allocation110_spill] sm:$0xff] %v15298_v33  ;;  %v2458_v54 = vor.u32 %v2457_v1, %v2456_v0  ;;  %v2461_v52 = vshll.u32 %v2460_v49, 23  ;;  %v2753_v10 = vadd.s32 536870912, %v2752_v57  ;;  %6865 = vperm.xlu1 %12317, %v15298_v33   ;;  %v15301_v44 = vand.u32 3, %v5794_v45 }
 0x291   :  { %v2603_v34 = vand.u32 31, %v2601_v20  ;;  %v2597_v46 = vor.u32 8388608, %v2596_v62  ;;  %v15305_v23 = vshrl.u32 %v2601_v20, 5  ;;  %v15309_v38 = vand.u32 8388607, %v19648_v37 }
 0x292   :  { %v2462_v8 = vor.u32 4788187, %v2461_v52  ;;  %v2465_v2 = vcvt.s32.f32 %v2458_v54  ;;  %v15303_v13 = vshrl.u32 %v2753_v10, 30  ;;  %v2908_v0 = vadd.s32 1, %v11662_v5 }
 0x293   :  { %v2604_v25 = vsub.s32 32, %v2603_v34  ;;  %v2606_v45 = vshll.u32 %v19860_v17, %v2603_v34  ;;  %v2609_v1 = vshll.u32 %v19855_v32, %v2603_v34  ;;  %v2612_v62 = vshll.u32 %v19848_v35, %v2603_v34 }
 0x294   :  { %v2463_v40 = vand.u32 2147483647, %v2462_v8  ;;  %v2755_v48 = vshll.u32 %v15303_v13, 30  ;;  %v2615_v5 = vshll.u32 %v19856_v15, %v2603_v34  ;;  %v2748_v8 = vadd.s32 %v15240_v51, %v15256_v63 }
 0x295   :  { %v2607_v52 = vshrl.u32 %v19855_v32, %v2604_v25  ;;  %v2610_v10 = vshrl.u32 %v19848_v35, %v2604_v25  ;;  %v2613_v49 = vshrl.u32 %v19856_v15, %v2604_v25  ;;  %v2616_v54 = vshrl.u32 %v19857_v14, %v2604_v25 }
 0x296   :  { %v2466_v31 = vmul.f32 %v2465_v2, %v2463_v40  ;;  %v15318_v20 = vsub.s32 %v2752_v57, %v2755_v48  ;;  %v15324_v37 = vshll.u32 %v2597_v46, 8  ;;  %vm2909_vm15 = vcmp.gt.s32.totalorder %v2908_v0, 0 }
 0x297   :  { %v2605_v3 = vshrl.u32 %v19860_v17, %v2604_v25  ;;  %v2608_v2 = vor.u32 %v2607_v52, %v2606_v45  ;;  %v2611_v57 = vor.u32 %v2610_v10, %v2609_v1  ;;  %v2614_v40 = vor.u32 %v2613_v49, %v2612_v62 }
 0x298   :  { %v2467_v47 = vxor.u32 2147483648, %v2466_v31  ;;  %v2758_v43 = vsub.s32 0, %v15318_v20  ;;  %v2618_v48 = vshll.u32 %v19857_v14, %v2603_v34  ;;  %v2619_v39 = vshrl.u32 %v19858_v60, %v2604_v25 }
 0x299   :  { %vm2694_vm7 = vcmp.lt.s32.totalorder %v15058_v36, 0  ;;  %v2617_v46 = vor.u32 %v2616_v54, %v2615_v5  ;;  %vm2621_vm14 = vcmp.lt.s32.totalorder %v15305_v23, 1  ;;  %vm2624_vm12 = vcmp.lt.s32.totalorder %v15305_v23, 4 }
 0x29a   :  { %v2468_v51 = vsel %vm2385_vm6, %v2467_v47, %v2466_v31  ;;  %v11655_v63 = vmin.u32 %v2758_v43, %v15318_v20  ;;  %v2620_v1 = vor.u32 %v2619_v39, %v2618_v48  ;;  %v2910_v34 = vsel %vm2909_vm15, %v2908_v0, 0 }
 0x29b   :  { %v2471_v45 = vsel %vm15247_vm8, %v14990_v28, %v2468_v51  ;;  %vm2623_vm6 = vcmp.lt.s32.totalorder %v15305_v23, 3  ;;  %v2625_v47 = vsel %vm2621_vm14, %v2605_v3, %v2608_v2  ;;  %vm2622_vm13 = vcmp.lt.s32.totalorder %v15305_v23, 2 }
 0x29c   :  { %12615 = vcosq.f32 %v2471_v45  ;;  %v2760_v25 = vclz %v11655_v63  ;;  %v2626_v43 = vsel %vm2624_vm12, %v2614_v40, 2102212464  ;;  %v2629_v41 = vsel %vm2621_vm14, %v2608_v2, %v2611_v57 }
 0x29d   :  { %12617 = vsinq.f32 %v2471_v45  ;;  %vm5800_vm8 = vcmp.eq.s32.totalorder %v15301_v44, 2  ;;  %v2627_v0 = vsel %vm2623_vm6, %v2611_v57, %v2626_v43  ;;  %v2630_v52 = vsel %vm2624_vm12, %v2617_v46, 920167782 }
 0x29e   :  { %v11656_v39 = vadd.s32 4294967294, %v2760_v25  ;;  %v2633_v3 = vsel %vm2621_vm14, %v2611_v57, %v2614_v40  ;;  %vm5797_vm15 = vcmp.eq.s32.totalorder %v15301_v44, 0  ;;  %v2778_v10 = vsub.s32 4, %v15303_v13 }
 0x29f   :  { %v2628_v62 = vsel %vm2622_vm13, %v2625_v47, %v2627_v0  ;;  %v2631_v49 = vsel %vm2623_vm6, %v2614_v40, %v2630_v52  ;;  %v2634_v31 = vsel %vm2624_vm12, %v2620_v1, 1326507024  ;;  %vm5796_vm4 = vcmp.lt.s32.totalorder %v15301_v44, 2 }
 0x2a0   :  { %vm11657_vm0 = vcmp.lt.s32.totalorder %v11656_v39, 0  ;;  %v2632_v5 = vsel %vm2622_vm13, %v2629_v41, %v2631_v49  ;;  %v2635_v54 = vsel %vm2623_vm6, %v2617_v46, %v2634_v31  ;;  %v15369_v2 = vshrl.u32 %v2910_v34, 5 }
 0x2a1   :  { %vm19682_vm14 = vweird.f32 %v14990_v28  ;;  %v2763_v57 = vsel %vm11657_vm0, 0, %v11656_v39  ;;  %v2636_v40 = vsel %vm2622_vm13, %v2633_v3, %v2635_v54  ;;  %v2912_v25 = vand.u32 31, %v2910_v34 }
 0x2a2   :  { %v15375_v48 = vmul.u32.u64.low %v15324_v37, %v2632_v5  ;;  %v15376_v51 = vmul.u32.u64.high %v15324_v37, %v2632_v5, %v15375_v48  ;;  %v2764_v63 = vsub.s32 32, %v2763_v57  ;;  %v2765_v45 = vshll.u32 %v15318_v20, %v2763_v57 }
 0x2a3   :  { %v2768_v1 = vsub.s32 4294967266, %v2763_v57  ;;  %v2779_v46 = vsel %vm2694_vm7, %v2778_v10, %v15303_v13  ;;  %v15384_v47 = vmul.u32.u64.low %v15324_v37, %v2636_v40  ;;  %v15385_v43 = vmul.u32.u64.high %v15324_v37, %v2636_v40, %v15384_v47 }
 0x2a4   :  { %v2644_v23 = vmul.u32 %v15324_v37, %v2628_v62  ;;  %v2766_v41 = vshrl.u32 %v2748_v8, %v2764_v63  ;;  %v2913_v0 = vsub.s32 32, %v2912_v25  ;;  %vm2930_vm0 = vcmp.lt.s32.totalorder %v15369_v2, 1 }
 0x2a5   :  { %v2769_v39 = vadd.s32 127, %v2768_v1  ;;  %v2647_v52 = vadd.s32 1, %v15376_v51  ;;  %v2915_v20 = vshll.u32 %v19860_v17, %v2912_v25  ;;  %v2918_v34 = vshll.u32 %v19855_v32, %v2912_v25 }
 0x2a6   :  { %v2921_v3 = vshll.u32 %v19848_v35, %v2912_v25  ;;  %v15393_v13 = vpop.eup %12615  ;;  %v20003_v10 = vand.u32 2147483647, %v15058_v36  ;;  %v2767_v37 = vor.u32 %v2766_v41, %v2765_v45  ;;  %v2916_v62 = vshrl.u32 %v19855_v32, %v2913_v0 }
 0x2a7   :  { %20002 = vst [vmem:[#allocation111_spill] sm:$0xff] %v15393_v13  ;;  %v2770_v8 = vshll.u32 %v2769_v39, 23  ;;  %v2924_v31 = vshll.u32 %v19856_v15, %v2912_v25  ;;  %v15403_v5 = vpop.eup %12617  ;;  %v19662_v54 = vxor.u32 2147483648, %v15393_v13  ;;  %vm2646_vm6 = vc.u32 %v15385_v43, %v15375_v48 }
 0x2a8   :  { %vm15397_vm12 = vcmp.le.f32.partialorder %v20003_v10, 0.7853982  ;;  %20006 = vst [vmem:[#allocation112_spill] sm:$0xff] %v15403_v5  ;;  %v2914_v57 = vshrl.u32 %v19860_v17, %v2913_v0  ;;  %v2919_v40 = vshrl.u32 %v19848_v35, %v2913_v0  ;;  %v19663_v63 = vxor.u32 2147483648, %v15403_v5 }
 0x2a9   :  { %v2771_v1 = vor.u32 4788187, %v2770_v8  ;;  %v2774_v45 = vcvt.s32.f32 %v2767_v37  ;;  %v2648_v47 = vsel %vm2646_vm6, %v2647_v52, %v15376_v51  ;;  %v5802_v41 = vsel %vm5800_vm8, %v19662_v54, %v15403_v5 }
 0x2aa   :  { %v2649_v39 = vadd.s32 %v2648_v47, %v2644_v23  ;;  %v2917_v10 = vor.u32 %v2916_v62, %v2915_v20  ;;  %v2920_v33 = vor.u32 %v2919_v40, %v2918_v34  ;;  %v5799_v16 = vsel %vm5797_vm15, %v15393_v13, %v19663_v63 }
 0x2ab   :  { %v2772_v55 = vand.u32 2147483647, %v2771_v1  ;;  %v2922_v37 = vshrl.u32 %v19856_v15, %v2913_v0  ;;  %v2925_v51 = vshrl.u32 %v19857_v14, %v2913_v0  ;;  %v5803_v52 = vsel %vm5796_vm4, %v5799_v16, %v5802_v41 }
 0x2ac   :  { %v2650_v8 = vadd.s32 536870912, %v2649_v39  ;;  %v2927_v54 = vshll.u32 %v19857_v14, %v2912_v25  ;;  %v2928_v23 = vshrl.u32 %v19858_v60, %v2913_v0  ;;  %v15430_v20 = vsel %vm19682_vm14, nan, %v5803_v52 }
 0x2ad   :  { %20007 = vst [vmem:[#allocation113_spill] sm:$0xff] %v15430_v20  ;;  %v2775_v34 = vmul.f32 %v2774_v45, %v2772_v55  ;;  %v2923_v62 = vor.u32 %v2922_v37, %v2921_v3  ;;  %v2926_v40 = vor.u32 %v2925_v51, %v2924_v31  ;;  %6860 = vperm.xlu0 %12316, %v15430_v20   ;;  %vm2931_vm13 = vcmp.lt.s32.totalorder %v15369_v2, 2 }
 0x2ae   :  { %v2651_v1 = vshrl.u32 %v2650_v8, 30  ;;  %vm2932_vm8 = vcmp.lt.s32.totalorder %v15369_v2, 3  ;;  %vm2933_vm4 = vcmp.lt.s32.totalorder %v15369_v2, 4  ;;  %v2929_v44 = vor.u32 %v2928_v23, %v2927_v54 }
 0x2af   :  { %v2776_v16 = vxor.u32 2147483648, %v2775_v34  ;;  %v2935_v25 = vsel %vm2933_vm4, %v2923_v62, 2102212464  ;;  %v2938_v0 = vsel %vm2930_vm0, %v2917_v10, %v2920_v33  ;;  %v15442_v55 = vsel %vm15397_vm12, 0, %v2779_v46 }
 0x2b0   :  { %v2652_v3 = vshll.u32 %v2651_v1, 30  ;;  %v2939_v31 = vsel %vm2933_vm4, %v2926_v40, 920167782  ;;  %v20008_v45 = vor.u32 8388608, %v15309_v38  ;;  %v2934_v41 = vsel %vm2930_vm0, %v2914_v57, %v2917_v10  ;;  %v79_v57 = vld [vmem:[%s19407_s0 + $0xd0] sm:$0xff] }
 0x2b1   :  { %v2777_v54 = vsel %vm2694_vm7, %v2776_v16, %v2775_v34  ;;  %v2936_v37 = vsel %vm2932_vm8, %v2920_v33, %v2935_v25  ;;  %v2940_v46 = vsel %vm2932_vm8, %v2923_v62, %v2939_v31  ;;  %v2942_v8 = vsel %vm2930_vm0, %v2920_v33, %v2923_v62 }
 0x2b2   :  { %v2946_v47 = vshll.u32 %v20008_v45, 8  ;;  %v2780_v51 = vsel %vm15397_vm12, %v15058_v36, %v2777_v54  ;;  %v15459_v52 = vsub.s32 %v2649_v39, %v2652_v3  ;;  %v2941_v38 = vsel %vm2931_vm13, %v2938_v0, %v2940_v46 }
 0x2b3   :  { %12619 = vcosq.f32 %v2780_v51  ;;  %v6106_v10 = vadd.s32 3, %v15442_v55  ;;  %v2943_v23 = vsel %vm2933_vm4, %v2929_v44, 1326507024  ;;  %v2937_v39 = vsel %vm2931_vm13, %v2934_v41, %v2936_v37 }
 0x2b4   :  { %12621 = vsinq.f32 %v2780_v51  ;;  %v2655_v49 = vsub.s32 0, %v15459_v52  ;;  %v2944_v34 = vsel %vm2932_vm8, %v2926_v40, %v2943_v23  ;;  %v15481_v25 = vmul.f32 0.5, %v79_v57 }
 0x2b5   :  { %v2945_v33 = vsel %vm2931_vm13, %v2942_v8, %v2944_v34  ;;  %v15478_v62 = vmul.u32.u64.low %v2946_v47, %v2941_v38  ;;  %v15479_v16 = vmul.u32.u64.high %v2946_v47, %v2941_v38, %v15478_v62  ;;  %v2675_v44 = vsub.s32 4, %v2651_v1 }
 0x2b6   :  { %20009 = vst [vmem:[#allocation114_spill] sm:$0xff] %v15481_v25  ;;  %v11651_v0 = vmin.u32 %v2655_v49, %v15459_v52  ;;  %v15484_v3 = vmul.u32.u64.low %v2946_v47, %v2945_v33  ;;  %v15485_v31 = vmul.u32.u64.high %v2946_v47, %v2945_v33, %v15484_v3  ;;  %v6107_v45 = vand.u32 3, %v6106_v10 }
 0x2b7   :  { %v2798_v54 = vand.u32 2139095040, %v15481_v25  ;;  %vm19689_vm7 = vweird.f32 %v15058_v36  ;;  %v2953_v41 = vmul.u32 %v2946_v47, %v2937_v39  ;;  %vm2591_vm15 = vcmp.lt.s32.totalorder %v15176_v4, 0  ;;  %v82_v39 = vld [vmem:[%s19407_s0 + $0xe8] sm:$0xff] }
 0x2b8   :  { %v2657_v40 = vclz %v11651_v0  ;;  %v2956_v2 = vadd.s32 1, %v15479_v16  ;;  %v19664_v37 = vand.u32 2147483647, %v15481_v25  ;;  %v20010_v51 = vand.u32 2147483647, %v15176_v4 }
 0x2b9   :  { %v2799_v46 = vshrl.u32 %v2798_v54, 23  ;;  %v2676_v57 = vsel %vm2591_vm15, %v2675_v44, %v2651_v1  ;;  %vm2955_vm12 = vc.u32 %v15485_v31, %v15478_v62  ;;  %vm6108_vm6 = vcmp.lt.s32.totalorder %v6107_v45, 2 }
 0x2ba   :  { %vm15494_vm0 = vcmp.le.f32.partialorder %v20010_v51, 0.7853982  ;;  %v11652_v8 = vadd.s32 4294967294, %v2657_v40  ;;  %vm6109_vm13 = vcmp.eq.s32.totalorder %v6107_v45, 0  ;;  %v2957_v47 = vsel %vm2955_vm12, %v2956_v2, %v15479_v16 }
 0x2bb   :  { %v11658_v10 = vadd.s32 4294967169, %v2799_v46  ;;  %vm6112_vm8 = vcmp.eq.s32.totalorder %v6107_v45, 2  ;;  %v2645_v23 = vadd.s32 %v15375_v48, %v15385_v43  ;;  %v2958_v49 = vadd.s32 %v2957_v47, %v2953_v41 }
 0x2bc   :  { %vm11653_vm4 = vcmp.lt.s32.totalorder %v11652_v8, 0  ;;  %v15511_v33 = vsel %vm15494_vm0, 0, %v2676_v57  ;;  %v2802_v16 = vand.u32 8388607, %v19664_v37  ;;  %v15520_v2 = vmul.f32 0.5, %v82_v39 }
 0x2bd   :  { %v15507_v34 = vpop.eup %12619  ;;  %v2660_v1 = vsel %vm11653_vm4, 0, %v11652_v8  ;;  %20014 = vst [vmem:[#allocation116_spill] sm:$0xff] %v15511_v33  ;;  %v2805_v0 = vadd.s32 1, %v11658_v10  ;;  %v2959_v41 = vadd.s32 536870912, %v2958_v49 }
 0x2be   :  { %20013 = vst [vmem:[#allocation115_spill] sm:$0xff] %v15507_v34  ;;  %v15515_v44 = vpop.eup %12621  ;;  %v19667_v48 = vxor.u32 2147483648, %v15507_v34  ;;  %v2661_v43 = vsub.s32 32, %v2660_v1  ;;  %v2662_v3 = vshll.u32 %v15459_v52, %v2660_v1  ;;  %v2665_v54 = vsub.s32 4294967266, %v2660_v1 }
 0x2bf   :  { %20015 = vst [vmem:[#allocation117_spill] sm:$0xff] %v15515_v44  ;;  %v19668_v40 = vxor.u32 2147483648, %v15515_v44  ;;  %vm2806_vm12 = vcmp.gt.s32.totalorder %v2805_v0, 0  ;;  %v2960_v47 = vshrl.u32 %v2959_v41, 30  ;;  %v2803_v37 = vor.u32 8388608, %v2802_v16 }
 0x2c0   :  { %v6114_v46 = vsel %vm6112_vm8, %v19667_v48, %v15515_v44  ;;  %v2663_v51 = vshrl.u32 %v2645_v23, %v2661_v43  ;;  %v2666_v8 = vadd.s32 127, %v2665_v54  ;;  %v2807_v57 = vsel %vm2806_vm12, %v2805_v0, 0 }
 0x2c1   :  { %v6111_v52 = vsel %vm6109_vm13, %v15507_v34, %v19668_v40  ;;  %v2809_v10 = vand.u32 31, %v2807_v57  ;;  %v15536_v23 = vadd.s32 3, %v15511_v33  ;;  %v2961_v0 = vshll.u32 %v2960_v47, 30 }
 0x2c2   :  { %v6115_v1 = vsel %vm6108_vm6, %v6111_v52, %v6114_v46  ;;  %v2664_v63 = vor.u32 %v2663_v51, %v2662_v3  ;;  %v2667_v39 = vshll.u32 %v2666_v8, 23  ;;  %v2954_v41 = vadd.s32 %v15478_v62, %v15485_v31 }
 0x2c3   :  { %v15533_v20 = vsel %vm19689_vm7, nan, %v6115_v1  ;;  %v2810_v43 = vsub.s32 32, %v2809_v10  ;;  %v3107_v45 = vand.u32 2139095040, %v15520_v2  ;;  %v15541_v3 = vsub.s32 %v2958_v49, %v2961_v0 }
 0x2c4   :  { %20016 = vst [vmem:[#allocation118_spill] sm:$0xff] %v15533_v20  ;;  %6875 = vperm.xlu1 %12317, %v15533_v20   ;;  %v2668_v54 = vor.u32 4788187, %v2667_v39  ;;  %v2671_v48 = vcvt.s32.f32 %v2664_v63  ;;  %v2812_v16 = vshll.u32 %v19860_v17, %v2809_v10  ;;  %v2815_v52 = vshll.u32 %v19855_v32, %v2809_v10 }
 0x2c5   :  { %v2813_v46 = vshrl.u32 %v19855_v32, %v2810_v43  ;;  %v2816_v1 = vshrl.u32 %v19848_v35, %v2810_v43  ;;  %v15548_v40 = vshll.u32 %v2803_v37, 8  ;;  %vm2900_vm6 = vcmp.lt.s32.totalorder %v15228_v42, 0 }
 0x2c6   :  { %v2669_v8 = vand.u32 2147483647, %v2668_v54  ;;  %v2964_v63 = vsub.s32 0, %v15541_v3  ;;  %v2808_v62 = vshrl.u32 %v2807_v57, 5  ;;  %v2818_v31 = vshll.u32 %v19848_v35, %v2809_v10 }
 0x2c7   :  { %v2819_v49 = vshrl.u32 %v19856_v15, %v2810_v43  ;;  %v2821_v0 = vshll.u32 %v19856_v15, %v2809_v10  ;;  %v2822_v54 = vshrl.u32 %v19857_v14, %v2810_v43  ;;  %v3108_v51 = vshrl.u32 %v3107_v45, 23 }
 0x2c8   :  { %v2672_v39 = vmul.f32 %v2671_v48, %v2669_v8  ;;  %v11663_v20 = vmin.u32 %v2964_v63, %v15541_v3  ;;  %v2811_v37 = vshrl.u32 %v19860_v17, %v2810_v43  ;;  %v2814_v28 = vor.u32 %v2813_v46, %v2812_v16 }
 0x2c9   :  { %v2824_v13 = vshll.u32 %v19857_v14, %v2809_v10  ;;  %v2817_v33 = vor.u32 %v2816_v1, %v2815_v52  ;;  %v2823_v57 = vor.u32 %v2822_v54, %v2821_v0  ;;  %v2825_v36 = vshrl.u32 %v19858_v60, %v2810_v43 }
 0x2ca   :  { %v2673_v5 = vxor.u32 2147483648, %v2672_v39  ;;  %v2966_v34 = vclz %v11663_v20  ;;  %v2984_v44 = vsub.s32 4, %v2960_v47  ;;  %v2820_v48 = vor.u32 %v2819_v49, %v2818_v31 }
 0x2cb   :  { %vm2827_vm13 = vcmp.lt.s32.totalorder %v2808_v62, 1  ;;  %v2826_v45 = vor.u32 %v2825_v36, %v2824_v13  ;;  %vm2828_vm8 = vcmp.lt.s32.totalorder %v2808_v62, 2  ;;  %vm2829_vm4 = vcmp.lt.s32.totalorder %v2808_v62, 3 }
 0x2cc   :  { %v2674_v8 = vsel %vm2591_vm15, %v2673_v5, %v2672_v39  ;;  %v11664_v10 = vadd.s32 4294967294, %v2966_v34  ;;  %vm2830_vm12 = vcmp.lt.s32.totalorder %v2808_v62, 4  ;;  %v2831_v46 = vsel %vm2827_vm13, %v2811_v37, %v2814_v28 }
 0x2cd   :  { %v2677_v16 = vsel %vm15494_vm0, %v15176_v4, %v2674_v8  ;;  %v2832_v20 = vsel %vm2830_vm12, %v2820_v48, 2102212464  ;;  %v2835_v43 = vsel %vm2827_vm13, %v2814_v28, %v2817_v33  ;;  %v2836_v52 = vsel %vm2830_vm12, %v2823_v57, 920167782 }
 0x2ce   :  { %12623 = vcosq.f32 %v2677_v16  ;;  %vm11665_vm15 = vcmp.lt.s32.totalorder %v11664_v10, 0  ;;  %v2833_v36 = vsel %vm2829_vm4, %v2817_v33, %v2832_v20  ;;  %v2837_v13 = vsel %vm2829_vm4, %v2820_v48, %v2836_v52 }
 0x2cf   :  { %12625 = vsinq.f32 %v2677_v16  ;;  %v2969_v5 = vsel %vm11665_vm15, 0, %v11664_v10  ;;  %v2985_v38 = vsel %vm2900_vm6, %v2984_v44, %v2960_v47  ;;  %v2838_v34 = vsel %vm2828_vm8, %v2835_v43, %v2837_v13 }
 0x2d0   :  { %v2839_v1 = vsel %vm2827_vm13, %v2817_v33, %v2820_v48  ;;  %v2970_v63 = vsub.s32 32, %v2969_v5  ;;  %v2971_v31 = vshll.u32 %v15541_v3, %v2969_v5  ;;  %v2974_v28 = vsub.s32 4294967266, %v2969_v5  ;;  %v81_v3 = vld [vmem:[%s19407_s0 + $0xe0] sm:$0xff] }
 0x2d1   :  { %v2840_v49 = vsel %vm2830_vm12, %v2826_v45, 1326507024  ;;  %v2834_v39 = vsel %vm2828_vm8, %v2831_v46, %v2833_v36  ;;  %v15580_v54 = vmul.u32.u64.low %v15548_v40, %v2838_v34  ;;  %v15581_v37 = vmul.u32.u64.high %v15548_v40, %v2838_v34, %v15580_v54 }
 0x2d2   :  { %v2841_v0 = vsel %vm2829_vm4, %v2823_v57, %v2840_v49  ;;  %v2972_v44 = vshrl.u32 %v2954_v41, %v2970_v63  ;;  %v2975_v47 = vadd.s32 127, %v2974_v28  ;;  %v11670_v33 = vadd.s32 4294967169, %v3108_v51 }
 0x2d3   :  { %v2842_v8 = vsel %vm2828_vm8, %v2839_v1, %v2841_v0  ;;  %vm19688_vm0 = vweird.f32 %v15176_v4  ;;  %v6003_v48 = vand.u32 3, %v15536_v23  ;;  %v20017_v16 = vand.u32 2147483647, %v15228_v42 }
 0x2d4   :  { %v15591_v57 = vmul.u32.u64.low %v15548_v40, %v2842_v8  ;;  %v15592_v45 = vmul.u32.u64.high %v15548_v40, %v2842_v8, %v15591_v57  ;;  %v2973_v62 = vor.u32 %v2972_v44, %v2971_v31  ;;  %v2976_v51 = vshll.u32 %v2975_v47, 23 }
 0x2d5   :  { %vm15596_vm13 = vcmp.le.f32.partialorder %v20017_v16, 0.7853982  ;;  %v3114_v10 = vadd.s32 1, %v11670_v33  ;;  %v2850_v20 = vmul.u32 %v15548_v40, %v2834_v39  ;;  %v2853_v23 = vadd.s32 1, %v15581_v37 }
 0x2d6   :  { %v15602_v46 = vsel %vm15596_vm13, 0, %v2985_v38  ;;  %v15606_v43 = vmul.f32 0.5, %v81_v3  ;;  %v2977_v52 = vor.u32 4788187, %v2976_v51  ;;  %v2980_v36 = vcvt.s32.f32 %v2973_v62 }
 0x2d7   :  { %20020 = vst [vmem:[#allocation119_spill] sm:$0xff] %v15602_v46  ;;  %v20021_v13 = vand.u32 2147483647, %v15520_v2  ;;  %vm3115_vm8 = vcmp.gt.s32.totalorder %v3114_v10, 0  ;;  %vm6004_vm4 = vcmp.lt.s32.totalorder %v6003_v48, 2  ;;  %vm6008_vm12 = vcmp.eq.s32.totalorder %v6003_v48, 2 }
 0x2d8   :  { %v15610_v34 = vpop.eup %12623  ;;  %vm2852_vm15 = vc.u32 %v15592_v45, %v15580_v54  ;;  %v3116_v38 = vsel %vm3115_vm8, %v3114_v10, 0  ;;  %vm6005_vm14 = vcmp.eq.s32.totalorder %v6003_v48, 0  ;;  %v2978_v63 = vand.u32 2147483647, %v2977_v52 }
 0x2d9   :  { %v3111_v5 = vand.u32 8388607, %v20021_v13  ;;  %20022 = vst [vmem:[#allocation120_spill] sm:$0xff] %v15610_v34  ;;  %v15614_v1 = vpop.eup %12625  ;;  %v19683_v40 = vxor.u32 2147483648, %v15610_v34  ;;  %v2854_v31 = vsel %vm2852_vm15, %v2853_v23, %v15581_v37  ;;  %v6314_v49 = vadd.s32 3, %v15602_v46 }
 0x2da   :  { %20023 = vst [vmem:[#allocation121_spill] sm:$0xff] %v15614_v1  ;;  %v19684_v28 = vxor.u32 2147483648, %v15614_v1  ;;  %v2855_v39 = vadd.s32 %v2854_v31, %v2850_v20  ;;  %v3118_v0 = vand.u32 31, %v3116_v38  ;;  %v2981_v47 = vmul.f32 %v2980_v36, %v2978_v63 }
 0x2db   :  { %v6010_v44 = vsel %vm6008_vm12, %v19683_v40, %v15614_v1  ;;  %v3112_v8 = vor.u32 8388608, %v3111_v5  ;;  %v3004_v33 = vand.u32 2139095040, %v15606_v43  ;;  %v3117_v37 = vshrl.u32 %v3116_v38, 5 }
 0x2dc   :  { %v6007_v3 = vsel %vm6005_vm14, %v15610_v34, %v19684_v28  ;;  %v2856_v57 = vadd.s32 536870912, %v2855_v39  ;;  %v3119_v16 = vsub.s32 32, %v3118_v0  ;;  %v2982_v51 = vxor.u32 2147483648, %v2981_v47 }
 0x2dd   :  { %v6011_v62 = vsel %vm6004_vm4, %v6007_v3, %v6010_v44  ;;  %v3121_v10 = vshll.u32 %v19860_v17, %v3118_v0  ;;  %v3124_v20 = vshll.u32 %v19855_v32, %v3118_v0  ;;  %v3127_v13 = vshll.u32 %v19848_v35, %v3118_v0 }
 0x2de   :  { %v15632_v23 = vsel %vm19688_vm0, nan, %v6011_v62  ;;  %v2857_v52 = vshrl.u32 %v2856_v57, 30  ;;  %v3122_v36 = vshrl.u32 %v19855_v32, %v3119_v16  ;;  %v2983_v48 = vsel %vm2900_vm6, %v2982_v51, %v2981_v47 }
 0x2df   :  { %20024 = vst [vmem:[#allocation122_spill] sm:$0xff] %v15632_v23  ;;  %6870 = vperm.xlu0 %12316, %v15632_v23   ;;  %v3125_v5 = vshrl.u32 %v19848_v35, %v3119_v16  ;;  %v3128_v38 = vshrl.u32 %v19856_v15, %v3119_v16  ;;  %v3130_v63 = vshll.u32 %v19856_v15, %v3118_v0  ;;  %vm3136_vm14 = vcmp.lt.s32.totalorder %v3117_v37, 1 }
 0x2e0   :  { %v2986_v31 = vsel %vm15596_vm13, %v15228_v42, %v2983_v48  ;;  %v2858_v44 = vshll.u32 %v2857_v52, 30  ;;  %v3120_v3 = vshrl.u32 %v19860_v17, %v3119_v16  ;;  %v3123_v57 = vor.u32 %v3122_v36, %v3121_v10 }
 0x2e1   :  { %12627 = vcosq.f32 %v2986_v31  ;;  %v3126_v62 = vor.u32 %v3125_v5, %v3124_v20  ;;  %v3131_v40 = vshrl.u32 %v19857_v14, %v3119_v16  ;;  %v3129_v51 = vor.u32 %v3128_v38, %v3127_v13 }
 0x2e2   :  { %12629 = vsinq.f32 %v2986_v31  ;;  %v15647_v47 = vsub.s32 %v2855_v39, %v2858_v44  ;;  %v3133_v28 = vshll.u32 %v19857_v14, %v3118_v0  ;;  %v6315_v23 = vand.u32 3, %v6314_v49 }
 0x2e3   :  { %vm2797_vm6 = vcmp.lt.s32.totalorder %v15481_v25, 0  ;;  %v3132_v41 = vor.u32 %v3131_v40, %v3130_v63  ;;  %v3134_v48 = vshrl.u32 %v19858_v60, %v3119_v16  ;;  %vm3138_vm13 = vcmp.lt.s32.totalorder %v3117_v37, 3 }
 0x2e4   :  { %v2861_v4 = vsub.s32 0, %v15647_v47  ;;  %vm3137_vm8 = vcmp.lt.s32.totalorder %v3117_v37, 2  ;;  %vm3139_vm4 = vcmp.lt.s32.totalorder %v3117_v37, 4  ;;  %v3152_v10 = vshll.u32 %v3112_v8, 8 }
 0x2e5   :  { %v3135_v20 = vor.u32 %v3134_v48, %v3133_v28  ;;  %v3141_v36 = vsel %vm3139_vm4, %v3129_v51, 2102212464  ;;  %v3144_v39 = vsel %vm3136_vm14, %v3123_v57, %v3126_v62  ;;  %v3145_v5 = vsel %vm3139_vm4, %v3132_v41, 920167782 }
 0x2e6   :  { %vm19723_vm12 = vweird.f32 %v15228_v42  ;;  %v11659_v49 = vmin.u32 %v2861_v4, %v15647_v47  ;;  %v3140_v0 = vsel %vm3136_vm14, %v3120_v3, %v3123_v57  ;;  %v3146_v40 = vsel %vm3138_vm13, %v3129_v51, %v3145_v5 }
 0x2e7   :  { %v3005_v16 = vshrl.u32 %v3004_v33, 23  ;;  %v3142_v13 = vsel %vm3138_vm13, %v3126_v62, %v3141_v36  ;;  %v3147_v38 = vsel %vm3137_vm8, %v3144_v39, %v3146_v40  ;;  %v3148_v8 = vsel %vm3136_vm14, %v3126_v62, %v3129_v51 }
 0x2e8   :  { %v3149_v28 = vsel %vm3139_vm4, %v3135_v20, 1326507024  ;;  %vm6316_vm15 = vcmp.lt.s32.totalorder %v6315_v23, 2  ;;  %vm6317_vm0 = vcmp.eq.s32.totalorder %v6315_v23, 0  ;;  %v2863_v63 = vclz %v11659_v49 }
 0x2e9   :  { %v2881_v31 = vsub.s32 4, %v2857_v52  ;;  %vm6320_vm7 = vcmp.eq.s32.totalorder %v6315_v23, 2  ;;  %v3150_v44 = vsel %vm3138_vm13, %v3132_v41, %v3149_v28  ;;  %v3143_v33 = vsel %vm3137_vm8, %v3140_v0, %v3142_v13 }
 0x2ea   :  { %v15662_v4 = vmul.u32.u64.low %v3152_v10, %v3147_v38  ;;  %v15663_v48 = vmul.u32.u64.high %v3152_v10, %v3147_v38, %v15662_v4  ;;  %v11660_v3 = vadd.s32 4294967294, %v2863_v63  ;;  %v3151_v57 = vsel %vm3137_vm8, %v3148_v8, %v3150_v44 }
 0x2eb   :  { %v11666_v36 = vadd.s32 4294967169, %v3005_v16  ;;  %v15668_v39 = vpop.eup %12627  ;;  %v2851_v62 = vadd.s32 %v15580_v54, %v15592_v45  ;;  %v15672_v51 = vmul.u32.u64.low %v3152_v10, %v3151_v57  ;;  %v15673_v20 = vmul.u32.u64.high %v3152_v10, %v3151_v57, %v15672_v51 }
 0x2ec   :  { %20025 = vst [vmem:[#allocation123_spill] sm:$0xff] %v15668_v39  ;;  %v19692_v41 = vand.u32 2147483647, %v15606_v43  ;;  %v15676_v5 = vpop.eup %12629  ;;  %v19690_v49 = vxor.u32 2147483648, %v15668_v39  ;;  %vm11661_vm14 = vcmp.lt.s32.totalorder %v11660_v3, 0  ;;  %v2882_v37 = vsel %vm2797_vm6, %v2881_v31, %v2857_v52 }
 0x2ed   :  { %20026 = vst [vmem:[#allocation124_spill] sm:$0xff] %v15676_v5  ;;  %v3011_v0 = vadd.s32 1, %v11666_v36  ;;  %v19691_v40 = vxor.u32 2147483648, %v15676_v5  ;;  %v2866_v16 = vsel %vm11661_vm14, 0, %v11660_v3  ;;  %v3159_v13 = vmul.u32 %v3152_v10, %v3143_v33 }
 0x2ee   :  { %v3162_v54 = vadd.s32 1, %v15663_v48  ;;  %v6322_v45 = vsel %vm6320_vm7, %v19690_v49, %v15676_v5  ;;  %v2867_v38 = vsub.s32 32, %v2866_v16  ;;  %v2868_v8 = vshll.u32 %v15647_v47, %v2866_v16  ;;  %v84_v47 = vld [vmem:[%s19407_s0 + $0xf8] sm:$0xff] }
 0x2ef   :  { %v2871_v28 = vsub.s32 4294967266, %v2866_v16  ;;  %v6319_v52 = vsel %vm6317_vm0, %v15668_v39, %v19691_v40  ;;  %vm3161_vm13 = vc.u32 %v15673_v20, %v15662_v4  ;;  %v3008_v10 = vand.u32 8388607, %v19692_v41 }
 0x2f0   :  { %vm3012_vm8 = vcmp.gt.s32.totalorder %v3011_v0, 0  ;;  %v6323_v63 = vsel %vm6316_vm15, %v6319_v52, %v6322_v45  ;;  %v2869_v31 = vshrl.u32 %v2851_v62, %v2867_v38  ;;  %v3163_v3 = vsel %vm3161_vm13, %v3162_v54, %v15663_v48 }
 0x2f1   :  { %v2872_v44 = vadd.s32 127, %v2871_v28  ;;  %v15703_v33 = vsel %vm19723_vm12, nan, %v6323_v63  ;;  %v3164_v57 = vadd.s32 %v3163_v3, %v3159_v13  ;;  %v3013_v36 = vsel %vm3012_vm8, %v3011_v0, 0 }
 0x2f2   :  { %20027 = vst [vmem:[#allocation125_spill] sm:$0xff] %v15703_v33  ;;  %6885 = vperm.xlu1 %12317, %v15703_v33   ;;  %v20028_v51 = vand.u32 2147483647, %v15481_v25  ;;  %v2870_v62 = vor.u32 %v2869_v31, %v2868_v8  ;;  %v3015_v16 = vand.u32 31, %v3013_v36  ;;  %v15716_v38 = vmul.f32 0.5, %v84_v47 }
 0x2f3   :  { %v2873_v48 = vshll.u32 %v2872_v44, 23  ;;  %v3165_v45 = vadd.s32 536870912, %v3164_v57  ;;  %v3009_v28 = vor.u32 8388608, %v3008_v10  ;;  %v3014_v3 = vshrl.u32 %v3013_v36, 5 }
 0x2f4   :  { %vm15708_vm7 = vcmp.le.f32.partialorder %v20028_v51, 0.7853982  ;;  %v2877_v0 = vcvt.s32.f32 %v2870_v62  ;;  %v3016_v52 = vsub.s32 32, %v3015_v16  ;;  %v3018_v51 = vshll.u32 %v19860_v17, %v3015_v16 }
 0x2f5   :  { %v15714_v54 = vsel %vm15708_vm7, 0, %v2882_v37  ;;  %v2874_v13 = vor.u32 4788187, %v2873_v48  ;;  %v15718_v63 = vshrl.u32 %v3165_v45, 30  ;;  %v3021_v8 = vshll.u32 %v19855_v32, %v3015_v16 }
 0x2f6   :  { %v3019_v44 = vshrl.u32 %v19855_v32, %v3016_v52  ;;  %v3022_v37 = vshrl.u32 %v19848_v35, %v3016_v52  ;;  %v3027_v49 = vshll.u32 %v19856_v15, %v3015_v16  ;;  %v3024_v62 = vshll.u32 %v19848_v35, %v3015_v16 }
 0x2f7   :  { %v2875_v31 = vand.u32 2147483647, %v2874_v13  ;;  %v3167_v47 = vshll.u32 %v15718_v63, 30  ;;  %v3025_v10 = vshrl.u32 %v19856_v15, %v3016_v52  ;;  %v3028_v48 = vshrl.u32 %v19857_v14, %v3016_v52 }
 0x2f8   :  { %v6210_v45 = vadd.s32 3, %v15714_v54  ;;  %v3020_v13 = vor.u32 %v3019_v44, %v3018_v51  ;;  %v3030_v41 = vshll.u32 %v19857_v14, %v3015_v16  ;;  %v15733_v33 = vshll.u32 %v3009_v28, 8 }
 0x2f9   :  { %v2878_v36 = vmul.f32 %v2877_v0, %v2875_v31  ;;  %v15730_v40 = vsub.s32 %v3164_v57, %v3167_v47  ;;  %v3023_v1 = vor.u32 %v3022_v37, %v3021_v8  ;;  %v3029_v42 = vor.u32 %v3028_v48, %v3027_v49 }
 0x2fa   :  { %v3031_v39 = vshrl.u32 %v19858_v60, %v3016_v52  ;;  %v3026_v46 = vor.u32 %v3025_v10, %v3024_v62  ;;  %vm3033_vm0 = vcmp.lt.s32.totalorder %v3014_v3, 1  ;;  %v3313_v0 = vand.u32 2139095040, %v15716_v38 }
 0x2fb   :  { %v2879_v34 = vxor.u32 2147483648, %v2878_v36  ;;  %v3170_v5 = vsub.s32 0, %v15730_v40  ;;  %v3017_v51 = vshrl.u32 %v19860_v17, %v3016_v52  ;;  %vm3035_vm4 = vcmp.lt.s32.totalorder %v3014_v3, 3 }
 0x2fc   :  { %vm3036_vm15 = vcmp.lt.s32.totalorder %v3014_v3, 4  ;;  %v3032_v28 = vor.u32 %v3031_v39, %v3030_v41  ;;  %vm3034_vm14 = vcmp.lt.s32.totalorder %v3014_v3, 2  ;;  %v3041_v31 = vsel %vm3033_vm0, %v3020_v13, %v3023_v1 }
 0x2fd   :  { %v2880_v57 = vsel %vm2797_vm6, %v2879_v34, %v2878_v36  ;;  %v11671_v49 = vmin.u32 %v3170_v5, %v15730_v40  ;;  %v3038_v8 = vsel %vm3036_vm15, %v3026_v46, 2102212464  ;;  %v3042_v44 = vsel %vm3036_vm15, %v3029_v42, 920167782 }
 0x2fe   :  { %v2883_v16 = vsel %vm15708_vm7, %v15481_v25, %v2880_v57  ;;  %v6211_v34 = vand.u32 3, %v6210_v45  ;;  %v3037_v37 = vsel %vm3033_vm0, %v3017_v51, %v3020_v13  ;;  %v3039_v47 = vsel %vm3035_vm4, %v3023_v1, %v3038_v8 }
 0x2ff   :  { %12631 = vcosq.f32 %v2883_v16  ;;  %v3172_v52 = vclz %v11671_v49  ;;  %v3043_v23 = vsel %vm3035_vm4, %v3026_v46, %v3042_v44  ;;  %v3045_v5 = vsel %vm3033_vm0, %v3023_v1, %v3026_v46 }
 0x300   :  { %12633 = vsinq.f32 %v2883_v16  ;;  %v3044_v41 = vsel %vm3034_vm14, %v3041_v31, %v3043_v23  ;;  %v3046_v62 = vsel %vm3036_vm15, %v3032_v28, 1326507024  ;;  %v19707_v10 = vand.u32 2147483647, %v15716_v38 }
 0x301   :  { %v11672_v39 = vadd.s32 4294967294, %v3172_v52  ;;  %v3047_v48 = vsel %vm3035_vm4, %v3029_v42, %v3046_v62  ;;  %v15757_v36 = vmul.u32.u64.low %v15733_v33, %v3044_v41  ;;  %v15758_v45 = vmul.u32.u64.high %v15733_v33, %v3044_v41, %v15757_v36 }
 0x302   :  { %v3314_v13 = vshrl.u32 %v3313_v0, 23  ;;  %v3160_v57 = vadd.s32 %v15662_v4, %v15673_v20  ;;  %v3040_v46 = vsel %vm3034_vm14, %v3037_v37, %v3039_v47  ;;  %v3048_v1 = vsel %vm3034_vm14, %v3045_v5, %v3047_v48 }
 0x303   :  { %vm11673_vm6 = vcmp.lt.s32.totalorder %v11672_v39, 0  ;;  %v15766_v16 = vmul.u32.u64.low %v15733_v33, %v3048_v1  ;;  %v15767_v49 = vmul.u32.u64.high %v15733_v33, %v3048_v1, %v15766_v16  ;;  %vm19721_vm13 = vweird.f32 %v15481_v25 }
 0x304   :  { %v3175_v51 = vsel %vm11673_vm6, 0, %v11672_v39  ;;  %v11678_v42 = vadd.s32 4294967169, %v3314_v13  ;;  %v3056_v0 = vmul.u32 %v15733_v33, %v3040_v46  ;;  %v3059_v4 = vadd.s32 1, %v15758_v45 }
 0x305   :  { %v3176_v28 = vsub.s32 32, %v3175_v51  ;;  %v3177_v8 = vshll.u32 %v15730_v40, %v3175_v51  ;;  %v3180_v31 = vsub.s32 4294967266, %v3175_v51  ;;  %vm6213_vm8 = vcmp.eq.s32.totalorder %v6211_v34, 0 }
 0x306   :  { %v3320_v20 = vadd.s32 1, %v11678_v42  ;;  %vm6216_vm7 = vcmp.eq.s32.totalorder %v6211_v34, 2  ;;  %v3190_v37 = vsub.s32 4, %v15718_v63  ;;  %vm3058_vm0 = vc.u32 %v15767_v49, %v15757_v36 }
 0x307   :  { %v3178_v3 = vshrl.u32 %v3160_v57, %v3176_v28  ;;  %v3181_v44 = vadd.s32 127, %v3180_v31  ;;  %v3317_v40 = vand.u32 8388607, %v19707_v10  ;;  %v3060_v39 = vsel %vm3058_vm0, %v3059_v4, %v15758_v45 }
 0x308   :  { %vm3321_vm4 = vcmp.gt.s32.totalorder %v3320_v20, 0  ;;  %vm6212_vm15 = vcmp.lt.s32.totalorder %v6211_v34, 2  ;;  %v3061_v62 = vadd.s32 %v3060_v39, %v3056_v0  ;;  %vm3106_vm14 = vcmp.lt.s32.totalorder %v15520_v2, 0 }
 0x309   :  { %v15773_v52 = vpop.eup %12631  ;;  %v3179_v23 = vor.u32 %v3178_v3, %v3177_v8  ;;  %v3182_v5 = vshll.u32 %v3181_v44, 23  ;;  %v3322_v48 = vsel %vm3321_vm4, %v3320_v20, 0  ;;  %v3191_v45 = vsel %vm3106_vm14, %v3190_v37, %v15718_v63 }
 0x30a   :  { %20031 = vst [vmem:[#allocation126_spill] sm:$0xff] %v15773_v52  ;;  %v15780_v47 = vpop.eup %12633  ;;  %v19705_v33 = vxor.u32 2147483648, %v15773_v52  ;;  %v3062_v51 = vadd.s32 536870912, %v3061_v62  ;;  %v3324_v16 = vand.u32 31, %v3322_v48  ;;  %v20033_v28 = vand.u32 2147483647, %v15520_v2 }
 0x30b   :  { %20032 = vst [vmem:[#allocation127_spill] sm:$0xff] %v15780_v47  ;;  %v19706_v41 = vxor.u32 2147483648, %v15780_v47  ;;  %v3183_v57 = vor.u32 4788187, %v3182_v5  ;;  %v3186_v46 = vcvt.s32.f32 %v3179_v23  ;;  %v3318_v0 = vor.u32 8388608, %v3317_v40 }
 0x30c   :  { %v6218_v13 = vsel %vm6216_vm7, %v19705_v33, %v15780_v47  ;;  %vm15799_vm6 = vcmp.le.f32.partialorder %v20033_v28, 0.7853982  ;;  %v15807_v34 = vshrl.u32 %v3062_v51, 30  ;;  %v3323_v20 = vshrl.u32 %v3322_v48, 5 }
 0x30d   :  { %v6215_v1 = vsel %vm6213_vm8, %v15773_v52, %v19706_v41  ;;  %v3184_v31 = vand.u32 2147483647, %v3183_v57  ;;  %v3325_v3 = vsub.s32 32, %v3324_v16  ;;  %v15812_v44 = vsel %vm15799_vm6, 0, %v3191_v45 }
 0x30e   :  { %v6219_v42 = vsel %vm6212_vm15, %v6215_v1, %v6218_v13  ;;  %v3327_v37 = vshll.u32 %v19860_v17, %v3324_v16  ;;  %v3330_v23 = vshll.u32 %v19855_v32, %v3324_v16  ;;  %v3064_v40 = vshll.u32 %v15807_v34, 30 }
 0x30f   :  { %v15805_v4 = vsel %vm19721_vm13, nan, %v6219_v42  ;;  %v3187_v63 = vmul.f32 %v3186_v46, %v3184_v31  ;;  %v3328_v5 = vshrl.u32 %v19855_v32, %v3325_v3  ;;  %v3333_v39 = vshll.u32 %v19848_v35, %v3324_v16 }
 0x310   :  { %20036 = vst [vmem:[#allocation128_spill] sm:$0xff] %v15805_v4  ;;  %6880 = vperm.xlu0 %12316, %v15805_v4   ;;  %v3336_v48 = vshll.u32 %v19856_v15, %v3324_v16  ;;  %v3331_v57 = vshrl.u32 %v19848_v35, %v3325_v3  ;;  %v3334_v46 = vshrl.u32 %v19856_v15, %v3325_v3  ;;  %v6522_v45 = vadd.s32 3, %v15812_v44 }
 0x311   :  { %v3188_v13 = vxor.u32 2147483648, %v3187_v63  ;;  %v3337_v1 = vshrl.u32 %v19857_v14, %v3325_v3  ;;  %v15824_v51 = vsub.s32 %v3061_v62, %v3064_v40  ;;  %vm3342_vm8 = vcmp.lt.s32.totalorder %v3323_v20, 1 }
 0x312   :  { %v15826_v42 = vshll.u32 %v3318_v0, 8  ;;  %v3329_v31 = vor.u32 %v3328_v5, %v3327_v37  ;;  %v3332_v33 = vor.u32 %v3331_v57, %v3330_v23  ;;  %v3339_v41 = vshll.u32 %v19857_v14, %v3324_v16 }
 0x313   :  { %v3189_v28 = vsel %vm3106_vm14, %v3188_v13, %v3187_v63  ;;  %v3067_v4 = vsub.s32 0, %v15824_v51  ;;  %v3326_v25 = vshrl.u32 %v19860_v17, %v3325_v3  ;;  %v3338_v62 = vor.u32 %v3337_v1, %v3336_v48  ;;  %v83_v63 = vld [vmem:[%s19407_s0 + $0xf0] sm:$0xff] }
 0x314   :  { %v3192_v10 = vsel %vm15799_vm6, %v15520_v2, %v3189_v28  ;;  %v3335_v40 = vor.u32 %v3334_v46, %v3333_v39  ;;  %v3340_v0 = vshrl.u32 %v19858_v60, %v3325_v3  ;;  %vm3345_vm7 = vcmp.lt.s32.totalorder %v3323_v20, 4 }
 0x315   :  { %12635 = vcosq.f32 %v3192_v10  ;;  %v11667_v16 = vmin.u32 %v3067_v4, %v15824_v51  ;;  %vm3343_vm0 = vcmp.lt.s32.totalorder %v3323_v20, 2  ;;  %vm3344_vm4 = vcmp.lt.s32.totalorder %v3323_v20, 3 }
 0x316   :  { %12637 = vsinq.f32 %v3192_v10  ;;  %v3341_v8 = vor.u32 %v3340_v0, %v3339_v41  ;;  %v3347_v37 = vsel %vm3345_vm7, %v3335_v40, 2102212464  ;;  %v3350_v23 = vsel %vm3342_vm8, %v3329_v31, %v3332_v33 }
 0x317   :  { %v3351_v5 = vsel %vm3345_vm7, %v3338_v62, 920167782  ;;  %v6523_v39 = vand.u32 3, %v6522_v45  ;;  %v3069_v48 = vclz %v11667_v16  ;;  %v3346_v3 = vsel %vm3342_vm8, %v3326_v25, %v3329_v31 }
 0x318   :  { %v15845_v13 = vmul.f32 0.5, %v83_v63  ;;  %v3348_v57 = vsel %vm3344_vm4, %v3332_v33, %v3347_v37  ;;  %v3352_v10 = vsel %vm3344_vm4, %v3335_v40, %v3351_v5  ;;  %v3354_v4 = vsel %vm3342_vm8, %v3332_v33, %v3335_v40 }
 0x319   :  { %v3355_v41 = vsel %vm3345_vm7, %v3341_v8, 1326507024  ;;  %v3057_v46 = vadd.s32 %v15757_v36, %v15767_v49  ;;  %v11668_v1 = vadd.s32 4294967294, %v3069_v48  ;;  %v3353_v28 = vsel %vm3343_vm0, %v3350_v23, %v3352_v10 }
 0x31a   :  { %v3356_v45 = vsel %vm3344_vm4, %v3338_v62, %v3355_v41  ;;  %v3349_v25 = vsel %vm3343_vm0, %v3346_v3, %v3348_v57  ;;  %v15858_v0 = vmul.u32.u64.low %v15826_v42, %v3353_v28  ;;  %v15859_v63 = vmul.u32.u64.high %v15826_v42, %v3353_v28, %v15858_v0 }
 0x31b   :  { %v3357_v31 = vsel %vm3343_vm0, %v3354_v4, %v3356_v45  ;;  %vm11669_vm15 = vcmp.lt.s32.totalorder %v11668_v1, 0  ;;  %v3210_v36 = vand.u32 2139095040, %v15845_v13  ;;  %vm19722_vm14 = vweird.f32 %v15520_v2 }
 0x31c   :  { %v15863_v33 = vmul.u32.u64.low %v15826_v42, %v3357_v31  ;;  %v15864_v40 = vmul.u32.u64.high %v15826_v42, %v3357_v31, %v15863_v33  ;;  %v3072_v49 = vsel %vm11669_vm15, 0, %v11668_v1  ;;  %vm6528_vm6 = vcmp.eq.s32.totalorder %v6523_v39, 2 }
 0x31d   :  { %v3073_v16 = vsub.s32 32, %v3072_v49  ;;  %v3074_v62 = vshll.u32 %v15824_v51, %v3072_v49  ;;  %v3077_v8 = vsub.s32 4294967266, %v3072_v49  ;;  %v3211_v37 = vshrl.u32 %v3210_v36, 23 }
 0x31e   :  { %v3365_v23 = vmul.u32 %v15826_v42, %v3349_v25  ;;  %v3368_v5 = vadd.s32 1, %v15859_v63  ;;  %vm6525_vm8 = vcmp.eq.s32.totalorder %v6523_v39, 0  ;;  %vm6524_vm7 = vcmp.lt.s32.totalorder %v6523_v39, 2 }
 0x31f   :  { %v15868_v20 = vpop.eup %12635  ;;  %v3075_v57 = vshrl.u32 %v3057_v46, %v3073_v16  ;;  %v3078_v10 = vadd.s32 127, %v3077_v8  ;;  %vm3367_vm0 = vc.u32 %v15864_v40, %v15858_v0  ;;  %v11674_v4 = vadd.s32 4294967169, %v3211_v37 }
 0x320   :  { %v15873_v48 = vpop.eup %12637  ;;  %v19711_v3 = vxor.u32 2147483648, %v15868_v20  ;;  %v3369_v28 = vsel %vm3367_vm0, %v3368_v5, %v15859_v63  ;;  %v3087_v45 = vsub.s32 4, %v15807_v34  ;;  %vm3003_vm15 = vcmp.lt.s32.totalorder %v15606_v43, 0 }
 0x321   :  { %v19712_v51 = vxor.u32 2147483648, %v15873_v48  ;;  %v3076_v41 = vor.u32 %v3075_v57, %v3074_v62  ;;  %v3079_v1 = vshll.u32 %v3078_v10, 23  ;;  %v3370_v25 = vadd.s32 %v3369_v28, %v3365_v23 }
 0x322   :  { %v6530_v42 = vsel %vm6528_vm6, %v19711_v3, %v15873_v48  ;;  %v3217_v39 = vadd.s32 1, %v11674_v4  ;;  %v19713_v62 = vand.u32 2147483647, %v15845_v13  ;;  %v3088_v37 = vsel %vm3003_vm15, %v3087_v45, %v15807_v34 }
 0x323   :  { %v6527_v46 = vsel %vm6525_vm8, %v15868_v20, %v19712_v51  ;;  %v3080_v33 = vor.u32 4788187, %v3079_v1  ;;  %v3083_v36 = vcvt.s32.f32 %v3076_v41  ;;  %v3371_v16 = vadd.s32 536870912, %v3370_v25 }
 0x324   :  { %v6531_v31 = vsel %vm6524_vm7, %v6527_v46, %v6530_v42  ;;  %vm3218_vm4 = vcmp.gt.s32.totalorder %v3217_v39, 0  ;;  %v20038_v10 = vand.u32 2147483647, %v15606_v43  ;;  %v3214_v41 = vand.u32 8388607, %v19713_v62 }
 0x325   :  { %v15889_v49 = vsel %vm19722_vm14, nan, %v6531_v31  ;;  %v3081_v63 = vand.u32 2147483647, %v3080_v33  ;;  %v3219_v8 = vsel %vm3218_vm4, %v3217_v39, 0  ;;  %v15897_v23 = vshrl.u32 %v3371_v16, 30 }
 0x326   :  { %20037 = vst [vmem:[#allocation129_spill] sm:$0xff] %v15889_v49  ;;  %6895 = vperm.xlu1 %12317, %v15889_v49   ;;  %v3221_v5 = vand.u32 31, %v3219_v8  ;;  %vm15901_vm6 = vcmp.le.f32.partialorder %v20038_v10, 0.7853982  ;;  %v3220_v46 = vshrl.u32 %v3219_v8, 5 }
 0x327   :  { %v3084_v57 = vmul.f32 %v3083_v36, %v3081_v63  ;;  %v3373_v42 = vshll.u32 %v15897_v23, 30  ;;  %v15910_v34 = vsel %vm15901_vm6, 0, %v3088_v37 }
 0x328   :  { %v3222_v1 = vsub.s32 32, %v3221_v5  ;;  %v3224_v45 = vshll.u32 %v19860_v17, %v3221_v5  ;;  %v3227_v33 = vshll.u32 %v19855_v32, %v3221_v5  ;;  %v3230_v36 = vshll.u32 %v19848_v35, %v3221_v5 }
 0x329   :  { %v3085_v28 = vxor.u32 2147483648, %v3084_v57  ;;  %v15913_v39 = vsub.s32 %v3370_v25, %v3373_v42  ;;  %v3233_v37 = vshll.u32 %v19856_v15, %v3221_v5  ;;  %v6418_v8 = vadd.s32 3, %v15910_v34 }
 0x32a   :  { %v3225_v31 = vshrl.u32 %v19855_v32, %v3222_v1  ;;  %v3228_v63 = vshrl.u32 %v19848_v35, %v3222_v1  ;;  %v3231_v10 = vshrl.u32 %v19856_v15, %v3222_v1  ;;  %v3215_v32 = vor.u32 8388608, %v3214_v41 }
 0x32b   :  { %v3086_v16 = vsel %vm3003_vm15, %v3085_v28, %v3084_v57  ;;  %v3376_v42 = vsub.s32 0, %v15913_v39  ;;  %v3223_v3 = vshrl.u32 %v19860_v17, %v3222_v1  ;;  %v3234_v57 = vshrl.u32 %v19857_v14, %v3222_v1 }
 0x32c   :  { %v3089_v25 = vsel %vm15901_vm6, %v15606_v43, %v3086_v16  ;;  %v3226_v51 = vor.u32 %v3225_v31, %v3224_v45  ;;  %v3229_v28 = vor.u32 %v3228_v63, %v3227_v33  ;;  %v3236_v15 = vshll.u32 %v19857_v14, %v3221_v5 }
 0x32d   :  { %12639 = vcosq.f32 %v3089_v25  ;;  %v11679_v35 = vmin.u32 %v3376_v42, %v15913_v39  ;;  %v3232_v62 = vor.u32 %v3231_v10, %v3230_v36  ;;  %v3235_v4 = vor.u32 %v3234_v57, %v3233_v37 }
 0x32e   :  { %12641 = vsinq.f32 %v3089_v25  ;;  %v3237_v16 = vshrl.u32 %v19858_v60, %v3222_v1  ;;  %vm3239_vm8 = vcmp.lt.s32.totalorder %v3220_v46, 1  ;;  %v6419_v49 = vand.u32 3, %v6418_v8 }
 0x32f   :  { %v3378_v52 = vclz %v11679_v35  ;;  %vm3240_vm7 = vcmp.lt.s32.totalorder %v3220_v46, 2  ;;  %v3255_v41 = vshll.u32 %v3215_v32, 8  ;;  %vm3241_vm0 = vcmp.lt.s32.totalorder %v3220_v46, 3 }
 0x330   :  { %v3238_v47 = vor.u32 %v3237_v16, %v3236_v15  ;;  %vm3242_vm4 = vcmp.lt.s32.totalorder %v3220_v46, 4  ;;  %v3243_v17 = vsel %vm3239_vm8, %v3223_v3, %v3226_v51  ;;  %v3247_v25 = vsel %vm3239_vm8, %v3226_v51, %v3229_v28 }
 0x331   :  { %v11680_v45 = vadd.s32 4294967294, %v3378_v52  ;;  %v3244_v31 = vsel %vm3242_vm4, %v3232_v62, 2102212464  ;;  %v3248_v42 = vsel %vm3242_vm4, %v3235_v4, 920167782  ;;  %v3251_v14 = vsel %vm3239_vm8, %v3229_v28, %v3232_v62 }
 0x332   :  { %v3245_v33 = vsel %vm3241_vm0, %v3229_v28, %v3244_v31  ;;  %v3249_v63 = vsel %vm3241_vm0, %v3232_v62, %v3248_v42  ;;  %v3252_v5 = vsel %vm3242_vm4, %v3238_v47, 1326507024  ;;  %v3366_v60 = vadd.s32 %v15858_v0, %v15864_v40 }
 0x333   :  { %vm11681_vm15 = vcmp.lt.s32.totalorder %v11680_v45, 0  ;;  %v3250_v1 = vsel %vm3240_vm7, %v3247_v25, %v3249_v63  ;;  %v3253_v36 = vsel %vm3241_vm0, %v3235_v4, %v3252_v5  ;;  %v3246_v62 = vsel %vm3240_vm7, %v3243_v17, %v3245_v33 }
 0x334   :  { %v3381_v10 = vsel %vm11681_vm15, 0, %v11680_v45  ;;  %v3254_v37 = vsel %vm3240_vm7, %v3251_v14, %v3253_v36  ;;  %v15937_v8 = vmul.u32.u64.low %v3255_v41, %v3250_v1  ;;  %v15938_v3 = vmul.u32.u64.high %v3255_v41, %v3250_v1, %v15937_v8 }
 0x335   :  { %v3382_v52 = vsub.s32 32, %v3381_v10  ;;  %v3383_v51 = vshll.u32 %v15913_v39, %v3381_v10  ;;  %v3386_v32 = vsub.s32 4294967266, %v3381_v10  ;;  %vm6424_vm6 = vcmp.eq.s32.totalorder %v6419_v49, 2 }
 0x336   :  { %v15944_v0 = vmul.u32.u64.low %v3255_v41, %v3254_v37  ;;  %v15945_v40 = vmul.u32.u64.high %v3255_v41, %v3254_v37, %v15944_v0  ;;  %vm6421_vm8 = vcmp.eq.s32.totalorder %v6419_v49, 0  ;;  %vm6420_vm0 = vcmp.lt.s32.totalorder %v6419_v49, 2 }
 0x337   :  { %v15942_v47 = vpop.eup %12639  ;;  %v3384_v28 = vshrl.u32 %v3366_v60, %v3382_v52  ;;  %v3387_v15 = vadd.s32 127, %v3386_v32  ;;  %v3262_v39 = vmul.u32 %v3255_v41, %v3246_v62  ;;  %v3265_v46 = vadd.s32 1, %v15938_v3 }
 0x338   :  { %v15947_v57 = vpop.eup %12641  ;;  %v3100_v35 = vxor.u32 2147483648, %v15942_v47  ;;  %vm19720_vm7 = vweird.f32 %v15606_v43  ;;  %vm3264_vm4 = vc.u32 %v15945_v40, %v15937_v8  ;;  %v3396_v5 = vsub.s32 4, %v15897_v23 }
 0x339   :  { %v3097_v4 = vxor.u32 2147483648, %v15947_v57  ;;  %v3385_v17 = vor.u32 %v3384_v28, %v3383_v51  ;;  %v3388_v45 = vshll.u32 %v3387_v15, 23  ;;  %v3266_v41 = vsel %vm3264_vm4, %v3265_v46, %v15938_v3 }
 0x33a   :  { %v6426_v16 = vsel %vm6424_vm6, %v3100_v35, %v15947_v57  ;;  %v3267_v63 = vadd.s32 %v3266_v41, %v3262_v39  ;;  %vm3312_vm15 = vcmp.lt.s32.totalorder %v15716_v38, 0  ;;  %v20042_v10 = vand.u32 2147483647, %v15716_v38 }
 0x33b   :  { %v6423_v31 = vsel %vm6421_vm8, %v15942_v47, %v3097_v4  ;;  %v3389_v42 = vor.u32 4788187, %v3388_v45  ;;  %v3392_v49 = vcvt.s32.f32 %v3385_v17  ;;  %v3397_v3 = vsel %vm3312_vm15, %v3396_v5, %v15897_v23 }
 0x33c   :  { %v6427_v25 = vsel %vm6420_vm0, %v6423_v31, %v6426_v16  ;;  %v3268_v60 = vadd.s32 536870912, %v3267_v63  ;;  %vm3311_vm6 = vcmp.le.f32.partialorder %v20042_v10, 0.7853982  ;;  %v313_v39 = vand.u32 3, %v13278_v58 }
 0x33d   :  { %v15963_v33 = vsel %vm19720_vm7, nan, %v6427_v25  ;;  %v3390_v14 = vand.u32 2147483647, %v3389_v42  ;;  %v15975_v62 = vsel %vm3311_vm6, 0, %v3397_v3  ;;  %v519_v23 = vand.u32 3, %v13172_v30 }
 0x33e   :  { %20041 = vst [vmem:[#allocation130_spill] sm:$0xff] %v15963_v33  ;;  %6890 = vperm.xlu0 %12316, %v15963_v33   ;;  %v15968_v36 = vshrl.u32 %v3268_v60, 30  ;;  %v6730_v15 = vadd.s32 3, %v15975_v62  ;;  %vm315_vm8 = vcmp.eq.s32.totalorder %v313_v39, 0  ;;  %vm318_vm0 = vcmp.eq.s32.totalorder %v313_v39, 2 }
 0x33f   :  { %v3393_v1 = vmul.f32 %v3392_v49, %v3390_v14  ;;  %vm19724_vm4 = vweird.f32 %v15716_v38  ;;  %v15982_v31 = vand.u32 3, %v13071_v21  ;;  %v3263_v25 = vadd.s32 %v15937_v8, %v15945_v40 }
 0x340   :  { %v3270_v52 = vshll.u32 %v15968_v36, 30  ;;  %v6731_v17 = vand.u32 3, %v6730_v15  ;;  %v20043_v42 = vxor.u32 2147483648, %v13378_v53  ;;  %v20044_v49 = vxor.u32 2147483648, %v13372_v50 }
 0x341   :  { %v3394_v37 = vxor.u32 2147483648, %v3393_v1  ;;  %vm521_vm14 = vcmp.eq.s32.totalorder %v519_v23, 0  ;;  %vm520_vm12 = vcmp.lt.s32.totalorder %v519_v23, 2 }
 0x342   :  { %v3271_v0 = vsub.s32 %v3267_v63, %v3270_v52  ;;  %v317_v58 = vsel %vm315_vm8, %v13372_v50, %v20043_v42  ;;  %v320_v41 = vsel %vm318_vm0, %v20044_v49, %v13378_v53  ;;  %vm6733_vm7 = vcmp.eq.s32.totalorder %v6731_v17, 0  ;;  %v20068_v42 = vld [vmem:[#allocation36_spill] sm:$0xff] }
 0x343   :  { %v3395_v51 = vsel %vm3312_vm15, %v3394_v37, %v3393_v1  ;;  %vm314_vm15 = vcmp.lt.s32.totalorder %v313_v39, 2  ;;  %vm6736_vm13 = vcmp.eq.s32.totalorder %v6731_v17, 2  ;;  %vm6732_vm8 = vcmp.lt.s32.totalorder %v6731_v17, 2 }
 0x344   :  { %v3398_v32 = vsel %vm3311_vm6, %v15716_v38, %v3395_v51  ;;  %v3273_v28 = vsub.s32 0, %v3271_v0  ;;  %v321_v1 = vsel %vm314_vm15, %v317_v58, %v320_v41  ;;  %v725_v50 = vand.u32 3, %v13390_v29 }
 0x345   :  { %12643 = vcosq.f32 %v3398_v32  ;;  %vm524_vm0 = vcmp.eq.s32.totalorder %v519_v23, 2  ;;  %v20045_v52 = vxor.u32 2147483648, %v13287_v7  ;;  %v3293_v39 = vsub.s32 4, %v15968_v36 }
 0x346   :  { %12645 = vsinq.f32 %v3398_v32  ;;  %v11675_v46 = vmin.u32 %v3273_v28, %v3271_v0  ;;  %v16012_v28 = vand.u32 3, %v12985_v12  ;;  %v20048_v12 = vand.u32 2147483647, %v15845_v13 }
 0x347   :  { %v523_v29 = vsel %vm521_vm14, %v13274_v27, %v20045_v52  ;;  %vm730_vm14 = vcmp.eq.s32.totalorder %v725_v50, 2  ;;  %vm3209_vm15 = vcmp.lt.s32.totalorder %v15845_v13, 0  ;;  %v20053_v41 = vxor.u32 2147483648, %v13494_v61 }
 0x348   :  { %v3275_v16 = vclz %v11675_v46  ;;  %v20047_v46 = vxor.u32 2147483648, %v13274_v27  ;;  %v16033_v27 = vsel %vm312_vm10, nan, %v321_v1  ;;  %v3294_v22 = vsel %vm3209_vm15, %v3293_v39, %v15968_v36 }
 0x349   :  { %20051 = vst [vmem:[#allocation132_spill] sm:$0xff] %v16033_v27  ;;  %vm726_vm10 = vcmp.lt.s32.totalorder %v725_v50, 2  ;;  %v1137_v23 = vand.u32 3, %v13760_v24  ;;  %v20055_v36 = vxor.u32 2147483648, %v13179_v11  ;;  %v20063_v39 = vxor.u32 2147483648, %v13126_v18 }
 0x34a   :  { %v11676_v45 = vadd.s32 4294967294, %v3275_v16  ;;  %v526_v16 = vsel %vm524_vm0, %v20047_v46, %v13287_v7  ;;  %v20052_v7 = vxor.u32 2147483648, %v13181_v26  ;;  %vm215_vm0 = vcmp.eq.s32.totalorder %v15982_v31, 2 }
 0x34b   :  { %v217_v1 = vsel %vm215_vm0, %v20055_v36, %v13181_v26  ;;  %v20059_v26 = vxor.u32 2147483648, %v20058_v6  ;;  %v20075_v36 = vld [vmem:[#allocation23_spill] sm:$0xff] }
 0x34c   :  { %vm11677_vm6 = vcmp.lt.s32.totalorder %v11676_v45, 0 }
 0x34d   :  { %v3278_v30 = vsel %vm11677_vm6, 0, %v11676_v45  ;;  %vm212_vm6 = vcmp.eq.s32.totalorder %v15982_v31, 0 }
 0x34e   :  { %v3279_v8 = vsub.s32 32, %v3278_v30  ;;  %v3280_v40 = vshll.u32 %v3271_v0, %v3278_v30  ;;  %v3283_v5 = vsub.s32 4294967266, %v3278_v30  ;;  %v214_v58 = vsel %vm212_vm6, %v13179_v11, %v20052_v7 }
 0x34f   :  { %v15991_v63 = vpop.eup %12643 }
 0x350   :  { %v15993_v14 = vpop.eup %12645  ;;  %v3409_v21 = vxor.u32 2147483648, %v15991_v63  ;;  %v3281_v10 = vshrl.u32 %v3263_v25, %v3279_v8  ;;  %v3284_v37 = vadd.s32 127, %v3283_v5  ;;  %v931_v25 = vand.u32 3, %v13602_v9 }
 0x351   :  { %v3406_v60 = vxor.u32 2147483648, %v15993_v14  ;;  %v527_v9 = vsel %vm520_vm12, %v523_v29, %v526_v16  ;;  %v20054_v8 = vxor.u32 2147483648, %v13489_v56 }
 0x352   :  { %v6738_v53 = vsel %vm6736_vm13, %v3409_v21, %v15993_v14  ;;  %v3282_v32 = vor.u32 %v3281_v10, %v3280_v40  ;;  %v3285_v0 = vshll.u32 %v3284_v37, 23  ;;  %vm727_vm13 = vcmp.eq.s32.totalorder %v725_v50, 0  ;;  %v20060_v37 = vld [vmem:[#allocation27_spill] sm:$0xff] }
 0x353   :  { %v6735_v3 = vsel %vm6733_vm7, %v15991_v63, %v3406_v60  ;;  %vm16026_vm7 = vcmp.le.f32.partialorder %v20048_v12, 0.7853982  ;;  %v729_v30 = vsel %vm727_vm13, %v13489_v56, %v20053_v41  ;;  %v732_v40 = vsel %vm730_vm14, %v20054_v8, %v13494_v61  ;;  %v20066_v12 = vld [vmem:[#allocation37_spill] sm:$0xff] }
 0x354   :  { %v6739_v51 = vsel %vm6732_vm8, %v6735_v3, %v6738_v53  ;;  %v3286_v17 = vor.u32 4788187, %v3285_v0  ;;  %v3289_v45 = vcvt.s32.f32 %v3282_v32  ;;  %vm211_vm8 = vcmp.lt.s32.totalorder %v15982_v31, 2 }
 0x355   :  { %v16016_v15 = vsel %vm19724_vm4, nan, %v6739_v51  ;;  %vm418_vm4 = vcmp.eq.s32.totalorder %v16012_v28, 0  ;;  %vm933_vm12 = vcmp.eq.s32.totalorder %v931_v25, 0  ;;  %vm936_vm6 = vcmp.eq.s32.totalorder %v931_v25, 2  ;;  %v20062_v51 = vld [vmem:[#allocation42_spill] sm:$0xff] }
 0x356   :  { %20046 = vst [vmem:[#allocation131_spill] sm:$0xff] %v16016_v15  ;;  %6905 = vperm.xlu1 %12317, %v16016_v15   ;;  %v3287_v49 = vand.u32 2147483647, %v3286_v17  ;;  %v16061_v53 = vsel %vm518_vm5, nan, %v527_v9  ;;  %vm417_vm13 = vcmp.lt.s32.totalorder %v16012_v28, 2  ;;  %v622_v56 = vand.u32 3, %v13480_v19 }
 0x357   :  { %20056 = vst [vmem:[#allocation133_spill] sm:$0xff] %v16061_v53  ;;  %v20057_v50 = vxor.u32 2147483648, %v13130_v59  ;;  %vm421_vm14 = vcmp.eq.s32.totalorder %v16012_v28, 2  ;;  %v733_v24 = vsel %vm726_vm10, %v729_v30, %v732_v40  ;;  %v16071_v11 = vsel %vm16026_vm7, 0, %v3294_v22  ;;  %v20070_v9 = vld [vmem:[#allocation54_spill] sm:$0xff] }
 0x358   :  { %v3290_v5 = vmul.f32 %v3289_v45, %v3287_v49  ;;  %vm932_vm0 = vcmp.lt.s32.totalorder %v931_v25, 2  ;;  %v935_v3 = vsel %vm933_vm12, %v20060_v37, %v20059_v26  ;;  %v20061_v19 = vxor.u32 2147483648, %v20060_v37 }
 0x359   :  { %v420_v10 = vsel %vm418_vm4, %v13126_v18, %v20057_v50  ;;  %vm1139_vm5 = vcmp.eq.s32.totalorder %v1137_v23, 0  ;;  %vm1142_vm4 = vcmp.eq.s32.totalorder %v1137_v23, 2  ;;  %v1343_v32 = vand.u32 3, %v20062_v51  ;;  %v20085_v51 = vld [vmem:[#allocation30_spill] sm:$0xff] }
 0x35a   :  { %6915 = vperm.xlu1 %12317, %v16033_v27   ;;  %v3291_v61 = vxor.u32 2147483648, %v3290_v5  ;;  %v938_v52 = vsel %vm936_vm6, %v20061_v19, %v20058_v6  ;;  %v423_v46 = vsel %vm421_vm14, %v20063_v39, %v13130_v59  ;;  %v16091_v17 = vsel %vm724_vm1, nan, %v733_v24 }
 0x35b   :  { %20065 = vst [vmem:[#allocation28_spill] sm:$0xff] %v16091_v17  ;;  %vm624_vm10 = vcmp.eq.s32.totalorder %v622_v56, 0  ;;  %v6626_v45 = vadd.s32 3, %v16071_v11  ;;  %v939_v25 = vsel %vm932_vm0, %v935_v3, %v938_v52  ;;  %vm1138_vm12 = vcmp.lt.s32.totalorder %v1137_v23, 2  ;;  %v20081_v3 = vld [vmem:[#allocation65_spill] sm:$0xff]  ;;  %v20082_v52 = vld [vmem:[#allocation12_spill] sm:$0xff] }
 0x35c   :  { %v3292_v29 = vsel %vm3209_vm15, %v3291_v61, %v3290_v5  ;;  %vm627_vm15 = vcmp.eq.s32.totalorder %v622_v56, 2  ;;  %v20067_v7 = vxor.u32 2147483648, %v20066_v12  ;;  %v20069_v18 = vxor.u32 2147483648, %v20068_v42  ;;  %v20073_v5 = vld [vmem:[#allocation24_spill] sm:$0xff] }
 0x35d   :  { %v3295_v0 = vsel %vm16026_vm7, %v15845_v13, %v3292_v29  ;;  %vm1345_vm1 = vcmp.eq.s32.totalorder %v1343_v32, 0  ;;  %vm1348_vm7 = vcmp.eq.s32.totalorder %v1343_v32, 2  ;;  %v1549_v22 = vand.u32 3, %v20070_v9 }
 0x35e   :  { %6925 = vperm.xlu1 %12317, %v16061_v53   ;;  %12647 = vcosq.f32 %v3295_v0  ;;  %v1141_v49 = vsel %vm1139_vm5, %v20068_v42, %v20067_v7  ;;  %v1144_v59 = vsel %vm1142_vm4, %v20069_v18, %v20066_v12  ;;  %v218_v41 = vsel %vm211_vm8, %v214_v58, %v217_v1  ;;  %v20077_v58 = vld [vmem:[#allocation48_spill] sm:$0xff]  ;;  %v20079_v1 = vld [vmem:[#allocation47_spill] sm:$0xff]  ;;  %v20092_v42 = vld [vmem:[#allocation58_spill] sm:$0xff] }
 0x35f   :  { %12649 = vsinq.f32 %v3295_v0  ;;  %v424_v30 = vsel %vm417_vm13, %v420_v10, %v423_v46  ;;  %v16108_v40 = vsel %vm930_vm11, nan, %v939_v25  ;;  %vm623_vm6 = vcmp.lt.s32.totalorder %v622_v56, 2  ;;  %v20086_v0 = vld [vmem:[#allocation21_spill] sm:$0xff]  ;;  %v20088_v46 = vld [vmem:[#allocation11_spill] sm:$0xff]  ;;  %v20091_v25 = vld [vmem:[#allocation38_spill] sm:$0xff] }
 0x360   :  { %20072 = vst [vmem:[#allocation27_spill] sm:$0xff] %v16108_v40  ;;  %v20074_v23 = vxor.u32 2147483648, %v20073_v5  ;;  %v20076_v50 = vxor.u32 2147483648, %v20075_v36  ;;  %v1145_v6 = vsel %vm1138_vm12, %v1141_v49, %v1144_v59  ;;  %v6627_v31 = vand.u32 3, %v6626_v45  ;;  %v20094_v18 = vld [vmem:[#allocation57_spill] sm:$0xff]  ;;  %v20096_v56 = vld [vmem:[#allocation72_spill] sm:$0xff] }
 0x361   :  { %vm1344_vm8 = vcmp.lt.s32.totalorder %v1343_v32, 2  ;;  %v20078_v28 = vxor.u32 2147483648, %v20077_v58  ;;  %v20080_v26 = vxor.u32 2147483648, %v20079_v1  ;;  %vm1551_vm11 = vcmp.eq.s32.totalorder %v1549_v22, 0 }
 0x362   :  { %6935 = vperm.xlu1 %12317, %v16091_v17   ;;  %v626_v61 = vsel %vm624_vm10, %v20075_v36, %v20074_v23  ;;  %v629_v24 = vsel %vm627_vm15, %v20076_v50, %v20073_v5  ;;  %vm1554_vm13 = vcmp.eq.s32.totalorder %v1549_v22, 2  ;;  %v1755_v19 = vand.u32 3, %v20081_v3 }
 0x363   :  { %v1347_v10 = vsel %vm1345_vm1, %v20079_v1, %v20078_v28  ;;  %v1350_v37 = vsel %vm1348_vm7, %v20080_v26, %v20077_v58  ;;  %vm3299_vm14 = vweird.f32 %v15845_v13  ;;  %vm20083_vm0 = vweird.f32 %v20082_v52  ;;  %v20099_v58 = vld [vmem:[#allocation69_spill] sm:$0xff]  ;;  %v20101_v1 = vld [vmem:[#allocation67_spill] sm:$0xff] }
 0x364   :  { %v16128_v29 = vsel %vm20083_vm0, nan, %v218_v41  ;;  %v828_v32 = vand.u32 3, %v20085_v51  ;;  %vm20087_vm5 = vweird.f32 %v20086_v0  ;;  %vm20089_vm4 = vweird.f32 %v20088_v46  ;;  %v20104_v51 = vld [vmem:[#allocation34_spill] sm:$0xff]  ;;  %v20106_v46 = vld [vmem:[#allocation33_spill] sm:$0xff] }
 0x365   :  { %20084 = vst [vmem:[#allocation42_spill] sm:$0xff] %v16128_v29  ;;  %v16133_v39 = vsel %vm20087_vm5, nan, %v1145_v6  ;;  %v16137_v16 = vsel %vm20089_vm4, nan, %v424_v30  ;;  %v630_v45 = vsel %vm623_vm6, %v626_v61, %v629_v24  ;;  %v16141_v12 = vand.u32 3, %v20091_v25 }
 0x366   :  { %6945 = vperm.xlu1 %12317, %v16108_v40   ;;  %20090 = vst [vmem:[#allocation13_spill] sm:$0xff] %v16137_v16  ;;  %v1351_v7 = vsel %vm1344_vm8, %v1347_v10, %v1350_v37  ;;  %vm6628_vm10 = vcmp.lt.s32.totalorder %v6627_v31, 2  ;;  %vm1550_vm15 = vcmp.lt.s32.totalorder %v1549_v22, 2  ;;  %v20093_v49 = vxor.u32 2147483648, %v20092_v42  ;;  %v20103_v22 = vld [vmem:[#allocation83_spill] sm:$0xff] }
 0x367   :  { %v20095_v9 = vxor.u32 2147483648, %v20094_v18  ;;  %vm6632_vm12 = vcmp.eq.s32.totalorder %v6627_v31, 2  ;;  %vm1757_vm1 = vcmp.eq.s32.totalorder %v1755_v19, 0  ;;  %vm1760_vm7 = vcmp.eq.s32.totalorder %v1755_v19, 2 }
 0x368   :  { %v1553_v59 = vsel %vm1551_vm11, %v20094_v18, %v20093_v49  ;;  %v16149_v8 = vpop.eup %12647  ;;  %v1961_v30 = vand.u32 3, %v20096_v56  ;;  %vm6629_vm6 = vcmp.eq.s32.totalorder %v6627_v31, 0  ;;  %vm829_vm8 = vcmp.lt.s32.totalorder %v828_v32, 2  ;;  %v20109_v18 = vld [vmem:[#allocation46_spill] sm:$0xff] }
 0x369   :  { %v1556_v41 = vsel %vm1554_vm13, %v20095_v9, %v20092_v42  ;;  %v16153_v5 = vpop.eup %12649  ;;  %v3306_v23 = vxor.u32 2147483648, %v16149_v8  ;;  %v16158_v61 = vsel %vm1342_vm3, nan, %v1351_v7  ;;  %vm830_vm11 = vcmp.eq.s32.totalorder %v828_v32, 0  ;;  %v20111_v56 = vld [vmem:[#allocation78_spill] sm:$0xff] }
 0x36a   :  { %6955 = vperm.xlu1 %12317, %v16133_v39   ;;  %20098 = vst [vmem:[#allocation37_spill] sm:$0xff] %v16158_v61  ;;  %v3303_v50 = vxor.u32 2147483648, %v16153_v5  ;;  %vm833_vm13 = vcmp.eq.s32.totalorder %v828_v32, 2  ;;  %v1557_v24 = vsel %vm1550_vm15, %v1553_v59, %v1556_v41  ;;  %vm1756_vm0 = vcmp.lt.s32.totalorder %v1755_v19, 2 }
 0x36b   :  { %v6634_v6 = vsel %vm6632_vm12, %v3306_v23, %v16153_v5  ;;  %v20100_v28 = vxor.u32 2147483648, %v20099_v58  ;;  %v20102_v26 = vxor.u32 2147483648, %v20101_v1  ;;  %vm1963_vm3 = vcmp.eq.s32.totalorder %v1961_v30, 0 }
 0x36c   :  { %v6631_v3 = vsel %vm6629_vm6, %v16149_v8, %v3303_v50  ;;  %vm1966_vm5 = vcmp.eq.s32.totalorder %v1961_v30, 2  ;;  %v2167_v52 = vand.u32 3, %v20103_v22  ;;  %v20105_v0 = vxor.u32 2147483648, %v20104_v51 }
 0x36d   :  { %v1759_v10 = vsel %vm1757_vm1, %v20101_v1, %v20100_v28  ;;  %v1762_v37 = vsel %vm1760_vm7, %v20102_v26, %v20099_v58  ;;  %v6635_v19 = vsel %vm6628_vm10, %v6631_v3, %v6634_v6  ;;  %vm1036_vm4 = vcmp.eq.s32.totalorder %v16141_v12, 0  ;;  %v20115_v1 = vld [vmem:[#allocation93_spill] sm:$0xff]  ;;  %v20116_v26 = vld [vmem:[#allocation44_spill] sm:$0xff]  ;;  %v20118_v3 = vld [vmem:[#allocation43_spill] sm:$0xff] }
 0x36e   :  { %6965 = vperm.xlu1 %12317, %v16158_v61   ;;  %v832_v25 = vsel %vm830_vm11, %v20106_v46, %v20105_v0  ;;  %v16183_v42 = vsel %vm1548_vm2, nan, %v1557_v24  ;;  %v16187_v49 = vsel %vm3299_vm14, nan, %v6635_v19  ;;  %vm1039_vm15 = vcmp.eq.s32.totalorder %v16141_v12, 2  ;;  %v20113_v24 = vld [vmem:[#allocation77_spill] sm:$0xff] }
 0x36f   :  { %20108 = vst [vmem:[#allocation36_spill] sm:$0xff] %v16187_v49  ;;  %v1240_v59 = vand.u32 3, %v20109_v18  ;;  %v1763_v31 = vsel %vm1756_vm0, %v1759_v10, %v1762_v37  ;;  %6900 = vperm.xlu0 %12316, %v16187_v49   ;;  %v20110_v9 = vxor.u32 2147483648, %v20106_v46  ;;  %vm1962_vm10 = vcmp.lt.s32.totalorder %v1961_v30, 2  ;;  %v20122_v46 = vld [vmem:[#allocation102_spill] sm:$0xff] }
 0x370   :  { %v20112_v36 = vxor.u32 2147483648, %v20111_v56  ;;  %v20114_v58 = vxor.u32 2147483648, %v20113_v24  ;;  %vm1035_vm2 = vcmp.lt.s32.totalorder %v16141_v12, 2  ;;  %vm2169_vm12 = vcmp.eq.s32.totalorder %v2167_v52, 0  ;;  %v20123_v18 = vld [vmem:[#allocation14_spill] sm:$0xff] }
 0x371   :  { %v835_v41 = vsel %vm833_vm13, %v20110_v9, %v20104_v51  ;;  %vm2172_vm1 = vcmp.eq.s32.totalorder %v2167_v52, 2  ;;  %v2373_v10 = vand.u32 3, %v20115_v1  ;;  %v20117_v37 = vxor.u32 2147483648, %v20116_v26  ;;  %v20120_v51 = vld [vmem:[#allocation50_spill] sm:$0xff] }
 0x372   :  { %v1965_v6 = vsel %vm1963_vm3, %v20113_v24, %v20112_v36  ;;  %v1968_v28 = vsel %vm1966_vm5, %v20114_v58, %v20111_v56  ;;  %6975 = vperm.xlu1 %12317, %v16183_v42   ;;  %v20119_v22 = vxor.u32 2147483648, %v20118_v3  ;;  %vm20121_vm7 = vweird.f32 %v20120_v51  ;;  %v20126_v24 = vld [vmem:[#allocation88_spill] sm:$0xff]  ;;  %v20128_v1 = vld [vmem:[#allocation86_spill] sm:$0xff] }
 0x373   :  { %v1038_v30 = vsel %vm1036_vm4, %v20118_v3, %v20117_v37  ;;  %v16215_v0 = vsel %vm20121_vm7, nan, %v1763_v31  ;;  %v2579_v7 = vand.u32 3, %v20122_v46  ;;  %vm20124_vm6 = vweird.f32 %v20123_v18  ;;  %6910 = vperm.xlu0 %12316, %v16128_v29   ;;  %v20130_v3 = vld [vmem:[#allocation56_spill] sm:$0xff]  ;;  %v20138_v18 = vld [vmem:[#allocation99_spill] sm:$0xff] }
 0x374   :  { %v1041_v19 = vsel %vm1039_vm15, %v20119_v22, %v20116_v26  ;;  %v16220_v9 = vsel %vm20124_vm6, nan, %v630_v45  ;;  %v836_v56 = vsel %vm829_vm8, %v832_v25, %v835_v41  ;;  %vm1242_vm11 = vcmp.eq.s32.totalorder %v1240_v59, 0  ;;  %v20133_v41 = vld [vmem:[#allocation52_spill] sm:$0xff] }
 0x375   :  { %20125 = vst [vmem:[#allocation54_spill] sm:$0xff] %v16220_v9  ;;  %v1969_v36 = vsel %vm1962_vm10, %v1965_v6, %v1968_v28  ;;  %vm1245_vm13 = vcmp.eq.s32.totalorder %v1240_v59, 2  ;;  %vm2168_vm0 = vcmp.lt.s32.totalorder %v2167_v52, 2  ;;  %v20127_v58 = vxor.u32 2147483648, %v20126_v24  ;;  %v20131_v52 = vld [vmem:[#allocation60_spill] sm:$0xff]  ;;  %v20135_v28 = vld [vmem:[#allocation51_spill] sm:$0xff] }
 0x376   :  { %v20129_v31 = vxor.u32 2147483648, %v20128_v1  ;;  %v1042_v45 = vsel %vm1035_vm2, %v1038_v30, %v1041_v19  ;;  %v16233_v32 = vand.u32 3, %v20130_v3  ;;  %6985 = vperm.xlu1 %12317, %v16215_v0   ;;  %vm2375_vm8 = vcmp.eq.s32.totalorder %v2373_v10, 0  ;;  %v20137_v19 = vld [vmem:[#allocation68_spill] sm:$0xff] }
 0x377   :  { %v2171_v26 = vsel %vm2169_vm12, %v20128_v1, %v20127_v58  ;;  %vm2378_vm3 = vcmp.eq.s32.totalorder %v2373_v10, 2  ;;  %vm1241_vm5 = vcmp.lt.s32.totalorder %v1240_v59, 2  ;;  %vm20132_vm4 = vweird.f32 %v20131_v52  ;;  %6920 = vperm.xlu0 %12316, %v16137_v16   ;;  %v20142_v52 = vld [vmem:[#allocation109_spill] sm:$0xff] }
 0x378   :  { %v2174_v37 = vsel %vm2172_vm1, %v20129_v31, %v20126_v24  ;;  %v16238_v25 = vsel %vm20132_vm4, nan, %v1969_v36  ;;  %vm2581_vm15 = vcmp.eq.s32.totalorder %v2579_v7, 0  ;;  %vm2584_vm10 = vcmp.eq.s32.totalorder %v2579_v7, 2  ;;  %v20140_v24 = vld [vmem:[#allocation98_spill] sm:$0xff] }
 0x379   :  { %v20134_v6 = vxor.u32 2147483648, %v20133_v41  ;;  %v20136_v30 = vxor.u32 2147483648, %v20135_v28  ;;  %v16248_v51 = vand.u32 3, %v20137_v19  ;;  %v2175_v46 = vsel %vm2168_vm0, %v2171_v26, %v2174_v37  ;;  %v20144_v37 = vld [vmem:[#allocation107_spill] sm:$0xff] }
 0x37a   :  { %vm2374_vm2 = vcmp.lt.s32.totalorder %v2373_v10, 2  ;;  %v20139_v36 = vxor.u32 2147483648, %v20138_v18  ;;  %v20141_v1 = vxor.u32 2147483648, %v20140_v24  ;;  %v2785_v3 = vand.u32 3, %v15442_v55  ;;  %6995 = vperm.xlu1 %12317, %v16238_v25   ;;  %v20149_v55 = vld [vmem:[#allocation66_spill] sm:$0xff] }
 0x37b   :  { %v1244_v12 = vsel %vm1242_vm11, %v20135_v28, %v20134_v6  ;;  %v1247_v22 = vsel %vm1245_vm13, %v20136_v30, %v20133_v41  ;;  %vm1448_vm12 = vcmp.eq.s32.totalorder %v16233_v32, 0  ;;  %vm2580_vm1 = vcmp.lt.s32.totalorder %v2579_v7, 2  ;;  %v20146_v28 = vld [vmem:[#allocation20_spill] sm:$0xff]  ;;  %v20152_v7 = vld [vmem:[#allocation26_spill] sm:$0xff]  ;;  %6930 = vperm.xlu0 %12316, %v16220_v9  }
 0x37c   :  { %v2377_v58 = vsel %vm2375_vm8, %v20140_v24, %v20139_v36  ;;  %v2380_v31 = vsel %vm2378_vm3, %v20141_v1, %v20138_v18  ;;  %v20143_v26 = vxor.u32 2147483648, %v20142_v52  ;;  %v20145_v10 = vxor.u32 2147483648, %v20144_v37  ;;  %v16275_v18 = vpop.permute.xlu1 %6760 }
 0x37d   :  { %vm20147_vm7 = vweird.f32 %v20146_v28  ;;  %vm1451_vm6 = vcmp.eq.s32.totalorder %v16233_v32, 2  ;;  %vm20150_vm11 = vweird.f32 %v20149_v55  ;;  %20151 = vst [vmem:[#allocation24_spill] sm:$0xff] %v16275_v18  ;;  %vm20153_vm13 = vweird.f32 %v20152_v7  ;;  %v20167_v55 = vld [vmem:[#allocation115_spill] sm:$0xff] }
 0x37e   :  { %v2583_v41 = vsel %vm2581_vm15, %v20144_v37, %v20143_v26  ;;  %v2586_v6 = vsel %vm2584_vm10, %v20145_v10, %v20142_v52  ;;  %v16268_v30 = vsel %vm20147_vm7, nan, %v836_v56  ;;  %v16273_v19 = vsel %vm20150_vm11, nan, %v2175_v46  ;;  %v20155_v56 = vld [vmem:[#allocation62_spill] sm:$0xff]  ;;  %v20157_v37 = vld [vmem:[#allocation61_spill] sm:$0xff] }
 0x37f   :  { %20148 = vst [vmem:[#allocation18_spill] sm:$0xff] %v16268_v30  ;;  %v16279_v36 = vsel %vm20153_vm13, nan, %v1042_v45  ;;  %v1248_v24 = vsel %vm1241_vm5, %v1244_v12, %v1247_v22  ;;  %v2381_v1 = vsel %vm2374_vm2, %v2377_v58, %v2380_v31  ;;  %v3403_v52 = vand.u32 3, %v15975_v62  ;;  %7005 = vperm.xlu1 %12317, %v16273_v19   ;;  %v20159_v62 = vld [vmem:[#allocation119_spill] sm:$0xff]  ;;  %v20162_v58 = vld [vmem:[#allocation89_spill] sm:$0xff]  ;;  %6940 = vperm.xlu0 %12316, %v16268_v30  }
 0x380   :  { %20154 = vst [vmem:[#allocation23_spill] sm:$0xff] %v16279_v36  ;;  %vm1447_vm0 = vcmp.lt.s32.totalorder %v16233_v32, 2  ;;  %v20156_v26 = vxor.u32 2147483648, %v20155_v56  ;;  %v2587_v10 = vsel %vm2580_vm1, %v2583_v41, %v2586_v6  ;;  %vm2787_vm8 = vcmp.eq.s32.totalorder %v2785_v3, 0  ;;  %v20165_v41 = vld [vmem:[#allocation117_spill] sm:$0xff] }
 0x381   :  { %v20158_v28 = vxor.u32 2147483648, %v20157_v37  ;;  %vm1654_vm3 = vcmp.eq.s32.totalorder %v16248_v51, 0  ;;  %vm2790_vm5 = vcmp.eq.s32.totalorder %v2785_v3, 2  ;;  %v2991_v59 = vand.u32 3, %v20159_v62 }
 0x382   :  { %v1450_v46 = vsel %vm1448_vm12, %v20157_v37, %v20156_v26  ;;  %vm1657_vm4 = vcmp.eq.s32.totalorder %v16248_v51, 2  ;;  %v16297_v22 = vsel %vm2372_vm9, nan, %v2381_v1  ;;  %vm2786_vm15 = vcmp.lt.s32.totalorder %v2785_v3, 2 }
 0x383   :  { %v1453_v45 = vsel %vm1451_vm6, %v20158_v28, %v20155_v56  ;;  %20161 = vst [vmem:[#allocation48_spill] sm:$0xff] %v16297_v22  ;;  %vm3404_vm10 = vcmp.lt.s32.totalorder %v3403_v52, 2  ;;  %vm20163_vm2 = vweird.f32 %v20162_v58  ;;  %v20166_v6 = vxor.u32 2147483648, %v20165_v41  ;;  %v16317_v28 = vpop.permute.xlu1 %6765  ;;  %7015 = vperm.xlu1 %12317, %v16297_v22   ;;  %6950 = vperm.xlu0 %12316, %v16279_v36   ;;  %v20175_v58 = vld [vmem:[#allocation123_spill] sm:$0xff] }
 0x384   :  { %v16301_v31 = vsel %vm20163_vm2, nan, %v2587_v10  ;;  %vm3405_vm12 = vcmp.eq.s32.totalorder %v3403_v52, 0  ;;  %vm3408_vm1 = vcmp.eq.s32.totalorder %v3403_v52, 2  ;;  %v20168_v56 = vxor.u32 2147483648, %v20167_v55  ;;  %20169 = vst [vmem:[#allocation65_spill] sm:$0xff] %v16317_v28 }
 0x385   :  { %20164 = vst [vmem:[#allocation47_spill] sm:$0xff] %v16301_v31  ;;  %v2789_v7 = vsel %vm2787_vm8, %v20167_v55, %v20166_v6  ;;  %v3407_v1 = vsel %vm3405_vm12, %v15991_v63, %v3406_v60  ;;  %v3410_v37 = vsel %vm3408_vm1, %v3409_v21, %v15993_v14  ;;  %v3300_v10 = vand.u32 3, %v16071_v11  ;;  %v20172_v63 = vld [vmem:[#allocation76_spill] sm:$0xff] }
 0x386   :  { %v2792_v26 = vsel %vm2790_vm5, %v20168_v56, %v20165_v41  ;;  %vm2993_vm9 = vcmp.eq.s32.totalorder %v2991_v59, 0  ;;  %vm2996_vm7 = vcmp.eq.s32.totalorder %v2991_v59, 2  ;;  %v3197_v52 = vand.u32 3, %v15812_v44 }
 0x387   :  { %v3411_v62 = vsel %vm3404_vm10, %v3407_v1, %v3410_v37  ;;  %vm20170_vm6 = vweird.f32 %v15716_v38  ;;  %vm3301_vm11 = vcmp.lt.s32.totalorder %v3300_v10, 2  ;;  %vm3302_vm13 = vcmp.eq.s32.totalorder %v3300_v10, 0  ;;  %v20173_v38 = vld [vmem:[#allocation124_spill] sm:$0xff]  ;;  %7025 = vperm.xlu1 %12317, %v16301_v31   ;;  %v20184_v1 = vld [vmem:[#allocation97_spill] sm:$0xff] }
 0x388   :  { %v16323_v12 = vsel %vm20170_vm6, nan, %v3411_v62  ;;  %vm3305_vm8 = vcmp.eq.s32.totalorder %v3300_v10, 2  ;;  %v1858_v14 = vand.u32 3, %v20172_v63  ;;  %v2793_v21 = vsel %vm2786_vm15, %v2789_v7, %v2792_v26  ;;  %v20177_v7 = vld [vmem:[#allocation32_spill] sm:$0xff]  ;;  %v20183_v26 = vld [vmem:[#allocation71_spill] sm:$0xff]  ;;  %v16361_v10 = vpop.permute.xlu1 %6775 }
 0x389   :  { %20171 = vst [vmem:[#allocation12_spill] sm:$0xff] %v16323_v12  ;;  %v3304_v60 = vsel %vm3302_vm13, %v16149_v8, %v3303_v50  ;;  %v3307_v44 = vsel %vm3305_vm8, %v3306_v23, %v16153_v5  ;;  %vm2992_vm5 = vcmp.lt.s32.totalorder %v2991_v59, 2  ;;  %v20174_v11 = vxor.u32 2147483648, %v20173_v38  ;;  %v20181_v23 = vld [vmem:[#allocation73_spill] sm:$0xff]  ;;  %20187 = vst [vmem:[#allocation38_spill] sm:$0xff] %v16361_v10 }
 0x38a   :  { %v20176_v6 = vxor.u32 2147483648, %v20175_v58  ;;  %v3308_v55 = vsel %vm3301_vm11, %v3304_v60, %v3307_v44  ;;  %vm20178_vm15 = vweird.f32 %v20177_v7  ;;  %vm3199_vm10 = vcmp.eq.s32.totalorder %v3197_v52, 0  ;;  %v20202_v7 = vld [vmem:[#allocation96_spill] sm:$0xff] }
 0x38b   :  { %v2995_v41 = vsel %vm2993_vm9, %v20175_v58, %v20174_v11  ;;  %v16342_v56 = vsel %vm20178_vm15, nan, %v1248_v24  ;;  %vm3202_vm2 = vcmp.eq.s32.totalorder %v3197_v52, 2  ;;  %v16347_v8 = vsel %vm3299_vm14, nan, %v3308_v55  ;;  %v20195_v11 = vld [vmem:[#allocation106_spill] sm:$0xff] }
 0x38c   :  { %v2998_v3 = vsel %vm2996_vm7, %v20176_v6, %v20173_v38  ;;  %20179 = vst [vmem:[#allocation30_spill] sm:$0xff] %v16342_v56  ;;  %20180 = vst [vmem:[#allocation21_spill] sm:$0xff] %v16347_v8  ;;  %v1454_v5 = vsel %vm1447_vm0, %v1450_v46, %v1453_v45  ;;  %vm1653_vm12 = vcmp.lt.s32.totalorder %v16248_v51, 2  ;;  %v20182_v50 = vxor.u32 2147483648, %v20181_v23  ;;  %6960 = vperm.xlu0 %12316, %v16342_v56   ;;  %v20189_v45 = vld [vmem:[#allocation87_spill] sm:$0xff]  ;;  %v20192_v38 = vld [vmem:[#allocation41_spill] sm:$0xff] }
 0x38d   :  { %vm20185_vm1 = vweird.f32 %v20184_v1  ;;  %v20188_v13 = vxor.u32 2147483648, %v20183_v26  ;;  %vm1860_vm14 = vcmp.eq.s32.totalorder %v1858_v14, 0  ;;  %vm1863_vm0 = vcmp.eq.s32.totalorder %v1858_v14, 2  ;;  %v20200_v6 = vld [vmem:[#allocation81_spill] sm:$0xff]  ;;  %v20209_v1 = vld [vmem:[#allocation92_spill] sm:$0xff] }
 0x38e   :  { %v1656_v24 = vsel %vm1654_vm3, %v20183_v26, %v20182_v50  ;;  %v16359_v37 = vsel %vm20185_vm1, nan, %v2793_v21  ;;  %v2999_v46 = vsel %vm2992_vm5, %v2995_v41, %v2998_v3  ;;  %v2064_v62 = vand.u32 3, %v20189_v45  ;;  %v20204_v50 = vld [vmem:[#allocation53_spill] sm:$0xff] }
 0x38f   :  { %20186 = vst [vmem:[#allocation11_spill] sm:$0xff] %v16359_v37  ;;  %v1659_v32 = vsel %vm1657_vm4, %v20188_v13, %v20181_v23  ;;  %vm3198_vm3 = vcmp.lt.s32.totalorder %v3197_v52, 2  ;;  %v20190_v63 = vxor.u32 2147483648, %v15873_v48  ;;  %v20191_v60 = vxor.u32 2147483648, %v15868_v20  ;;  %7035 = vperm.xlu1 %12317, %v16359_v37   ;;  %v20198_v52 = vld [vmem:[#allocation82_spill] sm:$0xff]  ;;  %v16394_v23 = vpop.permute.xlu1 %6785 }
 0x390   :  { %vm20193_vm9 = vweird.f32 %v20192_v38  ;;  %v1660_v59 = vsel %vm1653_vm12, %v1656_v24, %v1659_v32  ;;  %vm20196_vm4 = vweird.f32 %v20195_v11  ;;  %vm1859_vm7 = vcmp.lt.s32.totalorder %v1858_v14, 2  ;;  %20203 = vst [vmem:[#allocation72_spill] sm:$0xff] %v16394_v23  ;;  %v20211_v32 = vld [vmem:[#allocation91_spill] sm:$0xff] }
 0x391   :  { %v3201_v21 = vsel %vm3199_vm10, %v15868_v20, %v20190_v63  ;;  %v3204_v44 = vsel %vm3202_vm2, %v20191_v60, %v15873_v48  ;;  %v16379_v51 = vsel %vm20193_vm9, nan, %v1454_v5  ;;  %v16384_v58 = vsel %vm20196_vm4, nan, %v2999_v46 }
 0x392   :  { %20194 = vst [vmem:[#allocation58_spill] sm:$0xff] %v16379_v51  ;;  %20197 = vst [vmem:[#allocation57_spill] sm:$0xff] %v16384_v58  ;;  %v20199_v41 = vxor.u32 2147483648, %v20198_v52  ;;  %v20201_v20 = vxor.u32 2147483648, %v20200_v6  ;;  %v3205_v55 = vsel %vm3198_vm3, %v3201_v21, %v3204_v44  ;;  %6970 = vperm.xlu0 %12316, %v16379_v51   ;;  %vm2066_vm6 = vcmp.eq.s32.totalorder %v2064_v62, 0  ;;  %v20213_v21 = vld [vmem:[#allocation108_spill] sm:$0xff] }
 0x393   :  { %vm2069_vm11 = vcmp.eq.s32.totalorder %v2064_v62, 2  ;;  %v2270_v5 = vand.u32 3, %v20202_v7  ;;  %vm20205_vm13 = vweird.f32 %v20204_v50  ;;  %7045 = vperm.xlu1 %12317, %v16384_v58   ;;  %vm20207_vm8 = vweird.f32 %v15520_v2  ;;  %v20214_v44 = vld [vmem:[#allocation64_spill] sm:$0xff]  ;;  %v16418_v38 = vpop.permute.xlu1 %6795 }
 0x394   :  { %v1862_v3 = vsel %vm1860_vm14, %v20200_v6, %v20199_v41  ;;  %v1865_v48 = vsel %vm1863_vm0, %v20201_v20, %v20198_v52  ;;  %v16398_v14 = vsel %vm20205_vm13, nan, %v1660_v59  ;;  %v16403_v24 = vsel %vm20207_vm8, nan, %v3205_v55  ;;  %20217 = vst [vmem:[#allocation83_spill] sm:$0xff] %v16418_v38  ;;  %v20218_v59 = vld [vmem:[#allocation103_spill] sm:$0xff]  ;;  %v20220_v52 = vld [vmem:[#allocation101_spill] sm:$0xff]  ;;  %v20222_v20 = vld [vmem:[#allocation116_spill] sm:$0xff] }
 0x395   :  { %20206 = vst [vmem:[#allocation31_spill] sm:$0xff] %v16398_v14  ;;  %v1866_v26 = vsel %vm1859_vm7, %v1862_v3, %v1865_v48  ;;  %20208 = vst [vmem:[#allocation69_spill] sm:$0xff] %v16403_v24  ;;  %vm2065_vm5 = vcmp.lt.s32.totalorder %v2064_v62, 2  ;;  %v20210_v13 = vxor.u32 2147483648, %v20209_v1  ;;  %v20212_v45 = vxor.u32 2147483648, %v20211_v32  ;;  %v20223_v55 = vld [vmem:[#allocation74_spill] sm:$0xff] }
 0x396   :  { %6980 = vperm.xlu0 %12316, %v16398_v14   ;;  %vm2272_vm15 = vcmp.eq.s32.totalorder %v2270_v5, 0  ;;  %vm2275_vm10 = vcmp.eq.s32.totalorder %v2270_v5, 2  ;;  %v2476_v60 = vand.u32 3, %v20213_v21  ;;  %vm20215_vm2 = vweird.f32 %v20214_v44  ;;  %v20232_v44 = vld [vmem:[#allocation85_spill] sm:$0xff] }
 0x397   :  { %v2068_v46 = vsel %vm2066_vm6, %v20211_v32, %v20210_v13  ;;  %v2071_v63 = vsel %vm2069_vm11, %v20212_v45, %v20209_v1  ;;  %v16415_v2 = vsel %vm20215_vm2, nan, %v1866_v26  ;;  %7055 = vperm.xlu1 %12317, %v16403_v24   ;;  %vm2271_vm12 = vcmp.lt.s32.totalorder %v2270_v5, 2  ;;  %v16433_v5 = vpop.permute.xlu0 %6750  ;;  %v20227_v26 = vld [vmem:[#allocation112_spill] sm:$0xff]  ;;  %v20229_v13 = vld [vmem:[#allocation111_spill] sm:$0xff]  ;;  %v16443_v21 = vpop.permute.xlu1 %6805 }
 0x398   :  { %20216 = vst [vmem:[#allocation67_spill] sm:$0xff] %v16415_v2  ;;  %v2072_v62 = vsel %vm2065_vm5, %v2068_v46, %v2071_v63  ;;  %v20219_v11 = vxor.u32 2147483648, %v20218_v59  ;;  %v20221_v6 = vxor.u32 2147483648, %v20220_v52  ;;  %vm2478_vm1 = vcmp.eq.s32.totalorder %v2476_v60, 0  ;;  %20226 = vst [vmem:[#allocation33_spill] sm:$0xff] %v16433_v5  ;;  %v20299_v5 = vld [vmem:[#allocation90_spill] sm:$0xff] }
 0x399   :  { %vm2481_vm14 = vcmp.eq.s32.totalorder %v2476_v60, 2  ;;  %v2682_v48 = vand.u32 3, %v20222_v20  ;;  %vm20224_vm0 = vweird.f32 %v20223_v55  ;;  %vm2477_vm3 = vcmp.lt.s32.totalorder %v2476_v60, 2  ;;  %20231 = vst [vmem:[#allocation40_spill] sm:$0xff] %v16443_v21 }
 0x39a   :  { %v2274_v41 = vsel %vm2272_vm15, %v20220_v52, %v20219_v11  ;;  %v2277_v3 = vsel %vm2275_vm10, %v20221_v6, %v20218_v59  ;;  %6990 = vperm.xlu0 %12316, %v16415_v2   ;;  %v16430_v7 = vsel %vm20224_vm0, nan, %v2072_v62  ;;  %v20228_v1 = vxor.u32 2147483648, %v20227_v26  ;;  %v20235_v11 = vld [vmem:[#allocation19_spill] sm:$0xff]  ;;  %v20236_v52 = vld [vmem:[#allocation121_spill] sm:$0xff]  ;;  %v20238_v6 = vld [vmem:[#allocation120_spill] sm:$0xff] }
 0x39b   :  { %20225 = vst [vmem:[#allocation34_spill] sm:$0xff] %v16430_v7  ;;  %7065 = vperm.xlu1 %12317, %v16323_v12   ;;  %v2278_v50 = vsel %vm2271_vm12, %v2274_v41, %v2277_v3  ;;  %v20230_v46 = vxor.u32 2147483648, %v20229_v13  ;;  %vm2684_vm9 = vcmp.eq.s32.totalorder %v2682_v48, 0  ;;  %vm2687_vm4 = vcmp.eq.s32.totalorder %v2682_v48, 2  ;;  %v16456_v55 = vpop.permute.xlu0 %6755 }
 0x39c   :  { %v2480_v32 = vsel %vm2478_vm1, %v20229_v13, %v20228_v1  ;;  %v2888_v63 = vand.u32 3, %v15714_v54  ;;  %vm20233_vm7 = vweird.f32 %v20232_v44  ;;  %v12736_v60 = vmov 1   ;;  %20240 = vst [vmem:[#allocation78_spill] sm:$0xff] %v16456_v55  ;;  %v20244_v13 = vld [vmem:[#allocation15_spill] sm:$0xff]  ;;  %v20248_v44 = vld [vmem:[#allocation126_spill] sm:$0xff] }
 0x39d   :  { %v2483_v45 = vsel %vm2481_vm14, %v20230_v46, %v20227_v26  ;;  %v16447_v62 = vsel %vm20233_vm7, nan, %v2278_v50  ;;  %vm2683_vm6 = vcmp.lt.s32.totalorder %v2682_v48, 2  ;;  %v20237_v41 = vxor.u32 2147483648, %v20236_v52  ;;  %v20241_v26 = vld [vmem:[#allocation94_spill] sm:$0xff]  ;;  %v20246_v46 = vld [vmem:[#allocation127_spill] sm:$0xff] }
 0x39e   :  { %7000 = vperm.xlu0 %12316, %v16430_v7   ;;  %20234 = vst [vmem:[#allocation46_spill] sm:$0xff] %v16447_v62  ;;  %v2484_v59 = vsel %vm2477_vm3, %v2480_v32, %v2483_v45  ;;  %v20239_v20 = vxor.u32 2147483648, %v20238_v6  ;;  %vm2890_vm11 = vcmp.eq.s32.totalorder %v2888_v63, 0  ;;  %vm2893_vm13 = vcmp.eq.s32.totalorder %v2888_v63, 2  ;;  %v16465_v32 = vpop.permute.xlu1 %6815 }
 0x39f   :  { %12319 = vset.pattern.permute.xlu1 %v12736_v60  ;;  %v2686_v3 = vsel %vm2684_vm9, %v20238_v6, %v20237_v41  ;;  %v3094_v50 = vand.u32 3, %v15910_v34  ;;  %vm20242_vm8 = vweird.f32 %v20241_v26  ;;  %20245 = vst [vmem:[#allocation93_spill] sm:$0xff] %v16465_v32  ;;  %vm2889_vm5 = vcmp.lt.s32.totalorder %v2888_v63, 2  ;;  %v20250_v34 = vld [vmem:[#allocation104_spill] sm:$0xff]  ;;  %v20254_v63 = vld [vmem:[#allocation25_spill] sm:$0xff]  ;;  %v20278_v32 = vld [vmem:[#allocation95_spill] sm:$0xff] }
 0x3a0   :  { %7110 = vperm.xlu1 %12319, %v20235_v11   ;;  %v2689_v54 = vsel %vm2687_vm4, %v20239_v20, %v20236_v52  ;;  %v16462_v1 = vsel %vm20242_vm8, nan, %v2484_v59  ;;  %v20247_v45 = vxor.u32 2147483648, %v20246_v46  ;;  %v20249_v41 = vxor.u32 2147483648, %v20248_v44 }
 0x3a1   :  { %20243 = vst [vmem:[#allocation77_spill] sm:$0xff] %v16462_v1  ;;  %v2690_v48 = vsel %vm2683_vm6, %v2686_v3, %v2689_v54  ;;  %vm3096_vm15 = vcmp.eq.s32.totalorder %v3094_v50, 0  ;;  %vm3099_vm10 = vcmp.eq.s32.totalorder %v3094_v50, 2  ;;  %vm20251_vm2 = vweird.f32 %v20250_v34  ;;  %v16478_v3 = vpop.permute.xlu0 %6770  ;;  %v20268_v34 = vld [vmem:[#allocation63_spill] sm:$0xff] }
 0x3a2   :  { %7010 = vperm.xlu0 %12316, %v16447_v62   ;;  %v2892_v52 = vsel %vm2890_vm11, %v20248_v44, %v20247_v45  ;;  %v2895_v6 = vsel %vm2893_vm13, %v20249_v41, %v20246_v46  ;;  %v16476_v59 = vsel %vm20251_vm2, nan, %v2690_v48  ;;  %20253 = vst [vmem:[#allocation43_spill] sm:$0xff] %v16478_v3  ;;  %vm3095_vm12 = vcmp.lt.s32.totalorder %v3094_v50, 2  ;;  %v16488_v46 = vpop.permute.xlu1 %6825  ;;  %v20256_v48 = vld [vmem:[#allocation114_spill] sm:$0xff]  ;;  %v20266_v41 = vld [vmem:[#allocation55_spill] sm:$0xff]  ;;  %v20291_v3 = vld [vmem:[#allocation128_spill] sm:$0xff] }
 0x3a3   :  { %20252 = vst [vmem:[#allocation44_spill] sm:$0xff] %v16476_v59  ;;  %v2896_v20 = vsel %vm2889_vm5, %v2892_v52, %v2895_v6  ;;  %v3098_v54 = vsel %vm3096_vm15, %v15942_v47, %v3097_v4  ;;  %v3101_v26 = vsel %vm3099_vm10, %v3100_v35, %v15947_v57  ;;  %20255 = vst [vmem:[#allocation50_spill] sm:$0xff] %v16488_v46  ;;  %vm20257_vm1 = vweird.f32 %v20256_v48  ;;  %v20259_v52 = vld [vmem:[#allocation35_spill] sm:$0xff]  ;;  %v20263_v47 = vld [vmem:[#allocation45_spill] sm:$0xff] }
 0x3a4   :  { %7114 = vperm.xlu1 %12319, %v20244_v13   ;;  %v16492_v45 = vsel %vm20257_vm1, nan, %v2896_v20  ;;  %v3102_v44 = vsel %vm3095_vm12, %v3098_v54, %v3101_v26  ;;  %vm20261_vm14 = vweird.f32 %v15606_v43  ;;  %v20270_v43 = vld [vmem:[#allocation16_spill] sm:$0xff]  ;;  %v20271_v54 = vld [vmem:[#allocation75_spill] sm:$0xff]  ;;  %v20273_v48 = vld [vmem:[#allocation17_spill] sm:$0xff]  ;;  %vm9366_vm7 = vcmask 130048  }
 0x3a5   :  { %20258 = vst [vmem:[#allocation102_spill] sm:$0xff] %v16492_v45  ;;  %v16495_v50 = vpop.permute.xlu0 %6780  ;;  %v16500_v4 = vsel %vm20261_vm14, nan, %v3102_v44 }
 0x3a6   :  { %7020 = vperm.xlu0 %12316, %v16462_v1   ;;  %20260 = vst [vmem:[#allocation14_spill] sm:$0xff] %v16495_v50  ;;  %20262 = vst [vmem:[#allocation88_spill] sm:$0xff] %v16500_v4  ;;  %v16503_v57 = vpop.permute.xlu1 %6835  ;;  %v20288_v50 = vld [vmem:[#allocation122_spill] sm:$0xff] }
 0x3a7   :  { %20264 = vst [vmem:[#allocation86_spill] sm:$0xff] %v16503_v57  ;;  %v20275_v57 = vld [vmem:[#allocation84_spill] sm:$0xff] }
 0x3a8   :  { %7122 = vperm.xlu1 %12319, %v20254_v63  }
 0x3a9   :  { %v16506_v35 = vpop.permute.xlu0 %6790 }
 0x3aa   :  { %7030 = vperm.xlu0 %12316, %v16476_v59   ;;  %20265 = vst [vmem:[#allocation56_spill] sm:$0xff] %v16506_v35  ;;  %v16510_v6 = vpop.permute.xlu1 %6845 }
 0x3ab   :  { %20267 = vst [vmem:[#allocation60_spill] sm:$0xff] %v16510_v6  ;;  %v20277_v6 = vld [vmem:[#allocation22_spill] sm:$0xff] }
 0x3ac   :  { %7130 = vperm.xlu1 %12319, %v20259_v52  }
 0x3ad   :  { %v16513_v20 = vpop.permute.xlu0 %6800 }
 0x3ae   :  { %7040 = vperm.xlu0 %12316, %v16492_v45   ;;  %20269 = vst [vmem:[#allocation52_spill] sm:$0xff] %v16513_v20  ;;  %v16517_v26 = vpop.permute.xlu1 %6855  ;;  %v20281_v20 = vld [vmem:[#allocation105_spill] sm:$0xff] }
 0x3af   :  { %20272 = vst [vmem:[#allocation51_spill] sm:$0xff] %v16517_v26  ;;  %v20283_v26 = vld [vmem:[#allocation39_spill] sm:$0xff] }
 0x3b0   :  { %7138 = vperm.xlu1 %12319, %v20263_v47  }
 0x3b1   :  { %v16520_v44 = vpop.permute.xlu0 %6810 }
 0x3b2   :  { %7050 = vperm.xlu0 %12316, %v16500_v4   ;;  %20274 = vst [vmem:[#allocation68_spill] sm:$0xff] %v16520_v44  ;;  %v16523_v46 = vpop.permute.xlu1 %6865  ;;  %v20285_v44 = vld [vmem:[#allocation113_spill] sm:$0xff] }
 0x3b3   :  { %20276 = vst [vmem:[#allocation99_spill] sm:$0xff] %v16523_v46  ;;  %v20287_v46 = vld [vmem:[#allocation49_spill] sm:$0xff] }
 0x3b4   :  { %7146 = vperm.xlu1 %12319, %v20266_v41  }
 0x3b5   :  { %v16527_v21 = vpop.permute.xlu0 %6820 }
 0x3b6   :  { %7060 = vperm.xlu0 %12316, %v16347_v8   ;;  %20279 = vst [vmem:[#allocation98_spill] sm:$0xff] %v16527_v21  ;;  %v16531_v38 = vpop.permute.xlu1 %6875  ;;  %v20290_v21 = vld [vmem:[#allocation59_spill] sm:$0xff] }
 0x3b7   :  { %20282 = vst [vmem:[#allocation109_spill] sm:$0xff] %v16531_v38  ;;  %v20293_v38 = vld [vmem:[#allocation70_spill] sm:$0xff] }
 0x3b8   :  { %7154 = vperm.xlu1 %12319, %v20268_v34  }
 0x3b9   :  { %v16534_v35 = vpop.permute.xlu0 %6830 }
 0x3ba   :  { %12318 = vset.pattern.permute.xlu0 %v12736_v60  ;;  %v20280_v60 = vld [vmem:[#allocation29_spill] sm:$0xff]  ;;  %20284 = vst [vmem:[#allocation107_spill] sm:$0xff] %v16534_v35  ;;  %v16537_v23 = vpop.permute.xlu1 %6885 }
 0x3bb   :  { %7106 = vperm.xlu0 %12318, %v20270_v43   ;;  %20286 = vst [vmem:[#allocation20_spill] sm:$0xff] %v16537_v23  ;;  %v20296_v23 = vld [vmem:[#allocation79_spill] sm:$0xff] }
 0x3bc   :  { %7162 = vperm.xlu1 %12319, %v20271_v54  }
 0x3bd   :  { %v16541_v10 = vpop.permute.xlu0 %6840 }
 0x3be   :  { %20289 = vst [vmem:[#allocation66_spill] sm:$0xff] %v16541_v10  ;;  %v16545_v28 = vpop.permute.xlu1 %6895 }
 0x3bf   :  { %7118 = vperm.xlu0 %12318, %v20273_v48   ;;  %20292 = vst [vmem:[#allocation26_spill] sm:$0xff] %v16545_v28 }
 0x3c0   :  { %7170 = vperm.xlu1 %12319, %v20275_v57  }
 0x3c1   :  { %v16548_v18 = vpop.permute.xlu0 %6850 }
 0x3c2   :  { %20294 = vst [vmem:[#allocation62_spill] sm:$0xff] %v16548_v18 }
 0x3c3   :  { %7126 = vperm.xlu0 %12318, %v20277_v6  }
 0x3c4   :  { %7178 = vperm.xlu1 %12319, %v20278_v32  }
 0x3c5   :  { %v16555_v55 = vpop.permute.xlu0 %6860 }
 0x3c6   :  { %20297 = vst [vmem:[#allocation119_spill] sm:$0xff] %v16555_v55 }
 0x3c7   :  { %7134 = vperm.xlu0 %12318, %v20280_v60  }
 0x3c8   :  { %7186 = vperm.xlu1 %12319, %v20281_v20  }
 0x3c9   :  { %v16564_v18 = vpop.permute.xlu0 %6870 }
 0x3ca   :  { %20302 = vst [vmem:[#allocation117_spill] sm:$0xff] %v16564_v18 }
 0x3cb   :  { %7142 = vperm.xlu0 %12318, %v20283_v26  }
 0x3cc   :  { %7194 = vperm.xlu1 %12319, %v20285_v44  }
 0x3cd   :  { %v16571_v55 = vpop.permute.xlu0 %6880 }
 0x3ce   :  { %20305 = vst [vmem:[#allocation76_spill] sm:$0xff] %v16571_v55 }
 0x3cf   :  { %7150 = vperm.xlu0 %12318, %v20287_v46  }
 0x3d0   :  { %7202 = vperm.xlu1 %12319, %v20288_v50  }
 0x3d1   :  { %v16580_v18 = vpop.permute.xlu0 %6890 }
 0x3d2   :  { %20310 = vst [vmem:[#allocation32_spill] sm:$0xff] %v16580_v18 }
 0x3d3   :  { %7158 = vperm.xlu0 %12318, %v20290_v21  }
 0x3d4   :  { %7210 = vperm.xlu1 %12319, %v20291_v3   ;;  %v20301_v3 = vld [vmem:[#allocation100_spill] sm:$0xff] }
 0x3d5   :  { %v16551_v35 = vpop.permute.xlu1 %6905 }
 0x3d6   :  { %20295 = vst [vmem:[#allocation61_spill] sm:$0xff] %v16551_v35 }
 0x3d7   :  { %7166 = vperm.xlu0 %12318, %v20293_v38  }
 0x3d8   :  { %7218 = vperm.xlu1 %12319, %v15963_v33   ;;  %v20304_v33 = vld [vmem:[#allocation110_spill] sm:$0xff] }
 0x3d9   :  { %v16557_v10 = vpop.permute.xlu1 %6915 }
 0x3da   :  { %20298 = vst [vmem:[#allocation80_spill] sm:$0xff] %v16557_v10 }
 0x3db   :  { %7174 = vperm.xlu0 %12318, %v20296_v23  }
 0x3dc   :  { %7226 = vperm.xlu1 %12319, %v16187_v49   ;;  %v20307_v49 = vld [vmem:[#allocation118_spill] sm:$0xff] }
 0x3dd   :  { %v16561_v28 = vpop.permute.xlu1 %6925 }
 0x3de   :  { %20300 = vst [vmem:[#allocation89_spill] sm:$0xff] %v16561_v28 }
 0x3df   :  { %7182 = vperm.xlu0 %12318, %v20299_v5  }
 0x3e0   :  { %7234 = vperm.xlu1 %12319, %v16128_v29   ;;  %v20309_v29 = vld [vmem:[#allocation125_spill] sm:$0xff] }
 0x3e1   :  { %v16567_v35 = vpop.permute.xlu1 %6935 }
 0x3e2   :  { %20303 = vst [vmem:[#allocation115_spill] sm:$0xff] %v16567_v35 }
 0x3e3   :  { %7190 = vperm.xlu0 %12318, %v20301_v3  }
 0x3e4   :  { %7242 = vperm.xlu1 %12319, %v16137_v16   ;;  %v20312_v16 = vld [vmem:[#allocation129_spill] sm:$0xff] }
 0x3e5   :  { %v16573_v10 = vpop.permute.xlu1 %6945 }
 0x3e6   :  { %20306 = vst [vmem:[#allocation124_spill] sm:$0xff] %v16573_v10 }
 0x3e7   :  { %7198 = vperm.xlu0 %12318, %v20304_v33  }
 0x3e8   :  { %7250 = vperm.xlu1 %12319, %v16220_v9  }
 0x3e9   :  { %v16577_v28 = vpop.permute.xlu1 %6955 }
 0x3ea   :  { %20308 = vst [vmem:[#allocation123_spill] sm:$0xff] %v16577_v28 }
 0x3eb   :  { %7206 = vperm.xlu0 %12318, %v20307_v49  }
 0x3ec   :  { %7258 = vperm.xlu1 %12319, %v16268_v30  }
 0x3ed   :  { %v16583_v35 = vpop.permute.xlu1 %6965 }
 0x3ee   :  { %20311 = vst [vmem:[#allocation73_spill] sm:$0xff] %v16583_v35  ;;  %v16587_v55 = vpop.permute.xlu0 %6900 }
 0x3ef   :  { %7214 = vperm.xlu0 %12318, %v20309_v29   ;;  %20313 = vst [vmem:[#allocation71_spill] sm:$0xff] %v16587_v55 }
 0x3f0   :  { %7266 = vperm.xlu1 %12319, %v16279_v36  }
 0x3f1   :  { %v16589_v10 = vpop.permute.xlu1 %6975 }
 0x3f2   :  { %20314 = vst [vmem:[#allocation97_spill] sm:$0xff] %v16589_v10  ;;  %v16593_v28 = vpop.permute.xlu0 %6910 }
 0x3f3   :  { %7222 = vperm.xlu0 %12318, %v20312_v16   ;;  %20315 = vst [vmem:[#allocation87_spill] sm:$0xff] %v16593_v28 }
 0x3f4   :  { %7274 = vperm.xlu1 %12319, %v16342_v56  }
 0x3f5   :  { %v16595_v30 = vpop.permute.xlu1 %6985 }
 0x3f6   :  { %20316 = vst [vmem:[#allocation41_spill] sm:$0xff] %v16595_v30  ;;  %v16599_v18 = vpop.permute.xlu0 %6920 }
 0x3f7   :  { %7230 = vperm.xlu0 %12318, %v16016_v15   ;;  %20317 = vst [vmem:[#allocation106_spill] sm:$0xff] %v16599_v18 }
 0x3f8   :  { %7282 = vperm.xlu1 %12319, %v16379_v51  }
 0x3f9   :  { %v16601_v35 = vpop.permute.xlu1 %6995 }
 0x3fa   :  { %20318 = vst [vmem:[#allocation82_spill] sm:$0xff] %v16601_v35  ;;  %v16605_v55 = vpop.permute.xlu0 %6930 }
 0x3fb   :  { %7238 = vperm.xlu0 %12318, %v16033_v27   ;;  %20319 = vst [vmem:[#allocation81_spill] sm:$0xff] %v16605_v55 }
 0x3fc   :  { %7290 = vperm.xlu1 %12319, %v16398_v14  }
 0x3fe   :  { %v16607_v10 = vpop.permute.xlu1 %7005  ;;  %v16611_v30 = vpop.permute.xlu0 %6940 }
 0x3ff   :  { %7246 = vperm.xlu0 %12318, %v16061_v53   ;;  %20320 = vst [vmem:[#allocation96_spill] sm:$0xff] %v16607_v10  ;;  %20321 = vst [vmem:[#allocation53_spill] sm:$0xff] %v16611_v30 }
 0x400   :  { %7298 = vperm.xlu1 %12319, %v16415_v2  }
 0x402   :  { %v16613_v28 = vpop.permute.xlu1 %7015  ;;  %v16617_v35 = vpop.permute.xlu0 %6950 }
 0x403   :  { %7254 = vperm.xlu0 %12318, %v16091_v17   ;;  %20322 = vst [vmem:[#allocation92_spill] sm:$0xff] %v16613_v28  ;;  %20323 = vst [vmem:[#allocation91_spill] sm:$0xff] %v16617_v35 }
 0x404   :  { %7306 = vperm.xlu1 %12319, %v16430_v7  }
 0x406   :  { %v16619_v18 = vpop.permute.xlu1 %7025 }
 0x407   :  { %7262 = vperm.xlu0 %12318, %v16108_v40   ;;  %20324 = vst [vmem:[#allocation108_spill] sm:$0xff] %v16619_v18 }
 0x408   :  { %7314 = vperm.xlu1 %12319, %v16447_v62  }
 0x40b   :  { %7270 = vperm.xlu0 %12318, %v16133_v39   ;;  %v16623_v10 = vpop.permute.xlu0 %6960 }
 0x40c   :  { %7322 = vperm.xlu1 %12319, %v16462_v1   ;;  %20325 = vst [vmem:[#allocation64_spill] sm:$0xff] %v16623_v10 }
 0x40e   :  { %v16625_v55 = vpop.permute.xlu1 %7035 }
 0x40f   :  { %20326 = vst [vmem:[#allocation103_spill] sm:$0xff] %v16625_v55  ;;  %7278 = vperm.xlu0 %12318, %v16158_v61  }
 0x410   :  { %7330 = vperm.xlu1 %12319, %v16476_v59  }
 0x411   :  { %v16629_v28 = vpop.permute.xlu0 %6970 }
 0x412   :  { %20327 = vst [vmem:[#allocation101_spill] sm:$0xff] %v16629_v28  ;;  %v16631_v30 = vpop.permute.xlu1 %7045 }
 0x413   :  { %20328 = vst [vmem:[#allocation116_spill] sm:$0xff] %v16631_v30  ;;  %7286 = vperm.xlu0 %12318, %v16183_v42  }
 0x414   :  { %7338 = vperm.xlu1 %12319, %v16492_v45  }
 0x415   :  { %v16635_v18 = vpop.permute.xlu0 %6980 }
 0x416   :  { %20329 = vst [vmem:[#allocation74_spill] sm:$0xff] %v16635_v18  ;;  %v16637_v35 = vpop.permute.xlu1 %7055  ;;  %v12737_v18 = vmov 2  }
 0x417   :  { %20330 = vst [vmem:[#allocation112_spill] sm:$0xff] %v16637_v35  ;;  %7294 = vperm.xlu0 %12318, %v16215_v0  }
 0x418   :  { %7346 = vperm.xlu1 %12319, %v16500_v4  }
 0x419   :  { %v16641_v55 = vpop.permute.xlu0 %6990 }
 0x41a   :  { %20331 = vst [vmem:[#allocation111_spill] sm:$0xff] %v16641_v55  ;;  %v16643_v10 = vpop.permute.xlu1 %7065 }
 0x41b   :  { %20332 = vst [vmem:[#allocation85_spill] sm:$0xff] %v16643_v10  ;;  %7302 = vperm.xlu0 %12318, %v16238_v25  }
 0x41c   :  { %7354 = vperm.xlu1 %12319, %v16347_v8  }
 0x41d   :  { %v16647_v30 = vpop.permute.xlu0 %7000 }
 0x41e   :  { %20333 = vst [vmem:[#allocation121_spill] sm:$0xff] %v16647_v30 }
 0x41f   :  { %7310 = vperm.xlu0 %12318, %v16273_v19   ;;  %v16650_v28 = vpop.permute.xlu1 %7110 }
 0x420   :  { %20334 = vst [vmem:[#allocation120_spill] sm:$0xff] %v16650_v28  ;;  %12320 = vset.pattern.permute.xlu1 %v12737_v18 }
 0x421   :  { %v16652_v35 = vpop.permute.xlu0 %7010  ;;  %7431 = vperm.xlu1 %12320, %v20270_v43  }
 0x422   :  { %20335 = vst [vmem:[#allocation94_spill] sm:$0xff] %v16652_v35 }
 0x423   :  { %7318 = vperm.xlu0 %12318, %v16297_v22   ;;  %v16656_v55 = vpop.permute.xlu1 %7114 }
 0x424   :  { %20336 = vst [vmem:[#allocation15_spill] sm:$0xff] %v16656_v55 }
 0x425   :  { %v16658_v10 = vpop.permute.xlu0 %7020  ;;  %7439 = vperm.xlu1 %12320, %v20244_v13  }
 0x426   :  { %20337 = vst [vmem:[#allocation127_spill] sm:$0xff] %v16658_v10 }
 0x427   :  { %7326 = vperm.xlu0 %12318, %v16301_v31   ;;  %v16662_v30 = vpop.permute.xlu1 %7122 }
 0x428   :  { %20338 = vst [vmem:[#allocation126_spill] sm:$0xff] %v16662_v30 }
 0x429   :  { %v16664_v8 = vpop.permute.xlu0 %7030  ;;  %7443 = vperm.xlu1 %12320, %v20273_v48  }
 0x42a   :  { %20339 = vst [vmem:[#allocation104_spill] sm:$0xff] %v16664_v8 }
 0x42b   :  { %7334 = vperm.xlu0 %12318, %v16359_v37   ;;  %v16668_v35 = vpop.permute.xlu1 %7130 }
 0x42c   :  { %20340 = vst [vmem:[#allocation114_spill] sm:$0xff] %v16668_v35 }
 0x42d   :  { %v16670_v28 = vpop.permute.xlu0 %7040  ;;  %7451 = vperm.xlu1 %12320, %v20277_v6  }
 0x42e   :  { %20341 = vst [vmem:[#allocation16_spill] sm:$0xff] %v16670_v28 }
 0x42f   :  { %7342 = vperm.xlu0 %12318, %v16384_v58   ;;  %v16674_v10 = vpop.permute.xlu1 %7138 }
 0x430   :  { %20342 = vst [vmem:[#allocation17_spill] sm:$0xff] %v16674_v10 }
 0x431   :  { %v16676_v55 = vpop.permute.xlu0 %7050  ;;  %7459 = vperm.xlu1 %12320, %v20280_v60  }
 0x432   :  { %20343 = vst [vmem:[#allocation113_spill] sm:$0xff] %v16676_v55 }
 0x433   :  { %7350 = vperm.xlu0 %12318, %v16403_v24   ;;  %v16680_v8 = vpop.permute.xlu1 %7146 }
 0x434   :  { %20344 = vst [vmem:[#allocation134_spill] sm:$0xff] %v16680_v8 }
 0x435   :  { %v16682_v30 = vpop.permute.xlu0 %7060  ;;  %7467 = vperm.xlu1 %12320, %v20283_v26  }
 0x436   :  { %20345 = vst [vmem:[#allocation135_spill] sm:$0xff] %v16682_v30 }
 0x437   :  { %7358 = vperm.xlu0 %12318, %v16323_v12   ;;  %v16686_v28 = vpop.permute.xlu1 %7154 }
 0x438   :  { %20346 = vst [vmem:[#allocation136_spill] sm:$0xff] %v16686_v28 }
 0x439   :  { %7475 = vperm.xlu1 %12320, %v20287_v46  }
 0x43a   :  { %v16689_v35 = vpop.permute.xlu0 %7106 }
 0x43b   :  { %20347 = vst [vmem:[#allocation137_spill] sm:$0xff] %v16689_v35  ;;  %12321 = vset.pattern.permute.xlu0 %v12737_v18  ;;  %v16691_v55 = vpop.permute.xlu1 %7162 }
 0x43c   :  { %20348 = vst [vmem:[#allocation138_spill] sm:$0xff] %v16691_v55  ;;  %7435 = vperm.xlu0 %12321, %v20235_v11  }
 0x43d   :  { %7483 = vperm.xlu1 %12320, %v20290_v21  }
 0x43e   :  { %v16695_v8 = vpop.permute.xlu0 %7118 }
 0x43f   :  { %20349 = vst [vmem:[#allocation139_spill] sm:$0xff] %v16695_v8  ;;  %v16697_v30 = vpop.permute.xlu1 %7170 }
 0x440   :  { %20350 = vst [vmem:[#allocation140_spill] sm:$0xff] %v16697_v30  ;;  %7447 = vperm.xlu0 %12321, %v20254_v63  }
 0x441   :  { %7491 = vperm.xlu1 %12320, %v20293_v38  }
 0x442   :  { %v16701_v28 = vpop.permute.xlu0 %7126 }
 0x443   :  { %20351 = vst [vmem:[#allocation141_spill] sm:$0xff] %v16701_v28  ;;  %v16703_v10 = vpop.permute.xlu1 %7178 }
 0x444   :  { %20352 = vst [vmem:[#allocation142_spill] sm:$0xff] %v16703_v10  ;;  %7455 = vperm.xlu0 %12321, %v20259_v52  }
 0x445   :  { %7499 = vperm.xlu1 %12320, %v20296_v23  }
 0x446   :  { %v16707_v18 = vpop.permute.xlu0 %7134 }
 0x447   :  { %20353 = vst [vmem:[#allocation143_spill] sm:$0xff] %v16707_v18  ;;  %v16709_v55 = vpop.permute.xlu1 %7186 }
 0x448   :  { %20354 = vst [vmem:[#allocation144_spill] sm:$0xff] %v16709_v55  ;;  %7463 = vperm.xlu0 %12321, %v20263_v47  }
 0x449   :  { %7507 = vperm.xlu1 %12320, %v20299_v5  }
 0x44a   :  { %v16713_v30 = vpop.permute.xlu0 %7142 }
 0x44b   :  { %20355 = vst [vmem:[#allocation145_spill] sm:$0xff] %v16713_v30  ;;  %v16715_v8 = vpop.permute.xlu1 %7194 }
 0x44c   :  { %20356 = vst [vmem:[#allocation146_spill] sm:$0xff] %v16715_v8  ;;  %7471 = vperm.xlu0 %12321, %v20266_v41  }
 0x44d   :  { %7515 = vperm.xlu1 %12320, %v20301_v3  }
 0x44e   :  { %v16719_v10 = vpop.permute.xlu0 %7150 }
 0x44f   :  { %20357 = vst [vmem:[#allocation147_spill] sm:$0xff] %v16719_v10  ;;  %v16721_v28 = vpop.permute.xlu1 %7202 }
 0x450   :  { %20358 = vst [vmem:[#allocation148_spill] sm:$0xff] %v16721_v28  ;;  %7479 = vperm.xlu0 %12321, %v20268_v34  }
 0x451   :  { %7523 = vperm.xlu1 %12320, %v20304_v33  }
 0x452   :  { %v16725_v55 = vpop.permute.xlu0 %7158 }
 0x453   :  { %20359 = vst [vmem:[#allocation149_spill] sm:$0xff] %v16725_v55  ;;  %v16727_v18 = vpop.permute.xlu1 %7210 }
 0x454   :  { %20360 = vst [vmem:[#allocation150_spill] sm:$0xff] %v16727_v18  ;;  %7487 = vperm.xlu0 %12321, %v20271_v54  }
 0x455   :  { %7531 = vperm.xlu1 %12320, %v20307_v49  }
 0x456   :  { %v16731_v8 = vpop.permute.xlu0 %7166 }
 0x457   :  { %20361 = vst [vmem:[#allocation151_spill] sm:$0xff] %v16731_v8  ;;  %v16733_v30 = vpop.permute.xlu1 %7218 }
 0x458   :  { %20362 = vst [vmem:[#allocation152_spill] sm:$0xff] %v16733_v30  ;;  %7495 = vperm.xlu0 %12321, %v20275_v57  }
 0x459   :  { %7539 = vperm.xlu1 %12320, %v20309_v29  }
 0x45a   :  { %v16737_v28 = vpop.permute.xlu0 %7174 }
 0x45b   :  { %20363 = vst [vmem:[#allocation153_spill] sm:$0xff] %v16737_v28  ;;  %v16739_v10 = vpop.permute.xlu1 %7226 }
 0x45c   :  { %20364 = vst [vmem:[#allocation154_spill] sm:$0xff] %v16739_v10  ;;  %7503 = vperm.xlu0 %12321, %v20278_v32  }
 0x45d   :  { %7547 = vperm.xlu1 %12320, %v20312_v16  }
 0x45e   :  { %v16743_v18 = vpop.permute.xlu0 %7182 }
 0x45f   :  { %20365 = vst [vmem:[#allocation155_spill] sm:$0xff] %v16743_v18  ;;  %v16745_v55 = vpop.permute.xlu1 %7234 }
 0x460   :  { %20366 = vst [vmem:[#allocation156_spill] sm:$0xff] %v16745_v55  ;;  %7511 = vperm.xlu0 %12321, %v20281_v20   ;;  %v20373_v55 = vld [vmem:[#allocation128_spill] sm:$0xff] }
 0x461   :  { %7555 = vperm.xlu1 %12320, %v16016_v15  }
 0x462   :  { %v16749_v30 = vpop.permute.xlu0 %7190 }
 0x463   :  { %20367 = vst [vmem:[#allocation157_spill] sm:$0xff] %v16749_v30  ;;  %v16751_v8 = vpop.permute.xlu1 %7242 }
 0x464   :  { %20368 = vst [vmem:[#allocation158_spill] sm:$0xff] %v16751_v8  ;;  %7519 = vperm.xlu0 %12321, %v20285_v44  }
 0x465   :  { %7563 = vperm.xlu1 %12320, %v16033_v27   ;;  %v20376_v27 = vld [vmem:[#allocation130_spill] sm:$0xff] }
 0x466   :  { %v16755_v10 = vpop.permute.xlu0 %7198 }
 0x467   :  { %20369 = vst [vmem:[#allocation159_spill] sm:$0xff] %v16755_v10  ;;  %v16757_v28 = vpop.permute.xlu1 %7250 }
 0x468   :  { %20370 = vst [vmem:[#allocation160_spill] sm:$0xff] %v16757_v28  ;;  %7527 = vperm.xlu0 %12321, %v20288_v50  }
 0x469   :  { %7571 = vperm.xlu1 %12320, %v16061_v53   ;;  %v20379_v53 = vld [vmem:[#allocation36_spill] sm:$0xff] }
 0x46a   :  { %v16761_v18 = vpop.permute.xlu0 %7206 }
 0x46b   :  { %20371 = vst [vmem:[#allocation161_spill] sm:$0xff] %v16761_v18  ;;  %v16763_v35 = vpop.permute.xlu1 %7258 }
 0x46c   :  { %20372 = vst [vmem:[#allocation162_spill] sm:$0xff] %v16763_v35  ;;  %7535 = vperm.xlu0 %12321, %v20373_v55  }
 0x46d   :  { %7579 = vperm.xlu1 %12320, %v16091_v17   ;;  %v20382_v17 = vld [vmem:[#allocation42_spill] sm:$0xff] }
 0x46e   :  { %v16767_v30 = vpop.permute.xlu0 %7214 }
 0x46f   :  { %20374 = vst [vmem:[#allocation163_spill] sm:$0xff] %v16767_v30  ;;  %v16769_v8 = vpop.permute.xlu1 %7266 }
 0x470   :  { %20375 = vst [vmem:[#allocation164_spill] sm:$0xff] %v16769_v8  ;;  %7543 = vperm.xlu0 %12321, %v20376_v27  }
 0x471   :  { %7587 = vperm.xlu1 %12320, %v16108_v40   ;;  %v20385_v40 = vld [vmem:[#allocation13_spill] sm:$0xff] }
 0x472   :  { %v16773_v10 = vpop.permute.xlu0 %7222 }
 0x473   :  { %20377 = vst [vmem:[#allocation165_spill] sm:$0xff] %v16773_v10  ;;  %v16775_v28 = vpop.permute.xlu1 %7274 }
 0x474   :  { %20378 = vst [vmem:[#allocation166_spill] sm:$0xff] %v16775_v28  ;;  %7551 = vperm.xlu0 %12321, %v20379_v53  }
 0x475   :  { %7595 = vperm.xlu1 %12320, %v16133_v39  }
 0x476   :  { %v16779_v18 = vpop.permute.xlu0 %7230 }
 0x477   :  { %20380 = vst [vmem:[#allocation167_spill] sm:$0xff] %v16779_v18  ;;  %v16781_v35 = vpop.permute.xlu1 %7282 }
 0x478   :  { %20381 = vst [vmem:[#allocation168_spill] sm:$0xff] %v16781_v35  ;;  %7559 = vperm.xlu0 %12321, %v20382_v17  }
 0x479   :  { %7603 = vperm.xlu1 %12320, %v16158_v61   ;;  %v20390_v61 = vld [vmem:[#allocation18_spill] sm:$0xff] }
 0x47a   :  { %v16785_v30 = vpop.permute.xlu0 %7238 }
 0x47b   :  { %20383 = vst [vmem:[#allocation169_spill] sm:$0xff] %v16785_v30  ;;  %v16787_v8 = vpop.permute.xlu1 %7290 }
 0x47c   :  { %20384 = vst [vmem:[#allocation170_spill] sm:$0xff] %v16787_v8  ;;  %7567 = vperm.xlu0 %12321, %v20385_v40  }
 0x47d   :  { %7611 = vperm.xlu1 %12320, %v16183_v42  }
 0x47e   :  { %v16791_v10 = vpop.permute.xlu0 %7246 }
 0x47f   :  { %20386 = vst [vmem:[#allocation171_spill] sm:$0xff] %v16791_v10  ;;  %v16793_v28 = vpop.permute.xlu1 %7298 }
 0x480   :  { %20387 = vst [vmem:[#allocation172_spill] sm:$0xff] %v16793_v28  ;;  %7575 = vperm.xlu0 %12321, %v16220_v9  }
 0x481   :  { %7619 = vperm.xlu1 %12320, %v16215_v0  }
 0x482   :  { %v16797_v18 = vpop.permute.xlu0 %7254 }
 0x483   :  { %20388 = vst [vmem:[#allocation173_spill] sm:$0xff] %v16797_v18  ;;  %v16799_v35 = vpop.permute.xlu1 %7306 }
 0x484   :  { %20389 = vst [vmem:[#allocation174_spill] sm:$0xff] %v16799_v35  ;;  %7583 = vperm.xlu0 %12321, %v20390_v61  }
 0x485   :  { %7627 = vperm.xlu1 %12320, %v16238_v25  }
 0x486   :  { %v16803_v8 = vpop.permute.xlu0 %7262 }
 0x487   :  { %20391 = vst [vmem:[#allocation175_spill] sm:$0xff] %v16803_v8  ;;  %v16805_v30 = vpop.permute.xlu1 %7314 }
 0x488   :  { %20392 = vst [vmem:[#allocation176_spill] sm:$0xff] %v16805_v30  ;;  %7591 = vperm.xlu0 %12321, %v16279_v36  }
 0x489   :  { %7635 = vperm.xlu1 %12320, %v16273_v19  }
 0x48a   :  { %v16809_v28 = vpop.permute.xlu0 %7270 }
 0x48b   :  { %20393 = vst [vmem:[#allocation177_spill] sm:$0xff] %v16809_v28  ;;  %v16811_v10 = vpop.permute.xlu1 %7322 }
 0x48c   :  { %20394 = vst [vmem:[#allocation178_spill] sm:$0xff] %v16811_v10  ;;  %7599 = vperm.xlu0 %12321, %v16342_v56  }
 0x48d   :  { %7643 = vperm.xlu1 %12320, %v16297_v22  }
 0x48e   :  { %v16815_v35 = vpop.permute.xlu0 %7278 }
 0x48f   :  { %20395 = vst [vmem:[#allocation179_spill] sm:$0xff] %v16815_v35  ;;  %v16817_v18 = vpop.permute.xlu1 %7330 }
 0x490   :  { %20396 = vst [vmem:[#allocation180_spill] sm:$0xff] %v16817_v18  ;;  %7607 = vperm.xlu0 %12321, %v16379_v51  }
 0x491   :  { %7651 = vperm.xlu1 %12320, %v16301_v31  }
 0x492   :  { %v16821_v30 = vpop.permute.xlu0 %7286 }
 0x493   :  { %20397 = vst [vmem:[#allocation181_spill] sm:$0xff] %v16821_v30  ;;  %v16823_v8 = vpop.permute.xlu1 %7338 }
 0x494   :  { %20398 = vst [vmem:[#allocation182_spill] sm:$0xff] %v16823_v8  ;;  %7615 = vperm.xlu0 %12321, %v16398_v14  }
 0x495   :  { %7659 = vperm.xlu1 %12320, %v16359_v37  }
 0x496   :  { %v16827_v10 = vpop.permute.xlu0 %7294 }
 0x497   :  { %20399 = vst [vmem:[#allocation183_spill] sm:$0xff] %v16827_v10  ;;  %v16829_v28 = vpop.permute.xlu1 %7346 }
 0x498   :  { %20400 = vst [vmem:[#allocation184_spill] sm:$0xff] %v16829_v28  ;;  %7623 = vperm.xlu0 %12321, %v16415_v2  }
 0x499   :  { %7667 = vperm.xlu1 %12320, %v16384_v58  }
 0x49a   :  { %v16833_v18 = vpop.permute.xlu0 %7302 }
 0x49b   :  { %20401 = vst [vmem:[#allocation185_spill] sm:$0xff] %v16833_v18  ;;  %v16835_v35 = vpop.permute.xlu1 %7354  ;;  %v12738_v18 = vmov 3  }
 0x49c   :  { %20402 = vst [vmem:[#allocation186_spill] sm:$0xff] %v16835_v35  ;;  %7631 = vperm.xlu0 %12321, %v16430_v7  }
 0x49d   :  { %7675 = vperm.xlu1 %12320, %v16403_v24  }
 0x49e   :  { %v16839_v8 = vpop.permute.xlu0 %7310 }
 0x49f   :  { %20403 = vst [vmem:[#allocation187_spill] sm:$0xff] %v16839_v8 }
 0x4a0   :  { %7639 = vperm.xlu0 %12321, %v16447_v62   ;;  %v16842_v30 = vpop.permute.xlu1 %7431 }
 0x4a1   :  { %20404 = vst [vmem:[#allocation188_spill] sm:$0xff] %v16842_v30  ;;  %7683 = vperm.xlu1 %12320, %v16323_v12  }
 0x4a2   :  { %v16845_v28 = vpop.permute.xlu0 %7318 }
 0x4a3   :  { %20405 = vst [vmem:[#allocation189_spill] sm:$0xff] %v16845_v28 }
 0x4a4   :  { %7647 = vperm.xlu0 %12321, %v16462_v1   ;;  %v16848_v10 = vpop.permute.xlu1 %7439 }
 0x4a5   :  { %20406 = vst [vmem:[#allocation190_spill] sm:$0xff] %v16848_v10  ;;  %12323 = vset.pattern.permute.xlu1 %v12738_v18 }
 0x4a6   :  { %v16850_v35 = vpop.permute.xlu0 %7326  ;;  %7759 = vperm.xlu1 %12323, %v20235_v11  }
 0x4a7   :  { %20407 = vst [vmem:[#allocation191_spill] sm:$0xff] %v16850_v35 }
 0x4a8   :  { %7655 = vperm.xlu0 %12321, %v16476_v59   ;;  %v16854_v8 = vpop.permute.xlu1 %7443 }
 0x4a9   :  { %20408 = vst [vmem:[#allocation192_spill] sm:$0xff] %v16854_v8  ;;  %v20414_v8 = vld [vmem:[#allocation21_spill] sm:$0xff] }
 0x4aa   :  { %v16856_v24 = vpop.permute.xlu0 %7334  ;;  %7763 = vperm.xlu1 %12323, %v20244_v13  }
 0x4ab   :  { %20409 = vst [vmem:[#allocation193_spill] sm:$0xff] %v16856_v24 }
 0x4ac   :  { %7663 = vperm.xlu0 %12321, %v16492_v45   ;;  %v16860_v28 = vpop.permute.xlu1 %7451 }
 0x4ad   :  { %20410 = vst [vmem:[#allocation194_spill] sm:$0xff] %v16860_v28 }
 0x4ae   :  { %v16862_v30 = vpop.permute.xlu0 %7342  ;;  %7771 = vperm.xlu1 %12323, %v20254_v63  }
 0x4af   :  { %20411 = vst [vmem:[#allocation195_spill] sm:$0xff] %v16862_v30 }
 0x4b0   :  { %7671 = vperm.xlu0 %12321, %v16500_v4   ;;  %v16866_v35 = vpop.permute.xlu1 %7459 }
 0x4b1   :  { %20412 = vst [vmem:[#allocation196_spill] sm:$0xff] %v16866_v35 }
 0x4b2   :  { %v16868_v10 = vpop.permute.xlu0 %7350  ;;  %7779 = vperm.xlu1 %12323, %v20259_v52  }
 0x4b3   :  { %20413 = vst [vmem:[#allocation197_spill] sm:$0xff] %v16868_v10 }
 0x4b4   :  { %7679 = vperm.xlu0 %12321, %v20414_v8   ;;  %v16872_v24 = vpop.permute.xlu1 %7467 }
 0x4b5   :  { %20415 = vst [vmem:[#allocation198_spill] sm:$0xff] %v16872_v24 }
 0x4b6   :  { %v16874_v11 = vpop.permute.xlu0 %7358  ;;  %7787 = vperm.xlu1 %12323, %v20263_v47  }
 0x4b7   :  { %20416 = vst [vmem:[#allocation199_spill] sm:$0xff] %v16874_v11 }
 0x4b8   :  { %12322 = vset.pattern.permute.xlu0 %v12738_v18  ;;  %v16877_v30 = vpop.permute.xlu1 %7475 }
 0x4b9   :  { %20417 = vst [vmem:[#allocation200_spill] sm:$0xff] %v16877_v30  ;;  %7755 = vperm.xlu0 %12322, %v20270_v43  }
 0x4ba   :  { %7795 = vperm.xlu1 %12323, %v20266_v41  }
 0x4bb   :  { %v16881_v35 = vpop.permute.xlu0 %7435 }
 0x4bc   :  { %v16883_v10 = vpop.permute.xlu1 %7483 }
 0x4bd   :  { %20418 = vst [vmem:[#allocation201_spill] sm:$0xff] %v16883_v10  ;;  %7767 = vperm.xlu0 %12322, %v20273_v48  }
 0x4be   :  { %7803 = vperm.xlu1 %12323, %v20268_v34  }
 0x4bf   :  { %v16887_v24 = vpop.permute.xlu0 %7447 }
 0x4c0   :  { %20419 = vst [vmem:[#allocation202_spill] sm:$0xff] %v16887_v24  ;;  %v16889_v11 = vpop.permute.xlu1 %7491 }
 0x4c1   :  { %20420 = vst [vmem:[#allocation203_spill] sm:$0xff] %v16889_v11  ;;  %7775 = vperm.xlu0 %12322, %v20277_v6  }
 0x4c2   :  { %7811 = vperm.xlu1 %12323, %v20271_v54  }
 0x4c3   :  { %v16893_v18 = vpop.permute.xlu0 %7455 }
 0x4c4   :  { %20421 = vst [vmem:[#allocation204_spill] sm:$0xff] %v16893_v18  ;;  %v16895_v30 = vpop.permute.xlu1 %7499 }
 0x4c5   :  { %20422 = vst [vmem:[#allocation205_spill] sm:$0xff] %v16895_v30  ;;  %7783 = vperm.xlu0 %12322, %v20280_v60  }
 0x4c6   :  { %7819 = vperm.xlu1 %12323, %v20275_v57  }
 0x4c7   :  { %v16899_v10 = vpop.permute.xlu0 %7463 }
 0x4c8   :  { %20423 = vst [vmem:[#allocation206_spill] sm:$0xff] %v16899_v10  ;;  %v16901_v28 = vpop.permute.xlu1 %7507 }
 0x4c9   :  { %20424 = vst [vmem:[#allocation207_spill] sm:$0xff] %v16901_v28  ;;  %7791 = vperm.xlu0 %12322, %v20283_v26  }
 0x4ca   :  { %7827 = vperm.xlu1 %12323, %v20278_v32  }
 0x4cb   :  { %v16905_v11 = vpop.permute.xlu0 %7471 }
 0x4cc   :  { %20425 = vst [vmem:[#allocation208_spill] sm:$0xff] %v16905_v11  ;;  %v16907_v24 = vpop.permute.xlu1 %7515 }
 0x4cd   :  { %20426 = vst [vmem:[#allocation209_spill] sm:$0xff] %v16907_v24  ;;  %7799 = vperm.xlu0 %12322, %v20287_v46  }
 0x4ce   :  { %7835 = vperm.xlu1 %12323, %v20281_v20  }
 0x4cf   :  { %v16911_v30 = vpop.permute.xlu0 %7479 }
 0x4d0   :  { %20427 = vst [vmem:[#allocation210_spill] sm:$0xff] %v16911_v30  ;;  %v16913_v18 = vpop.permute.xlu1 %7523 }
 0x4d1   :  { %20428 = vst [vmem:[#allocation211_spill] sm:$0xff] %v16913_v18  ;;  %7807 = vperm.xlu0 %12322, %v20290_v21  }
 0x4d2   :  { %7843 = vperm.xlu1 %12323, %v20285_v44  }
 0x4d3   :  { %v16917_v28 = vpop.permute.xlu0 %7487 }
 0x4d4   :  { %20429 = vst [vmem:[#allocation212_spill] sm:$0xff] %v16917_v28  ;;  %v16919_v10 = vpop.permute.xlu1 %7531 }
 0x4d5   :  { %20430 = vst [vmem:[#allocation213_spill] sm:$0xff] %v16919_v10  ;;  %7815 = vperm.xlu0 %12322, %v20293_v38  }
 0x4d6   :  { %7851 = vperm.xlu1 %12323, %v20288_v50  }
 0x4d7   :  { %v16923_v24 = vpop.permute.xlu0 %7495 }
 0x4d8   :  { %20431 = vst [vmem:[#allocation214_spill] sm:$0xff] %v16923_v24  ;;  %v16925_v11 = vpop.permute.xlu1 %7539 }
 0x4d9   :  { %20432 = vst [vmem:[#allocation215_spill] sm:$0xff] %v16925_v11  ;;  %7823 = vperm.xlu0 %12322, %v20296_v23  }
 0x4da   :  { %7859 = vperm.xlu1 %12323, %v20373_v55  }
 0x4db   :  { %v16929_v18 = vpop.permute.xlu0 %7503 }
 0x4dc   :  { %20433 = vst [vmem:[#allocation216_spill] sm:$0xff] %v16929_v18  ;;  %v16931_v30 = vpop.permute.xlu1 %7547 }
 0x4dd   :  { %20434 = vst [vmem:[#allocation217_spill] sm:$0xff] %v16931_v30  ;;  %7831 = vperm.xlu0 %12322, %v20299_v5  }
 0x4de   :  { %7867 = vperm.xlu1 %12323, %v20376_v27  }
 0x4df   :  { %v16935_v10 = vpop.permute.xlu0 %7511 }
 0x4e0   :  { %20435 = vst [vmem:[#allocation218_spill] sm:$0xff] %v16935_v10  ;;  %v16937_v28 = vpop.permute.xlu1 %7555 }
 0x4e1   :  { %20436 = vst [vmem:[#allocation219_spill] sm:$0xff] %v16937_v28  ;;  %7839 = vperm.xlu0 %12322, %v20301_v3  }
 0x4e2   :  { %7875 = vperm.xlu1 %12323, %v20379_v53  }
 0x4e3   :  { %v16941_v11 = vpop.permute.xlu0 %7519 }
 0x4e4   :  { %20437 = vst [vmem:[#allocation220_spill] sm:$0xff] %v16941_v11  ;;  %v16943_v24 = vpop.permute.xlu1 %7563 }
 0x4e5   :  { %7847 = vperm.xlu0 %12322, %v20304_v33  }
 0x4e6   :  { %7883 = vperm.xlu1 %12323, %v20382_v17  }
 0x4e7   :  { %v16947_v30 = vpop.permute.xlu0 %7527 }
 0x4e8   :  { %20438 = vst [vmem:[#allocation221_spill] sm:$0xff] %v16947_v30  ;;  %v16949_v18 = vpop.permute.xlu1 %7571 }
 0x4e9   :  { %7855 = vperm.xlu0 %12322, %v20307_v49  }
 0x4ea   :  { %7891 = vperm.xlu1 %12323, %v20385_v40  }
 0x4eb   :  { %v16953_v28 = vpop.permute.xlu0 %7535 }
 0x4ec   :  { %20439 = vst [vmem:[#allocation222_spill] sm:$0xff] %v16953_v28  ;;  %v16955_v10 = vpop.permute.xlu1 %7579 }
 0x4ed   :  { %20440 = vst [vmem:[#allocation223_spill] sm:$0xff] %v16955_v10  ;;  %7863 = vperm.xlu0 %12322, %v20309_v29   ;;  %v20453_v10 = vld [vmem:[#allocation27_spill] sm:$0xff] }
 0x4ee   :  { %7899 = vperm.xlu1 %12323, %v16220_v9   ;;  %v20446_v9 = vld [vmem:[#allocation132_spill] sm:$0xff] }
 0x4ef   :  { %v16959_v11 = vpop.permute.xlu0 %7543 }
 0x4f0   :  { %20441 = vst [vmem:[#allocation224_spill] sm:$0xff] %v16959_v11  ;;  %v16961_v53 = vpop.permute.xlu1 %7587 }
 0x4f1   :  { %20442 = vst [vmem:[#allocation225_spill] sm:$0xff] %v16961_v53  ;;  %7871 = vperm.xlu0 %12322, %v20312_v16  }
 0x4f2   :  { %7907 = vperm.xlu1 %12323, %v20390_v61   ;;  %v20448_v61 = vld [vmem:[#allocation133_spill] sm:$0xff] }
 0x4f3   :  { %v16965_v30 = vpop.permute.xlu0 %7551 }
 0x4f4   :  { %20443 = vst [vmem:[#allocation226_spill] sm:$0xff] %v16965_v30  ;;  %v16967_v17 = vpop.permute.xlu1 %7595 }
 0x4f5   :  { %20444 = vst [vmem:[#allocation227_spill] sm:$0xff] %v16967_v17  ;;  %7879 = vperm.xlu0 %12322, %v16016_v15  }
 0x4f6   :  { %7915 = vperm.xlu1 %12323, %v16279_v36   ;;  %v20451_v36 = vld [vmem:[#allocation28_spill] sm:$0xff] }
 0x4f7   :  { %v16971_v28 = vpop.permute.xlu0 %7559 }
 0x4f8   :  { %v16973_v40 = vpop.permute.xlu1 %7603 }
 0x4f9   :  { %20445 = vst [vmem:[#allocation228_spill] sm:$0xff] %v16973_v40  ;;  %7887 = vperm.xlu0 %12322, %v20446_v9   ;;  %v12389_v40 = vld [vmem:[%s19408_s1 + $0x4] ss:$8 sps:$4 sm:$0xff]  }
 0x4fa   :  { %7923 = vperm.xlu1 %12323, %v16342_v56   ;;  %v12391_v56 = vld [vmem:[%s19408_s1] ss:$8 sps:$4 sm:$0xff]   ;;  %9415 = vmatprep.subr.bf16.mxu0 %v12389_v40 }
 0x4fb   :  { %v16977_v11 = vpop.permute.xlu0 %7567  ;;  %9416 = vmatpush1.bf16.msra.mxu0 %v12391_v56 }
 0x4fc   :  { %v16979_v53 = vpop.permute.xlu1 %7611 }
 0x4fd   :  { %20447 = vst [vmem:[#allocation132_spill] sm:$0xff] %v16979_v53  ;;  %7895 = vperm.xlu0 %12322, %v20448_v61  }
 0x4fe   :  { %7931 = vperm.xlu1 %12323, %v16379_v51  }
 0x4ff   :  { %v16983_v30 = vpop.permute.xlu0 %7575 }
 0x500   :  { %20449 = vst [vmem:[#allocation133_spill] sm:$0xff] %v16983_v30  ;;  %v16985_v17 = vpop.permute.xlu1 %7619 }
 0x501   :  { %20450 = vst [vmem:[#allocation229_spill] sm:$0xff] %v16985_v17  ;;  %7903 = vperm.xlu0 %12322, %v20451_v36  }
 0x502   :  { %7939 = vperm.xlu1 %12323, %v16398_v14   ;;  %v20456_v14 = vld [vmem:[#allocation37_spill] sm:$0xff] }
 0x503   :  { %v16995_v53 = vpop.permute.xlu0 %7583 }
 0x504   :  { %v16997_v51 = vpop.permute.xlu1 %7627 }
 0x505   :  { %20452 = vst [vmem:[#allocation28_spill] sm:$0xff] %v16997_v51  ;;  %7911 = vperm.xlu0 %12322, %v20453_v10  }
 0x506   :  { %7947 = vperm.xlu1 %12323, %v16415_v2  }
 0x507   :  { %v17001_v17 = vpop.permute.xlu0 %7591 }
 0x508   :  { %v17003_v27 = vpop.permute.xlu1 %7635 }
 0x509   :  { %20454 = vst [vmem:[#allocation27_spill] sm:$0xff] %v17003_v27  ;;  %7919 = vperm.xlu0 %12322, %v16133_v39  }
 0x50a   :  { %7955 = vperm.xlu1 %12323, %v16430_v7  }
 0x50b   :  { %v17007_v30 = vpop.permute.xlu0 %7599 }
 0x50c   :  { %v17009_v40 = vpop.permute.xlu1 %7643 }
 0x50d   :  { %20455 = vst [vmem:[#allocation230_spill] sm:$0xff] %v17009_v40  ;;  %7927 = vperm.xlu0 %12322, %v20456_v14  }
 0x50e   :  { %7963 = vperm.xlu1 %12323, %v16447_v62  }
 0x50f   :  { %v17013_v56 = vpop.permute.xlu0 %7607 }
 0x510   :  { %v17015_v51 = vpop.permute.xlu1 %7651 }
 0x511   :  { %20457 = vst [vmem:[#allocation37_spill] sm:$0xff] %v17015_v51  ;;  %7935 = vperm.xlu0 %12322, %v16183_v42  }
 0x512   :  { %7971 = vperm.xlu1 %12323, %v16462_v1  }
 0x513   :  { %v17019_v2 = vpop.permute.xlu0 %7615 }
 0x514   :  { %v17021_v27 = vpop.permute.xlu1 %7659 }
 0x515   :  { %20458 = vst [vmem:[#allocation231_spill] sm:$0xff] %v17021_v27  ;;  %7943 = vperm.xlu0 %12322, %v16215_v0  }
 0x516   :  { %7979 = vperm.xlu1 %12323, %v16476_v59  }
 0x517   :  { %v17025_v7 = vpop.permute.xlu0 %7623 }
 0x518   :  { %20459 = vst [vmem:[#allocation232_spill] sm:$0xff] %v17025_v7  ;;  %v17027_v40 = vpop.permute.xlu1 %7667  ;;  %v20499_v7 = vld [vmem:[#allocation78_spill] sm:$0xff] }
 0x519   :  { %20460 = vst [vmem:[#allocation233_spill] sm:$0xff] %v17027_v40  ;;  %7951 = vperm.xlu0 %12322, %v16238_v25   ;;  %v19780_v40 = vmov 4  }
 0x51a   :  { %7987 = vperm.xlu1 %12323, %v16492_v45  }
 0x51b   :  { %v17031_v62 = vpop.permute.xlu0 %7631 }
 0x51c   :  { %20461 = vst [vmem:[#allocation234_spill] sm:$0xff] %v17031_v62  ;;  %v17033_v51 = vpop.permute.xlu1 %7675 }
 0x51d   :  { %20462 = vst [vmem:[#allocation235_spill] sm:$0xff] %v17033_v51  ;;  %7959 = vperm.xlu0 %12322, %v16273_v19  }
 0x51e   :  { %7995 = vperm.xlu1 %12323, %v16500_v4  }
 0x51f   :  { %v17037_v1 = vpop.permute.xlu0 %7639 }
 0x520   :  { %20463 = vst [vmem:[#allocation236_spill] sm:$0xff] %v17037_v1  ;;  %v17039_v27 = vpop.permute.xlu1 %7683 }
 0x521   :  { %20464 = vst [vmem:[#allocation237_spill] sm:$0xff] %v17039_v27  ;;  %7967 = vperm.xlu0 %12322, %v16297_v22   ;;  %v20475_v22 = vld [vmem:[#allocation19_spill] sm:$0xff] }
 0x522   :  { %8003 = vperm.xlu1 %12323, %v20414_v8  }
 0x523   :  { %v17043_v59 = vpop.permute.xlu0 %7647 }
 0x524   :  { %20465 = vst [vmem:[#allocation238_spill] sm:$0xff] %v17043_v59 }
 0x525   :  { %7975 = vperm.xlu0 %12322, %v16301_v31   ;;  %v17046_v45 = vpop.permute.xlu1 %7759 }
 0x526   :  { %12324 = vset.pattern.permute.xlu1 %v19780_v40  ;;  %v20469_v40 = vld [vmem:[#allocation69_spill] sm:$0xff] }
 0x527   :  { %v17049_v51 = vpop.permute.xlu0 %7655  ;;  %8091 = vperm.xlu1 %12324, %v20270_v43  }
 0x528   :  { %20466 = vst [vmem:[#allocation239_spill] sm:$0xff] %v17049_v51 }
 0x529   :  { %7983 = vperm.xlu0 %12322, %v16359_v37   ;;  %v17053_v4 = vpop.permute.xlu1 %7763  ;;  %v19790_v37 = vmov 7  }
 0x52b   :  { %v17055_v27 = vpop.permute.xlu0 %7663  ;;  %8099 = vperm.xlu1 %12324, %v20244_v13  }
 0x52c   :  { %20467 = vst [vmem:[#allocation240_spill] sm:$0xff] %v17055_v27 }
 0x52d   :  { %7991 = vperm.xlu0 %12322, %v16384_v58   ;;  %v17059_v8 = vpop.permute.xlu1 %7771 }
 0x52f   :  { %v17061_v59 = vpop.permute.xlu0 %7671  ;;  %8103 = vperm.xlu1 %12324, %v20273_v48  }
 0x530   :  { %20468 = vst [vmem:[#allocation241_spill] sm:$0xff] %v17061_v59 }
 0x531   :  { %7999 = vperm.xlu0 %12322, %v20469_v40   ;;  %v17065_v51 = vpop.permute.xlu1 %7779 }
 0x533   :  { %v17067_v1 = vpop.permute.xlu0 %7679  ;;  %8111 = vperm.xlu1 %12324, %v20277_v6  }
 0x534   :  { %20470 = vst [vmem:[#allocation242_spill] sm:$0xff] %v17067_v1 }
 0x535   :  { %8007 = vperm.xlu0 %12322, %v16323_v12   ;;  %v17071_v27 = vpop.permute.xlu1 %7787 }
 0x537   :  { %8119 = vperm.xlu1 %12324, %v20280_v60  }
 0x538   :  { %v17074_v58 = vpop.permute.xlu0 %7755 }
 0x539   :  { %12327 = vset.pattern.permute.xlu0 %v19790_v37  ;;  %v17077_v59 = vpop.permute.xlu1 %7795 }
 0x53a   :  { %9019 = vperm.xlu0 %12327, %v20270_v43  }
 0x53b   :  { %8127 = vperm.xlu1 %12324, %v20283_v26  }
 0x53c   :  { %v17081_v1 = vpop.permute.xlu0 %7767 }
 0x53d   :  { %v17083_v6 = vpop.permute.xlu1 %7803 }
 0x53e   :  { %9151 = vperm.xlu0 %12327, %v20446_v9  }
 0x53f   :  { %8135 = vperm.xlu1 %12324, %v20287_v46  }
 0x540   :  { %v17087_v60 = vpop.permute.xlu0 %7775 }
 0x541   :  { %v17089_v12 = vpop.permute.xlu1 %7811 }
 0x542   :  { %9031 = vperm.xlu0 %12327, %v20273_v48  }
 0x543   :  { %8143 = vperm.xlu1 %12324, %v20290_v21   ;;  %v20474_v21 = vmov 4  }
 0x544   :  { %v17093_v37 = vpop.permute.xlu0 %7783 }
 0x545   :  { %v17095_v40 = vpop.permute.xlu1 %7819 }
 0x546   :  { %20471 = vst [vmem:[#allocation243_spill] sm:$0xff] %v17095_v40  ;;  %9035 = vperm.xlu0 %12327, %v20254_v63  }
 0x547   :  { %8151 = vperm.xlu1 %12324, %v20293_v38  }
 0x548   :  { %v17099_v26 = vpop.permute.xlu0 %7791 }
 0x549   :  { %v17101_v62 = vpop.permute.xlu1 %7827 }
 0x54a   :  { %20472 = vst [vmem:[#allocation244_spill] sm:$0xff] %v17101_v62  ;;  %9167 = vperm.xlu0 %12327, %v20451_v36  }
 0x54b   :  { %8159 = vperm.xlu1 %12324, %v20296_v23  }
 0x54c   :  { %v17105_v46 = vpop.permute.xlu0 %7799 }
 0x54d   :  { %v17107_v31 = vpop.permute.xlu1 %7835 }
 0x54e   :  { %20473 = vst [vmem:[#allocation245_spill] sm:$0xff] %v17107_v31  ;;  %12335 = vset.pattern.permute.xlu0 %v20474_v21 }
 0x54f   :  { %8095 = vperm.xlu0 %12335, %v20475_v22   ;;  %8167 = vperm.xlu1 %12324, %v20299_v5  }
 0x550   :  { %v17112_v40 = vpop.permute.xlu0 %7807 }
 0x551   :  { %v17114_v38 = vpop.permute.xlu1 %7843 }
 0x552   :  { %20476 = vst [vmem:[#allocation19_spill] sm:$0xff] %v17114_v38 }
 0x553   :  { %8107 = vperm.xlu0 %12335, %v20254_v63   ;;  %8175 = vperm.xlu1 %12324, %v20301_v3   ;;  %v6741_v3 = vlaneseq }
 0x554   :  { %v17118_v62 = vpop.permute.xlu0 %7815 }
 0x555   :  { %v17120_v23 = vpop.permute.xlu1 %7851 }
 0x556   :  { %20477 = vst [vmem:[#allocation246_spill] sm:$0xff] %v17120_v23 }
 0x557   :  { %8115 = vperm.xlu0 %12335, %v20259_v52   ;;  %8183 = vperm.xlu1 %12324, %v20304_v33  }
 0x558   :  { %v17124_v21 = vpop.permute.xlu0 %7823 }
 0x559   :  { %20478 = vst [vmem:[#allocation247_spill] sm:$0xff] %v17124_v21  ;;  %v17126_v31 = vpop.permute.xlu1 %7859 }
 0x55a   :  { %20479 = vst [vmem:[#allocation248_spill] sm:$0xff] %v17126_v31 }
 0x55b   :  { %8123 = vperm.xlu0 %12335, %v20263_v47   ;;  %8191 = vperm.xlu1 %12324, %v20307_v49   ;;  %v6742_v47 = vand.u32 127, %v6741_v3 }
 0x55c   :  { %v17130_v5 = vpop.permute.xlu0 %7831 }
 0x55d   :  { %20480 = vst [vmem:[#allocation249_spill] sm:$0xff] %v17130_v5  ;;  %v17132_v63 = vpop.permute.xlu1 %7867  ;;  %v7100_v23 = vshra.s32 %v6742_v47, 2  ;;  %v20493_v5 = vld [vmem:[#allocation120_spill] sm:$0xff] }
 0x55e   :  { %20481 = vst [vmem:[#allocation250_spill] sm:$0xff] %v17132_v63 }
 0x55f   :  { %8131 = vperm.xlu0 %12335, %v20266_v41   ;;  %8199 = vperm.xlu1 %12324, %v20309_v29   ;;  %v6743_v41 = vshra.s32 %v6742_v47, 3  ;;  %v7425_v29 = vshra.s32 %v6742_v47, 1 }
 0x560   :  { %v17136_v52 = vpop.permute.xlu0 %7839 }
 0x561   :  { %20482 = vst [vmem:[#allocation251_spill] sm:$0xff] %v17136_v52  ;;  %v17138_v33 = vpop.permute.xlu1 %7875  ;;  %v17148_v52 = vand.u32 1, %v7100_v23  ;;  %v17152_v3 = vand.u32 1, %v6743_v41  ;;  %v7750_v41 = vand.u32 1, %v6742_v47 }
 0x562   :  { %20483 = vst [vmem:[#allocation252_spill] sm:$0xff] %v17138_v33  ;;  %v20490_v33 = vld [vmem:[#allocation156_spill] sm:$0xff] }
 0x563   :  { %8139 = vperm.xlu0 %12335, %v20268_v34   ;;  %8207 = vperm.xlu1 %12324, %v20312_v16   ;;  %v17154_v16 = vand.u32 1, %v7425_v29  ;;  %vm7102_vm0 = vcmp.eq.s32.totalorder %v17148_v52, 1  ;;  %vm6745_vm3 = vcmp.eq.s32.totalorder %v17152_v3, 1  ;;  %v20489_v29 = vld [vmem:[#allocation33_spill] sm:$0xff]  ;;  %vm17189_vm4 = vcmp.eq.s32.totalorder %v7750_v41, 1 }
 0x564   :  { %v17142_v31 = vpop.permute.xlu0 %7847 }
 0x565   :  { %20484 = vst [vmem:[#allocation253_spill] sm:$0xff] %v17142_v31  ;;  %v7884_v49 = vpop.permute.xlu1 %7883  ;;  %vm7427_vm9 = vcmp.eq.s32.totalorder %v17154_v16, 1  ;;  %v20492_v31 = vld [vmem:[#allocation169_spill] sm:$0xff] }
 0x566   :  { %v7362_v21 = vsel %vm7102_vm0, %v20493_v5, %v20492_v31 }
 0x567   :  { %8147 = vperm.xlu0 %12335, %v20271_v54   ;;  %8215 = vperm.xlu1 %12324, %v16016_v15  }
 0x568   :  { %v17146_v63 = vpop.permute.xlu0 %7855 }
 0x569   :  { %20485 = vst [vmem:[#allocation254_spill] sm:$0xff] %v17146_v63  ;;  %v7892_v38 = vpop.permute.xlu1 %7891 }
 0x56b   :  { %8155 = vperm.xlu0 %12335, %v20275_v57   ;;  %8223 = vperm.xlu1 %12324, %v20446_v9   ;;  %v20488_v57 = vld [vmem:[#allocation87_spill] sm:$0xff] }
 0x56c   :  { %v17156_v34 = vpop.permute.xlu0 %7863  ;;  %v7068_v15 = vsel %vm6745_vm3, %v20489_v29, %v20488_v57 }
 0x56d   :  { %20486 = vst [vmem:[#allocation255_spill] sm:$0xff] %v17156_v34  ;;  %v17158_v54 = vpop.permute.xlu1 %7899  ;;  %v20491_v34 = vld [vmem:[#allocation137_spill] sm:$0xff] }
 0x56e   :  { %v7361_v63 = vsel %vm7102_vm0, %v20491_v34, %v20490_v33  ;;  %v20498_v34 = vld [vmem:[#allocation80_spill] sm:$0xff] }
 0x56f   :  { %8163 = vperm.xlu0 %12335, %v20278_v32   ;;  %8231 = vperm.xlu1 %12324, %v20448_v61   ;;  %v7393_v57 = vmul.f32 %v7361_v63, %v7068_v15  ;;  %v7069_v31 = vsel %vm6745_vm3, %v20499_v7, %v20498_v34  ;;  %v8010_v15 = vsel %vm17189_vm4, %v17074_v58, %v7884_v49  ;;  %v20500_v34 = vld [vmem:[#allocation158_spill] sm:$0xff] }
 0x570   :  { %v17165_v23 = vpop.permute.xlu0 %7871  ;;  %v7394_v63 = vmul.f32 %v7362_v21, %v7069_v31  ;;  %v20504_v31 = vld [vmem:[#allocation171_spill] sm:$0xff] }
 0x571   :  { %20487 = vst [vmem:[#allocation256_spill] sm:$0xff] %v17165_v23  ;;  %v17175_v32 = vpop.permute.xlu1 %7907  ;;  %v20494_v23 = vld [vmem:[#allocation188_spill] sm:$0xff] }
 0x572   :  { %v7686_v47 = vsel %vm7427_vm9, %v20494_v23, %v16971_v28  ;;  %v7687_v28 = vsel %vm7427_vm9, %v16881_v35, %v16943_v24  ;;  %v20502_v35 = vld [vmem:[#allocation106_spill] sm:$0xff] }
 0x573   :  { %8171 = vperm.xlu0 %12335, %v20281_v20   ;;  %8239 = vperm.xlu1 %12324, %v20451_v36   ;;  %v7718_v23 = vmul.f32 %v7686_v47, %v7393_v57  ;;  %v7719_v41 = vmul.f32 %v7687_v28, %v7394_v63  ;;  %v20503_v47 = vld [vmem:[#allocation24_spill] sm:$0xff]  ;;  %v20505_v28 = vld [vmem:[#allocation139_spill] sm:$0xff]  ;;  %v20506_v63 = vld [vmem:[#allocation190_spill] sm:$0xff] }
 0x574   :  { %v17187_v29 = vpop.permute.xlu0 %7879  ;;  %v7070_v57 = vsel %vm6745_vm3, %v20503_v47, %v20502_v35  ;;  %v20509_v35 = vld [vmem:[#allocation192_spill] sm:$0xff] }
 0x575   :  { %20495 = vst [vmem:[#allocation87_spill] sm:$0xff] %v17187_v29  ;;  %v17204_v5 = vpop.permute.xlu1 %7915  ;;  %v8042_v7 = vmul.f32 %v8010_v15, %v7718_v23  ;;  %v20501_v29 = vld [vmem:[#allocation15_spill] sm:$0xff]  ;;  %v7364_v15 = vsel %vm7102_vm0, %v20505_v28, %v20504_v31  ;;  %v7689_v47 = vsel %vm7427_vm9, %v20509_v35, %v16949_v18 }
 0x576   :  { %v7363_v24 = vsel %vm7102_vm0, %v20501_v29, %v20500_v34  ;;  %v7688_v29 = vsel %vm7427_vm9, %v20506_v63, %v16977_v11  ;;  %v20508_v34 = vld [vmem:[#allocation65_spill] sm:$0xff]  ;;  %v8012_v11 = vsel %vm17189_vm4, %v17053_v4, %v7892_v38  ;;  %v20512_v4 = vld [vmem:[#allocation43_spill] sm:$0xff] }
 0x577   :  { %8179 = vperm.xlu0 %12335, %v20285_v44   ;;  %8247 = vperm.xlu1 %12324, %v20453_v10   ;;  %v20511_v38 = vld [vmem:[#allocation81_spill] sm:$0xff] }
 0x578   :  { %v7888_v20 = vpop.permute.xlu0 %7887 }
 0x579   :  { %v8011_v49 = vsel %vm17189_vm4, %v17046_v45, %v7888_v20  ;;  %v17215_v58 = vpop.permute.xlu1 %7923  ;;  %v7395_v45 = vmul.f32 %v7363_v24, %v7070_v57 }
 0x57a   :  { %v8043_v21 = vmul.f32 %v8011_v49, %v7719_v41  ;;  %v20507_v41 = vld [vmem:[#allocation89_spill] sm:$0xff] }
 0x57b   :  { %8187 = vperm.xlu0 %12335, %v20288_v50   ;;  %8255 = vperm.xlu1 %12324, %v16133_v39   ;;  %v7071_v49 = vsel %vm6745_vm3, %v20508_v34, %v20507_v41  ;;  %v7720_v24 = vmul.f32 %v7688_v29, %v7395_v45  ;;  %v19818_v41 = vmov 5   ;;  %v20513_v29 = vld [vmem:[#allocation160_spill] sm:$0xff]  ;;  %v20514_v45 = vld [vmem:[#allocation126_spill] sm:$0xff]  ;;  %v20515_v34 = vld [vmem:[#allocation173_spill] sm:$0xff] }
 0x57c   :  { %v7896_v20 = vpop.permute.xlu0 %7895  ;;  %v8074_v23 = vpack.c.bf16 %v8043_v21, %v8042_v7  ;;  %v7396_v28 = vmul.f32 %v7364_v15, %v7071_v49  ;;  %v20510_v21 = vmov 0   ;;  %v7072_v15 = vsel %vm6745_vm3, %v20512_v4, %v20511_v38  ;;  %v20516_v49 = vld [vmem:[#allocation141_spill] sm:$0xff] }
 0x57d   :  { %v17242_v31 = vpop.permute.xlu1 %7931  ;;  %v8013_v7 = vsel %vm17189_vm4, %v17081_v1, %v7896_v20  ;;  %v8044_v63 = vmul.f32 %v8012_v11, %v7720_v24  ;;  %v7365_v1 = vsel %vm7102_vm0, %v20514_v45, %v20513_v29  ;;  %v7366_v35 = vsel %vm7102_vm0, %v20516_v49, %v20515_v34  ;;  %v20518_v11 = vld [vmem:[#allocation202_spill] sm:$0xff]  ;;  %v20520_v45 = vld [vmem:[#allocation115_spill] sm:$0xff] }
 0x57e   :  { %11812 = vmatmul.mubr.msk.bf16.vlgmr.msra.gmra.mrb[0].mxu0 %vm9366_vm7, %v8074_v23  ;;  %v7721_v57 = vmul.f32 %v7689_v47, %v7396_v28  ;;  %v20517_v47 = vld [vmem:[#allocation133_spill] sm:$0xff]  ;;  %v20519_v24 = vld [vmem:[#allocation130_spill] sm:$0xff]  ;;  %v7397_v38 = vmul.f32 %v7365_v1, %v7072_v15  ;;  %v8014_v49 = vsel %vm17189_vm4, %v17059_v8, %v17158_v54 }
 0x57f   :  { %8195 = vperm.xlu0 %12335, %v20373_v55   ;;  %9457 = vmatprep.mubr.bf16.mxu0 %v20510_v21  ;;  %v7690_v28 = vsel %vm7427_vm9, %v20518_v11, %v20517_v47  ;;  %v20523_v55 = vld [vmem:[#allocation194_spill] sm:$0xff]  ;;  %v20526_v8 = vld [vmem:[#allocation53_spill] sm:$0xff] }
 0x580   :  { %v7904_v18 = vpop.permute.xlu0 %7903  ;;  %12325 = vset.pattern.permute.xlu1 %v19818_v41  ;;  %v8045_v23 = vmul.f32 %v8013_v7, %v7721_v57  ;;  %v20521_v41 = vld [vmem:[#allocation38_spill] sm:$0xff]  ;;  %v20522_v57 = vld [vmem:[#allocation223_spill] sm:$0xff]  ;;  %v7722_v1 = vmul.f32 %v7690_v28, %v7397_v38 }
 0x581   :  { %8383 = vperm.xlu1 %12325, %v20475_v22   ;;  %v17260_v20 = vpop.permute.xlu1 %7939  ;;  %v7073_v7 = vsel %vm6745_vm3, %v20521_v41, %v20520_v45  ;;  %v7691_v34 = vsel %vm7427_vm9, %v20523_v55, %v20522_v57  ;;  %v20524_v47 = vld [vmem:[#allocation42_spill] sm:$0xff]  ;;  %v8015_v41 = vsel %vm17189_vm4, %v17087_v60, %v7904_v18 }
 0x582   :  { %v8075_v4 = vpack.c.bf16 %v8045_v23, %v8044_v63  ;;  %v7398_v63 = vmul.f32 %v7366_v35, %v7073_v7  ;;  %v20525_v23 = vld [vmem:[#allocation36_spill] sm:$0xff]  ;;  %v8046_v11 = vmul.f32 %v8014_v49, %v7722_v1  ;;  %v20527_v54 = vld [vmem:[#allocation14_spill] sm:$0xff]  ;;  %v20530_v7 = vld [vmem:[#allocation175_spill] sm:$0xff] }
 0x583   :  { %8203 = vperm.xlu0 %12335, %v20519_v24   ;;  %v7074_v57 = vsel %vm6745_vm3, %v20527_v54, %v20526_v8  ;;  %v20528_v35 = vld [vmem:[#allocation162_spill] sm:$0xff] }
 0x584   :  { %v7912_v29 = vpop.permute.xlu0 %7911  ;;  %v7723_v55 = vmul.f32 %v7691_v34, %v7398_v63  ;;  %v20529_v28 = vld [vmem:[#allocation114_spill] sm:$0xff]  ;;  %v20531_v34 = vld [vmem:[#allocation143_spill] sm:$0xff]  ;;  %v20532_v63 = vld [vmem:[#allocation204_spill] sm:$0xff] }
 0x585   :  { %8507 = vperm.xlu1 %12325, %v20524_v47   ;;  %v17284_v15 = vpop.permute.xlu1 %7947  ;;  %v7367_v38 = vsel %vm7102_vm0, %v20529_v28, %v20528_v35  ;;  %v7368_v49 = vsel %vm7102_vm0, %v20531_v34, %v20530_v7  ;;  %v7692_v1 = vsel %vm7427_vm9, %v20532_v63, %v16995_v53  ;;  %v20533_v28 = vld [vmem:[#allocation124_spill] sm:$0xff]  ;;  %v8016_v53 = vsel %vm17189_vm4, %v17065_v51, %v17175_v32  ;;  %v20538_v51 = vld [vmem:[#allocation91_spill] sm:$0xff]  ;;  %v20549_v24 = vld [vmem:[#allocation198_spill] sm:$0xff] }
 0x586   :  { %11813 = vmatmul.mubr.msk.bf16.gmra.mrb[4].mxu0 %vm9366_vm7, %v8075_v4  ;;  %v19821_v4 = vmov 6   ;;  %v8047_v18 = vmul.f32 %v8015_v41, %v7723_v55  ;;  %v7399_v8 = vmul.f32 %v7367_v38, %v7074_v57  ;;  %v20534_v41 = vld [vmem:[#allocation72_spill] sm:$0xff]  ;;  %v8017_v38 = vsel %vm17189_vm4, %v17093_v37, %v7912_v29  ;;  %v20542_v29 = vld [vmem:[#allocation177_spill] sm:$0xff] }
 0x587   :  { %8211 = vperm.xlu0 %12335, %v20525_v23   ;;  %9467 = vmatprep.mubr.bf16.mxu0 %v20510_v21  ;;  %v7075_v55 = vsel %vm6745_vm3, %v20534_v41, %v20533_v28  ;;  %v20536_v23 = vld [vmem:[#allocation196_spill] sm:$0xff]  ;;  %v20543_v41 = vld [vmem:[#allocation145_spill] sm:$0xff] }
 0x588   :  { %v7920_v45 = vpop.permute.xlu0 %7919  ;;  %v8076_v54 = vpack.c.bf16 %v8047_v18, %v8046_v11  ;;  %v7400_v11 = vmul.f32 %v7368_v49, %v7075_v55  ;;  %v7724_v57 = vmul.f32 %v7692_v1, %v7399_v8  ;;  %v20537_v18 = vld [vmem:[#allocation13_spill] sm:$0xff]  ;;  %v20539_v32 = vld [vmem:[#allocation56_spill] sm:$0xff]  ;;  %v7370_v55 = vsel %vm7102_vm0, %v20543_v41, %v20542_v29 }
 0x589   :  { %12326 = vset.pattern.permute.xlu1 %v19821_v4  ;;  %v17301_v60 = vpop.permute.xlu1 %7955  ;;  %v20535_v4 = vld [vmem:[#allocation225_spill] sm:$0xff]  ;;  %v7076_v49 = vsel %vm6745_vm3, %v20539_v32, %v20538_v51  ;;  %v20540_v1 = vld [vmem:[#allocation164_spill] sm:$0xff] }
 0x58a   :  { %8699 = vperm.xlu1 %12326, %v20270_v43   ;;  %v7693_v7 = vsel %vm7427_vm9, %v20536_v23, %v20535_v4  ;;  %v8048_v4 = vmul.f32 %v8016_v53, %v7724_v57  ;;  %v20541_v8 = vld [vmem:[#allocation17_spill] sm:$0xff] }
 0x58b   :  { %8219 = vperm.xlu0 %12335, %v20524_v47   ;;  %v7725_v23 = vmul.f32 %v7693_v7, %v7400_v11  ;;  %v20544_v7 = vld [vmem:[#allocation206_spill] sm:$0xff] }
 0x58c   :  { %v17313_v35 = vpop.permute.xlu0 %7927  ;;  %v7694_v53 = vsel %vm7427_vm9, %v20544_v7, %v17001_v17  ;;  %v20545_v11 = vld [vmem:[#allocation54_spill] sm:$0xff]  ;;  %v8018_v17 = vsel %vm17189_vm4, %v17071_v27, %v17204_v5  ;;  %v20552_v27 = vld [vmem:[#allocation64_spill] sm:$0xff] }
 0x58d   :  { %v17327_v34 = vpop.permute.xlu1 %7963  ;;  %v8049_v37 = vmul.f32 %v8017_v38, %v7725_v23  ;;  %v20547_v38 = vld [vmem:[#allocation83_spill] sm:$0xff]  ;;  %v20551_v7 = vld [vmem:[#allocation18_spill] sm:$0xff]  ;;  %v20553_v5 = vld [vmem:[#allocation52_spill] sm:$0xff] }
 0x58e   :  { %11814 = vmatmul.mubr.msk.bf16.gmra.mrb[8].mxu0 %vm9366_vm7, %v8076_v54  ;;  %8827 = vperm.xlu1 %12326, %v20524_v47   ;;  %v7369_v54 = vsel %vm7102_vm0, %v20541_v8, %v20540_v1  ;;  %v20546_v1 = vld [vmem:[#allocation123_spill] sm:$0xff] }
 0x58f   :  { %8227 = vperm.xlu0 %12335, %v20537_v18   ;;  %9477 = vmatprep.mubr.bf16.mxu0 %v20510_v21  ;;  %v7401_v57 = vmul.f32 %v7369_v54, %v7076_v49  ;;  %v8077_v51 = vpack.c.bf16 %v8049_v37, %v8048_v4  ;;  %v7077_v23 = vsel %vm6745_vm3, %v20547_v38, %v20546_v1  ;;  %v20548_v8 = vld [vmem:[#allocation227_spill] sm:$0xff]  ;;  %v20550_v54 = vmov 7  }
 0x590   :  { %v17336_v63 = vpop.permute.xlu0 %7935  ;;  %v7695_v29 = vsel %vm7427_vm9, %v20549_v24, %v20548_v8  ;;  %v7402_v4 = vmul.f32 %v7370_v55, %v7077_v23  ;;  %v8019_v37 = vsel %vm17189_vm4, %v17099_v26, %v7920_v45  ;;  %v7078_v55 = vsel %vm6745_vm3, %v20553_v5, %v20552_v27  ;;  %v20556_v23 = vld [vmem:[#allocation179_spill] sm:$0xff] }
 0x591   :  { %v17346_v28 = vpop.permute.xlu1 %7971  ;;  %v7726_v49 = vmul.f32 %v7694_v53, %v7401_v57  ;;  %v20554_v53 = vld [vmem:[#allocation166_spill] sm:$0xff]  ;;  %v20557_v8 = vld [vmem:[#allocation147_spill] sm:$0xff] }
 0x592   :  { %8831 = vperm.xlu1 %12326, %v20446_v9   ;;  %v7727_v24 = vmul.f32 %v7695_v29, %v7402_v4  ;;  %v20555_v57 = vld [vmem:[#allocation134_spill] sm:$0xff]  ;;  %v7372_v29 = vsel %vm7102_vm0, %v20557_v8, %v20556_v23  ;;  %v20563_v23 = vld [vmem:[#allocation200_spill] sm:$0xff] }
 0x593   :  { %8235 = vperm.xlu0 %12335, %v20545_v11   ;;  %v8050_v1 = vmul.f32 %v8018_v17, %v7726_v49  ;;  %v7371_v26 = vsel %vm7102_vm0, %v20555_v57, %v20554_v53  ;;  %v20558_v17 = vld [vmem:[#allocation208_spill] sm:$0xff]  ;;  %v20559_v49 = vld [vmem:[#allocation23_spill] sm:$0xff]  ;;  %v20560_v53 = vld [vmem:[#allocation73_spill] sm:$0xff] }
 0x594   :  { %v17358_v32 = vpop.permute.xlu0 %7943  ;;  %v7696_v4 = vsel %vm7427_vm9, %v20558_v17, %v17007_v30  ;;  %v7403_v27 = vmul.f32 %v7371_v26, %v7078_v55  ;;  %v20562_v57 = vld [vmem:[#allocation228_spill] sm:$0xff]  ;;  %v8020_v30 = vsel %vm17189_vm4, %v17077_v59, %v17215_v58  ;;  %v20564_v59 = vmov 5   ;;  %v20565_v58 = vld [vmem:[#allocation101_spill] sm:$0xff] }
 0x595   :  { %v17372_v41 = vpop.permute.xlu1 %7979  ;;  %v7697_v8 = vsel %vm7427_vm9, %v20563_v23, %v20562_v57  ;;  %v20570_v57 = vld [vmem:[#allocation149_spill] sm:$0xff] }
 0x596   :  { %11815 = vmatmul.mubr.msk.bf16.gmra.mrb[12].mxu0 %vm9366_vm7, %v8077_v51  ;;  %12328 = vset.pattern.permute.xlu1 %v20550_v54  ;;  %v8051_v51 = vmul.f32 %v8019_v37, %v7727_v24  ;;  %v20561_v37 = vld [vmem:[#allocation40_spill] sm:$0xff]  ;;  %v7728_v26 = vmul.f32 %v7696_v4, %v7403_v27 }
 0x597   :  { %8243 = vperm.xlu0 %12335, %v20551_v7   ;;  %9487 = vmatprep.mubr.bf16.mxu0 %v20510_v21  ;;  %v7079_v24 = vsel %vm6745_vm3, %v20561_v37, %v20560_v53  ;;  %v20567_v27 = vld [vmem:[#allocation168_spill] sm:$0xff] }
 0x598   :  { %v17381_v38 = vpop.permute.xlu0 %7951  ;;  %9023 = vperm.xlu1 %12328, %v20475_v22   ;;  %v8078_v5 = vpack.c.bf16 %v8051_v51, %v8050_v1  ;;  %v7404_v55 = vmul.f32 %v7372_v29, %v7079_v24  ;;  %v8052_v17 = vmul.f32 %v8020_v30, %v7728_v26  ;;  %v20566_v29 = vld [vmem:[#allocation68_spill] sm:$0xff]  ;;  %v20569_v24 = vld [vmem:[#allocation181_spill] sm:$0xff] }
 0x599   :  { %v17392_v45 = vpop.permute.xlu1 %7987  ;;  %v7080_v4 = vsel %vm6745_vm3, %v20566_v29, %v20565_v58  ;;  %v7374_v23 = vsel %vm7102_vm0, %v20570_v57, %v20569_v24  ;;  %v20572_v29 = vld [vmem:[#allocation97_spill] sm:$0xff] }
 0x59a   :  { %v7729_v51 = vmul.f32 %v7697_v8, %v7404_v55  ;;  %v20571_v8 = vld [vmem:[#allocation210_spill] sm:$0xff] }
 0x59b   :  { %8251 = vperm.xlu0 %12335, %v20559_v49   ;;  %v7698_v30 = vsel %vm7427_vm9, %v20571_v8, %v17013_v56  ;;  %v8022_v56 = vsel %vm17189_vm4, %v17083_v6, %v17242_v31  ;;  %v20576_v31 = vld [vmem:[#allocation74_spill] sm:$0xff] }
 0x59c   :  { %v17403_v50 = vpop.permute.xlu0 %7959  ;;  %9147 = vperm.xlu1 %12328, %v20524_v47   ;;  %v8021_v47 = vsel %vm17189_vm4, %v17105_v46, %v17313_v35 }
 0x59d   :  { %v17418_v1 = vpop.permute.xlu1 %7995  ;;  %v8053_v37 = vmul.f32 %v8021_v47, %v7729_v51  ;;  %v20574_v51 = vld [vmem:[#allocation132_spill] sm:$0xff] }
 0x59e   :  { %11816 = vmatmul.mubr.msk.bf16.gmra.mrb[16].mxu0 %vm9366_vm7, %v8078_v5  ;;  %v20568_v5 = vld [vmem:[#allocation136_spill] sm:$0xff] }
 0x59f   :  { %8263 = vperm.xlu0 %12335, %v20456_v14   ;;  %9497 = vmatprep.mubr.bf16.mxu0 %v20510_v21  ;;  %v7373_v46 = vsel %vm7102_vm0, %v20568_v5, %v20567_v27  ;;  %v8079_v26 = vpack.c.bf16 %v8053_v37, %v8052_v17  ;;  %v20573_v27 = vld [vmem:[#allocation93_spill] sm:$0xff]  ;;  %v8023_v37 = vsel %vm17189_vm4, %v17112_v40, %v17336_v63 }
 0x5a0   :  { %v17427_v53 = vpop.permute.xlu0 %7967  ;;  %12329 = vset.pattern.permute.xlu1 %v20564_v59  ;;  %v7405_v55 = vmul.f32 %v7373_v46, %v7080_v4  ;;  %v7081_v47 = vsel %vm6745_vm3, %v20573_v27, %v20572_v29  ;;  %v20575_v5 = vld [vmem:[#allocation201_spill] sm:$0xff]  ;;  %v20580_v27 = vld [vmem:[#allocation183_spill] sm:$0xff] }
 0x5a1   :  { %8387 = vperm.xlu1 %12329, %v20244_v13   ;;  %v17439_v35 = vpop.permute.xlu1 %8003  ;;  %v7699_v24 = vsel %vm7427_vm9, %v20575_v5, %v20574_v51  ;;  %v7406_v17 = vmul.f32 %v7374_v23, %v7081_v47  ;;  %v20577_v23 = vld [vmem:[#allocation98_spill] sm:$0xff]  ;;  %v20581_v47 = vld [vmem:[#allocation151_spill] sm:$0xff]  ;;  %v20582_v5 = vld [vmem:[#allocation212_spill] sm:$0xff] }
 0x5a2   :  { %v7730_v4 = vmul.f32 %v7698_v30, %v7405_v55  ;;  %v7082_v30 = vsel %vm6745_vm3, %v20577_v23, %v20576_v31  ;;  %v20578_v55 = vld [vmem:[#allocation170_spill] sm:$0xff]  ;;  %v7376_v51 = vsel %vm7102_vm0, %v20581_v47, %v20580_v27  ;;  %v20583_v31 = vld [vmem:[#allocation41_spill] sm:$0xff]  ;;  %v20587_v27 = vmov 6  }
 0x5a3   :  { %8271 = vperm.xlu0 %12335, %v16183_v42   ;;  %v7731_v57 = vmul.f32 %v7699_v24, %v7406_v17  ;;  %v7700_v24 = vsel %vm7427_vm9, %v20582_v5, %v17019_v2  ;;  %v20585_v23 = vld [vmem:[#allocation229_spill] sm:$0xff]  ;;  %v8024_v2 = vsel %vm17189_vm4, %v17089_v12, %v17260_v20  ;;  %v20589_v5 = vld [vmem:[#allocation107_spill] sm:$0xff] }
 0x5a4   :  { %v17450_v58 = vpop.permute.xlu0 %7975  ;;  %v8054_v8 = vmul.f32 %v8022_v56, %v7730_v4 }
 0x5a5   :  { %8515 = vperm.xlu1 %12329, %v20537_v18   ;;  %v8055_v40 = vmul.f32 %v8023_v37, %v7731_v57  ;;  %v20584_v37 = vld [vmem:[#allocation50_spill] sm:$0xff] }
 0x5a6   :  { %11817 = vmatmul.mubr.msk.bf16.gmra.mrb[20].mxu0 %vm9366_vm7, %v8079_v26  ;;  %v17466_v46 = vpop.permute.xlu1 %8091  ;;  %v20579_v26 = vld [vmem:[#allocation138_spill] sm:$0xff]  ;;  %v7083_v57 = vsel %vm6745_vm3, %v20584_v37, %v20583_v31 }
 0x5a7   :  { %8279 = vperm.xlu0 %12335, %v16215_v0   ;;  %9507 = vmatprep.mubr.bf16.mxu0 %v20510_v21  ;;  %v7375_v29 = vsel %vm7102_vm0, %v20579_v26, %v20578_v55  ;;  %v8080_v17 = vpack.c.bf16 %v8055_v40, %v8054_v8  ;;  %v20586_v55 = vld [vmem:[#allocation203_spill] sm:$0xff]  ;;  %v7408_v8 = vmul.f32 %v7376_v51, %v7083_v57  ;;  %v20594_v57 = vld [vmem:[#allocation153_spill] sm:$0xff] }
 0x5a8   :  { %v17474_v6 = vpop.permute.xlu0 %7983  ;;  %v7407_v56 = vmul.f32 %v7375_v29, %v7082_v30  ;;  %v7701_v26 = vsel %vm7427_vm9, %v20586_v55, %v20585_v23  ;;  %v8025_v40 = vsel %vm17189_vm4, %v17118_v62, %v17358_v32  ;;  %v20588_v51 = vld [vmem:[#allocation111_spill] sm:$0xff]  ;;  %v20593_v32 = vld [vmem:[#allocation185_spill] sm:$0xff]  ;;  %v20595_v55 = vld [vmem:[#allocation232_spill] sm:$0xff] }
 0x5a9   :  { %8519 = vperm.xlu1 %12329, %v20448_v61   ;;  %v7733_v12 = vmul.f32 %v7701_v26, %v7408_v8  ;;  %v7378_v23 = vsel %vm7102_vm0, %v20594_v57, %v20593_v32  ;;  %v20596_v26 = vld [vmem:[#allocation214_spill] sm:$0xff]  ;;  %v20597_v8 = vld [vmem:[#allocation48_spill] sm:$0xff]  ;;  %v20602_v32 = vld [vmem:[#allocation243_spill] sm:$0xff] }
 0x5aa   :  { %v17485_v63 = vpop.permute.xlu1 %8099  ;;  %v7732_v30 = vmul.f32 %v7700_v24, %v7407_v56  ;;  %v7084_v24 = vsel %vm6745_vm3, %v20589_v5, %v20588_v51  ;;  %v20590_v56 = vld [vmem:[#allocation172_spill] sm:$0xff]  ;;  %v20598_v5 = vld [vmem:[#allocation82_spill] sm:$0xff]  ;;  %v8026_v57 = vsel %vm17189_vm4, %v20602_v32, %v17284_v15 }
 0x5ab   :  { %8287 = vperm.xlu0 %12335, %v16238_v25   ;;  %v8057_v37 = vmul.f32 %v8025_v40, %v7733_v12  ;;  %v20599_v40 = vld [vmem:[#allocation86_spill] sm:$0xff] }
 0x5ac   :  { %v17496_v4 = vpop.permute.xlu0 %7991  ;;  %v8056_v20 = vmul.f32 %v8024_v2, %v7732_v30  ;;  %v7702_v2 = vsel %vm7427_vm9, %v20596_v26, %v20595_v55  ;;  %v7085_v12 = vsel %vm6745_vm3, %v20599_v40, %v20598_v5  ;;  %v20605_v5 = vld [vmem:[#allocation47_spill] sm:$0xff] }
 0x5ad   :  { %12330 = vset.pattern.permute.xlu1 %v20587_v27  ;;  %v7410_v26 = vmul.f32 %v7378_v23, %v7085_v12  ;;  %v20606_v23 = vld [vmem:[#allocation121_spill] sm:$0xff]  ;;  %v20609_v12 = vld [vmem:[#allocation142_spill] sm:$0xff] }
 0x5ae   :  { %11818 = vmatmul.mubr.msk.bf16.gmra.mrb[24].mxu0 %vm9366_vm7, %v8080_v17  ;;  %8711 = vperm.xlu1 %12330, %v20273_v48   ;;  %v17513_v29 = vpop.permute.xlu1 %8103  ;;  %v20591_v17 = vld [vmem:[#allocation140_spill] sm:$0xff]  ;;  %v8081_v51 = vpack.c.bf16 %v8057_v37, %v8056_v20 }
 0x5af   :  { %8295 = vperm.xlu0 %12335, %v16273_v19   ;;  %9517 = vmatprep.mubr.bf16.mxu0 %v20510_v21  ;;  %v7377_v31 = vsel %vm7102_vm0, %v20591_v17, %v20590_v56  ;;  %v20600_v56 = vld [vmem:[#allocation28_spill] sm:$0xff]  ;;  %v20601_v17 = vld [vmem:[#allocation205_spill] sm:$0xff] }
 0x5b0   :  { %v17521_v47 = vpop.permute.xlu0 %7999  ;;  %v7409_v30 = vmul.f32 %v7377_v31, %v7084_v24  ;;  %v20604_v31 = vld [vmem:[#allocation247_spill] sm:$0xff] }
 0x5b1   :  { %v8027_v37 = vsel %vm17189_vm4, %v20604_v31, %v17381_v38  ;;  %v20611_v31 = vld [vmem:[#allocation187_spill] sm:$0xff] }
 0x5b2   :  { %8835 = vperm.xlu1 %12330, %v20537_v18   ;;  %v17532_v62 = vpop.permute.xlu1 %8111  ;;  %v7734_v24 = vmul.f32 %v7702_v2, %v7409_v30  ;;  %v20607_v2 = vld [vmem:[#allocation66_spill] sm:$0xff] }
 0x5b3   :  { %20592 = vst [vmem:[#allocation33_spill] sm:$0xff] %v17532_v62  ;;  %8303 = vperm.xlu0 %12335, %v20597_v8   ;;  %v7703_v62 = vsel %vm7427_vm9, %v20601_v17, %v20600_v56  ;;  %v7086_v30 = vsel %vm6745_vm3, %v20607_v2, %v20606_v23  ;;  %v20615_v2 = vld [vmem:[#allocation11_spill] sm:$0xff] }
 0x5b4   :  { %v17555_v55 = vpop.permute.xlu0 %8007  ;;  %v7735_v15 = vmul.f32 %v7703_v62, %v7410_v26  ;;  %v8058_v40 = vmul.f32 %v8026_v57, %v7734_v24  ;;  %v20612_v62 = vld [vmem:[#allocation155_spill] sm:$0xff]  ;;  %v20613_v26 = vld [vmem:[#allocation234_spill] sm:$0xff]  ;;  %v20614_v24 = vld [vmem:[#allocation216_spill] sm:$0xff] }
 0x5b5   :  { %v7380_v57 = vsel %vm7102_vm0, %v20612_v62, %v20611_v31  ;;  %v7704_v23 = vsel %vm7427_vm9, %v20614_v24, %v20613_v26  ;;  %v20620_v62 = vld [vmem:[#allocation244_spill] sm:$0xff] }
 0x5b6   :  { %11819 = vmatmul.mubr.msk.bf16.gmra.mrb[28].mxu0 %vm9366_vm7, %v8081_v51  ;;  %12331 = vset.pattern.permute.xlu1 %v20550_v54  ;;  %v17559_v20 = vpop.permute.xlu1 %8119  ;;  %v20608_v51 = vld [vmem:[#allocation174_spill] sm:$0xff]  ;;  %v8059_v38 = vmul.f32 %v8027_v37, %v7735_v15  ;;  %v20617_v37 = vld [vmem:[#allocation60_spill] sm:$0xff]  ;;  %v8028_v26 = vsel %vm17189_vm4, %v20620_v62, %v17301_v60 }
 0x5b7   :  { %20603 = vst [vmem:[#allocation156_spill] sm:$0xff] %v17559_v20  ;;  %8311 = vperm.xlu0 %12335, %v20605_v5   ;;  %9527 = vmatprep.mubr.bf16.mxu0 %v20510_v21  ;;  %v7379_v56 = vsel %vm7102_vm0, %v20609_v12, %v20608_v51  ;;  %v20616_v51 = vld [vmem:[#allocation96_spill] sm:$0xff]  ;;  %v20618_v12 = vld [vmem:[#allocation27_spill] sm:$0xff]  ;;  %v20624_v60 = vld [vmem:[#allocation94_spill] sm:$0xff] }
 0x5b8   :  { %9027 = vperm.xlu1 %12331, %v20244_v13   ;;  %v7411_v20 = vmul.f32 %v7379_v56, %v7086_v30  ;;  %v8082_v5 = vpack.c.bf16 %v8059_v38, %v8058_v40  ;;  %v7087_v15 = vsel %vm6745_vm3, %v20617_v37, %v20616_v51  ;;  %v20622_v56 = vld [vmem:[#allocation249_spill] sm:$0xff] }
 0x5b9   :  { %v17576_v17 = vpop.permute.xlu0 %9019  ;;  %v7412_v40 = vmul.f32 %v7380_v57, %v7087_v15  ;;  %v8029_v38 = vsel %vm17189_vm4, %v20622_v56, %v17403_v50  ;;  %v20623_v51 = vld [vmem:[#allocation57_spill] sm:$0xff]  ;;  %v20625_v57 = vld [vmem:[#allocation62_spill] sm:$0xff] }
 0x5ba   :  { %v17578_v32 = vpop.permute.xlu1 %8127  ;;  %v7736_v30 = vmul.f32 %v7704_v23, %v7411_v20  ;;  %v7088_v20 = vsel %vm6745_vm3, %v20625_v57, %v20624_v60  ;;  %v20627_v23 = vld [vmem:[#allocation144_spill] sm:$0xff]  ;;  %v20630_v56 = vld [vmem:[#allocation189_spill] sm:$0xff] }
 0x5bb   :  { %20610 = vst [vmem:[#allocation137_spill] sm:$0xff] %v17578_v32  ;;  %8319 = vperm.xlu0 %12335, %v20615_v2   ;;  %v20619_v32 = vld [vmem:[#allocation207_spill] sm:$0xff]  ;;  %v20634_v57 = vld [vmem:[#allocation69_spill] sm:$0xff] }
 0x5bc   :  { %9155 = vperm.xlu1 %12331, %v20537_v18   ;;  %v7705_v31 = vsel %vm7427_vm9, %v20619_v32, %v20618_v12  ;;  %v8060_v37 = vmul.f32 %v8028_v26, %v7736_v30  ;;  %v20633_v30 = vld [vmem:[#allocation218_spill] sm:$0xff] }
 0x5bd   :  { %v17602_v24 = vpop.permute.xlu0 %9151  ;;  %v7737_v32 = vmul.f32 %v7705_v31, %v7412_v40  ;;  %v20631_v31 = vld [vmem:[#allocation157_spill] sm:$0xff]  ;;  %v20632_v40 = vld [vmem:[#allocation236_spill] sm:$0xff] }
 0x5be   :  { %11820 = vmatmul.mubr.msk.bf16.gmra.mrb[32].mxu0 %vm9366_vm7, %v8082_v5  ;;  %v17605_v18 = vpop.permute.xlu1 %8135  ;;  %v20626_v5 = vld [vmem:[#allocation176_spill] sm:$0xff]  ;;  %v7382_v26 = vsel %vm7102_vm0, %v20631_v31, %v20630_v56  ;;  %v7706_v60 = vsel %vm7427_vm9, %v20633_v30, %v20632_v40  ;;  %v20639_v31 = vld [vmem:[#allocation245_spill] sm:$0xff] }
 0x5bf   :  { %20621 = vst [vmem:[#allocation169_spill] sm:$0xff] %v17605_v18  ;;  %8327 = vperm.xlu0 %12335, %v20623_v51   ;;  %9537 = vmatprep.mubr.bf16.mxu0 %v20510_v21  ;;  %v7381_v15 = vsel %vm7102_vm0, %v20627_v23, %v20626_v5  ;;  %v8061_v50 = vmul.f32 %v8029_v38, %v7737_v32  ;;  %v20635_v5 = vld [vmem:[#allocation92_spill] sm:$0xff]  ;;  %v20636_v38 = vld [vmem:[#allocation51_spill] sm:$0xff]  ;;  %v20637_v23 = vld [vmem:[#allocation230_spill] sm:$0xff] }
 0x5c0   :  { %9159 = vperm.xlu1 %12331, %v20448_v61   ;;  %v7413_v18 = vmul.f32 %v7381_v15, %v7088_v20  ;;  %v7089_v32 = vsel %vm6745_vm3, %v20636_v38, %v20635_v5  ;;  %v8030_v40 = vsel %vm17189_vm4, %v20639_v31, %v17327_v34  ;;  %v20643_v5 = vld [vmem:[#allocation251_spill] sm:$0xff]  ;;  %v20644_v38 = vld [vmem:[#allocation12_spill] sm:$0xff] }
 0x5c1   :  { %v17622_v12 = vpop.permute.xlu0 %9031  ;;  %v8083_v51 = vpack.c.bf16 %v8061_v50, %v8060_v37  ;;  %v20641_v37 = vld [vmem:[#allocation22_spill] sm:$0xff]  ;;  %v7414_v20 = vmul.f32 %v7382_v26, %v7089_v32  ;;  %v20645_v31 = vld [vmem:[#allocation127_spill] sm:$0xff] }
 0x5c2   :  { %20628 = vst [vmem:[#allocation120_spill] sm:$0xff] %v17622_v12  ;;  %v17624_v62 = vpop.permute.xlu1 %8143  ;;  %v7738_v15 = vmul.f32 %v7706_v60, %v7413_v18  ;;  %v20647_v26 = vld [vmem:[#allocation178_spill] sm:$0xff] }
 0x5c3   :  { %20629 = vst [vmem:[#allocation188_spill] sm:$0xff] %v17624_v62  ;;  %8335 = vperm.xlu0 %12335, %v20634_v57   ;;  %v20638_v62 = vld [vmem:[#allocation209_spill] sm:$0xff]  ;;  %v20646_v57 = vld [vmem:[#allocation119_spill] sm:$0xff] }
 0x5c4   :  { %12332 = vset.pattern.permute.xlu1 %v20564_v59  ;;  %v7707_v56 = vsel %vm7427_vm9, %v20638_v62, %v20637_v23  ;;  %v8031_v62 = vsel %vm17189_vm4, %v20643_v5, %v17427_v53  ;;  %v8062_v23 = vmul.f32 %v8030_v40, %v7738_v15  ;;  %v7090_v18 = vsel %vm6745_vm3, %v20646_v57, %v20645_v31  ;;  %v20654_v15 = vld [vmem:[#allocation220_spill] sm:$0xff] }
 0x5c5   :  { %v17648_v30 = vpop.permute.xlu0 %9035  ;;  %8399 = vperm.xlu1 %12332, %v20641_v37   ;;  %v7739_v34 = vmul.f32 %v7707_v56, %v7414_v20  ;;  %v20652_v56 = vld [vmem:[#allocation159_spill] sm:$0xff]  ;;  %v20653_v20 = vld [vmem:[#allocation238_spill] sm:$0xff] }
 0x5c6   :  { %20640 = vst [vmem:[#allocation80_spill] sm:$0xff] %v17648_v30  ;;  %11821 = vmatmul.mubr.msk.bf16.gmra.mrb[36].mxu0 %vm9366_vm7, %v8083_v51  ;;  %v17652_v50 = vpop.permute.xlu1 %8151  ;;  %v20648_v51 = vld [vmem:[#allocation146_spill] sm:$0xff]  ;;  %v7708_v57 = vsel %vm7427_vm9, %v20654_v15, %v20653_v20  ;;  %v20662_v15 = vld [vmem:[#allocation253_spill] sm:$0xff] }
 0x5c7   :  { %20642 = vst [vmem:[#allocation78_spill] sm:$0xff] %v17652_v50  ;;  %8343 = vperm.xlu0 %12335, %v20644_v38   ;;  %9547 = vmatprep.mubr.bf16.mxu0 %v20510_v21  ;;  %v7383_v60 = vsel %vm7102_vm0, %v20648_v51, %v20647_v26  ;;  %v8063_v53 = vmul.f32 %v8031_v62, %v7739_v34  ;;  %v20651_v50 = vld [vmem:[#allocation191_spill] sm:$0xff]  ;;  %v20655_v51 = vld [vmem:[#allocation108_spill] sm:$0xff] }
 0x5c8   :  { %v7384_v40 = vsel %vm7102_vm0, %v20652_v56, %v20651_v50  ;;  %v7415_v31 = vmul.f32 %v7383_v60, %v7090_v18  ;;  %v20656_v62 = vld [vmem:[#allocation99_spill] sm:$0xff]  ;;  %v20660_v60 = vld [vmem:[#allocation25_spill] sm:$0xff] }
 0x5c9   :  { %v17668_v32 = vpop.permute.xlu0 %9167  ;;  %8523 = vperm.xlu1 %12332, %v20545_v11   ;;  %v8084_v26 = vpack.c.bf16 %v8063_v53, %v8062_v23  ;;  %v7091_v34 = vsel %vm6745_vm3, %v20656_v62, %v20655_v51  ;;  %v20658_v38 = vld [vmem:[#allocation211_spill] sm:$0xff]  ;;  %v20666_v51 = vld [vmem:[#allocation148_spill] sm:$0xff] }
 0x5ca   :  { %20649 = vst [vmem:[#allocation158_spill] sm:$0xff] %v17668_v32  ;;  %v17671_v5 = vpop.permute.xlu1 %8159  ;;  %v20659_v56 = vld [vmem:[#allocation19_spill] sm:$0xff]  ;;  %v7416_v23 = vmul.f32 %v7384_v40, %v7091_v34  ;;  %v7740_v18 = vmul.f32 %v7708_v57, %v7415_v31  ;;  %v20663_v40 = vld [vmem:[#allocation104_spill] sm:$0xff]  ;;  %v20664_v57 = vld [vmem:[#allocation117_spill] sm:$0xff] }
 0x5cb   :  { %20650 = vst [vmem:[#allocation15_spill] sm:$0xff] %v17671_v5  ;;  %12383 = vset.pattern.permute.xlu0 %v20564_v59  ;;  %v20657_v5 = vld [vmem:[#allocation37_spill] sm:$0xff]  ;;  %v8032_v20 = vsel %vm17189_vm4, %v20659_v56, %v17346_v28  ;;  %v7092_v31 = vsel %vm6745_vm3, %v20664_v57, %v20663_v40 }
 0x5cc   :  { %8379 = vperm.xlu0 %12383, %v20270_v43   ;;  %v7709_v50 = vsel %vm7427_vm9, %v20658_v38, %v20657_v5  ;;  %v8033_v38 = vsel %vm17189_vm4, %v20662_v15, %v17450_v58  ;;  %v8064_v5 = vmul.f32 %v8032_v20, %v7740_v18  ;;  %v20670_v20 = vld [vmem:[#allocation161_spill] sm:$0xff] }
 0x5cd   :  { %12333 = vset.pattern.permute.xlu1 %v20587_v27  ;;  %v7741_v28 = vmul.f32 %v7709_v50, %v7416_v23  ;;  %v20669_v50 = vld [vmem:[#allocation193_spill] sm:$0xff]  ;;  %v20671_v23 = vld [vmem:[#allocation239_spill] sm:$0xff] }
 0x5ce   :  { %v17696_v43 = vpop.permute.xlu0 %8095  ;;  %11822 = vmatmul.mubr.msk.bf16.gmra.mrb[40].mxu0 %vm9366_vm7, %v8084_v26  ;;  %8715 = vperm.xlu1 %12333, %v20660_v60   ;;  %v17700_v53 = vpop.permute.xlu1 %8167  ;;  %v20665_v26 = vld [vmem:[#allocation180_spill] sm:$0xff]  ;;  %v20672_v18 = vld [vmem:[#allocation221_spill] sm:$0xff] }
 0x5cf   :  { %20661 = vst [vmem:[#allocation106_spill] sm:$0xff] %v17700_v53  ;;  %9557 = vmatprep.mubr.bf16.mxu0 %v20510_v21  ;;  %v7385_v62 = vsel %vm7102_vm0, %v20666_v51, %v20665_v26  ;;  %v8065_v34 = vmul.f32 %v8033_v38, %v7741_v28  ;;  %v7710_v15 = vsel %vm7427_vm9, %v20672_v18, %v20671_v23  ;;  %v20673_v38 = vld [vmem:[#allocation103_spill] sm:$0xff]  ;;  %v20674_v28 = vld [vmem:[#allocation109_spill] sm:$0xff] }
 0x5d0   :  { %8511 = vperm.xlu0 %12383, %v20446_v9   ;;  %v7386_v9 = vsel %vm7102_vm0, %v20670_v20, %v20669_v50  ;;  %v7417_v40 = vmul.f32 %v7385_v62, %v7092_v31  ;;  %v7093_v26 = vsel %vm6745_vm3, %v20674_v28, %v20673_v38  ;;  %v20675_v51 = vld [vmem:[#allocation231_spill] sm:$0xff]  ;;  %v20677_v50 = vld [vmem:[#allocation246_spill] sm:$0xff] }
 0x5d1   :  { %v8085_v57 = vpack.c.bf16 %v8065_v34, %v8064_v5  ;;  %v8034_v20 = vsel %vm17189_vm4, %v20677_v50, %v17372_v41  ;;  %v7418_v23 = vmul.f32 %v7386_v9, %v7093_v26  ;;  %v20680_v62 = vld [vmem:[#allocation254_spill] sm:$0xff]  ;;  %v20681_v41 = vld [vmem:[#allocation16_spill] sm:$0xff] }
 0x5d2   :  { %v17716_v56 = vpop.permute.xlu0 %8107  ;;  %8843 = vperm.xlu1 %12333, %v20545_v11   ;;  %v17719_v58 = vpop.permute.xlu1 %8175  ;;  %v7742_v31 = vmul.f32 %v7710_v15, %v7417_v40  ;;  %v8035_v34 = vsel %vm17189_vm4, %v20680_v62, %v17474_v6  ;;  %v20682_v9 = vld [vmem:[#allocation76_spill] sm:$0xff]  ;;  %v20683_v40 = vld [vmem:[#allocation182_spill] sm:$0xff] }
 0x5d3   :  { %20667 = vst [vmem:[#allocation24_spill] sm:$0xff] %v17716_v56  ;;  %20668 = vst [vmem:[#allocation171_spill] sm:$0xff] %v17719_v58  ;;  %v20676_v58 = vld [vmem:[#allocation213_spill] sm:$0xff]  ;;  %v7094_v15 = vsel %vm6745_vm3, %v20682_v9, %v20681_v41  ;;  %v20689_v50 = vld [vmem:[#allocation240_spill] sm:$0xff] }
 0x5d4   :  { %8391 = vperm.xlu0 %12383, %v20273_v48   ;;  %v7711_v53 = vsel %vm7427_vm9, %v20676_v58, %v20675_v51  ;;  %v8066_v18 = vmul.f32 %v8034_v20, %v7742_v31  ;;  %v20688_v51 = vld [vmem:[#allocation163_spill] sm:$0xff]  ;;  %v20690_v20 = vld [vmem:[#allocation222_spill] sm:$0xff]  ;;  %v20693_v9 = vld [vmem:[#allocation233_spill] sm:$0xff] }
 0x5d5   :  { %v7743_v58 = vmul.f32 %v7711_v53, %v7418_v23  ;;  %v20687_v53 = vld [vmem:[#allocation195_spill] sm:$0xff]  ;;  %v7712_v23 = vsel %vm7427_vm9, %v20690_v20, %v20689_v50 }
 0x5d6   :  { %v17742_v5 = vpop.permute.xlu0 %8115  ;;  %11823 = vmatmul.mubr.msk.bf16.gmra.mrb[44].mxu0 %vm9366_vm7, %v8085_v57  ;;  %8847 = vperm.xlu1 %12333, %v20451_v36   ;;  %v17746_v48 = vpop.permute.xlu1 %8183  ;;  %v20684_v57 = vld [vmem:[#allocation150_spill] sm:$0xff]  ;;  %v20788_v56 = vld [vmem:[#allocation63_spill] sm:$0xff] }
 0x5d7   :  { %20678 = vst [vmem:[#allocation139_spill] sm:$0xff] %v17742_v5  ;;  %20679 = vst [vmem:[#allocation190_spill] sm:$0xff] %v17746_v48  ;;  %9567 = vmatprep.mubr.bf16.mxu0 %v20510_v21  ;;  %v7387_v38 = vsel %vm7102_vm0, %v20684_v57, %v20683_v40  ;;  %v8067_v28 = vmul.f32 %v8035_v34, %v7743_v58  ;;  %v20691_v34 = vld [vmem:[#allocation116_spill] sm:$0xff]  ;;  %v20694_v40 = vld [vmem:[#allocation215_spill] sm:$0xff] }
 0x5d8   :  { %8395 = vperm.xlu0 %12383, %v20660_v60   ;;  %v7388_v60 = vsel %vm7102_vm0, %v20688_v51, %v20687_v53  ;;  %v7419_v31 = vmul.f32 %v7387_v38, %v7094_v15  ;;  %v20692_v58 = vld [vmem:[#allocation20_spill] sm:$0xff]  ;;  %v7713_v57 = vsel %vm7427_vm9, %v20694_v40, %v20693_v9  ;;  %v20698_v38 = vld [vmem:[#allocation255_spill] sm:$0xff] }
 0x5d9   :  { %v8086_v62 = vpack.c.bf16 %v8067_v28, %v8066_v18  ;;  %v7095_v41 = vsel %vm6745_vm3, %v20692_v58, %v20691_v34  ;;  %v20695_v53 = vld [vmem:[#allocation248_spill] sm:$0xff]  ;;  %v8037_v28 = vsel %vm17189_vm4, %v20698_v38, %v17496_v4  ;;  %v20733_v48 = vld [vmem:[#allocation219_spill] sm:$0xff] }
 0x5da   :  { %v17762_v26 = vpop.permute.xlu0 %8123  ;;  %12334 = vset.pattern.permute.xlu1 %v20550_v54  ;;  %v17765_v6 = vpop.permute.xlu1 %8191  ;;  %v8036_v51 = vsel %vm17189_vm4, %v20695_v53, %v17392_v45  ;;  %v7420_v50 = vmul.f32 %v7388_v60, %v7095_v41  ;;  %v7744_v15 = vmul.f32 %v7712_v23, %v7419_v31  ;;  %v20699_v45 = vld [vmem:[#allocation29_spill] sm:$0xff]  ;;  %v20701_v23 = vld [vmem:[#allocation32_spill] sm:$0xff] }
 0x5db   :  { %20685 = vst [vmem:[#allocation89_spill] sm:$0xff] %v17762_v26  ;;  %20686 = vst [vmem:[#allocation65_spill] sm:$0xff] %v17765_v6  ;;  %9039 = vperm.xlu1 %12334, %v20641_v37   ;;  %v20700_v60 = vld [vmem:[#allocation113_spill] sm:$0xff]  ;;  %v20703_v58 = vld [vmem:[#allocation152_spill] sm:$0xff] }
 0x5dc   :  { %8527 = vperm.xlu0 %12383, %v20451_v36   ;;  %v7745_v20 = vmul.f32 %v7713_v57, %v7420_v50  ;;  %v8068_v34 = vmul.f32 %v8036_v51, %v7744_v15  ;;  %v7096_v31 = vsel %vm6745_vm3, %v20701_v23, %v20700_v60  ;;  %v20707_v57 = vld [vmem:[#allocation165_spill] sm:$0xff]  ;;  %v20709_v50 = vld [vmem:[#allocation224_spill] sm:$0xff]  ;;  %v20729_v6 = vld [vmem:[#allocation30_spill] sm:$0xff] }
 0x5dd   :  { %v20708_v51 = vld [vmem:[#allocation241_spill] sm:$0xff] }
 0x5de   :  { %v17789_v18 = vpop.permute.xlu0 %8131  ;;  %11824 = vmatmul.mubr.msk.bf16.gmra.mrb[48].mxu0 %vm9366_vm7, %v8086_v62  ;;  %v17792_v36 = vpop.permute.xlu1 %8199  ;;  %v20702_v62 = vld [vmem:[#allocation184_spill] sm:$0xff]  ;;  %v8069_v9 = vmul.f32 %v8037_v28, %v7745_v20  ;;  %v7714_v15 = vsel %vm7427_vm9, %v20709_v50, %v20708_v51  ;;  %v20710_v23 = vld [vmem:[#allocation45_spill] sm:$0xff]  ;;  %v20711_v28 = vld [vmem:[#allocation35_spill] sm:$0xff] }
 0x5df   :  { %20696 = vst [vmem:[#allocation192_spill] sm:$0xff] %v17789_v18  ;;  %20697 = vst [vmem:[#allocation81_spill] sm:$0xff] %v17792_v36  ;;  %9577 = vmatprep.mubr.bf16.mxu0 %v20510_v21  ;;  %9163 = vperm.xlu1 %12334, %v20545_v11   ;;  %v7389_v41 = vsel %vm7102_vm0, %v20703_v58, %v20702_v62  ;;  %v20706_v11 = vld [vmem:[#allocation197_spill] sm:$0xff]  ;;  %v20712_v20 = vld [vmem:[#allocation112_spill] sm:$0xff] }
 0x5e0   :  { %8407 = vperm.xlu0 %12383, %v20699_v45   ;;  %v7390_v53 = vsel %vm7102_vm0, %v20707_v57, %v20706_v11  ;;  %v7421_v38 = vmul.f32 %v7389_v41, %v7096_v31  ;;  %v8087_v60 = vpack.c.bf16 %v8069_v9, %v8068_v34  ;;  %v20713_v62 = vld [vmem:[#allocation26_spill] sm:$0xff]  ;;  %v20715_v11 = vld [vmem:[#allocation217_spill] sm:$0xff] }
 0x5e1   :  { %v7097_v58 = vsel %vm6745_vm3, %v20713_v62, %v20712_v20  ;;  %v20716_v51 = vld [vmem:[#allocation250_spill] sm:$0xff]  ;;  %v20719_v20 = vld [vmem:[#allocation256_spill] sm:$0xff] }
 0x5e2   :  { %v17809_v4 = vpop.permute.xlu0 %8139  ;;  %v17811_v40 = vpop.permute.xlu1 %8207  ;;  %v8038_v31 = vsel %vm17189_vm4, %v20716_v51, %v17418_v1  ;;  %v7422_v34 = vmul.f32 %v7390_v53, %v7097_v58  ;;  %v7746_v41 = vmul.f32 %v7714_v15, %v7421_v38  ;;  %v8039_v62 = vsel %vm17189_vm4, %v20719_v20, %v17521_v47  ;;  %v20720_v1 = vld [vmem:[#allocation135_spill] sm:$0xff]  ;;  %v20722_v38 = vld [vmem:[#allocation186_spill] sm:$0xff] }
 0x5e3   :  { %20704 = vst [vmem:[#allocation43_spill] sm:$0xff] %v17809_v4  ;;  %20705 = vst [vmem:[#allocation160_spill] sm:$0xff] %v17811_v40  ;;  %12336 = vset.pattern.permute.xlu1 %v20564_v59  ;;  %v20714_v40 = vld [vmem:[#allocation235_spill] sm:$0xff]  ;;  %v12392_v4 = vld [vmem:[#allocation2 + $0x4] ss:$8 sps:$4 sm:$0xff]  }
 0x5e4   :  { %8411 = vperm.xlu0 %12383, %v20710_v23   ;;  %8403 = vperm.xlu1 %12336, %v20711_v28   ;;  %v7715_v57 = vsel %vm7427_vm9, %v20715_v11, %v20714_v40  ;;  %v8070_v11 = vmul.f32 %v8038_v31, %v7746_v41  ;;  %v20721_v53 = vld [vmem:[#allocation71_spill] sm:$0xff]  ;;  %v20727_v41 = vld [vmem:[#allocation242_spill] sm:$0xff] }
 0x5e5   :  { %v7747_v40 = vmul.f32 %v7715_v57, %v7422_v34  ;;  %v7098_v15 = vsel %vm6745_vm3, %v20721_v53, %v20720_v1  ;;  %v20725_v57 = vld [vmem:[#allocation199_spill] sm:$0xff]  ;;  %v12394_v18 = vld [vmem:[#allocation2] ss:$8 sps:$4 sm:$0xff]   ;;  %9668 = vmatprep.subr.bf16.mxu1 %v12392_v4  ;;  %v20761_v4 = vmov 4  }
 0x5e6   :  { %v17836_v9 = vpop.permute.xlu0 %8147  ;;  %11825 = vmatmul.mubr.msk.bf16.gmra.mrb[52].mxu0 %vm9366_vm7, %v8087_v60  ;;  %v17839_v50 = vpop.permute.xlu1 %8215  ;;  %v20723_v60 = vld [vmem:[#allocation154_spill] sm:$0xff]  ;;  %v20726_v31 = vld [vmem:[#allocation167_spill] sm:$0xff]  ;;  %9669 = vmatpush1.bf16.msra.mxu1 %v12394_v18 }
 0x5e7   :  { %20717 = vst [vmem:[#allocation126_spill] sm:$0xff] %v17836_v9  ;;  %20718 = vst [vmem:[#allocation173_spill] sm:$0xff] %v17839_v50  ;;  %9587 = vmatprep.mubr.bf16.mxu0 %v20510_v21  ;;  %v7391_v58 = vsel %vm7102_vm0, %v20723_v60, %v20722_v38  ;;  %v8071_v51 = vmul.f32 %v8039_v62, %v7747_v40  ;;  %v7392_v34 = vsel %vm7102_vm0, %v20726_v31, %v20725_v57  ;;  %v20728_v50 = vld [vmem:[#allocation226_spill] sm:$0xff]  ;;  %v20730_v62 = vld [vmem:[#allocation85_spill] sm:$0xff] }
 0x5e8   :  { %8543 = vperm.xlu0 %12383, %v16133_v39   ;;  %8531 = vperm.xlu1 %12336, %v20551_v7   ;;  %v7716_v1 = vsel %vm7427_vm9, %v20728_v50, %v20727_v41  ;;  %v7423_v53 = vmul.f32 %v7391_v58, %v7098_v15  ;;  %v20731_v40 = vld [vmem:[#allocation61_spill] sm:$0xff]  ;;  %v20734_v31 = vld [vmem:[#allocation252_spill] sm:$0xff]  ;;  %v20736_v41 = vld [vmem:[#allocation87_spill] sm:$0xff] }
 0x5e9   :  { %v8088_v36 = vpack.c.bf16 %v8071_v51, %v8070_v11  ;;  %v7099_v38 = vsel %vm6745_vm3, %v20731_v40, %v20730_v62  ;;  %v20732_v60 = vld [vmem:[#allocation237_spill] sm:$0xff]  ;;  %v8040_v50 = vsel %vm17189_vm4, %v20734_v31, %v17439_v35  ;;  %v8041_v62 = vsel %vm17189_vm4, %v20736_v41, %v17555_v55  ;;  %v20747_v41 = vld [vmem:[#allocation46_spill] sm:$0xff] }
 0x5ea   :  { %v17856_v47 = vpop.permute.xlu0 %8155  ;;  %v17858_v20 = vpop.permute.xlu1 %8223  ;;  %v7717_v57 = vsel %vm7427_vm9, %v20733_v48, %v20732_v60  ;;  %v7424_v11 = vmul.f32 %v7392_v34, %v7099_v38  ;;  %v7748_v15 = vmul.f32 %v7716_v1, %v7423_v53  ;;  %v20737_v60 = vld [vmem:[#allocation58_spill] sm:$0xff]  ;;  %v20739_v53 = vld [vmem:[#allocation31_spill] sm:$0xff] }
 0x5eb   :  { %20724 = vst [vmem:[#allocation141_spill] sm:$0xff] %v17856_v47 }
 0x5ec   :  { %8547 = vperm.xlu0 %12383, %v20729_v6   ;;  %8535 = vperm.xlu1 %12336, %v20453_v10   ;;  %v7749_v48 = vmul.f32 %v7717_v57, %v7424_v11  ;;  %v8072_v40 = vmul.f32 %v8040_v50, %v7748_v15  ;;  %v20742_v57 = vld [vmem:[#allocation67_spill] sm:$0xff]  ;;  %v20745_v11 = vld [vmem:[#allocation34_spill] sm:$0xff] }
 0x5ee   :  { %v17882_v58 = vpop.permute.xlu0 %8163  ;;  %11826 = vmatmul.mubr.msk.bf16.gmra.mrb[56].mxu0 %vm9366_vm7, %v8088_v36  ;;  %v17885_v51 = vpop.permute.xlu1 %8231  ;;  %v8073_v35 = vmul.f32 %v8041_v62, %v7749_v48 }
 0x5ef   :  { %20735 = vst [vmem:[#allocation133_spill] sm:$0xff] %v17882_v58  ;;  %9597 = vmatprep.mubr.bf16.mxu0 %v20510_v21 }
 0x5f0   :  { %8555 = vperm.xlu0 %12383, %v20737_v60   ;;  %12337 = vset.pattern.permute.xlu1 %v20587_v27  ;;  %v8089_v1 = vpack.c.bf16 %v8073_v35, %v8072_v40  ;;  %v20749_v40 = vld [vmem:[#allocation77_spill] sm:$0xff] }
 0x5f1   :  { %8727 = vperm.xlu1 %12337, %v20699_v45  }
 0x5f2   :  { %v17895_v34 = vpop.permute.xlu0 %8171  ;;  %v17897_v36 = vpop.permute.xlu1 %8239 }
 0x5f3   :  { %20738 = vst [vmem:[#allocation202_spill] sm:$0xff] %v17895_v34 }
 0x5f4   :  { %8563 = vperm.xlu0 %12383, %v20739_v53  }
 0x5f5   :  { %8851 = vperm.xlu1 %12337, %v20551_v7  }
 0x5f6   :  { %v17901_v55 = vpop.permute.xlu0 %8179  ;;  %11827 = vmatmul.mubr.msk.bf16.gmra.mrb[60].mxu0 %vm9366_vm7, %v8089_v1  ;;  %v17904_v38 = vpop.permute.xlu1 %8247 }
 0x5f7   :  { %20740 = vst [vmem:[#allocation115_spill] sm:$0xff] %v17901_v55  ;;  %20741 = vst [vmem:[#allocation38_spill] sm:$0xff] %v17904_v38 }
 0x5f8   :  { %8571 = vperm.xlu0 %12383, %v20742_v57  }
 0x5f9   :  { %12338 = vset.pattern.permute.xlu1 %v20550_v54 }
 0x5fa   :  { %v17908_v31 = vpop.permute.xlu0 %8187  ;;  %9043 = vperm.xlu1 %12338, %v20711_v28   ;;  %v17911_v50 = vpop.permute.xlu1 %8255 }
 0x5fb   :  { %20743 = vst [vmem:[#allocation223_spill] sm:$0xff] %v17908_v31  ;;  %20744 = vst [vmem:[#allocation194_spill] sm:$0xff] %v17911_v50  ;;  %v20751_v31 = vld [vmem:[#allocation39_spill] sm:$0xff] }
 0x5fc   :  { %8579 = vperm.xlu0 %12383, %v20745_v11  }
 0x5fe   :  { %v17914_v15 = vpop.permute.xlu0 %8195  ;;  %9171 = vperm.xlu1 %12338, %v20551_v7  }
 0x5ff   :  { %20746 = vst [vmem:[#allocation42_spill] sm:$0xff] %v17914_v15  ;;  %v20752_v15 = vld [vmem:[#allocation44_spill] sm:$0xff] }
 0x600   :  { %8587 = vperm.xlu0 %12383, %v20747_v41   ;;  %v17918_v62 = vpop.permute.xlu1 %8383 }
 0x602   :  { %v17920_v48 = vpop.permute.xlu0 %8203  ;;  %9175 = vperm.xlu1 %12338, %v20453_v10  }
 0x603   :  { %20748 = vst [vmem:[#allocation53_spill] sm:$0xff] %v17920_v48  ;;  %v20753_v48 = vld [vmem:[#allocation102_spill] sm:$0xff] }
 0x604   :  { %8595 = vperm.xlu0 %12383, %v20749_v40   ;;  %v17924_v35 = vpop.permute.xlu1 %8507  ;;  %v20756_v40 = vld [vmem:[#allocation21_spill] sm:$0xff] }
 0x606   :  { %v17926_v1 = vpop.permute.xlu0 %8211  ;;  %12339 = vset.pattern.permute.xlu1 %v20564_v59 }
 0x607   :  { %20750 = vst [vmem:[#allocation14_spill] sm:$0xff] %v17926_v1  ;;  %8415 = vperm.xlu1 %12339, %v20751_v31   ;;  %v20754_v1 = vld [vmem:[#allocation88_spill] sm:$0xff] }
 0x608   :  { %8603 = vperm.xlu0 %12383, %v20752_v15  }
 0x609   :  { %v17931_v7 = vpop.permute.xlu1 %8699 }
 0x60a   :  { %v17933_v55 = vpop.permute.xlu0 %8219 }
 0x60b   :  { %8539 = vperm.xlu1 %12339, %v20559_v49  }
 0x60c   :  { %8611 = vperm.xlu0 %12383, %v20753_v48  }
 0x60d   :  { %v17937_v34 = vpop.permute.xlu1 %8827 }
 0x60e   :  { %v17939_v58 = vpop.permute.xlu0 %8227 }
 0x60f   :  { %12340 = vset.pattern.permute.xlu1 %v20587_v27 }
 0x610   :  { %8619 = vperm.xlu0 %12383, %v20754_v1   ;;  %8731 = vperm.xlu1 %12340, %v20710_v23  }
 0x611   :  { %v17944_v47 = vpop.permute.xlu1 %8831 }
 0x612   :  { %v17946_v15 = vpop.permute.xlu0 %8235 }
 0x613   :  { %20755 = vst [vmem:[#allocation162_spill] sm:$0xff] %v17946_v15  ;;  %v20790_v15 = vld [vmem:[#allocation125_spill] sm:$0xff] }
 0x614   :  { %8627 = vperm.xlu0 %12383, %v20756_v40   ;;  %8859 = vperm.xlu1 %12340, %v20559_v49  }
 0x616   :  { %v17950_v9 = vpop.permute.xlu0 %8243 }
 0x617   :  { %20757 = vst [vmem:[#allocation114_spill] sm:$0xff] %v17950_v9  ;;  %v17952_v48 = vpop.permute.xlu1 %9023 }
 0x618   :  { %12385 = vset.pattern.permute.xlu0 %v20587_v27  ;;  %8863 = vperm.xlu1 %12340, %v16133_v39  }
 0x619   :  { %8703 = vperm.xlu0 %12385, %v20475_v22  }
 0x61a   :  { %v17957_v1 = vpop.permute.xlu0 %8251 }
 0x61b   :  { %20758 = vst [vmem:[#allocation175_spill] sm:$0xff] %v17957_v1  ;;  %v17959_v41 = vpop.permute.xlu1 %9147 }
 0x61c   :  { %12341 = vset.pattern.permute.xlu1 %v20550_v54 }
 0x61d   :  { %8707 = vperm.xlu0 %12385, %v20244_v13   ;;  %9055 = vperm.xlu1 %12341, %v20751_v31  }
 0x61e   :  { %v17964_v40 = vpop.permute.xlu0 %8263 }
 0x61f   :  { %20759 = vst [vmem:[#allocation143_spill] sm:$0xff] %v17964_v40 }
 0x620   :  { %v17966_v50 = vpop.permute.xlu1 %8387 }
 0x621   :  { %8839 = vperm.xlu0 %12385, %v20448_v61   ;;  %9179 = vperm.xlu1 %12341, %v20559_v49   ;;  %v20764_v61 = vld [vmem:[#allocation55_spill] sm:$0xff] }
 0x622   :  { %v17970_v22 = vpop.permute.xlu0 %8271 }
 0x623   :  { %20760 = vst [vmem:[#allocation204_spill] sm:$0xff] %v17970_v22  ;;  %v20766_v22 = vld [vmem:[#allocation49_spill] sm:$0xff] }
 0x624   :  { %v17972_v26 = vpop.permute.xlu1 %8515 }
 0x625   :  { %8719 = vperm.xlu0 %12385, %v20641_v37   ;;  %12342 = vset.pattern.permute.xlu1 %v20761_v4 }
 0x626   :  { %v17976_v13 = vpop.permute.xlu0 %8279  ;;  %8259 = vperm.xlu1 %12342, %v20729_v6  }
 0x627   :  { %20762 = vst [vmem:[#allocation124_spill] sm:$0xff] %v17976_v13 }
 0x628   :  { %v17979_v40 = vpop.permute.xlu1 %8519 }
 0x629   :  { %8723 = vperm.xlu0 %12385, %v20711_v28  }
 0x62a   :  { %v17982_v18 = vpop.permute.xlu0 %8287  ;;  %12343 = vset.pattern.permute.xlu1 %v20564_v59 }
 0x62b   :  { %20763 = vst [vmem:[#allocation72_spill] sm:$0xff] %v17982_v18  ;;  %8419 = vperm.xlu1 %12343, %v20764_v61  }
 0x62d   :  { %8855 = vperm.xlu0 %12385, %v20453_v10   ;;  %v17987_v49 = vpop.permute.xlu1 %8711 }
 0x62e   :  { %v17989_v37 = vpop.permute.xlu0 %8295 }
 0x62f   :  { %20765 = vst [vmem:[#allocation225_spill] sm:$0xff] %v17989_v37  ;;  %8423 = vperm.xlu1 %12343, %v20766_v22   ;;  %v20770_v37 = vld [vmem:[#allocation59_spill] sm:$0xff] }
 0x631   :  { %8735 = vperm.xlu0 %12385, %v20751_v31   ;;  %v17993_v13 = vpop.permute.xlu1 %8835 }
 0x632   :  { %v17995_v1 = vpop.permute.xlu0 %8303 }
 0x633   :  { %20767 = vst [vmem:[#allocation196_spill] sm:$0xff] %v17995_v1  ;;  %8551 = vperm.xlu1 %12343, %v20456_v14   ;;  %v20772_v1 = vld [vmem:[#allocation70_spill] sm:$0xff] }
 0x635   :  { %8743 = vperm.xlu0 %12385, %v20766_v22  }
 0x636   :  { %v17999_v28 = vpop.permute.xlu0 %8311 }
 0x637   :  { %20768 = vst [vmem:[#allocation13_spill] sm:$0xff] %v17999_v28  ;;  %12344 = vset.pattern.permute.xlu1 %v20587_v27  ;;  %v18002_v10 = vpop.permute.xlu1 %9027  ;;  %v20775_v28 = vld [vmem:[#allocation79_spill] sm:$0xff] }
 0x638   :  { %20769 = vst [vmem:[#allocation91_spill] sm:$0xff] %v18002_v10  ;;  %8739 = vperm.xlu1 %12344, %v20764_v61  }
 0x639   :  { %8751 = vperm.xlu0 %12385, %v20770_v37  }
 0x63a   :  { %v18006_v18 = vpop.permute.xlu0 %8319 }
 0x63b   :  { %20771 = vst [vmem:[#allocation56_spill] sm:$0xff] %v18006_v18  ;;  %v18008_v31 = vpop.permute.xlu1 %9155  ;;  %v20777_v18 = vld [vmem:[#allocation90_spill] sm:$0xff] }
 0x63c   :  { %8867 = vperm.xlu1 %12344, %v20729_v6  }
 0x63d   :  { %8759 = vperm.xlu0 %12385, %v20772_v1  }
 0x63e   :  { %v18012_v38 = vpop.permute.xlu0 %8327 }
 0x63f   :  { %20773 = vst [vmem:[#allocation164_spill] sm:$0xff] %v18012_v38  ;;  %v18014_v5 = vpop.permute.xlu1 %9159  ;;  %v20780_v38 = vld [vmem:[#allocation100_spill] sm:$0xff] }
 0x640   :  { %20774 = vst [vmem:[#allocation17_spill] sm:$0xff] %v18014_v5  ;;  %8871 = vperm.xlu1 %12344, %v20456_v14  }
 0x641   :  { %8767 = vperm.xlu0 %12385, %v20775_v28   ;;  %v20781_v28 = vld [vmem:[#allocation110_spill] sm:$0xff] }
 0x642   :  { %v18018_v9 = vpop.permute.xlu0 %8335 }
 0x643   :  { %20776 = vst [vmem:[#allocation177_spill] sm:$0xff] %v18018_v9 }
 0x644   :  { %12345 = vset.pattern.permute.xlu1 %v20550_v54  ;;  %v18021_v11 = vpop.permute.xlu1 %8399 }
 0x645   :  { %8775 = vperm.xlu0 %12385, %v20777_v18   ;;  %9063 = vperm.xlu1 %12345, %v20766_v22   ;;  %v20783_v22 = vld [vmem:[#allocation118_spill] sm:$0xff] }
 0x646   :  { %v18025_v2 = vpop.permute.xlu0 %8343 }
 0x647   :  { %20778 = vst [vmem:[#allocation145_spill] sm:$0xff] %v18025_v2 }
 0x648   :  { %v18027_v30 = vpop.permute.xlu1 %8523 }
 0x649   :  { %20779 = vst [vmem:[#allocation206_spill] sm:$0xff] %v18027_v30  ;;  %8783 = vperm.xlu0 %12385, %v20780_v38   ;;  %9187 = vperm.xlu1 %12345, %v20729_v6  }
 0x64b   :  { %v18031_v32 = vpop.permute.xlu0 %8379 }
 0x64d   :  { %8791 = vperm.xlu0 %12385, %v20781_v28   ;;  %12346 = vset.pattern.permute.xlu1 %v20761_v4  ;;  %v18035_v9 = vpop.permute.xlu1 %8715 }
 0x64e   :  { %20782 = vst [vmem:[#allocation54_spill] sm:$0xff] %v18035_v9  ;;  %8267 = vperm.xlu1 %12346, %v20737_v60  }
 0x64f   :  { %v18038_v18 = vpop.permute.xlu0 %8511 }
 0x651   :  { %8799 = vperm.xlu0 %12385, %v20783_v22   ;;  %v18041_v2 = vpop.f32.mrb[0].mxu0  ;;  %v18043_v30 = vpop.permute.xlu1 %8843 }
 0x652   :  { %20784 = vst [vmem:[#allocation123_spill] sm:$0xff] %v18041_v2  ;;  %20785 = vst [vmem:[#allocation83_spill] sm:$0xff] %v18043_v30  ;;  %v18045_v38 = vpop.f32.mrb[1].mxu0  ;;  %12347 = vset.pattern.permute.xlu1 %v20564_v59  ;;  %v20793_v2 = vld [vmem:[#allocation129_spill] sm:$0xff] }
 0x653   :  { %20786 = vst [vmem:[#allocation227_spill] sm:$0xff] %v18045_v38  ;;  %v18048_v6 = vpop.permute.xlu0 %8391  ;;  %v18050_v28 = vpop.f32.mrb[2].mxu0  ;;  %8427 = vperm.xlu1 %12347, %v20788_v56  }
 0x654   :  { %20787 = vst [vmem:[#allocation198_spill] sm:$0xff] %v18050_v28  ;;  %v18053_v9 = vpop.f32.mrb[3].mxu0 }
 0x655   :  { %20789 = vst [vmem:[#allocation18_spill] sm:$0xff] %v18053_v9  ;;  %8807 = vperm.xlu0 %12385, %v20790_v15   ;;  %v18056_v12 = vpop.permute.xlu1 %8847  ;;  %v20798_v15 = vld [vmem:[#allocation131_spill] sm:$0xff] }
 0x656   :  { %20791 = vst [vmem:[#allocation64_spill] sm:$0xff] %v18056_v12 }
 0x657   :  { %v18058_v22 = vpop.permute.xlu0 %8395  ;;  %8431 = vperm.xlu1 %12347, %v20770_v37  }
 0x658   :  { %20792 = vst [vmem:[#allocation52_spill] sm:$0xff] %v18058_v22 }
 0x659   :  { %8815 = vperm.xlu0 %12385, %v20793_v2   ;;  %v18062_v38 = vpop.f32.mrb[4].mxu0 }
 0x65a   :  { %20794 = vst [vmem:[#allocation166_spill] sm:$0xff] %v18062_v38  ;;  %v18064_v30 = vpop.f32.mrb[5].mxu0  ;;  %v18066_v5 = vpop.permute.xlu1 %9039 }
 0x65b   :  { %20795 = vst [vmem:[#allocation134_spill] sm:$0xff] %v18064_v30  ;;  %v18068_v28 = vpop.permute.xlu0 %8527  ;;  %v18070_v10 = vpop.f32.mrb[6].mxu0  ;;  %8559 = vperm.xlu1 %12347, %v16183_v42  }
 0x65c   :  { %20796 = vst [vmem:[#allocation179_spill] sm:$0xff] %v18070_v10  ;;  %v18073_v9 = vpop.f32.mrb[7].mxu0 }
 0x65d   :  { %20797 = vst [vmem:[#allocation147_spill] sm:$0xff] %v18073_v9  ;;  %8823 = vperm.xlu0 %12385, %v20798_v15  }
 0x65e   :  { %v18076_v12 = vpop.permute.xlu1 %9163 }
 0x65f   :  { %20799 = vst [vmem:[#allocation208_spill] sm:$0xff] %v18076_v12  ;;  %v18078_v22 = vpop.permute.xlu0 %8407  ;;  %12348 = vset.pattern.permute.xlu1 %v20587_v27 }
 0x660   :  { %20800 = vst [vmem:[#allocation23_spill] sm:$0xff] %v18078_v22  ;;  %8747 = vperm.xlu1 %12348, %v20788_v56  }
 0x661   :  { %12387 = vset.pattern.permute.xlu0 %v20550_v54  ;;  %v18083_v2 = vpop.f32.mrb[8].mxu0 }
 0x662   :  { %20801 = vst [vmem:[#allocation73_spill] sm:$0xff] %v18083_v2  ;;  %9047 = vperm.xlu0 %12387, %v20699_v45   ;;  %v18086_v10 = vpop.f32.mrb[9].mxu0 }
 0x663   :  { %20802 = vst [vmem:[#allocation40_spill] sm:$0xff] %v18086_v10  ;;  %v18088_v30 = vpop.permute.xlu0 %8411  ;;  %v18090_v9 = vpop.f32.mrb[10].mxu0 }
 0x664   :  { %20803 = vst [vmem:[#allocation228_spill] sm:$0xff] %v18088_v30  ;;  %20804 = vst [vmem:[#allocation200_spill] sm:$0xff] %v18090_v9  ;;  %v18092_v15 = vpop.f32.mrb[11].mxu0  ;;  %v18094_v38 = vpop.permute.xlu1 %8403  ;;  %8875 = vperm.xlu1 %12348, %v20737_v60  }
 0x665   :  { %20805 = vst [vmem:[#allocation101_spill] sm:$0xff] %v18092_v15 }
 0x666   :  { %9051 = vperm.xlu0 %12387, %v20710_v23  }
 0x667   :  { %v18098_v22 = vpop.permute.xlu0 %8543 }
 0x668   :  { %20806 = vst [vmem:[#allocation68_spill] sm:$0xff] %v18098_v22  ;;  %v18100_v12 = vpop.permute.xlu1 %8531  ;;  %8879 = vperm.xlu1 %12348, %v16183_v42  }
 0x669   :  { %v18103_v45 = vpop.f32.mrb[12].mxu0 }
 0x66a   :  { %20807 = vst [vmem:[#allocation168_spill] sm:$0xff] %v18103_v45  ;;  %9183 = vperm.xlu0 %12387, %v16133_v39   ;;  %v18106_v10 = vpop.f32.mrb[13].mxu0 }
 0x66b   :  { %20808 = vst [vmem:[#allocation136_spill] sm:$0xff] %v18106_v10  ;;  %v18108_v9 = vpop.permute.xlu0 %8547  ;;  %v18110_v15 = vpop.f32.mrb[14].mxu0 }
 0x66c   :  { %20809 = vst [vmem:[#allocation181_spill] sm:$0xff] %v18108_v9  ;;  %20810 = vst [vmem:[#allocation149_spill] sm:$0xff] %v18110_v15  ;;  %v18112_v2 = vpop.f32.mrb[15].mxu0  ;;  %v18114_v30 = vpop.permute.xlu1 %8535  ;;  %12349 = vset.pattern.permute.xlu1 %v20550_v54 }
 0x66d   :  { %20811 = vst [vmem:[#allocation210_spill] sm:$0xff] %v18112_v2  ;;  %9071 = vperm.xlu1 %12349, %v20770_v37  }
 0x66e   :  { %9059 = vperm.xlu0 %12387, %v20764_v61  }
 0x66f   :  { %v18119_v23 = vpop.permute.xlu0 %8555 }
 0x670   :  { %20812 = vst [vmem:[#allocation97_spill] sm:$0xff] %v18119_v23  ;;  %v18121_v45 = vpop.permute.xlu1 %8727 }
 0x671   :  { %v18123_v39 = vpop.f32.mrb[16].mxu0  ;;  %9195 = vperm.xlu1 %12349, %v20737_v60  }
 0x672   :  { %20813 = vst [vmem:[#allocation93_spill] sm:$0xff] %v18123_v39  ;;  %9191 = vperm.xlu0 %12387, %v20456_v14   ;;  %v18127_v15 = vpop.f32.mrb[17].mxu0  ;;  %v20823_v39 = vld [vmem:[#allocation75_spill] sm:$0xff] }
 0x673   :  { %20814 = vst [vmem:[#allocation132_spill] sm:$0xff] %v18127_v15  ;;  %v18129_v2 = vpop.permute.xlu0 %8563  ;;  %v18131_v10 = vpop.f32.mrb[18].mxu0 }
 0x674   :  { %20815 = vst [vmem:[#allocation201_spill] sm:$0xff] %v18129_v2  ;;  %20816 = vst [vmem:[#allocation74_spill] sm:$0xff] %v18131_v10  ;;  %v18133_v9 = vpop.f32.mrb[19].mxu0  ;;  %v18135_v37 = vpop.permute.xlu1 %8851 }
 0x675   :  { %20817 = vst [vmem:[#allocation98_spill] sm:$0xff] %v18133_v9  ;;  %12350 = vset.pattern.permute.xlu1 %v20761_v4 }
 0x676   :  { %9067 = vperm.xlu0 %12387, %v20788_v56   ;;  %8275 = vperm.xlu1 %12350, %v20739_v53  }
 0x677   :  { %v18140_v61 = vpop.permute.xlu0 %8571 }
 0x678   :  { %20818 = vst [vmem:[#allocation170_spill] sm:$0xff] %v18140_v61 }
 0x679   :  { %v18142_v60 = vpop.f32.mrb[20].mxu0  ;;  %v18144_v14 = vpop.permute.xlu1 %9043 }
 0x67a   :  { %20819 = vst [vmem:[#allocation138_spill] sm:$0xff] %v18142_v60  ;;  %v18146_v15 = vpop.f32.mrb[21].mxu0  ;;  %9199 = vperm.xlu0 %12387, %v16183_v42   ;;  %12351 = vset.pattern.permute.xlu1 %v20564_v59 }
 0x67b   :  { %20820 = vst [vmem:[#allocation183_spill] sm:$0xff] %v18146_v15  ;;  %v18150_v9 = vpop.permute.xlu0 %8579  ;;  %v18152_v10 = vpop.f32.mrb[22].mxu0  ;;  %8435 = vperm.xlu1 %12351, %v20823_v39  }
 0x67c   :  { %20821 = vst [vmem:[#allocation151_spill] sm:$0xff] %v18150_v9  ;;  %20822 = vst [vmem:[#allocation212_spill] sm:$0xff] %v18152_v10  ;;  %v18155_v56 = vpop.f32.mrb[23].mxu0 }
 0x67d   :  { %20824 = vst [vmem:[#allocation41_spill] sm:$0xff] %v18155_v56  ;;  %v18157_v2 = vpop.permute.xlu1 %9171 }
 0x67e   :  { %9075 = vperm.xlu0 %12387, %v20823_v39  }
 0x67f   :  { %v18160_v60 = vpop.permute.xlu0 %8587  ;;  %8439 = vperm.xlu1 %12351, %v20772_v1  }
 0x680   :  { %20825 = vst [vmem:[#allocation50_spill] sm:$0xff] %v18160_v60  ;;  %v20833_v60 = vld [vmem:[#allocation84_spill] sm:$0xff] }
 0x681   :  { %v18163_v15 = vpop.f32.mrb[24].mxu0  ;;  %v18165_v42 = vpop.permute.xlu1 %9175 }
 0x682   :  { %20826 = vst [vmem:[#allocation229_spill] sm:$0xff] %v18163_v15  ;;  %20827 = vst [vmem:[#allocation203_spill] sm:$0xff] %v18165_v42  ;;  %v18167_v61 = vpop.f32.mrb[25].mxu0  ;;  %9207 = vperm.xlu0 %12387, %v16215_v0  }
 0x683   :  { %20828 = vst [vmem:[#allocation111_spill] sm:$0xff] %v18167_v61  ;;  %v18170_v10 = vpop.permute.xlu0 %8595  ;;  %v18172_v9 = vpop.f32.mrb[26].mxu0  ;;  %8567 = vperm.xlu1 %12351, %v16215_v0  }
 0x684   :  { %20829 = vst [vmem:[#allocation107_spill] sm:$0xff] %v18170_v10  ;;  %20830 = vst [vmem:[#allocation172_spill] sm:$0xff] %v18172_v9  ;;  %v18175_v56 = vpop.f32.mrb[27].mxu0 }
 0x685   :  { %20831 = vst [vmem:[#allocation140_spill] sm:$0xff] %v18175_v56 }
 0x686   :  { %v18177_v23 = vpop.permute.xlu1 %8415  ;;  %9083 = vperm.xlu0 %12387, %v20833_v60  }
 0x687   :  { %20832 = vst [vmem:[#allocation185_spill] sm:$0xff] %v18177_v23  ;;  %v18180_v22 = vpop.permute.xlu0 %8603  ;;  %12352 = vset.pattern.permute.xlu1 %v20587_v27 }
 0x688   :  { %20834 = vst [vmem:[#allocation153_spill] sm:$0xff] %v18180_v22  ;;  %8755 = vperm.xlu1 %12352, %v20823_v39   ;;  %v20841_v22 = vld [vmem:[#allocation95_spill] sm:$0xff] }
 0x689   :  { %v18184_v61 = vpop.f32.mrb[28].mxu0 }
 0x68a   :  { %20835 = vst [vmem:[#allocation232_spill] sm:$0xff] %v18184_v61  ;;  %v18186_v15 = vpop.f32.mrb[29].mxu0  ;;  %v18188_v10 = vpop.permute.xlu1 %8539  ;;  %9215 = vperm.xlu0 %12387, %v16238_v25  }
 0x68b   :  { %20836 = vst [vmem:[#allocation214_spill] sm:$0xff] %v18186_v15  ;;  %20837 = vst [vmem:[#allocation48_spill] sm:$0xff] %v18188_v10  ;;  %v18191_v9 = vpop.permute.xlu0 %8611  ;;  %v18193_v56 = vpop.f32.mrb[30].mxu0  ;;  %v8634_v15 = vsel %vm7102_vm0, %v18031_v32, %v17924_v35  ;;  %v8635_v32 = vsel %vm7102_vm0, %v17918_v62, %v18038_v18  ;;  %v20849_v35 = vld [vmem:[#allocation105_spill] sm:$0xff] }
 0x68c   :  { %20838 = vst [vmem:[#allocation82_spill] sm:$0xff] %v18191_v9  ;;  %20839 = vst [vmem:[#allocation86_spill] sm:$0xff] %v18193_v56  ;;  %v18195_v23 = vpop.f32.mrb[31].mxu0  ;;  %8883 = vperm.xlu1 %12352, %v20739_v53  }
 0x68d   :  { %20840 = vst [vmem:[#allocation28_spill] sm:$0xff] %v18195_v23 }
 0x68e   :  { %9091 = vperm.xlu0 %12387, %v20841_v22  }
 0x68f   :  { %v18199_v42 = vpop.permute.xlu0 %8619  ;;  %v18201_v39 = vpop.permute.xlu1 %8731 }
 0x690   :  { %20842 = vst [vmem:[#allocation205_spill] sm:$0xff] %v18199_v42  ;;  %20843 = vst [vmem:[#allocation243_spill] sm:$0xff] %v18201_v39  ;;  %8887 = vperm.xlu1 %12352, %v16215_v0   ;;  %v8346_v42 = vsel %vm6745_vm3, %v17466_v46, %v17933_v55  ;;  %v8347_v46 = vsel %vm6745_vm3, %v17696_v43, %v17858_v20  ;;  %v8954_v55 = vsel %vm7427_vm9, %v17931_v7, %v17937_v34 }
 0x691   :  { %v18208_v9 = vpop.f32.mrb[32].mxu0  ;;  %v8666_v0 = vmul.f32 %v8634_v15, %v8346_v42  ;;  %v8667_v42 = vmul.f32 %v8635_v32, %v8347_v46  ;;  %v9275_v20 = vsel %vm17189_vm4, %v17952_v48, %v17602_v24  ;;  %v9274_v34 = vsel %vm17189_vm4, %v17576_v17, %v17959_v41 }
 0x692   :  { %20844 = vst [vmem:[#allocation247_spill] sm:$0xff] %v18208_v9  ;;  %v18210_v56 = vpop.f32.mrb[33].mxu0  ;;  %9223 = vperm.xlu0 %12387, %v16273_v19   ;;  %v8348_v24 = vsel %vm6745_vm3, %v17485_v63, %v17939_v58  ;;  %v8637_v17 = vsel %vm7102_vm0, %v18048_v6, %v17979_v40  ;;  %v8349_v63 = vsel %vm6745_vm3, %v17513_v29, %v17885_v51 }
 0x693   :  { %20845 = vst [vmem:[#allocation121_spill] sm:$0xff] %v18210_v56  ;;  %v18217_v23 = vpop.permute.xlu0 %8627  ;;  %v18219_v61 = vpop.f32.mrb[34].mxu0  ;;  %v8986_v15 = vmul.f32 %v8954_v55, %v8666_v0  ;;  %v8669_v58 = vmul.f32 %v8637_v17, %v8349_v63  ;;  %v8639_v6 = vsel %vm7102_vm0, %v18021_v11, %v18068_v28  ;;  %v20865_v63 = vld [vmem:[#allocation206_spill] sm:$0xff] }
 0x694   :  { %20846 = vst [vmem:[#allocation66_spill] sm:$0xff] %v18217_v23  ;;  %20847 = vst [vmem:[#allocation174_spill] sm:$0xff] %v18219_v61  ;;  %v18221_v39 = vpop.f32.mrb[35].mxu0  ;;  %v18223_v10 = vpop.permute.xlu1 %8859  ;;  %12353 = vset.pattern.permute.xlu1 %v20550_v54 }
 0x695   :  { %20848 = vst [vmem:[#allocation142_spill] sm:$0xff] %v18221_v39  ;;  %9079 = vperm.xlu1 %12353, %v20772_v1   ;;  %v9306_v7 = vmul.f32 %v9274_v34, %v8986_v15 }
 0x696   :  { %9099 = vperm.xlu0 %12387, %v20849_v35  }
 0x698   :  { %v8704_v23 = vpop.permute.xlu0 %8703  ;;  %v18240_v39 = vpop.permute.xlu1 %8863 }
 0x699   :  { %v8955_v62 = vsel %vm7427_vm9, %v8704_v23, %v17944_v47  ;;  %v18245_v1 = vpop.f32.mrb[36].mxu0  ;;  %9203 = vperm.xlu1 %12353, %v20739_v53   ;;  %v8636_v47 = vsel %vm7102_vm0, %v17966_v50, %v17972_v26 }
 0x69a   :  { %20850 = vst [vmem:[#allocation187_spill] sm:$0xff] %v18245_v1  ;;  %v8987_v18 = vmul.f32 %v8955_v62, %v8667_v42  ;;  %v18248_v43 = vpop.f32.mrb[37].mxu0  ;;  %9231 = vperm.xlu0 %12387, %v20597_v8   ;;  %v8668_v41 = vmul.f32 %v8636_v47, %v8348_v24  ;;  %v20856_v42 = vld [vmem:[#allocation47_spill] sm:$0xff]  ;;  %v20857_v62 = vld [vmem:[#allocation33_spill] sm:$0xff] }
 0x69b   :  { %20851 = vst [vmem:[#allocation155_spill] sm:$0xff] %v18248_v43  ;;  %v18263_v53 = vpop.f32.mrb[38].mxu0  ;;  %v8351_v11 = vsel %vm6745_vm3, %v20857_v62, %v17897_v36  ;;  %v12395_v36 = vld [vmem:[#allocation5] ss:$16 sps:$4 sm:$0xff]  }
 0x69c   :  { %20852 = vst [vmem:[#allocation234_spill] sm:$0xff] %v18263_v53  ;;  %v9307_v23 = vmul.f32 %v9275_v20, %v8987_v18  ;;  %v8708_v0 = vpop.permute.xlu0 %8707  ;;  %v18265_v32 = vpop.f32.mrb[39].mxu0  ;;  %v20859_v18 = vld [vmem:[#allocation17_spill] sm:$0xff]  ;;  %v20860_v20 = vld [vmem:[#allocation120_spill] sm:$0xff] }
 0x69d   :  { %20853 = vst [vmem:[#allocation216_spill] sm:$0xff] %v18265_v32  ;;  %v8956_v26 = vsel %vm7427_vm9, %v8708_v0, %v17993_v13  ;;  %v18278_v50 = vpop.permute.xlu1 %9055  ;;  %12354 = vset.pattern.permute.xlu1 %v20761_v4  ;;  %v9277_v34 = vsel %vm17189_vm4, %v20860_v20, %v20859_v18  ;;  %v20871_v20 = vld [vmem:[#allocation79_spill] sm:$0xff] }
 0x69e   :  { %v9338_v48 = vpack.c.bf16 %v9307_v23, %v9306_v7  ;;  %8283 = vperm.xlu1 %12354, %v20742_v57   ;;  %9107 = vperm.xlu0 %12387, %v20285_v44   ;;  %v8988_v40 = vmul.f32 %v8956_v26, %v8668_v41  ;;  %v8671_v7 = vmul.f32 %v8639_v6, %v8351_v11  ;;  %v12397_v26 = vld [vmem:[#allocation5 + $0x4] ss:$16 sps:$4 sm:$0xff]   ;;  %v20863_v41 = vld [vmem:[#allocation162_spill] sm:$0xff] }
 0x69f   :  { %10341 = vmatprep.subr.bf16.mxu0 %v12397_v26  ;;  %v20868_v11 = vld [vmem:[#allocation122_spill] sm:$0xff]  ;;  %v20874_v26 = vld [vmem:[#allocation80_spill] sm:$0xff] }
 0x6a0   :  { %11830 = vmatmul.mubr.msk.bf16.vlgmr.msra.gmra.mrb[0].mxu1 %vm9366_vm7, %v9338_v48  ;;  %v8840_v13 = vpop.permute.xlu0 %8839  ;;  %v20864_v48 = vld [vmem:[#allocation24_spill] sm:$0xff]  ;;  %10342 = vmatpush1.bf16.msra.mxu0 %v12395_v36 }
 0x6a1   :  { %v8957_v46 = vsel %vm7427_vm9, %v17987_v49, %v8840_v13  ;;  %9710 = vmatprep.mubr.bf16.mxu1 %v20510_v21  ;;  %v18296_v55 = vpop.f32.mrb[40].mxu0  ;;  %v18298_v15 = vpop.permute.xlu1 %9179  ;;  %v20858_v49 = vld [vmem:[#allocation91_spill] sm:$0xff] }
 0x6a2   :  { %20854 = vst [vmem:[#allocation96_spill] sm:$0xff] %v18296_v55  ;;  %v8989_v29 = vmul.f32 %v8957_v46, %v8669_v58  ;;  %v18300_v51 = vpop.f32.mrb[41].mxu0  ;;  %12355 = vset.pattern.permute.xlu1 %v20564_v59  ;;  %9239 = vperm.xlu0 %12387, %v20856_v42   ;;  %v9276_v28 = vsel %vm17189_vm4, %v20858_v49, %v18008_v31  ;;  %v20866_v58 = vld [vmem:[#allocation52_spill] sm:$0xff]  ;;  %v20869_v49 = vld [vmem:[#allocation83_spill] sm:$0xff] }
 0x6a3   :  { %20855 = vst [vmem:[#allocation60_spill] sm:$0xff] %v18300_v51  ;;  %v18316_v47 = vpop.f32.mrb[42].mxu0  ;;  %8443 = vperm.xlu1 %12355, %v20833_v60   ;;  %v9308_v23 = vmul.f32 %v9276_v28, %v8988_v40  ;;  %v8350_v31 = vsel %vm6745_vm3, %v20864_v48, %v20863_v41  ;;  %v8638_v13 = vsel %vm7102_vm0, %v20866_v58, %v20865_v63  ;;  %v20867_v46 = vld [vmem:[#allocation64_spill] sm:$0xff]  ;;  %v20870_v28 = vld [vmem:[#allocation54_spill] sm:$0xff]  ;;  %v12400_v48 = vld [vmem:[#allocation5 + $0x24] ss:$16 sps:$4 sm:$0xff]  }
 0x6a4   :  { %20861 = vst [vmem:[#allocation27_spill] sm:$0xff] %v18316_v47  ;;  %v9309_v0 = vmul.f32 %v9277_v34, %v8989_v29  ;;  %v8720_v24 = vpop.permute.xlu0 %8719  ;;  %v18319_v17 = vpop.f32.mrb[43].mxu0  ;;  %v8958_v18 = vsel %vm7427_vm9, %v20870_v28, %v20869_v49  ;;  %v8670_v34 = vmul.f32 %v8638_v13, %v8350_v31  ;;  %10343 = vmatprep.subr.bf16.mxu0 %v12400_v48  ;;  %v20895_v47 = vld [vmem:[#allocation12_spill] sm:$0xff]  ;;  %v12418_v55 = vld [vmem:[#allocation5 + $0xe4] ss:$16 sps:$4 sm:$0xff]  }
 0x6a5   :  { %20862 = vst [vmem:[#allocation207_spill] sm:$0xff] %v18319_v17  ;;  %v8959_v40 = vsel %vm7427_vm9, %v8720_v24, %v20867_v46  ;;  %v18332_v6 = vpop.permute.xlu1 %8259  ;;  %v12398_v24 = vld [vmem:[#allocation5 + $0x20] ss:$16 sps:$4 sm:$0xff]  }
 0x6a6   :  { %v9339_v29 = vpack.c.bf16 %v9309_v0, %v9308_v23  ;;  %v8991_v62 = vmul.f32 %v8959_v40, %v8671_v7  ;;  %9115 = vperm.xlu0 %12387, %v20868_v11   ;;  %v20872_v23 = vld [vmem:[#allocation158_spill] sm:$0xff]  ;;  %v20873_v0 = vld [vmem:[#allocation208_spill] sm:$0xff]  ;;  %v8990_v31 = vmul.f32 %v8958_v18, %v8670_v34  ;;  %v20877_v40 = vld [vmem:[#allocation11_spill] sm:$0xff]  ;;  %10344 = vmatpush1.bf16.msra.mxu0 %v12398_v24 }
 0x6a7   :  { %8447 = vperm.xlu1 %12355, %v20871_v20   ;;  %v9279_v7 = vsel %vm17189_vm4, %v18066_v5, %v20872_v23  ;;  %v9278_v63 = vsel %vm17189_vm4, %v20874_v26, %v20873_v0  ;;  %v12401_v23 = vld [vmem:[#allocation5 + $0x40] ss:$16 sps:$4 sm:$0xff]   ;;  %v12403_v18 = vld [vmem:[#allocation5 + $0x44] ss:$16 sps:$4 sm:$0xff]  }
 0x6a8   :  { %11831 = vmatmul.mubr.msk.bf16.gmra.mrb[4].mxu1 %vm9366_vm7, %v9339_v29  ;;  %v18341_v41 = vpop.permute.xlu0 %8723  ;;  %v9311_v58 = vmul.f32 %v9279_v7, %v8991_v62  ;;  %v9310_v5 = vmul.f32 %v9278_v63, %v8990_v31  ;;  %10345 = vmatprep.subr.bf16.mxu0 %v12403_v18  ;;  %v20880_v7 = vld [vmem:[#allocation128_spill] sm:$0xff]  ;;  %v12404_v24 = vld [vmem:[#allocation5 + $0x60] ss:$16 sps:$4 sm:$0xff]   ;;  %v12406_v0 = vld [vmem:[#allocation5 + $0x64] ss:$16 sps:$4 sm:$0xff]  }
 0x6a9   :  { %9720 = vmatprep.mubr.bf16.mxu1 %v20510_v21  ;;  %v18352_v36 = vpop.f32.mrb[44].mxu0 }
 0x6aa   :  { %20875 = vst [vmem:[#allocation244_spill] sm:$0xff] %v18352_v36  ;;  %v18354_v13 = vpop.f32.mrb[45].mxu0  ;;  %v18356_v46 = vpop.permute.xlu1 %8419  ;;  %9247 = vperm.xlu0 %12387, %v20877_v40   ;;  %v9340_v62 = vpack.c.bf16 %v9311_v58, %v9310_v5  ;;  %10346 = vmatpush1.bf16.msra.mxu0 %v12401_v23  ;;  %v20883_v58 = vld [vmem:[#allocation57_spill] sm:$0xff] }
 0x6ab   :  { %20876 = vst [vmem:[#allocation249_spill] sm:$0xff] %v18354_v13  ;;  %v18359_v29 = vpop.f32.mrb[46].mxu0  ;;  %8575 = vperm.xlu1 %12355, %v16238_v25   ;;  %10347 = vmatprep.subr.bf16.mxu0 %v12406_v0 }
 0x6ac   :  { %20878 = vst [vmem:[#allocation94_spill] sm:$0xff] %v18359_v29  ;;  %v18362_v49 = vpop.permute.xlu0 %8855  ;;  %v18364_v28 = vpop.f32.mrb[47].mxu0 }
 0x6ad   :  { %20879 = vst [vmem:[#allocation62_spill] sm:$0xff] %v18364_v28 }
 0x6ae   :  { %v18366_v34 = vpop.permute.xlu1 %8423  ;;  %9123 = vperm.xlu0 %12387, %v20880_v7   ;;  %10348 = vmatpush1.bf16.msra.mxu0 %v12404_v24  ;;  %v12410_v24 = vld [vmem:[#allocation5 + $0xa0] ss:$16 sps:$4 sm:$0xff]  }
 0x6af   :  { %12356 = vset.pattern.permute.xlu1 %v20587_v27 }
 0x6b0   :  { %11832 = vmatmul.mubr.msk.bf16.gmra.mrb[8].mxu1 %vm9366_vm7, %v9340_v62  ;;  %v18371_v48 = vpop.permute.xlu0 %8735  ;;  %8763 = vperm.xlu1 %12356, %v20833_v60   ;;  %v12407_v60 = vld [vmem:[#allocation5 + $0x80] ss:$16 sps:$4 sm:$0xff]   ;;  %v12409_v62 = vld [vmem:[#allocation5 + $0x84] ss:$16 sps:$4 sm:$0xff]  }
 0x6b1   :  { %v18374_v26 = vpop.f32.mrb[48].mxu0  ;;  %9730 = vmatprep.mubr.bf16.mxu1 %v20510_v21  ;;  %10349 = vmatprep.subr.bf16.mxu0 %v12409_v62 }
 0x6b2   :  { %20881 = vst [vmem:[#allocation176_spill] sm:$0xff] %v18374_v26  ;;  %v18377_v63 = vpop.f32.mrb[49].mxu0  ;;  %v18379_v31 = vpop.permute.xlu1 %8551  ;;  %9255 = vperm.xlu0 %12387, %v20883_v58   ;;  %v20886_v26 = vld [vmem:[#allocation130_spill] sm:$0xff]  ;;  %10350 = vmatpush1.bf16.msra.mxu0 %v12407_v60  ;;  %v12415_v60 = vld [vmem:[#allocation5 + $0xc4] ss:$16 sps:$4 sm:$0xff]  }
 0x6b3   :  { %20882 = vst [vmem:[#allocation144_spill] sm:$0xff] %v18377_v63  ;;  %v18382_v5 = vpop.f32.mrb[50].mxu0 }
 0x6b4   :  { %20884 = vst [vmem:[#allocation189_spill] sm:$0xff] %v18382_v5  ;;  %v18384_v23 = vpop.permute.xlu0 %8743  ;;  %v18386_v18 = vpop.f32.mrb[51].mxu0  ;;  %8891 = vperm.xlu1 %12356, %v20742_v57   ;;  %v12412_v5 = vld [vmem:[#allocation5 + $0xa4] ss:$16 sps:$4 sm:$0xff]  }
 0x6b5   :  { %20885 = vst [vmem:[#allocation157_spill] sm:$0xff] %v18386_v18  ;;  %v20889_v18 = vld [vmem:[#allocation69_spill] sm:$0xff]  ;;  %10351 = vmatprep.subr.bf16.mxu0 %v12412_v5 }
 0x6b6   :  { %9131 = vperm.xlu0 %12387, %v20886_v26   ;;  %10352 = vmatpush1.bf16.msra.mxu0 %v12410_v24 }
 0x6b7   :  { %v18390_v28 = vpop.permute.xlu1 %8739  ;;  %10353 = vmatprep.subr.bf16.mxu0 %v12415_v60  ;;  %v12416_v60 = vld [vmem:[#allocation5 + $0xe0] ss:$16 sps:$4 sm:$0xff]  }
 0x6b8   :  { %v18392_v63 = vpop.permute.xlu0 %8751  ;;  %8895 = vperm.xlu1 %12356, %v16238_v25   ;;  %v12413_v25 = vld [vmem:[#allocation5 + $0xc0] ss:$16 sps:$4 sm:$0xff]  }
 0x6b9   :  { %v18395_v0 = vpop.f32.mrb[52].mxu0 }
 0x6ba   :  { %20887 = vst [vmem:[#allocation236_spill] sm:$0xff] %v18395_v0  ;;  %v18397_v29 = vpop.f32.mrb[53].mxu0  ;;  %9263 = vperm.xlu0 %12387, %v20889_v18   ;;  %10354 = vmatpush1.bf16.msra.mxu0 %v12413_v25  ;;  %v12421_v25 = vld [vmem:[#allocation5 + $0x104] ss:$16 sps:$4 sm:$0xff]  }
 0x6bb   :  { %20888 = vst [vmem:[#allocation218_spill] sm:$0xff] %v18397_v29  ;;  %v18400_v13 = vpop.f32.mrb[54].mxu0  ;;  %v18402_v36 = vpop.permute.xlu1 %8867  ;;  %v20892_v29 = vld [vmem:[#allocation36_spill] sm:$0xff]  ;;  %10355 = vmatprep.subr.bf16.mxu0 %v12418_v55  ;;  %v12422_v55 = vld [vmem:[#allocation5 + $0x120] ss:$16 sps:$4 sm:$0xff]  }
 0x6bc   :  { %20890 = vst [vmem:[#allocation92_spill] sm:$0xff] %v18400_v13  ;;  %v18404_v17 = vpop.permute.xlu0 %8759  ;;  %v18406_v62 = vpop.f32.mrb[55].mxu0  ;;  %12357 = vset.pattern.permute.xlu1 %v20550_v54  ;;  %v20910_v18 = vld [vmem:[#allocation139_spill] sm:$0xff] }
 0x6bd   :  { %20891 = vst [vmem:[#allocation51_spill] sm:$0xff] %v18406_v62  ;;  %9087 = vperm.xlu1 %12357, %v20871_v20  }
 0x6be   :  { %9139 = vperm.xlu0 %12387, %v20892_v29   ;;  %10356 = vmatpush1.bf16.msra.mxu0 %v12416_v60 }
 0x6bf   :  { %v18411_v0 = vpop.permute.xlu1 %8871  ;;  %10357 = vmatprep.subr.bf16.mxu0 %v12421_v25  ;;  %v12427_v25 = vld [vmem:[#allocation5 + $0x144] ss:$16 sps:$4 sm:$0xff]  }
 0x6c0   :  { %v18413_v13 = vpop.permute.xlu0 %8767 }
 0x6c1   :  { %v18415_v5 = vpop.f32.mrb[56].mxu0  ;;  %9211 = vperm.xlu1 %12357, %v20742_v57   ;;  %v12419_v57 = vld [vmem:[#allocation5 + $0x100] ss:$16 sps:$4 sm:$0xff]  }
 0x6c2   :  { %20893 = vst [vmem:[#allocation230_spill] sm:$0xff] %v18415_v5  ;;  %v18418_v62 = vpop.f32.mrb[57].mxu0  ;;  %9271 = vperm.xlu0 %12387, %v20895_v47   ;;  %v20898_v5 = vld [vmem:[#allocation34_spill] sm:$0xff]  ;;  %10358 = vmatpush1.bf16.msra.mxu0 %v12419_v57  ;;  %v12428_v57 = vld [vmem:[#allocation5 + $0x160] ss:$16 sps:$4 sm:$0xff]  }
 0x6c3   :  { %20894 = vst [vmem:[#allocation209_spill] sm:$0xff] %v18418_v62  ;;  %v18421_v24 = vpop.f32.mrb[58].mxu0 }
 0x6c4   :  { %20896 = vst [vmem:[#allocation245_spill] sm:$0xff] %v18421_v24  ;;  %v18423_v51 = vpop.permute.xlu0 %8775  ;;  %v18425_v20 = vpop.f32.mrb[59].mxu0  ;;  %v12424_v24 = vld [vmem:[#allocation5 + $0x124] ss:$16 sps:$4 sm:$0xff]  }
 0x6c5   :  { %20897 = vst [vmem:[#allocation22_spill] sm:$0xff] %v18425_v20  ;;  %v18427_v32 = vpop.permute.xlu1 %9063  ;;  %12358 = vset.pattern.permute.xlu1 %v20761_v4  ;;  %10359 = vmatprep.subr.bf16.mxu0 %v12424_v24  ;;  %v12433_v24 = vld [vmem:[#allocation5 + $0x184] ss:$16 sps:$4 sm:$0xff]  }
 0x6c6   :  { %8291 = vperm.xlu1 %12358, %v20898_v5   ;;  %10360 = vmatpush1.bf16.msra.mxu0 %v12422_v55  ;;  %v12431_v55 = vld [vmem:[#allocation5 + $0x180] ss:$16 sps:$4 sm:$0xff]  }
 0x6c7   :  { %10361 = vmatprep.subr.bf16.mxu0 %v12427_v25  ;;  %v12436_v25 = vld [vmem:[#allocation5 + $0x1a4] ss:$16 sps:$4 sm:$0xff]  }
 0x6c8   :  { %v18431_v62 = vpop.permute.xlu0 %8783 }
 0x6c9   :  { %20899 = vst [vmem:[#allocation251_spill] sm:$0xff] %v18431_v62  ;;  %v18433_v53 = vpop.f32.mrb[60].mxu0  ;;  %v18435_v43 = vpop.permute.xlu1 %9187 }
 0x6ca   :  { %20900 = vst [vmem:[#allocation127_spill] sm:$0xff] %v18433_v53  ;;  %v18437_v20 = vpop.f32.mrb[61].mxu0  ;;  %12359 = vset.pattern.permute.xlu1 %v20564_v59  ;;  %v20905_v53 = vld [vmem:[#allocation90_spill] sm:$0xff] }
 0x6cb   :  { %20901 = vst [vmem:[#allocation119_spill] sm:$0xff] %v18437_v20  ;;  %v18440_v1 = vpop.f32.mrb[62].mxu0  ;;  %8451 = vperm.xlu1 %12359, %v20841_v22   ;;  %v12425_v20 = vld [vmem:[#allocation5 + $0x140] ss:$16 sps:$4 sm:$0xff]  }
 0x6cc   :  { %20902 = vst [vmem:[#allocation178_spill] sm:$0xff] %v18440_v1  ;;  %v18443_v60 = vpop.permute.xlu0 %8791  ;;  %v18445_v61 = vpop.f32.mrb[63].mxu0  ;;  %v12430_v1 = vld [vmem:[#allocation5 + $0x164] ss:$16 sps:$4 sm:$0xff]   ;;  %10362 = vmatpush1.bf16.msra.mxu0 %v12425_v20 }
 0x6cd   :  { %20903 = vst [vmem:[#allocation146_spill] sm:$0xff] %v18443_v60  ;;  %20904 = vst [vmem:[#allocation191_spill] sm:$0xff] %v18445_v61  ;;  %v18447_v56 = vpop.permute.xlu1 %8267  ;;  %10363 = vmatprep.subr.bf16.mxu0 %v12430_v1  ;;  %v8640_v1 = vsel %vm7102_vm0, %v18094_v38, %v18100_v12  ;;  %v20912_v38 = vld [vmem:[#allocation38_spill] sm:$0xff] }
 0x6cf   :  { %8455 = vperm.xlu1 %12359, %v20905_v53  }
 0x6d0   :  { %v18450_v9 = vpop.permute.xlu0 %8799  ;;  %10364 = vmatpush1.bf16.msra.mxu0 %v12428_v57  ;;  %v12434_v57 = vld [vmem:[#allocation5 + $0x1a0] ss:$16 sps:$4 sm:$0xff]  }
 0x6d1   :  { %20906 = vst [vmem:[#allocation159_spill] sm:$0xff] %v18450_v9  ;;  %10365 = vmatprep.subr.bf16.mxu0 %v12433_v24  ;;  %v20909_v9 = vld [vmem:[#allocation114_spill] sm:$0xff]  ;;  %v8960_v24 = vsel %vm7427_vm9, %v18341_v41, %v18135_v37 }
 0x6d2   :  { %v18452_v47 = vpop.permute.xlu1 %8427  ;;  %v8352_v20 = vsel %vm6745_vm3, %v20910_v18, %v20909_v9  ;;  %v20913_v18 = vld [vmem:[#allocation156_spill] sm:$0xff] }
 0x6d3   :  { %8583 = vperm.xlu1 %12359, %v16273_v19   ;;  %v8672_v12 = vmul.f32 %v8640_v1, %v8352_v20  ;;  %v20914_v20 = vld [vmem:[#allocation203_spill] sm:$0xff] }
 0x6d4   :  { %v18455_v29 = vpop.permute.xlu0 %8807  ;;  %10366 = vmatpush1.bf16.msra.mxu0 %v12431_v55  ;;  %v8353_v55 = vsel %vm6745_vm3, %v20913_v18, %v20912_v38 }
 0x6d5   :  { %20907 = vst [vmem:[#allocation238_spill] sm:$0xff] %v18455_v29  ;;  %10367 = vmatprep.subr.bf16.mxu0 %v12436_v25  ;;  %v8992_v26 = vmul.f32 %v8960_v24, %v8672_v12  ;;  %v9280_v25 = vsel %vm17189_vm4, %v18144_v14, %v18157_v2  ;;  %v20916_v24 = vld [vmem:[#allocation89_spill] sm:$0xff] }
 0x6d6   :  { %v18457_v61 = vpop.permute.xlu1 %8431  ;;  %v20918_v12 = vld [vmem:[#allocation185_spill] sm:$0xff] }
 0x6d7   :  { %12360 = vset.pattern.permute.xlu1 %v20587_v27  ;;  %v9312_v38 = vmul.f32 %v9280_v25, %v8992_v26  ;;  %v20923_v25 = vld [vmem:[#allocation243_spill] sm:$0xff] }
 0x6d8   :  { %v18460_v60 = vpop.permute.xlu0 %8815  ;;  %8771 = vperm.xlu1 %12360, %v20841_v22   ;;  %10368 = vmatpush1.bf16.msra.mxu0 %v12434_v57 }
 0x6d9   :  { %20908 = vst [vmem:[#allocation220_spill] sm:$0xff] %v18460_v60  ;;  %v20911_v60 = vld [vmem:[#allocation23_spill] sm:$0xff] }
 0x6da   :  { %v18471_v29 = vpop.permute.xlu1 %8559  ;;  %v8641_v22 = vsel %vm7102_vm0, %v20911_v60, %v18114_v30  ;;  %v8961_v30 = vsel %vm7427_vm9, %v18121_v45, %v18362_v49 }
 0x6db   :  { %v8673_v60 = vmul.f32 %v8641_v22, %v8353_v55  ;;  %v20915_v22 = vld [vmem:[#allocation175_spill] sm:$0xff]  ;;  %v20919_v55 = vld [vmem:[#allocation48_spill] sm:$0xff] }
 0x6dc   :  { %v18481_v9 = vpop.permute.xlu0 %8823  ;;  %8899 = vperm.xlu1 %12360, %v20898_v5   ;;  %v8354_v57 = vsel %vm6745_vm3, %v20916_v24, %v20915_v22 }
 0x6dd   :  { %v8993_v37 = vmul.f32 %v8961_v30, %v8673_v60  ;;  %v20920_v30 = vld [vmem:[#allocation228_spill] sm:$0xff]  ;;  %v20921_v60 = vld [vmem:[#allocation194_spill] sm:$0xff] }
 0x6de   :  { %v8642_v2 = vsel %vm7102_vm0, %v20920_v30, %v20919_v55 }
 0x6df   :  { %v18492_v62 = vpop.permute.xlu1 %8747 }
 0x6e0   :  { %8903 = vperm.xlu1 %12360, %v16273_v19   ;;  %v20917_v19 = vld [vmem:[#allocation68_spill] sm:$0xff] }
 0x6e1   :  { %v9048_v41 = vpop.permute.xlu0 %9047  ;;  %v8643_v18 = vsel %vm7102_vm0, %v20918_v12, %v20917_v19 }
 0x6e2   :  { %v9281_v1 = vsel %vm17189_vm4, %v9048_v41, %v20914_v20  ;;  %v8962_v20 = vsel %vm7427_vm9, %v20923_v25, %v18223_v10 }
 0x6e3   :  { %v9313_v45 = vmul.f32 %v9281_v1, %v8993_v37  ;;  %v8876_v49 = vpop.permute.xlu1 %8875  ;;  %v20922_v37 = vld [vmem:[#allocation137_spill] sm:$0xff]  ;;  %v8963_v1 = vsel %vm7427_vm9, %v18371_v48, %v18240_v39 }
 0x6e4   :  { %12361 = vset.pattern.permute.xlu1 %v20550_v54  ;;  %v8355_v41 = vsel %vm6745_vm3, %v20922_v37, %v20921_v60  ;;  %v20928_v60 = vld [vmem:[#allocation46_spill] sm:$0xff] }
 0x6e5   :  { %v9341_v14 = vpack.c.bf16 %v9313_v45, %v9312_v38  ;;  %v9052_v26 = vpop.permute.xlu0 %9051  ;;  %9095 = vperm.xlu1 %12361, %v20905_v53   ;;  %v8675_v22 = vmul.f32 %v8643_v18, %v8355_v41  ;;  %v8674_v38 = vmul.f32 %v8642_v2, %v8354_v57  ;;  %v20924_v57 = vld [vmem:[#allocation181_spill] sm:$0xff] }
 0x6e6   :  { %v9282_v45 = vsel %vm17189_vm4, %v9052_v26, %v18298_v15  ;;  %v8644_v18 = vsel %vm7102_vm0, %v18356_v46, %v20924_v57  ;;  %v8645_v15 = vsel %vm7102_vm0, %v18366_v34, %v18379_v31  ;;  %v20927_v26 = vld [vmem:[#allocation192_spill] sm:$0xff]  ;;  %v8964_v34 = vsel %vm7427_vm9, %v18390_v28, %v18402_v36 }
 0x6e7   :  { %11833 = vmatmul.mubr.msk.bf16.gmra.mrb[12].mxu1 %vm9366_vm7, %v9341_v14  ;;  %v8880_v53 = vpop.permute.xlu1 %8879  ;;  %v8994_v24 = vmul.f32 %v8962_v20, %v8674_v38  ;;  %v8995_v19 = vmul.f32 %v8963_v1, %v8675_v22  ;;  %v20926_v14 = vld [vmem:[#allocation169_spill] sm:$0xff]  ;;  %v8356_v46 = vsel %vm6745_vm3, %v20927_v26, %v18332_v6  ;;  %v8965_v31 = vsel %vm7427_vm9, %v18384_v23, %v18411_v0  ;;  %v20931_v57 = vld [vmem:[#allocation204_spill] sm:$0xff] }
 0x6e8   :  { %9740 = vmatprep.mubr.bf16.mxu1 %v20510_v21  ;;  %v8676_v37 = vmul.f32 %v8644_v18, %v8356_v46  ;;  %v20929_v1 = vld [vmem:[#allocation97_spill] sm:$0xff]  ;;  %v20932_v18 = vld [vmem:[#allocation188_spill] sm:$0xff] }
 0x6e9   :  { %v9184_v12 = vpop.permute.xlu0 %9183  ;;  %9219 = vperm.xlu1 %12361, %v20898_v5   ;;  %v9314_v39 = vmul.f32 %v9282_v45, %v8994_v24  ;;  %v20925_v5 = vld [vmem:[#allocation143_spill] sm:$0xff]  ;;  %v8646_v23 = vsel %vm7102_vm0, %v18452_v47, %v20929_v1  ;;  %v8647_v47 = vsel %vm7102_vm0, %v18457_v61, %v18471_v29  ;;  %v20935_v1 = vld [vmem:[#allocation124_spill] sm:$0xff] }
 0x6ea   :  { %v9283_v10 = vsel %vm17189_vm4, %v18278_v50, %v9184_v12  ;;  %v8357_v50 = vsel %vm6745_vm3, %v20926_v14, %v20925_v5  ;;  %v8996_v20 = vmul.f32 %v8964_v34, %v8676_v37  ;;  %v12439_v22 = vld [vmem:[#allocation5 + $0x1c4] ss:$16 sps:$4 sm:$0xff]   ;;  %v12437_v45 = vld [vmem:[#allocation5 + $0x1c0] ss:$16 sps:$4 sm:$0xff]  }
 0x6eb   :  { %v9315_v48 = vmul.f32 %v9283_v10, %v8995_v19  ;;  %v8677_v41 = vmul.f32 %v8645_v15, %v8357_v50  ;;  %v20930_v24 = vld [vmem:[#allocation43_spill] sm:$0xff]  ;;  %10369 = vmatprep.subr.bf16.mxu0 %v12439_v22  ;;  %v8967_v15 = vsel %vm7427_vm9, %v18392_v63, %v8880_v53 }
 0x6ec   :  { %v9072_v55 = vpop.permute.xlu1 %9071  ;;  %v8358_v19 = vsel %vm6745_vm3, %v20930_v24, %v18447_v56  ;;  %10370 = vmatpush1.bf16.msra.mxu0 %v12437_v45  ;;  %v8359_v56 = vsel %vm6745_vm3, %v20932_v18, %v20931_v57  ;;  %v12442_v29 = vld [vmem:[#allocation5 + $0x1e4] ss:$16 sps:$4 sm:$0xff]   ;;  %v20939_v18 = vld [vmem:[#allocation110_spill] sm:$0xff] }
 0x6ed   :  { %v9342_v30 = vpack.c.bf16 %v9315_v48, %v9314_v39  ;;  %v9060_v2 = vpop.permute.xlu0 %9059  ;;  %12362 = vset.pattern.permute.xlu1 %v20761_v4  ;;  %v8997_v36 = vmul.f32 %v8965_v31, %v8677_v41  ;;  %v8678_v12 = vmul.f32 %v8646_v23, %v8358_v19  ;;  %10371 = vmatprep.subr.bf16.mxu0 %v12442_v29  ;;  %v20938_v24 = vld [vmem:[#allocation77_spill] sm:$0xff] }
 0x6ee   :  { %8299 = vperm.xlu1 %12362, %v20928_v60   ;;  %v9284_v6 = vsel %vm17189_vm4, %v9060_v2, %v18435_v43  ;;  %v12440_v2 = vld [vmem:[#allocation5 + $0x1e0] ss:$16 sps:$4 sm:$0xff]  }
 0x6ef   :  { %11834 = vmatmul.mubr.msk.bf16.gmra.mrb[16].mxu1 %vm9366_vm7, %v9342_v30  ;;  %v9316_v38 = vmul.f32 %v9284_v6, %v8996_v20  ;;  %v20933_v30 = vld [vmem:[#allocation100_spill] sm:$0xff] }
 0x6f0   :  { %9750 = vmatprep.mubr.bf16.mxu1 %v20510_v21  ;;  %v9196_v25 = vpop.permute.xlu1 %9195  ;;  %10372 = vmatpush1.bf16.msra.mxu0 %v12440_v2  ;;  %v20940_v2 = vld [vmem:[#allocation170_spill] sm:$0xff] }
 0x6f1   :  { %v9192_v28 = vpop.permute.xlu0 %9191 }
 0x6f2   :  { %v9285_v0 = vsel %vm17189_vm4, %v18427_v32, %v9192_v28  ;;  %12363 = vset.pattern.permute.xlu1 %v20564_v59  ;;  %v8966_v32 = vsel %vm7427_vm9, %v18492_v62, %v8876_v49  ;;  %v8679_v62 = vmul.f32 %v8647_v47, %v8359_v56 }
 0x6f3   :  { %v9317_v43 = vmul.f32 %v9285_v0, %v8997_v36  ;;  %8459 = vperm.xlu1 %12363, %v20849_v35   ;;  %v8998_v49 = vmul.f32 %v8966_v32, %v8678_v12  ;;  %v20937_v0 = vld [vmem:[#allocation126_spill] sm:$0xff] }
 0x6f4   :  { %v8999_v5 = vmul.f32 %v8967_v15, %v8679_v62 }
 0x6f5   :  { %v9343_v10 = vpack.c.bf16 %v9317_v43, %v9316_v38  ;;  %v9068_v39 = vpop.permute.xlu0 %9067  ;;  %v8276_v48 = vpop.permute.xlu1 %8275 }
 0x6f6   :  { %v9286_v61 = vsel %vm17189_vm4, %v9068_v39, %v9196_v25  ;;  %v20934_v25 = vld [vmem:[#allocation201_spill] sm:$0xff]  ;;  %v8360_v22 = vsel %vm6745_vm3, %v20937_v0, %v8276_v48 }
 0x6f7   :  { %11835 = vmatmul.mubr.msk.bf16.gmra.mrb[20].mxu1 %vm9366_vm7, %v9343_v10  ;;  %8463 = vperm.xlu1 %12363, %v20933_v30   ;;  %v9318_v50 = vmul.f32 %v9286_v61, %v8998_v49 }
 0x6f8   :  { %9760 = vmatprep.mubr.bf16.mxu1 %v20510_v21 }
 0x6f9   :  { %v9200_v14 = vpop.permute.xlu0 %9199 }
 0x6fa   :  { %v9287_v63 = vsel %vm17189_vm4, %v9072_v55, %v9200_v14  ;;  %v8436_v53 = vpop.permute.xlu1 %8435 }
 0x6fb   :  { %v9319_v26 = vmul.f32 %v9287_v63, %v8999_v5  ;;  %8591 = vperm.xlu1 %12363, %v20597_v8   ;;  %v20941_v63 = vld [vmem:[#allocation72_spill] sm:$0xff] }
 0x6fd   :  { %v9344_v46 = vpack.c.bf16 %v9319_v26, %v9318_v50  ;;  %v9076_v41 = vpop.permute.xlu0 %9075  ;;  %v20943_v26 = vld [vmem:[#allocation141_spill] sm:$0xff] }
 0x6fe   :  { %v8440_v34 = vpop.permute.xlu1 %8439 }
 0x6ff   :  { %11836 = vmatmul.mubr.msk.bf16.gmra.mrb[24].mxu1 %vm9366_vm7, %v9344_v46  ;;  %12364 = vset.pattern.permute.xlu1 %v20587_v27 }
 0x700   :  { %8779 = vperm.xlu1 %12364, %v20849_v35   ;;  %9770 = vmatprep.mubr.bf16.mxu1 %v20510_v21  ;;  %v8648_v35 = vsel %vm7102_vm0, %v8436_v53, %v20934_v25 }
 0x701   :  { %v9208_v28 = vpop.permute.xlu0 %9207  ;;  %v8680_v43 = vmul.f32 %v8648_v35, %v8360_v22 }
 0x702   :  { %v8568_v31 = vpop.permute.xlu1 %8567 }
 0x703   :  { %v8649_v20 = vsel %vm7102_vm0, %v8440_v34, %v8568_v31 }
 0x704   :  { %8907 = vperm.xlu1 %12364, %v20928_v60  }
 0x705   :  { %v9084_v49 = vpop.permute.xlu0 %9083 }
 0x707   :  { %v8756_v37 = vpop.permute.xlu1 %8755 }
 0x708   :  { %8911 = vperm.xlu1 %12364, %v20597_v8   ;;  %v20936_v8 = vld [vmem:[#allocation78_spill] sm:$0xff] }
 0x709   :  { %v8361_v23 = vsel %vm6745_vm3, %v20936_v8, %v20935_v1  ;;  %v9216_v50 = vpop.permute.xlu0 %9215 }
 0x70a   :  { %v8681_v45 = vmul.f32 %v8649_v20, %v8361_v23  ;;  %v20945_v23 = vld [vmem:[#allocation118_spill] sm:$0xff] }
 0x70b   :  { %v8884_v55 = vpop.permute.xlu1 %8883 }
 0x70c   :  { %12365 = vset.pattern.permute.xlu1 %v20550_v54 }
 0x70d   :  { %9103 = vperm.xlu1 %12365, %v20933_v30  }
 0x70f   :  { %v8888_v6 = vpop.permute.xlu1 %8887 }
 0x710   :  { %v8969_v38 = vsel %vm7427_vm9, %v18404_v17, %v8888_v6 }
 0x711   :  { %9227 = vperm.xlu1 %12365, %v20928_v60   ;;  %v8968_v60 = vsel %vm7427_vm9, %v8756_v37, %v8884_v55  ;;  %v9001_v32 = vmul.f32 %v8969_v38, %v8681_v45  ;;  %v9092_v45 = vpop.permute.xlu0 %9091 }
 0x712   :  { %v9000_v47 = vmul.f32 %v8968_v60, %v8680_v43 }
 0x714   :  { %v9080_v36 = vpop.permute.xlu1 %9079 }
 0x715   :  { %12366 = vset.pattern.permute.xlu1 %v20761_v4  ;;  %v9289_v19 = vsel %vm17189_vm4, %v9080_v36, %v9208_v28 }
 0x716   :  { %8307 = vperm.xlu1 %12366, %v20938_v24   ;;  %v9321_v39 = vmul.f32 %v9289_v19, %v9001_v32  ;;  %v20946_v19 = vld [vmem:[#allocation151_spill] sm:$0xff] }
 0x718   :  { %v9204_v12 = vpop.permute.xlu1 %9203 }
 0x719   :  { %v9288_v10 = vsel %vm17189_vm4, %v9076_v41, %v9204_v12  ;;  %v20944_v41 = vld [vmem:[#allocation44_spill] sm:$0xff]  ;;  %v9224_v12 = vpop.permute.xlu0 %9223 }
 0x71a   :  { %v9320_v48 = vmul.f32 %v9288_v10, %v9000_v47  ;;  %12367 = vset.pattern.permute.xlu1 %v20564_v59  ;;  %v20947_v10 = vld [vmem:[#allocation225_spill] sm:$0xff] }
 0x71b   :  { %8467 = vperm.xlu1 %12367, %v20285_v44  }
 0x71c   :  { %v9345_v17 = vpack.c.bf16 %v9321_v39, %v9320_v48  ;;  %v20949_v48 = vld [vmem:[#allocation133_spill] sm:$0xff] }
 0x71d   :  { %v8284_v57 = vpop.permute.xlu1 %8283 }
 0x71e   :  { %11837 = vmatmul.mubr.msk.bf16.gmra.mrb[28].mxu1 %vm9366_vm7, %v9345_v17  ;;  %v8362_v46 = vsel %vm6745_vm3, %v20943_v26, %v8284_v57 }
 0x71f   :  { %8471 = vperm.xlu1 %12367, %v20939_v18   ;;  %9780 = vmatprep.mubr.bf16.mxu1 %v20510_v21 }
 0x722   :  { %v8444_v56 = vpop.permute.xlu1 %8443 }
 0x723   :  { %8599 = vperm.xlu1 %12367, %v20856_v42   ;;  %v8650_v5 = vsel %vm7102_vm0, %v8444_v56, %v20940_v2 }
 0x724   :  { %v8682_v37 = vmul.f32 %v8650_v5, %v8362_v46 }
 0x726   :  { %v8448_v15 = vpop.permute.xlu1 %8447 }
 0x727   :  { %12368 = vset.pattern.permute.xlu1 %v20587_v27 }
 0x728   :  { %8787 = vperm.xlu1 %12368, %v20285_v44  }
 0x72a   :  { %v8576_v61 = vpop.permute.xlu1 %8575 }
 0x72b   :  { %v8651_v44 = vsel %vm7102_vm0, %v8448_v15, %v8576_v61  ;;  %v20950_v61 = vld [vmem:[#allocation102_spill] sm:$0xff] }
 0x72c   :  { %8915 = vperm.xlu1 %12368, %v20938_v24  }
 0x72f   :  { %v8764_v29 = vpop.permute.xlu1 %8763 }
 0x730   :  { %8919 = vperm.xlu1 %12368, %v20856_v42   ;;  %v20942_v42 = vld [vmem:[#allocation15_spill] sm:$0xff] }
 0x731   :  { %v8363_v53 = vsel %vm6745_vm3, %v20942_v42, %v20941_v63 }
 0x732   :  { %v8683_v55 = vmul.f32 %v8651_v44, %v8363_v53  ;;  %v20952_v53 = vld [vmem:[#allocation123_spill] sm:$0xff] }
 0x733   :  { %v8892_v62 = vpop.permute.xlu1 %8891 }
 0x734   :  { %12369 = vset.pattern.permute.xlu1 %v20550_v54  ;;  %v8970_v34 = vsel %vm7427_vm9, %v8764_v29, %v8892_v62 }
 0x735   :  { %9111 = vperm.xlu1 %12369, %v20939_v18   ;;  %v9002_v25 = vmul.f32 %v8970_v34, %v8682_v37  ;;  %v20953_v34 = vld [vmem:[#allocation227_spill] sm:$0xff] }
 0x737   :  { %v8896_v30 = vpop.permute.xlu1 %8895 }
 0x738   :  { %v8971_v31 = vsel %vm7427_vm9, %v18413_v13, %v8896_v30 }
 0x739   :  { %9235 = vperm.xlu1 %12369, %v20938_v24   ;;  %v9003_v35 = vmul.f32 %v8971_v31, %v8683_v55  ;;  %v20954_v55 = vld [vmem:[#allocation198_spill] sm:$0xff] }
 0x73c   :  { %v9088_v14 = vpop.permute.xlu1 %9087 }
 0x73d   :  { %12370 = vset.pattern.permute.xlu1 %v20761_v4  ;;  %v9291_v6 = vsel %vm17189_vm4, %v9088_v14, %v9216_v50  ;;  %v20951_v50 = vld [vmem:[#allocation125_spill] sm:$0xff] }
 0x73e   :  { %8315 = vperm.xlu1 %12370, %v20944_v41   ;;  %v9323_v28 = vmul.f32 %v9291_v6, %v9003_v35  ;;  %v20955_v35 = vld [vmem:[#allocation18_spill] sm:$0xff] }
 0x740   :  { %v9212_v20 = vpop.permute.xlu1 %9211 }
 0x741   :  { %v9290_v36 = vsel %vm17189_vm4, %v9084_v49, %v9212_v20 }
 0x742   :  { %v9322_v1 = vmul.f32 %v9290_v36, %v9002_v25  ;;  %12371 = vset.pattern.permute.xlu1 %v20564_v59 }
 0x743   :  { %8475 = vperm.xlu1 %12371, %v20868_v11  }
 0x744   :  { %v9346_v13 = vpack.c.bf16 %v9323_v28, %v9322_v1 }
 0x745   :  { %v8292_v8 = vpop.permute.xlu1 %8291 }
 0x746   :  { %11838 = vmatmul.mubr.msk.bf16.gmra.mrb[32].mxu1 %vm9366_vm7, %v9346_v13  ;;  %v8364_v17 = vsel %vm6745_vm3, %v20949_v48, %v8292_v8  ;;  %v20956_v8 = vld [vmem:[#allocation166_spill] sm:$0xff] }
 0x747   :  { %8479 = vperm.xlu1 %12371, %v20945_v23   ;;  %9790 = vmatprep.mubr.bf16.mxu1 %v20510_v21 }
 0x74a   :  { %v8452_v0 = vpop.permute.xlu1 %8451 }
 0x74b   :  { %8607 = vperm.xlu1 %12371, %v20877_v40   ;;  %v8652_v47 = vsel %vm7102_vm0, %v8452_v0, %v20946_v19 }
 0x74c   :  { %v8684_v56 = vmul.f32 %v8652_v47, %v8364_v17  ;;  %v20961_v17 = vld [vmem:[#allocation40_spill] sm:$0xff] }
 0x74e   :  { %v8456_v22 = vpop.permute.xlu1 %8455 }
 0x74f   :  { %12372 = vset.pattern.permute.xlu1 %v20587_v27 }
 0x750   :  { %8795 = vperm.xlu1 %12372, %v20868_v11  }
 0x752   :  { %v8584_v60 = vpop.permute.xlu1 %8583 }
 0x753   :  { %v8653_v11 = vsel %vm7102_vm0, %v8456_v22, %v8584_v60  ;;  %v20957_v22 = vld [vmem:[#allocation134_spill] sm:$0xff] }
 0x754   :  { %8923 = vperm.xlu1 %12372, %v20944_v41  }
 0x757   :  { %v8772_v38 = vpop.permute.xlu1 %8771 }
 0x758   :  { %8927 = vperm.xlu1 %12372, %v20877_v40   ;;  %v20948_v40 = vld [vmem:[#allocation106_spill] sm:$0xff] }
 0x759   :  { %v8365_v39 = vsel %vm6745_vm3, %v20948_v40, %v20947_v10  ;;  %v20960_v40 = vld [vmem:[#allocation73_spill] sm:$0xff] }
 0x75a   :  { %v8685_v15 = vmul.f32 %v8653_v11, %v8365_v39 }
 0x75b   :  { %v8900_v43 = vpop.permute.xlu1 %8899 }
 0x75c   :  { %12373 = vset.pattern.permute.xlu1 %v20550_v54  ;;  %v8972_v57 = vsel %vm7427_vm9, %v8772_v38, %v8900_v43  ;;  %v20958_v43 = vld [vmem:[#allocation179_spill] sm:$0xff] }
 0x75d   :  { %9119 = vperm.xlu1 %12373, %v20945_v23   ;;  %v9004_v62 = vmul.f32 %v8972_v57, %v8684_v56  ;;  %v20962_v56 = vld [vmem:[#allocation200_spill] sm:$0xff] }
 0x75f   :  { %v8904_v24 = vpop.permute.xlu1 %8903 }
 0x760   :  { %v8973_v18 = vsel %vm7427_vm9, %v18423_v51, %v8904_v24 }
 0x761   :  { %9243 = vperm.xlu1 %12373, %v20944_v41   ;;  %v9005_v49 = vmul.f32 %v8973_v18, %v8685_v15 }
 0x764   :  { %v9096_v32 = vpop.permute.xlu1 %9095 }
 0x765   :  { %12374 = vset.pattern.permute.xlu1 %v20761_v4  ;;  %v9293_v29 = vsel %vm17189_vm4, %v9096_v32, %v9224_v12 }
 0x766   :  { %8323 = vperm.xlu1 %12374, %v20950_v61   ;;  %v9325_v5 = vmul.f32 %v9293_v29, %v9005_v49  ;;  %v9100_v29 = vpop.permute.xlu0 %9099 }
 0x768   :  { %v9220_v30 = vpop.permute.xlu1 %9219 }
 0x769   :  { %v9292_v2 = vsel %vm17189_vm4, %v9092_v45, %v9220_v30 }
 0x76a   :  { %v9324_v44 = vmul.f32 %v9292_v2, %v9004_v62  ;;  %12375 = vset.pattern.permute.xlu1 %v20564_v59  ;;  %v20963_v62 = vld [vmem:[#allocation101_spill] sm:$0xff] }
 0x76b   :  { %8483 = vperm.xlu1 %12375, %v20880_v7  }
 0x76c   :  { %v9347_v51 = vpack.c.bf16 %v9325_v5, %v9324_v44  ;;  %v20964_v44 = vld [vmem:[#allocation50_spill] sm:$0xff] }
 0x76d   :  { %v8300_v14 = vpop.permute.xlu1 %8299 }
 0x76e   :  { %11839 = vmatmul.mubr.msk.bf16.gmra.mrb[36].mxu1 %vm9366_vm7, %v9347_v51 }
 0x76f   :  { %8487 = vperm.xlu1 %12375, %v20951_v50   ;;  %9800 = vmatprep.mubr.bf16.mxu1 %v20510_v21 }
 0x772   :  { %v8460_v63 = vpop.permute.xlu1 %8459 }
 0x773   :  { %v9702_v42 = vpop.f32.mrb[0].mxu1  ;;  %8615 = vperm.xlu1 %12375, %v20883_v58   ;;  %v8654_v51 = vsel %vm7102_vm0, %v8460_v63, %v20964_v44  ;;  %v20974_v44 = vld [vmem:[#allocation13_spill] sm:$0xff] }
 0x774   :  { %v9861_v26 = vmul.f32 %v9702_v42, %v20952_v53  ;;  %v9704_v46 = vpop.f32.mrb[1].mxu1  ;;  %v9232_v53 = vpop.permute.xlu0 %9231 }
 0x775   :  { %v9862_v31 = vmul.f32 %v9704_v46, %v20953_v34  ;;  %v9706_v37 = vpop.f32.mrb[2].mxu1  ;;  %v20966_v46 = vld [vmem:[#allocation171_spill] sm:$0xff] }
 0x776   :  { %v9863_v41 = vmul.f32 %v9706_v37, %v20954_v55  ;;  %v9708_v6 = vpop.f32.mrb[3].mxu1  ;;  %v8464_v25 = vpop.permute.xlu1 %8463  ;;  %v20968_v37 = vld [vmem:[#allocation251_spill] sm:$0xff] }
 0x777   :  { %v9864_v20 = vmul.f32 %v9708_v6, %v20955_v35  ;;  %12376 = vset.pattern.permute.xlu1 %v20587_v27 }
 0x778   :  { %v18718_v36 = vpack.c.bf16 %v9863_v41, %v9861_v26  ;;  %8803 = vperm.xlu1 %12376, %v20880_v7   ;;  %v20959_v7 = vld [vmem:[#allocation147_spill] sm:$0xff]  ;;  %v20965_v26 = vld [vmem:[#allocation196_spill] sm:$0xff] }
 0x779   :  { %v18721_v28 = vpack.c.bf16 %v9864_v20, %v9862_v31  ;;  %v8367_v34 = vsel %vm6745_vm3, %v20966_v46, %v20965_v26  ;;  %v20967_v31 = vld [vmem:[#allocation202_spill] sm:$0xff] }
 0x77a   :  { %v8592_v1 = vpop.permute.xlu1 %8591  ;;  %v20977_v46 = vld [vmem:[#allocation146_spill] sm:$0xff] }
 0x77b   :  { %v9712_v13 = vpop.f32.mrb[4].mxu1  ;;  %10373 = vmatprep.mubr.bf16.mxu0 %v18721_v28 }
 0x77c   :  { %v9865_v23 = vmul.f32 %v9712_v13, %v20956_v8  ;;  %v9714_v0 = vpop.f32.mrb[5].mxu1  ;;  %10374 = vmatmul.mubr.bf16.vlgmr.msra.gmra.mrb[64].mxu0 %v18718_v36  ;;  %8931 = vperm.xlu1 %12376, %v20950_v61  }
 0x77d   :  { %v9866_v60 = vmul.f32 %v9714_v0, %v20957_v22  ;;  %v9716_v38 = vpop.f32.mrb[6].mxu1  ;;  %v20970_v0 = vld [vmem:[#allocation130_spill] sm:$0xff] }
 0x77e   :  { %v9867_v45 = vmul.f32 %v9716_v38, %v20958_v43  ;;  %v9718_v24 = vpop.f32.mrb[7].mxu1  ;;  %v20971_v38 = vld [vmem:[#allocation129_spill] sm:$0xff] }
 0x77f   :  { %v9868_v19 = vmul.f32 %v9718_v24, %v20959_v7  ;;  %v8780_v47 = vpop.permute.xlu1 %8779 }
 0x780   :  { %v18730_v11 = vpack.c.bf16 %v9867_v45, %v9865_v23  ;;  %8935 = vperm.xlu1 %12376, %v20883_v58   ;;  %v20972_v45 = vld [vmem:[#allocation69_spill] sm:$0xff] }
 0x781   :  { %v18733_v32 = vpack.c.bf16 %v9868_v19, %v9866_v60  ;;  %v12443_v19 = vld [vmem:[#allocation5 + $0x8] ss:$16 sps:$4 sm:$0xff]  }
 0x783   :  { %v9722_v12 = vpop.f32.mrb[8].mxu1  ;;  %10383 = vmatprep.mubr.bf16.mxu0 %v18733_v32  ;;  %v8908_v10 = vpop.permute.xlu1 %8907 }
 0x784   :  { %v9869_v39 = vmul.f32 %v9722_v12, %v20960_v40  ;;  %v9724_v48 = vpop.f32.mrb[9].mxu1  ;;  %10384 = vmatmul.mubr.bf16.gmra.mrb[68].mxu0 %v18730_v11  ;;  %12377 = vset.pattern.permute.xlu1 %v20550_v54  ;;  %v8974_v63 = vsel %vm7427_vm9, %v8780_v47, %v8908_v10  ;;  %v12445_v47 = vld [vmem:[#allocation5 + $0xc] ss:$16 sps:$4 sm:$0xff]   ;;  %v12446_v10 = vld [vmem:[#allocation5 + $0x28] ss:$16 sps:$4 sm:$0xff]  }
 0x785   :  { %v9870_v57 = vmul.f32 %v9724_v48, %v20961_v17  ;;  %v9726_v18 = vpop.f32.mrb[10].mxu1  ;;  %9127 = vperm.xlu1 %12377, %v20951_v50   ;;  %v8655_v50 = vsel %vm7102_vm0, %v8464_v25, %v8592_v1  ;;  %v20969_v25 = vld [vmem:[#allocation88_spill] sm:$0xff]  ;;  %10534 = vmatprep.subr.bf16.mxu1 %v12445_v47  ;;  %v9108_v48 = vpop.permute.xlu0 %9107  ;;  %v20983_v47 = vld [vmem:[#allocation210_spill] sm:$0xff] }
 0x786   :  { %v9871_v58 = vmul.f32 %v9726_v18, %v20962_v56  ;;  %v9728_v15 = vpop.f32.mrb[11].mxu1  ;;  %v8687_v6 = vmul.f32 %v8655_v50, %v8367_v34  ;;  %10535 = vmatpush1.bf16.msra.mxu1 %v12443_v19  ;;  %v12448_v40 = vld [vmem:[#allocation5 + $0x2c] ss:$16 sps:$4 sm:$0xff]   ;;  %v12449_v17 = vld [vmem:[#allocation5 + $0x48] ss:$16 sps:$4 sm:$0xff]   ;;  %v20973_v56 = vld [vmem:[#allocation107_spill] sm:$0xff] }
 0x787   :  { %v9872_v49 = vmul.f32 %v9728_v15, %v20963_v62  ;;  %v8912_v30 = vpop.permute.xlu1 %8911  ;;  %10536 = vmatprep.subr.bf16.mxu1 %v12448_v40 }
 0x788   :  { %v18743_v2 = vpack.c.bf16 %v9871_v58, %v9869_v39  ;;  %v8975_v55 = vsel %vm7427_vm9, %v20968_v37, %v8912_v30  ;;  %v12454_v30 = vld [vmem:[#allocation5 + $0x6c] ss:$16 sps:$4 sm:$0xff]  }
 0x789   :  { %v18745_v5 = vpack.c.bf16 %v9872_v49, %v9870_v57  ;;  %9251 = vperm.xlu1 %12377, %v20950_v61   ;;  %v8366_v61 = vsel %vm6745_vm3, %v20967_v31, %v8300_v14  ;;  %v9007_v1 = vmul.f32 %v8975_v55, %v8687_v6  ;;  %v12451_v57 = vld [vmem:[#allocation5 + $0x4c] ss:$16 sps:$4 sm:$0xff]   ;;  %v9240_v62 = vpop.permute.xlu0 %9239  ;;  %v12452_v49 = vld [vmem:[#allocation5 + $0x68] ss:$16 sps:$4 sm:$0xff]  }
 0x78a   :  { %v8686_v41 = vmul.f32 %v8654_v51, %v8366_v61  ;;  %10537 = vmatpush1.bf16.msra.mxu1 %v12446_v10  ;;  %v20975_v51 = vld [vmem:[#allocation190_spill] sm:$0xff]  ;;  %v20984_v10 = vld [vmem:[#allocation131_spill] sm:$0xff] }
 0x78b   :  { %10393 = vmatprep.mubr.bf16.mxu0 %v18745_v5  ;;  %10538 = vmatprep.subr.bf16.mxu1 %v12451_v57  ;;  %v8369_v50 = vsel %vm6745_vm3, %v20975_v51, %v20974_v44  ;;  %v12457_v37 = vld [vmem:[#allocation5 + $0x8c] ss:$16 sps:$4 sm:$0xff]  }
 0x78c   :  { %10394 = vmatmul.mubr.bf16.gmra.mrb[72].mxu0 %v18743_v2  ;;  %v9104_v42 = vpop.permute.xlu1 %9103  ;;  %v9006_v20 = vmul.f32 %v8974_v63, %v8686_v41  ;;  %v20978_v63 = vld [vmem:[#allocation21_spill] sm:$0xff]  ;;  %v12455_v41 = vld [vmem:[#allocation5 + $0x88] ss:$16 sps:$4 sm:$0xff]  }
 0x78d   :  { %12378 = vset.pattern.permute.xlu1 %v20761_v4  ;;  %v9295_v35 = vsel %vm17189_vm4, %v9104_v42, %v9232_v53  ;;  %v20976_v42 = vld [vmem:[#allocation115_spill] sm:$0xff]  ;;  %v20989_v44 = vld [vmem:[#allocation98_spill] sm:$0xff] }
 0x78e   :  { %8331 = vperm.xlu1 %12378, %v20969_v25   ;;  %v9327_v8 = vmul.f32 %v9295_v35, %v9007_v1  ;;  %10539 = vmatpush1.bf16.msra.mxu1 %v12449_v17  ;;  %v20985_v17 = vld [vmem:[#allocation93_spill] sm:$0xff] }
 0x78f   :  { %10540 = vmatprep.subr.bf16.mxu1 %v12454_v30 }
 0x790   :  { %v9228_v13 = vpop.permute.xlu1 %9227 }
 0x791   :  { %v9294_v14 = vsel %vm17189_vm4, %v9100_v29, %v9228_v13 }
 0x792   :  { %v9326_v23 = vmul.f32 %v9294_v14, %v9006_v20  ;;  %12379 = vset.pattern.permute.xlu1 %v20564_v59  ;;  %10541 = vmatpush1.bf16.msra.mxu1 %v12452_v49  ;;  %v20979_v14 = vld [vmem:[#allocation168_spill] sm:$0xff] }
 0x793   :  { %8491 = vperm.xlu1 %12379, %v20970_v0   ;;  %10542 = vmatprep.subr.bf16.mxu1 %v12457_v37  ;;  %v20991_v37 = vld [vmem:[#allocation183_spill] sm:$0xff] }
 0x794   :  { %v9348_v22 = vpack.c.bf16 %v9327_v8, %v9326_v23 }
 0x795   :  { %v8308_v60 = vpop.permute.xlu1 %8307 }
 0x796   :  { %11840 = vmatmul.mubr.msk.bf16.gmra.mrb[40].mxu1 %vm9366_vm7, %v9348_v22  ;;  %v8368_v53 = vsel %vm6745_vm3, %v20976_v42, %v8308_v60  ;;  %v20981_v22 = vld [vmem:[#allocation136_spill] sm:$0xff] }
 0x797   :  { %8495 = vperm.xlu1 %12379, %v20971_v38   ;;  %9810 = vmatprep.mubr.bf16.mxu1 %v20510_v21 }
 0x798   :  { %10543 = vmatpush1.bf16.msra.mxu1 %v12455_v41 }
 0x79a   :  { %v8468_v43 = vpop.permute.xlu1 %8467 }
 0x79b   :  { %8623 = vperm.xlu1 %12379, %v20972_v45   ;;  %v8656_v58 = vsel %vm7102_vm0, %v8468_v43, %v20973_v56  ;;  %v20986_v56 = vld [vmem:[#allocation12_spill] sm:$0xff] }
 0x79c   :  { %v8688_v31 = vmul.f32 %v8656_v58, %v8368_v53  ;;  %v20987_v58 = vld [vmem:[#allocation132_spill] sm:$0xff] }
 0x79e   :  { %v8472_v24 = vpop.permute.xlu1 %8471 }
 0x79f   :  { %12380 = vset.pattern.permute.xlu1 %v20587_v27 }
 0x7a0   :  { %8811 = vperm.xlu1 %12380, %v20970_v0   ;;  %v20980_v0 = vld [vmem:[#allocation36_spill] sm:$0xff] }
 0x7a2   :  { %v8600_v7 = vpop.permute.xlu1 %8599 }
 0x7a3   :  { %v8657_v15 = vsel %vm7102_vm0, %v8472_v24, %v8600_v7 }
 0x7a4   :  { %8939 = vperm.xlu1 %12380, %v20969_v25   ;;  %v8689_v61 = vmul.f32 %v8657_v15, %v8369_v50 }
 0x7a7   :  { %v8788_v12 = vpop.permute.xlu1 %8787 }
 0x7a8   :  { %8943 = vperm.xlu1 %12380, %v20972_v45   ;;  %v20982_v45 = vld [vmem:[#allocation149_spill] sm:$0xff] }
 0x7ab   :  { %v8916_v39 = vpop.permute.xlu1 %8915 }
 0x7ac   :  { %12381 = vset.pattern.permute.xlu1 %v20550_v54  ;;  %v8976_v26 = vsel %vm7427_vm9, %v8788_v12, %v8916_v39 }
 0x7ad   :  { %9135 = vperm.xlu1 %12381, %v20971_v38   ;;  %v9008_v6 = vmul.f32 %v8976_v26, %v8688_v31 }
 0x7af   :  { %v8920_v18 = vpop.permute.xlu1 %8919 }
 0x7b0   :  { %v8977_v34 = vsel %vm7427_vm9, %v20977_v46, %v8920_v18 }
 0x7b1   :  { %9259 = vperm.xlu1 %12381, %v20969_v25   ;;  %v9009_v25 = vmul.f32 %v8977_v34, %v8689_v61  ;;  %v20990_v34 = vld [vmem:[#allocation138_spill] sm:$0xff] }
 0x7b4   :  { %v9112_v29 = vpop.permute.xlu1 %9111 }
 0x7b5   :  { %12382 = vset.pattern.permute.xlu1 %v20761_v4  ;;  %v9297_v55 = vsel %vm17189_vm4, %v9112_v29, %v9240_v62  ;;  %v20988_v62 = vld [vmem:[#allocation74_spill] sm:$0xff] }
 0x7b6   :  { %8339 = vperm.xlu1 %12382, %v20978_v63   ;;  %v9329_v4 = vmul.f32 %v9297_v55, %v9009_v25 }
 0x7b8   :  { %v9236_v35 = vpop.permute.xlu1 %9235 }
 0x7b9   :  { %v9296_v20 = vsel %vm17189_vm4, %v9108_v48, %v9236_v35  ;;  %v20993_v35 = vld [vmem:[#allocation41_spill] sm:$0xff] }
 0x7ba   :  { %v9732_v1 = vpop.f32.mrb[12].mxu1  ;;  %v9328_v13 = vmul.f32 %v9296_v20, %v9008_v6  ;;  %12384 = vset.pattern.permute.xlu1 %v20564_v59  ;;  %v20992_v6 = vld [vmem:[#allocation212_spill] sm:$0xff] }
 0x7bb   :  { %v9873_v8 = vmul.f32 %v9732_v1, %v20979_v14  ;;  %v9734_v23 = vpop.f32.mrb[13].mxu1  ;;  %8499 = vperm.xlu1 %12384, %v20980_v0   ;;  %v12460_v14 = vld [vmem:[#allocation5 + $0xac] ss:$16 sps:$4 sm:$0xff]  }
 0x7bc   :  { %v9874_v60 = vmul.f32 %v9734_v23, %v20981_v22  ;;  %v9736_v38 = vpop.f32.mrb[14].mxu1  ;;  %v9349_v43 = vpack.c.bf16 %v9329_v4, %v9328_v13  ;;  %10544 = vmatprep.subr.bf16.mxu1 %v12460_v14  ;;  %v12472_v14 = vld [vmem:[#allocation5 + $0x12c] ss:$16 sps:$4 sm:$0xff]  }
 0x7bd   :  { %v9875_v24 = vmul.f32 %v9736_v38, %v20982_v45  ;;  %v9738_v7 = vpop.f32.mrb[15].mxu1  ;;  %v18814_v19 = vpop.permute.xlu1 %8315 }
 0x7be   :  { %v9876_v12 = vmul.f32 %v9738_v7, %v20983_v47  ;;  %11841 = vmatmul.mubr.msk.bf16.gmra.mrb[44].mxu1 %vm9366_vm7, %v9349_v43  ;;  %v20995_v43 = vld [vmem:[#allocation111_spill] sm:$0xff]  ;;  %v12463_v7 = vld [vmem:[#allocation5 + $0xcc] ss:$16 sps:$4 sm:$0xff]  }
 0x7bf   :  { %v18818_v59 = vpack.c.bf16 %v9875_v24, %v9873_v8  ;;  %8503 = vperm.xlu1 %12384, %v20984_v10   ;;  %9820 = vmatprep.mubr.bf16.mxu1 %v20510_v21  ;;  %v12458_v8 = vld [vmem:[#allocation5 + $0xa8] ss:$16 sps:$4 sm:$0xff]  }
 0x7c0   :  { %v18822_v40 = vpack.c.bf16 %v9876_v12, %v9874_v60  ;;  %10545 = vmatpush1.bf16.msra.mxu1 %v12458_v8  ;;  %v20996_v47 = vld [vmem:[#allocation172_spill] sm:$0xff] }
 0x7c1   :  { %10546 = vmatprep.subr.bf16.mxu1 %v12463_v7 }
 0x7c2   :  { %v9742_v39 = vpop.f32.mrb[16].mxu1  ;;  %10403 = vmatprep.mubr.bf16.mxu0 %v18822_v40  ;;  %v8476_v48 = vpop.permute.xlu1 %8475 }
 0x7c3   :  { %v9877_v57 = vmul.f32 %v9742_v39, %v20985_v17  ;;  %v9744_v18 = vpop.f32.mrb[17].mxu1  ;;  %10404 = vmatmul.mubr.bf16.gmra.mrb[76].mxu0 %v18818_v59  ;;  %8631 = vperm.xlu1 %12384, %v20986_v56   ;;  %v12461_v17 = vld [vmem:[#allocation5 + $0xc8] ss:$16 sps:$4 sm:$0xff]  }
 0x7c4   :  { %v9878_v15 = vmul.f32 %v9744_v18, %v20987_v58  ;;  %v9746_v29 = vpop.f32.mrb[18].mxu1  ;;  %10547 = vmatpush1.bf16.msra.mxu1 %v12461_v17  ;;  %v12482_v17 = vld [vmem:[#allocation5 + $0x1a8] ss:$16 sps:$4 sm:$0xff]  }
 0x7c5   :  { %v9879_v49 = vmul.f32 %v9746_v29, %v20988_v62  ;;  %v9748_v30 = vpop.f32.mrb[19].mxu1  ;;  %v12466_v62 = vld [vmem:[#allocation5 + $0xec] ss:$16 sps:$4 sm:$0xff]  }
 0x7c6   :  { %v9880_v51 = vmul.f32 %v9748_v30, %v20989_v44  ;;  %v8480_v50 = vpop.permute.xlu1 %8479  ;;  %10548 = vmatprep.subr.bf16.mxu1 %v12466_v62 }
 0x7c7   :  { %v18831_v42 = vpack.c.bf16 %v9879_v49, %v9877_v57  ;;  %12386 = vset.pattern.permute.xlu1 %v20587_v27  ;;  %v20997_v57 = vld [vmem:[#allocation140_spill] sm:$0xff]  ;;  %v20998_v49 = vld [vmem:[#allocation153_spill] sm:$0xff] }
 0x7c8   :  { %v18834_v53 = vpack.c.bf16 %v9880_v51, %v9878_v15  ;;  %8819 = vperm.xlu1 %12386, %v20980_v0   ;;  %v20994_v0 = vld [vmem:[#allocation229_spill] sm:$0xff] }
 0x7ca   :  { %v9752_v26 = vpop.f32.mrb[20].mxu1  ;;  %10413 = vmatprep.mubr.bf16.mxu0 %v18834_v53  ;;  %v8608_v46 = vpop.permute.xlu1 %8607 }
 0x7cb   :  { %v9881_v31 = vmul.f32 %v9752_v26, %v20990_v34  ;;  %v9754_v61 = vpop.f32.mrb[21].mxu1  ;;  %10414 = vmatmul.mubr.bf16.gmra.mrb[80].mxu0 %v18831_v42  ;;  %v8659_v30 = vsel %vm7102_vm0, %v8480_v50, %v8608_v46  ;;  %v12469_v26 = vld [vmem:[#allocation5 + $0x10c] ss:$16 sps:$4 sm:$0xff]   ;;  %v21002_v50 = vld [vmem:[#allocation159_spill] sm:$0xff] }
 0x7cc   :  { %v9882_v55 = vmul.f32 %v9754_v61, %v20991_v37  ;;  %v9756_v41 = vpop.f32.mrb[22].mxu1  ;;  %8947 = vperm.xlu1 %12386, %v20978_v63   ;;  %v20999_v34 = vld [vmem:[#allocation56_spill] sm:$0xff]  ;;  %v21001_v61 = vld [vmem:[#allocation223_spill] sm:$0xff] }
 0x7cd   :  { %v9883_v27 = vmul.f32 %v9756_v41, %v20992_v6  ;;  %v9758_v25 = vpop.f32.mrb[23].mxu1  ;;  %v8370_v37 = vsel %vm6745_vm3, %v21001_v61, %v18814_v19 }
 0x7ce   :  { %v9884_v20 = vmul.f32 %v9758_v25, %v20993_v35 }
 0x7cf   :  { %v18844_v1 = vpack.c.bf16 %v9883_v27, %v9881_v31  ;;  %v8796_v4 = vpop.permute.xlu1 %8795  ;;  %v21000_v31 = vld [vmem:[#allocation65_spill] sm:$0xff] }
 0x7d0   :  { %v18846_v13 = vpack.c.bf16 %v9884_v20, %v9882_v55  ;;  %8951 = vperm.xlu1 %12386, %v20986_v56   ;;  %v9116_v56 = vpop.permute.xlu0 %9115  ;;  %v12467_v55 = vld [vmem:[#allocation5 + $0x108] ss:$16 sps:$4 sm:$0xff]  }
 0x7d2   :  { %10423 = vmatprep.mubr.bf16.mxu0 %v18846_v13  ;;  %v9762_v23 = vpop.f32.mrb[24].mxu1 }
 0x7d3   :  { %10424 = vmatmul.mubr.bf16.gmra.mrb[84].mxu0 %v18844_v1  ;;  %v9885_v22 = vmul.f32 %v9762_v23, %v20994_v0  ;;  %v9764_v60 = vpop.f32.mrb[25].mxu1  ;;  %v8924_v38 = vpop.permute.xlu1 %8923 }
 0x7d4   :  { %v9886_v45 = vmul.f32 %v9764_v60, %v20995_v43  ;;  %v9766_v24 = vpop.f32.mrb[26].mxu1  ;;  %12388 = vset.pattern.permute.xlu1 %v20550_v54  ;;  %v12464_v54 = vld [vmem:[#allocation5 + $0xe8] ss:$16 sps:$4 sm:$0xff]   ;;  %v9248_v51 = vpop.permute.xlu0 %9247  ;;  %v12478_v43 = vld [vmem:[#allocation5 + $0x16c] ss:$16 sps:$4 sm:$0xff]  }
 0x7d5   :  { %v9887_v12 = vmul.f32 %v9766_v24, %v20996_v47  ;;  %v9768_v39 = vpop.f32.mrb[27].mxu1  ;;  %9143 = vperm.xlu1 %12388, %v20984_v10   ;;  %v8658_v10 = vsel %vm7102_vm0, %v8476_v48, %v20998_v49  ;;  %10549 = vmatpush1.bf16.msra.mxu1 %v12464_v54  ;;  %v8978_v48 = vsel %vm7427_vm9, %v8796_v4, %v8924_v38  ;;  %v12470_v4 = vld [vmem:[#allocation5 + $0x128] ss:$16 sps:$4 sm:$0xff]   ;;  %v12481_v24 = vld [vmem:[#allocation5 + $0x18c] ss:$16 sps:$4 sm:$0xff]  }
 0x7d6   :  { %v9888_v18 = vmul.f32 %v9768_v39, %v20997_v57  ;;  %v8690_v41 = vmul.f32 %v8658_v10, %v8370_v37  ;;  %10550 = vmatprep.subr.bf16.mxu1 %v12469_v26  ;;  %v12473_v38 = vld [vmem:[#allocation5 + $0x148] ss:$16 sps:$4 sm:$0xff]   ;;  %v12487_v57 = vld [vmem:[#allocation5 + $0x1cc] ss:$16 sps:$4 sm:$0xff]  }
 0x7d7   :  { %v18857_v58 = vpack.c.bf16 %v9887_v12, %v9885_v22  ;;  %v8928_v15 = vpop.permute.xlu1 %8927  ;;  %v12475_v22 = vld [vmem:[#allocation5 + $0x14c] ss:$16 sps:$4 sm:$0xff]   ;;  %v12479_v47 = vld [vmem:[#allocation5 + $0x188] ss:$16 sps:$4 sm:$0xff]  }
 0x7d8   :  { %v18859_v29 = vpack.c.bf16 %v9888_v18, %v9886_v45  ;;  %v8979_v46 = vsel %vm7427_vm9, %v21002_v50, %v8928_v15  ;;  %v9010_v25 = vmul.f32 %v8978_v48, %v8690_v41  ;;  %v12476_v45 = vld [vmem:[#allocation5 + $0x168] ss:$16 sps:$4 sm:$0xff]   ;;  %v12484_v12 = vld [vmem:[#allocation5 + $0x1ac] ss:$16 sps:$4 sm:$0xff]  }
 0x7d9   :  { %9267 = vperm.xlu1 %12388, %v20978_v63   ;;  %v8371_v63 = vsel %vm6745_vm3, %v21000_v31, %v20999_v34  ;;  %10551 = vmatpush1.bf16.msra.mxu1 %v12467_v55  ;;  %v21004_v49 = vld [vmem:[#allocation214_spill] sm:$0xff] }
 0x7da   :  { %10433 = vmatprep.mubr.bf16.mxu0 %v18859_v29  ;;  %v8691_v6 = vmul.f32 %v8659_v30, %v8371_v63  ;;  %10552 = vmatprep.subr.bf16.mxu1 %v12472_v14  ;;  %v12490_v31 = vld [vmem:[#allocation5 + $0x1ec] ss:$16 sps:$4 sm:$0xff]  }
 0x7db   :  { %10434 = vmatmul.mubr.bf16.gmra.mrb[88].mxu0 %v18857_v58  ;;  %v21006_v63 = vld [vmem:[#allocation28_spill] sm:$0xff] }
 0x7dc   :  { %v9120_v44 = vpop.permute.xlu1 %9119  ;;  %v9011_v35 = vmul.f32 %v8979_v46, %v8691_v6  ;;  %v12488_v46 = vld [vmem:[#allocation5 + $0x1e8] ss:$16 sps:$4 sm:$0xff]   ;;  %v9124_v6 = vpop.permute.xlu0 %9123 }
 0x7dd   :  { %v9299_v27 = vsel %vm17189_vm4, %v9120_v44, %v9248_v51  ;;  %10553 = vmatpush1.bf16.msra.mxu1 %v12470_v4  ;;  %v12485_v44 = vld [vmem:[#allocation5 + $0x1c8] ss:$16 sps:$4 sm:$0xff]  }
 0x7de   :  { %v9331_v8 = vmul.f32 %v9299_v27, %v9011_v35  ;;  %10554 = vmatprep.subr.bf16.mxu1 %v12475_v22  ;;  %v21005_v51 = vld [vmem:[#allocation86_spill] sm:$0xff]  ;;  %v21008_v14 = vld [vmem:[#allocation164_spill] sm:$0xff] }
 0x7df   :  { %v21007_v27 = vld [vmem:[#allocation82_spill] sm:$0xff] }
 0x7e0   :  { %v9244_v20 = vpop.permute.xlu1 %9243  ;;  %v21011_v22 = vld [vmem:[#allocation238_spill] sm:$0xff] }
 0x7e1   :  { %v9298_v19 = vsel %vm17189_vm4, %v9116_v56, %v9244_v20  ;;  %10555 = vmatpush1.bf16.msra.mxu1 %v12473_v38  ;;  %v21003_v56 = vld [vmem:[#allocation232_spill] sm:$0xff] }
 0x7e2   :  { %v9330_v23 = vmul.f32 %v9298_v19, %v9010_v25  ;;  %10556 = vmatprep.subr.bf16.mxu1 %v12478_v43  ;;  %v21009_v19 = vld [vmem:[#allocation81_spill] sm:$0xff]  ;;  %v9256_v43 = vpop.permute.xlu0 %9255 }
 0x7e3   :  { %v8373_v4 = vsel %vm6745_vm3, %v21009_v19, %v21008_v14 }
 0x7e4   :  { %v9350_v0 = vpack.c.bf16 %v9331_v8, %v9330_v23  ;;  %v21010_v8 = vld [vmem:[#allocation42_spill] sm:$0xff] }
 0x7e5   :  { %v8324_v60 = vpop.permute.xlu1 %8323  ;;  %10557 = vmatpush1.bf16.msra.mxu1 %v12476_v45 }
 0x7e6   :  { %11842 = vmatmul.mubr.msk.bf16.gmra.mrb[48].mxu1 %vm9366_vm7, %v9350_v0  ;;  %10558 = vmatprep.subr.bf16.mxu1 %v12481_v24  ;;  %v8372_v23 = vsel %vm6745_vm3, %v21010_v8, %v8324_v60  ;;  %v21017_v8 = vld [vmem:[#allocation177_spill] sm:$0xff] }
 0x7e7   :  { %9830 = vmatprep.mubr.bf16.mxu1 %v20510_v21 }
 0x7e9   :  { %10559 = vmatpush1.bf16.msra.mxu1 %v12479_v47 }
 0x7ea   :  { %v8484_v7 = vpop.permute.xlu1 %8483  ;;  %10560 = vmatprep.subr.bf16.mxu1 %v12484_v12 }
 0x7eb   :  { %v8660_v25 = vsel %vm7102_vm0, %v8484_v7, %v21007_v27 }
 0x7ec   :  { %v8692_v45 = vmul.f32 %v8660_v25, %v8372_v23  ;;  %v21018_v23 = vld [vmem:[#allocation160_spill] sm:$0xff] }
 0x7ed   :  { %10561 = vmatpush1.bf16.msra.mxu1 %v12482_v17 }
 0x7ee   :  { %v8488_v39 = vpop.permute.xlu1 %8487  ;;  %10562 = vmatprep.subr.bf16.mxu1 %v12487_v57 }
 0x7f1   :  { %v9772_v18 = vpop.f32.mrb[28].mxu1  ;;  %10563 = vmatpush1.bf16.msra.mxu1 %v12485_v44 }
 0x7f2   :  { %v9889_v15 = vmul.f32 %v9772_v18, %v21003_v56  ;;  %v8616_v62 = vpop.permute.xlu1 %8615  ;;  %v9774_v54 = vpop.f32.mrb[29].mxu1  ;;  %10564 = vmatprep.subr.bf16.mxu1 %v12490_v31  ;;  %v21014_v31 = vld [vmem:[#allocation174_spill] sm:$0xff] }
 0x7f3   :  { %v9890_v10 = vmul.f32 %v9774_v54, %v21004_v49  ;;  %v9776_v30 = vpop.f32.mrb[30].mxu1  ;;  %v8661_v35 = vsel %vm7102_vm0, %v8488_v39, %v8616_v62  ;;  %v21012_v49 = vld [vmem:[#allocation247_spill] sm:$0xff] }
 0x7f4   :  { %v9891_v26 = vmul.f32 %v9776_v30, %v21005_v51  ;;  %v9778_v34 = vpop.f32.mrb[31].mxu1  ;;  %v8693_v24 = vmul.f32 %v8661_v35, %v8373_v4  ;;  %v21013_v51 = vld [vmem:[#allocation121_spill] sm:$0xff]  ;;  %v9132_v35 = vpop.permute.xlu0 %9131 }
 0x7f5   :  { %v9892_v61 = vmul.f32 %v9778_v34, %v21006_v63  ;;  %10565 = vmatpush1.bf16.msra.mxu1 %v12488_v46 }
 0x7f6   :  { %v18892_v37 = vpack.c.bf16 %v9891_v26, %v9889_v15 }
 0x7f7   :  { %v18894_v48 = vpack.c.bf16 %v9892_v61, %v9890_v10  ;;  %v8804_v50 = vpop.permute.xlu1 %8803 }
 0x7f9   :  { %10443 = vmatprep.mubr.bf16.mxu0 %v18894_v48 }
 0x7fa   :  { %10444 = vmatmul.mubr.bf16.gmra.mrb[92].mxu0 %v18892_v37 }
 0x7fb   :  { %v8932_v55 = vpop.permute.xlu1 %8931 }
 0x7fc   :  { %v8980_v0 = vsel %vm7427_vm9, %v8804_v50, %v8932_v55  ;;  %v21015_v50 = vld [vmem:[#allocation142_spill] sm:$0xff] }
 0x7fd   :  { %v9012_v47 = vmul.f32 %v8980_v0, %v8692_v45  ;;  %v8375_v0 = vsel %vm6745_vm3, %v21018_v23, %v21017_v8  ;;  %v21020_v45 = vld [vmem:[#allocation220_spill] sm:$0xff] }
 0x7ff   :  { %v8936_v41 = vpop.permute.xlu1 %8935 }
 0x800   :  { %v8981_v38 = vsel %vm7427_vm9, %v21011_v22, %v8936_v41  ;;  %v21019_v22 = vld [vmem:[#allocation53_spill] sm:$0xff] }
 0x801   :  { %v9013_v12 = vmul.f32 %v8981_v38, %v8693_v24 }
 0x804   :  { %v9128_v20 = vpop.permute.xlu1 %9127 }
 0x805   :  { %v9301_v7 = vsel %vm17189_vm4, %v9128_v20, %v9256_v43  ;;  %v21016_v20 = vld [vmem:[#allocation205_spill] sm:$0xff] }
 0x806   :  { %v9333_v60 = vmul.f32 %v9301_v7, %v9013_v12  ;;  %v9264_v7 = vpop.permute.xlu0 %9263 }
 0x808   :  { %v9252_v39 = vpop.permute.xlu1 %9251 }
 0x809   :  { %v9300_v17 = vsel %vm17189_vm4, %v9124_v6, %v9252_v39 }
 0x80a   :  { %v9332_v57 = vmul.f32 %v9300_v17, %v9012_v47  ;;  %v9140_v8 = vpop.permute.xlu0 %9139 }
 0x80c   :  { %v9351_v18 = vpack.c.bf16 %v9333_v60, %v9332_v57 }
 0x80d   :  { %v8332_v56 = vpop.permute.xlu1 %8331 }
 0x80e   :  { %11843 = vmatmul.mubr.msk.bf16.gmra.mrb[52].mxu1 %vm9366_vm7, %v9351_v18  ;;  %v8374_v38 = vsel %vm6745_vm3, %v21019_v22, %v8332_v56 }
 0x80f   :  { %9840 = vmatprep.mubr.bf16.mxu1 %v20510_v21 }
 0x812   :  { %v8492_v15 = vpop.permute.xlu1 %8491 }
 0x813   :  { %v8662_v14 = vsel %vm7102_vm0, %v8492_v15, %v21016_v20 }
 0x814   :  { %v8694_v47 = vmul.f32 %v8662_v14, %v8374_v38 }
 0x816   :  { %v8496_v62 = vpop.permute.xlu1 %8495 }
 0x819   :  { %v9782_v54 = vpop.f32.mrb[32].mxu1 }
 0x81a   :  { %v9893_v10 = vmul.f32 %v9782_v54, %v21012_v49  ;;  %v8624_v30 = vpop.permute.xlu1 %8623  ;;  %v9784_v44 = vpop.f32.mrb[33].mxu1 }
 0x81b   :  { %v9894_v26 = vmul.f32 %v9784_v44, %v21013_v51  ;;  %v9786_v34 = vpop.f32.mrb[34].mxu1  ;;  %v8663_v19 = vsel %vm7102_vm0, %v8496_v62, %v8624_v30  ;;  %v21021_v44 = vld [vmem:[#allocation187_spill] sm:$0xff] }
 0x81c   :  { %v9895_v63 = vmul.f32 %v9786_v34, %v21014_v31  ;;  %v9788_v61 = vpop.f32.mrb[35].mxu1  ;;  %v8695_v12 = vmul.f32 %v8663_v19, %v8375_v0  ;;  %v21022_v31 = vld [vmem:[#allocation155_spill] sm:$0xff] }
 0x81d   :  { %v9896_v46 = vmul.f32 %v9788_v61, %v21015_v50  ;;  %v21023_v50 = vld [vmem:[#allocation234_spill] sm:$0xff] }
 0x81e   :  { %v18925_v55 = vpack.c.bf16 %v9895_v63, %v9893_v10 }
 0x81f   :  { %v18927_v41 = vpack.c.bf16 %v9896_v46, %v9894_v26  ;;  %v8812_v6 = vpop.permute.xlu1 %8811 }
 0x821   :  { %10453 = vmatprep.mubr.bf16.mxu0 %v18927_v41 }
 0x822   :  { %10454 = vmatmul.mubr.bf16.gmra.mrb[96].mxu0 %v18925_v55 }
 0x823   :  { %v8940_v27 = vpop.permute.xlu1 %8939 }
 0x824   :  { %v8982_v43 = vsel %vm7427_vm9, %v8812_v6, %v8940_v27  ;;  %v21024_v27 = vld [vmem:[#allocation216_spill] sm:$0xff] }
 0x825   :  { %v9014_v17 = vmul.f32 %v8982_v43, %v8694_v47 }
 0x827   :  { %v8944_v25 = vpop.permute.xlu1 %8943 }
 0x828   :  { %v8983_v24 = vsel %vm7427_vm9, %v21020_v45, %v8944_v25 }
 0x829   :  { %v9015_v60 = vmul.f32 %v8983_v24, %v8695_v12  ;;  %v21025_v24 = vld [vmem:[#allocation66_spill] sm:$0xff] }
 0x82c   :  { %v9136_v4 = vpop.permute.xlu1 %9135 }
 0x82d   :  { %v9303_v39 = vsel %vm17189_vm4, %v9136_v4, %v9264_v7 }
 0x82e   :  { %v9335_v56 = vmul.f32 %v9303_v39, %v9015_v60  ;;  %v21026_v39 = vld [vmem:[#allocation145_spill] sm:$0xff] }
 0x830   :  { %v9260_v57 = vpop.permute.xlu1 %9259 }
 0x831   :  { %v9302_v18 = vsel %vm17189_vm4, %v9132_v35, %v9260_v57 }
 0x832   :  { %v9334_v15 = vmul.f32 %v9302_v18, %v9014_v17  ;;  %v21027_v17 = vld [vmem:[#allocation173_spill] sm:$0xff] }
 0x833   :  { %v8377_v60 = vsel %vm6745_vm3, %v21027_v17, %v21026_v39  ;;  %v21029_v17 = vld [vmem:[#allocation96_spill] sm:$0xff] }
 0x834   :  { %v9352_v62 = vpack.c.bf16 %v9335_v56, %v9334_v15  ;;  %v21028_v56 = vld [vmem:[#allocation14_spill] sm:$0xff] }
 0x835   :  { %v8340_v54 = vpop.permute.xlu1 %8339 }
 0x836   :  { %11844 = vmatmul.mubr.msk.bf16.gmra.mrb[56].mxu1 %vm9366_vm7, %v9352_v62  ;;  %v8376_v15 = vsel %vm6745_vm3, %v21028_v56, %v8340_v54  ;;  %v21030_v56 = vld [vmem:[#allocation60_spill] sm:$0xff] }
 0x837   :  { %9850 = vmatprep.mubr.bf16.mxu1 %v20510_v21 }
 0x83a   :  { %v8500_v49 = vpop.permute.xlu1 %8499 }
 0x83b   :  { %v8664_v7 = vsel %vm7102_vm0, %v8500_v49, %v21025_v24 }
 0x83e   :  { %v8504_v10 = vpop.permute.xlu1 %8503 }
 0x841   :  { %v9792_v30 = vpop.f32.mrb[36].mxu1 }
 0x842   :  { %v9897_v51 = vmul.f32 %v9792_v30, %v21021_v44  ;;  %v8632_v26 = vpop.permute.xlu1 %8631  ;;  %v9794_v34 = vpop.f32.mrb[37].mxu1  ;;  %v8696_v30 = vmul.f32 %v8664_v7, %v8376_v15 }
 0x843   :  { %v9898_v63 = vmul.f32 %v9794_v34, %v21022_v31  ;;  %v9796_v61 = vpop.f32.mrb[38].mxu1  ;;  %v8665_v12 = vsel %vm7102_vm0, %v8504_v10, %v8632_v26  ;;  %v9272_v10 = vpop.permute.xlu0 %9271 }
 0x844   :  { %v9899_v46 = vmul.f32 %v9796_v61, %v21023_v50  ;;  %v9798_v6 = vpop.f32.mrb[39].mxu1  ;;  %v8697_v44 = vmul.f32 %v8665_v12, %v8377_v60 }
 0x845   :  { %v9900_v25 = vmul.f32 %v9798_v6, %v21024_v27 }
 0x846   :  { %v18958_v35 = vpack.c.bf16 %v9899_v46, %v9897_v51 }
 0x847   :  { %v18960_v20 = vpack.c.bf16 %v9900_v25, %v9898_v63  ;;  %v8820_v21 = vpop.permute.xlu1 %8819 }
 0x849   :  { %10463 = vmatprep.mubr.bf16.mxu0 %v18960_v20 }
 0x84a   :  { %10464 = vmatmul.mubr.bf16.gmra.mrb[100].mxu0 %v18958_v35 }
 0x84b   :  { %v8948_v14 = vpop.permute.xlu1 %8947 }
 0x84c   :  { %v8984_v52 = vsel %vm7427_vm9, %v8820_v21, %v8948_v14 }
 0x84d   :  { %v9016_v3 = vmul.f32 %v8984_v52, %v8696_v30 }
 0x84f   :  { %v10375_v19 = vpop.f32.mrb[64].mxu0  ;;  %v8952_v4 = vpop.permute.xlu1 %8951 }
 0x850   :  { %v10377_v23 = vpop.f32.mrb[65].mxu0  ;;  %v18964_v22 = vmul.f32 %v10375_v19, %v10375_v19  ;;  %v8985_v49 = vsel %vm7427_vm9, %v18481_v9, %v8952_v4 }
 0x851   :  { %v10379_v0 = vpop.f32.mrb[66].mxu0  ;;  %v18968_v45 = vmul.f32 %v10377_v23, %v10377_v23  ;;  %v9017_v54 = vmul.f32 %v8985_v49, %v8697_v44  ;;  %v21031_v49 = vld [vmem:[#allocation27_spill] sm:$0xff] }
 0x852   :  { %v18966_v38 = vmul.f32 %v10379_v0, %v10379_v0  ;;  %v10381_v43 = vpop.f32.mrb[67].mxu0  ;;  %v21032_v44 = vld [vmem:[#allocation207_spill] sm:$0xff] }
 0x853   :  { %v18973_v47 = vmul.f32 %v10381_v43, %v10381_v43 }
 0x854   :  { %v10855_v57 = vpack.c.bf16 %v18966_v38, %v18964_v22  ;;  %v9144_v18 = vpop.permute.xlu1 %9143 }
 0x855   :  { %v10856_v62 = vpack.c.bf16 %v18973_v47, %v18968_v45  ;;  %v9305_v26 = vsel %vm17189_vm4, %v9144_v18, %v9272_v10 }
 0x856   :  { %v9337_v9 = vmul.f32 %v9305_v26, %v9017_v54 }
 0x857   :  { %v10385_v51 = vpop.f32.mrb[68].mxu0 }
 0x858   :  { %v10387_v34 = vpop.f32.mrb[69].mxu0  ;;  %v9268_v31 = vpop.permute.xlu1 %9267  ;;  %v18997_v50 = vmul.f32 %v10385_v51, %v10385_v51 }
 0x859   :  { %v10389_v63 = vpop.f32.mrb[70].mxu0  ;;  %v9304_v61 = vsel %vm17189_vm4, %v9140_v8, %v9268_v31  ;;  %v19001_v27 = vmul.f32 %v10387_v34, %v10387_v34 }
 0x85a   :  { %v18999_v46 = vmul.f32 %v10389_v63, %v10389_v63  ;;  %v10391_v16 = vpop.f32.mrb[71].mxu0  ;;  %v9336_v6 = vmul.f32 %v9304_v61, %v9016_v3  ;;  %v21034_v3 = vld [vmem:[#allocation249_spill] sm:$0xff]  ;;  %v21036_v63 = vld [vmem:[#allocation62_spill] sm:$0xff] }
 0x85b   :  { %v19003_v25 = vmul.f32 %v10391_v16, %v10391_v16 }
 0x85c   :  { %v10859_v21 = vpack.c.bf16 %v18999_v46, %v18997_v50  ;;  %v9353_v14 = vpack.c.bf16 %v9337_v9, %v9336_v6 }
 0x85d   :  { %v10860_v19 = vpack.c.bf16 %v19003_v25, %v19001_v27 }
 0x85e   :  { %11845 = vmatmul.mubr.msk.bf16.gmra.mrb[60].mxu1 %vm9366_vm7, %v9353_v14 }
 0x85f   :  { %v10395_v33 = vpop.f32.mrb[72].mxu0  ;;  %10566 = vmatprep.mubr.bf16.mxu1 %v18721_v28 }
 0x860   :  { %v10397_v4 = vpop.f32.mrb[73].mxu0  ;;  %v19011_v23 = vmul.f32 %v10395_v33, %v10395_v33 }
 0x861   :  { %v10399_v8 = vpop.f32.mrb[74].mxu0  ;;  %v19015_v24 = vmul.f32 %v10397_v4, %v10397_v4 }
 0x862   :  { %v19013_v0 = vmul.f32 %v10399_v8, %v10399_v8  ;;  %v10401_v43 = vpop.f32.mrb[75].mxu0  ;;  %v12491_v8 = vld [vmem:[%s19411_s4 + $0x40] sm:$0xff]  }
 0x863   :  { %v19017_v7 = vmul.f32 %v10401_v43, %v10401_v43  ;;  %11943 = vmatprep.subr.bf16.mxu0 %v12491_v8 }
 0x864   :  { %v10863_v12 = vpack.c.bf16 %v19013_v0, %v19011_v23 }
 0x865   :  { %v10864_v39 = vpack.c.bf16 %v19017_v7, %v19015_v24 }
 0x866   :  { %10567 = vmatmul.mubr.bf16.vlgmr.msra.gmra.mrb[64].mxu1 %v18718_v36 }
 0x867   :  { %10576 = vmatprep.mubr.bf16.mxu1 %v18733_v32 }
 0x869   :  { %v9802_v28 = vpop.f32.mrb[40].mxu1 }
 0x86a   :  { %v9901_v60 = vmul.f32 %v9802_v28, %v21029_v17  ;;  %v9804_v18 = vpop.f32.mrb[41].mxu1  ;;  %v12492_v28 = vld [vmem:[%s19411_s4] sm:$0xff]  }
 0x86b   :  { %v9902_v15 = vmul.f32 %v9804_v18, %v21030_v56  ;;  %v9806_v52 = vpop.f32.mrb[42].mxu1  ;;  %11944 = vmatpush3.bf16.msra.mxu0 %v12492_v28 }
 0x86c   :  { %v9903_v10 = vmul.f32 %v9806_v52, %v21031_v49  ;;  %v9808_v30 = vpop.f32.mrb[43].mxu1  ;;  %v12494_v49 = vld [vmem:[%s19411_s4 + $0x80] sm:$0xff]  }
 0x86d   :  { %v9904_v51 = vmul.f32 %v9808_v30, %v21032_v44  ;;  %v12496_v30 = vld [vmem:[%s19411_s4 + $0xc8] sm:$0xff]  }
 0x86e   :  { %v19029_v26 = vpack.c.bf16 %v9903_v10, %v9901_v60  ;;  %10577 = vmatmul.mubr.bf16.gmra.mrb[68].mxu1 %v18730_v11  ;;  %v21033_v11 = vld [vmem:[#allocation244_spill] sm:$0xff]  ;;  %v12495_v10 = vld [vmem:[%s19411_s4 + $0x48] sm:$0xff]  }
 0x86f   :  { %v19032_v34 = vpack.c.bf16 %v9904_v51, %v9902_v15  ;;  %10586 = vmatprep.mubr.bf16.mxu1 %v18745_v5  ;;  %v12497_v51 = vld [vmem:[%s19411_s4 + $0x8] sm:$0xff]   ;;  %11945 = vmatprep.subr.bf16.mxu0 %v12495_v10 }
 0x870   :  { %11946 = vmatpush3.bf16.msra.mxu0 %v12497_v51 }
 0x871   :  { %10473 = vmatprep.mubr.bf16.mxu0 %v19032_v34 }
 0x872   :  { %10474 = vmatmul.mubr.bf16.gmra.mrb[104].mxu0 %v19029_v26 }
 0x876   :  { %10587 = vmatmul.mubr.bf16.gmra.mrb[72].mxu1 %v18743_v2 }
 0x877   :  { %10596 = vmatprep.mubr.bf16.mxu1 %v18822_v40  ;;  %v21035_v40 = vld [vmem:[#allocation94_spill] sm:$0xff] }
 0x87e   :  { %10597 = vmatmul.mubr.bf16.gmra.mrb[76].mxu1 %v18818_v59 }
 0x87f   :  { %10606 = vmatprep.mubr.bf16.mxu1 %v18834_v53 }
 0x886   :  { %10607 = vmatmul.mubr.bf16.gmra.mrb[80].mxu1 %v18831_v42 }
 0x887   :  { %10616 = vmatprep.mubr.bf16.mxu1 %v18846_v13 }
 0x88e   :  { %10617 = vmatmul.mubr.bf16.gmra.mrb[84].mxu1 %v18844_v1 }
 0x88f   :  { %10626 = vmatprep.mubr.bf16.mxu1 %v18859_v29 }
 0x891   :  { %v9812_v36 = vpop.f32.mrb[44].mxu1 }
 0x892   :  { %v9905_v32 = vmul.f32 %v9812_v36, %v21033_v11  ;;  %v9814_v5 = vpop.f32.mrb[45].mxu1  ;;  %v12499_v36 = vld [vmem:[%s19411_s4 + $0x50] sm:$0xff]   ;;  %v12498_v11 = vld [vmem:[%s19411_s4 + $0x88] sm:$0xff]  }
 0x893   :  { %v9906_v2 = vmul.f32 %v9814_v5, %v21034_v3  ;;  %v9816_v54 = vpop.f32.mrb[46].mxu1  ;;  %v12500_v5 = vld [vmem:[%s19411_s4 + $0xd0] sm:$0xff]   ;;  %11947 = vmatprep.subr.bf16.mxu0 %v12499_v36  ;;  %v12509_v36 = vld [vmem:[%s19411_s4 + $0x20] sm:$0xff]  }
 0x894   :  { %v9907_v31 = vmul.f32 %v9816_v54, %v21035_v40  ;;  %v9818_v59 = vpop.f32.mrb[47].mxu1  ;;  %v12503_v40 = vld [vmem:[%s19411_s4 + $0x58] sm:$0xff]  }
 0x895   :  { %v9908_v53 = vmul.f32 %v9818_v59, %v21036_v63 }
 0x896   :  { %v10405_v61 = vpop.f32.mrb[76].mxu0  ;;  %v19049_v42 = vpack.c.bf16 %v9907_v31, %v9905_v32  ;;  %10627 = vmatmul.mubr.bf16.gmra.mrb[88].mxu1 %v18857_v58 }
 0x897   :  { %v10407_v1 = vpop.f32.mrb[77].mxu0  ;;  %v19052_v13 = vpack.c.bf16 %v9908_v53, %v9906_v2  ;;  %10636 = vmatprep.mubr.bf16.mxu1 %v18894_v48  ;;  %v19055_v16 = vmul.f32 %v10405_v61, %v10405_v61  ;;  %v12501_v2 = vld [vmem:[%s19411_s4 + $0x10] sm:$0xff]   ;;  %v12504_v61 = vld [vmem:[%s19411_s4 + $0xd8] sm:$0xff]  }
 0x898   :  { %v10409_v29 = vpop.f32.mrb[78].mxu0  ;;  %v19060_v14 = vmul.f32 %v10407_v1, %v10407_v1  ;;  %11948 = vmatpush3.bf16.msra.mxu0 %v12501_v2 }
 0x899   :  { %v19057_v9 = vmul.f32 %v10409_v29, %v10409_v29  ;;  %v10411_v6 = vpop.f32.mrb[79].mxu0  ;;  %10483 = vmatprep.mubr.bf16.mxu0 %v19052_v13  ;;  %v12505_v29 = vld [vmem:[%s19411_s4 + $0x18] sm:$0xff]   ;;  %11949 = vmatprep.subr.bf16.mxu0 %v12503_v40 }
 0x89a   :  { %v19062_v33 = vmul.f32 %v10411_v6, %v10411_v6  ;;  %10484 = vmatmul.mubr.bf16.gmra.mrb[108].mxu0 %v19049_v42 }
 0x89b   :  { %v21053_v23 = vpack.c.bf16 %v19057_v9, %v19055_v16 }
 0x89c   :  { %v10868_v48 = vpack.c.bf16 %v19062_v33, %v19060_v14  ;;  %11950 = vmatpush3.bf16.msra.mxu0 %v12505_v29  ;;  %v12515_v29 = vld [vmem:[%s19411_s4 + $0x70] sm:$0xff]  }
 0x89e   :  { %v10415_v4 = vpop.f32.mrb[80].mxu0  ;;  %10637 = vmatmul.mubr.bf16.gmra.mrb[92].mxu1 %v18892_v37 }
 0x89f   :  { %v10417_v43 = vpop.f32.mrb[81].mxu0  ;;  %10646 = vmatprep.mubr.bf16.mxu1 %v18927_v41  ;;  %v19077_v60 = vmul.f32 %v10415_v4, %v10415_v4  ;;  %v12493_v41 = vld [vmem:[%s19411_s4 + $0xc0] sm:$0xff]   ;;  %v12506_v4 = vld [vmem:[%s19411_s4 + $0x98] sm:$0xff]  }
 0x8a0   :  { %v10419_v17 = vpop.f32.mrb[82].mxu0  ;;  %v19081_v37 = vmul.f32 %v10417_v43, %v10417_v43  ;;  %12055 = vmatprep.subr.bf16.mxu1 %v12493_v41 }
 0x8a1   :  { %v19079_v18 = vmul.f32 %v10419_v17, %v10419_v17  ;;  %v10421_v56 = vpop.f32.mrb[83].mxu0  ;;  %12056 = vmatpush3.bf16.msra.mxu1 %v12494_v49 }
 0x8a2   :  { %v19083_v15 = vmul.f32 %v10421_v56, %v10421_v56  ;;  %12057 = vmatprep.subr.bf16.mxu1 %v12496_v30 }
 0x8a3   :  { %v21055_v16 = vpack.c.bf16 %v19079_v18, %v19077_v60 }
 0x8a5   :  { %12058 = vmatpush3.bf16.msra.mxu1 %v12498_v11  ;;  %v12510_v11 = vld [vmem:[%s19411_s4 + $0xa0] sm:$0xff]  }
 0x8a6   :  { %v10425_v32 = vpop.f32.mrb[84].mxu0  ;;  %10647 = vmatmul.mubr.bf16.gmra.mrb[96].mxu1 %v18925_v55  ;;  %12059 = vmatprep.subr.bf16.mxu1 %v12500_v5  ;;  %v12512_v5 = vld [vmem:[%s19411_s4 + $0xe8] sm:$0xff]  }
 0x8a7   :  { %v10427_v3 = vpop.f32.mrb[85].mxu0  ;;  %10656 = vmatprep.mubr.bf16.mxu1 %v18960_v20  ;;  %v19121_v55 = vmul.f32 %v10425_v32, %v10425_v32  ;;  %v12502_v20 = vld [vmem:[%s19411_s4 + $0x90] sm:$0xff]   ;;  %v12511_v32 = vld [vmem:[%s19411_s4 + $0x68] sm:$0xff]  }
 0x8a8   :  { %v10429_v54 = vpop.f32.mrb[86].mxu0  ;;  %v19128_v63 = vmul.f32 %v10427_v3, %v10427_v3  ;;  %v12514_v3 = vld [vmem:[%s19411_s4 + $0xa8] sm:$0xff]  }
 0x8a9   :  { %v19123_v31 = vmul.f32 %v10429_v54, %v10429_v54  ;;  %v10431_v59 = vpop.f32.mrb[87].mxu0  ;;  %12060 = vmatpush3.bf16.msra.mxu1 %v12502_v20 }
 0x8aa   :  { %v19130_v53 = vmul.f32 %v10431_v59, %v10431_v59  ;;  %12061 = vmatprep.subr.bf16.mxu1 %v12504_v61  ;;  %v21038_v59 = vld [vmem:[#allocation144_spill] sm:$0xff] }
 0x8ab   :  { %v21057_v60 = vpack.c.bf16 %v19123_v31, %v19121_v55 }
 0x8ad   :  { %12062 = vmatpush3.bf16.msra.mxu1 %v12506_v4  ;;  %v12516_v4 = vld [vmem:[%s19411_s4 + $0xf0] sm:$0xff]  }
 0x8ae   :  { %v10435_v8 = vpop.f32.mrb[88].mxu0  ;;  %10657 = vmatmul.mubr.bf16.gmra.mrb[100].mxu1 %v18958_v35  ;;  %v12507_v35 = vld [vmem:[%s19411_s4 + $0x60] sm:$0xff]  }
 0x8af   :  { %v10437_v43 = vpop.f32.mrb[89].mxu0  ;;  %10666 = vmatprep.mubr.bf16.mxu1 %v19032_v34  ;;  %v19147_v17 = vmul.f32 %v10435_v8, %v10435_v8  ;;  %v12508_v34 = vld [vmem:[%s19411_s4 + $0xe0] sm:$0xff]   ;;  %11951 = vmatprep.subr.bf16.mxu0 %v12507_v35 }
 0x8b0   :  { %v10439_v28 = vpop.f32.mrb[90].mxu0  ;;  %v19151_v49 = vmul.f32 %v10437_v43, %v10437_v43  ;;  %12063 = vmatprep.subr.bf16.mxu1 %v12508_v34  ;;  %11952 = vmatpush3.bf16.msra.mxu0 %v12509_v36  ;;  %v21039_v8 = vld [vmem:[#allocation189_spill] sm:$0xff]  ;;  %v12517_v36 = vld [vmem:[%s19411_s4 + $0x30] sm:$0xff]  }
 0x8b1   :  { %v19149_v56 = vmul.f32 %v10439_v28, %v10439_v28  ;;  %v10441_v41 = vpop.f32.mrb[91].mxu0  ;;  %12064 = vmatpush3.bf16.msra.mxu1 %v12510_v11  ;;  %11953 = vmatprep.subr.bf16.mxu0 %v12511_v32  ;;  %v12518_v11 = vld [vmem:[%s19411_s4 + $0xb0] sm:$0xff]  }
 0x8b2   :  { %v19153_v10 = vmul.f32 %v10441_v41, %v10441_v41  ;;  %12065 = vmatprep.subr.bf16.mxu1 %v12512_v5  ;;  %v21040_v41 = vld [vmem:[#allocation157_spill] sm:$0xff]  ;;  %v12519_v5 = vld [vmem:[%s19411_s4 + $0x78] sm:$0xff]  }
 0x8b5   :  { %12066 = vmatpush3.bf16.msra.mxu1 %v12514_v3  ;;  %v12522_v3 = vld [vmem:[%s19411_s4 + $0xb8] sm:$0xff]  }
 0x8b6   :  { %10667 = vmatmul.mubr.bf16.gmra.mrb[104].mxu1 %v19029_v26  ;;  %v12513_v26 = vld [vmem:[%s19411_s4 + $0x28] sm:$0xff]   ;;  %12067 = vmatprep.subr.bf16.mxu1 %v12516_v4 }
 0x8b7   :  { %10676 = vmatprep.mubr.bf16.mxu1 %v19052_v13  ;;  %v21037_v13 = vld [vmem:[#allocation176_spill] sm:$0xff]  ;;  %11954 = vmatpush3.bf16.msra.mxu0 %v12513_v26 }
 0x8b8   :  { %11955 = vmatprep.subr.bf16.mxu0 %v12515_v29  ;;  %v12520_v26 = vld [vmem:[%s19411_s4 + $0xf8] sm:$0xff]  }
 0x8b9   :  { %v9822_v2 = vpop.f32.mrb[48].mxu1  ;;  %12068 = vmatpush3.bf16.msra.mxu1 %v12518_v11 }
 0x8ba   :  { %v9909_v54 = vmul.f32 %v9822_v2, %v21037_v13  ;;  %v9824_v40 = vpop.f32.mrb[49].mxu1  ;;  %12069 = vmatprep.subr.bf16.mxu1 %v12520_v26 }
 0x8bb   :  { %v9910_v20 = vmul.f32 %v9824_v40, %v21038_v59  ;;  %v9826_v61 = vpop.f32.mrb[50].mxu1  ;;  %11956 = vmatpush3.bf16.msra.mxu0 %v12517_v36 }
 0x8bc   :  { %v9911_v43 = vmul.f32 %v9826_v61, %v21039_v8  ;;  %v9828_v28 = vpop.f32.mrb[51].mxu1  ;;  %11957 = vmatprep.subr.bf16.mxu0 %v12519_v5 }
 0x8bd   :  { %v9912_v35 = vmul.f32 %v9828_v28, %v21040_v41  ;;  %12070 = vmatpush3.bf16.msra.mxu1 %v12522_v3  ;;  %v21041_v28 = vld [vmem:[#allocation236_spill] sm:$0xff] }
 0x8be   :  { %v9949_v34 = vpack.c.bf16 %v9911_v43, %v9909_v54  ;;  %10677 = vmatmul.mubr.bf16.gmra.mrb[108].mxu1 %v19049_v42  ;;  %v12521_v42 = vld [vmem:[%s19411_s4 + $0x38] sm:$0xff]  }
 0x8bf   :  { %v9950_v32 = vpack.c.bf16 %v9912_v35, %v9910_v20  ;;  %11958 = vmatpush3.bf16.msra.mxu0 %v12521_v42  ;;  %v21044_v42 = vld [vmem:[#allocation51_spill] sm:$0xff] }
 0x8c1   :  { %10493 = vmatprep.mubr.bf16.mxu0 %v9950_v32  ;;  %10686 = vmatprep.mubr.bf16.mxu1 %v9950_v32  ;;  %v21043_v32 = vld [vmem:[#allocation92_spill] sm:$0xff] }
 0x8c2   :  { %10494 = vmatmul.mubr.bf16.gmra.mrb[112].mxu0 %v9949_v34 }
 0x8c6   :  { %10687 = vmatmul.mubr.bf16.gmra.mrb[112].mxu1 %v9949_v34  ;;  %v21042_v34 = vld [vmem:[#allocation218_spill] sm:$0xff] }
 0x8cd   :  { %v10445_v2 = vpop.f32.mrb[92].mxu0 }
 0x8ce   :  { %v10447_v13 = vpop.f32.mrb[93].mxu0  ;;  %v19214_v40 = vmul.f32 %v10445_v2, %v10445_v2 }
 0x8cf   :  { %v10449_v54 = vpop.f32.mrb[94].mxu0  ;;  %v19218_v61 = vmul.f32 %v10447_v13, %v10447_v13 }
 0x8d0   :  { %v19216_v59 = vmul.f32 %v10449_v54, %v10449_v54  ;;  %v10451_v20 = vpop.f32.mrb[95].mxu0 }
 0x8d1   :  { %v19220_v29 = vmul.f32 %v10451_v20, %v10451_v20 }
 0x8e1   :  { %v9832_v43 = vpop.f32.mrb[52].mxu1 }
 0x8e2   :  { %v9913_v41 = vmul.f32 %v9832_v43, %v21041_v28  ;;  %v9834_v35 = vpop.f32.mrb[53].mxu1 }
 0x8e3   :  { %v9914_v36 = vmul.f32 %v9834_v35, %v21042_v34  ;;  %v9836_v11 = vpop.f32.mrb[54].mxu1 }
 0x8e4   :  { %v9915_v5 = vmul.f32 %v9836_v11, %v21043_v32  ;;  %v9838_v26 = vpop.f32.mrb[55].mxu1  ;;  %v21045_v32 = vld [vmem:[#allocation230_spill] sm:$0xff] }
 0x8e5   :  { %v9916_v3 = vmul.f32 %v9838_v26, %v21044_v42  ;;  %v21046_v42 = vld [vmem:[#allocation209_spill] sm:$0xff] }
 0x8e6   :  { %v9951_v2 = vpack.c.bf16 %v9915_v5, %v9913_v41 }
 0x8e7   :  { %v9952_v13 = vpack.c.bf16 %v9916_v3, %v9914_v36 }
 0x8e9   :  { %10503 = vmatprep.mubr.bf16.mxu0 %v9952_v13  ;;  %10696 = vmatprep.mubr.bf16.mxu1 %v9952_v13 }
 0x8ea   :  { %10504 = vmatmul.mubr.bf16.gmra.mrb[116].mxu0 %v9951_v2  ;;  %10697 = vmatmul.mubr.bf16.gmra.mrb[116].mxu1 %v9951_v2 }
 0x8f5   :  { %v10455_v54 = vpop.f32.mrb[96].mxu0 }
 0x8f6   :  { %v10457_v20 = vpop.f32.mrb[97].mxu0  ;;  %v19230_v8 = vmul.f32 %v10455_v54, %v10455_v54 }
 0x8f7   :  { %v10459_v4 = vpop.f32.mrb[98].mxu0  ;;  %v19234_v35 = vmul.f32 %v10457_v20, %v10457_v20  ;;  %v21048_v20 = vld [vmem:[#allocation22_spill] sm:$0xff] }
 0x8f8   :  { %v19232_v43 = vmul.f32 %v10459_v4, %v10459_v4  ;;  %v10461_v28 = vpop.f32.mrb[99].mxu0  ;;  %v21047_v4 = vld [vmem:[#allocation245_spill] sm:$0xff] }
 0x8f9   :  { %v19236_v34 = vmul.f32 %v10461_v28, %v10461_v28 }
 0x909   :  { %v9842_v11 = vpop.f32.mrb[56].mxu1 }
 0x90a   :  { %v9917_v5 = vmul.f32 %v9842_v11, %v21045_v32  ;;  %v9844_v26 = vpop.f32.mrb[57].mxu1 }
 0x90b   :  { %v9918_v3 = vmul.f32 %v9844_v26, %v21046_v42  ;;  %v9846_v2 = vpop.f32.mrb[58].mxu1 }
 0x90c   :  { %v9919_v13 = vmul.f32 %v9846_v2, %v21047_v4  ;;  %v9848_v54 = vpop.f32.mrb[59].mxu1 }
 0x90d   :  { %v9920_v30 = vmul.f32 %v9848_v54, %v21048_v20 }
 0x90e   :  { %v9953_v28 = vpack.c.bf16 %v9919_v13, %v9917_v5  ;;  %v21050_v13 = vld [vmem:[#allocation119_spill] sm:$0xff] }
 0x90f   :  { %v9954_v51 = vpack.c.bf16 %v9920_v30, %v9918_v3  ;;  %v21049_v3 = vld [vmem:[#allocation127_spill] sm:$0xff] }
 0x911   :  { %10513 = vmatprep.mubr.bf16.mxu0 %v9954_v51  ;;  %10706 = vmatprep.mubr.bf16.mxu1 %v9954_v51 }
 0x912   :  { %10514 = vmatmul.mubr.bf16.gmra.mrb[120].mxu0 %v9953_v28  ;;  %10707 = vmatmul.mubr.bf16.gmra.mrb[120].mxu1 %v9953_v28 }
 0x91d   :  { %v10465_v41 = vpop.f32.mrb[100].mxu0 }
 0x91e   :  { %v10467_v36 = vpop.f32.mrb[101].mxu0  ;;  %v19246_v6 = vmul.f32 %v10465_v41, %v10465_v41 }
 0x91f   :  { %v10469_v1 = vpop.f32.mrb[102].mxu0  ;;  %v19250_v26 = vmul.f32 %v10467_v36, %v10467_v36  ;;  %v21052_v36 = vld [vmem:[#allocation191_spill] sm:$0xff] }
 0x920   :  { %v19248_v11 = vmul.f32 %v10469_v1, %v10469_v1  ;;  %v10471_v32 = vpop.f32.mrb[103].mxu0  ;;  %v21051_v1 = vld [vmem:[#allocation178_spill] sm:$0xff] }
 0x921   :  { %v19252_v42 = vmul.f32 %v10471_v32, %v10471_v32 }
 0x931   :  { %v9852_v51 = vpop.f32.mrb[60].mxu1 }
 0x932   :  { %v9921_v2 = vmul.f32 %v9852_v51, %v21049_v3  ;;  %v9854_v4 = vpop.f32.mrb[61].mxu1 }
 0x933   :  { %v9922_v41 = vmul.f32 %v9854_v4, %v21050_v13  ;;  %v9856_v54 = vpop.f32.mrb[62].mxu1 }
 0x934   :  { %v9923_v20 = vmul.f32 %v9856_v54, %v21051_v1  ;;  %v9858_v28 = vpop.f32.mrb[63].mxu1 }
 0x935   :  { %v9924_v52 = vmul.f32 %v9858_v28, %v21052_v36 }
 0x936   :  { %v9955_v32 = vpack.c.bf16 %v9923_v20, %v9921_v2 }
 0x937   :  { %v9956_v44 = vpack.c.bf16 %v9924_v52, %v9922_v41 }
 0x939   :  { %10523 = vmatprep.mubr.bf16.mxu0 %v9956_v44  ;;  %v10568_v58 = vpop.f32.mrb[64].mxu1  ;;  %10716 = vmatprep.mubr.bf16.mxu1 %v9956_v44 }
 0x93a   :  { %10524 = vmatmul.mubr.bf16.gmra.mrb[124].mxu0 %v9955_v32  ;;  %v10570_v5 = vpop.f32.mrb[65].mxu1  ;;  %10717 = vmatmul.mubr.bf16.gmra.mrb[124].mxu1 %v9955_v32  ;;  %v10729_v51 = vmul.f32 %v10568_v58, %v10568_v58 }
 0x93b   :  { %v10572_v30 = vpop.f32.mrb[66].mxu1  ;;  %11214 = vmatprep.mubr.bf16.mxu0 %v10856_v62  ;;  %v10730_v13 = vmul.f32 %v10570_v5, %v10570_v5 }
 0x93c   :  { %v10733_v3 = vmul.f32 %v10572_v30, %v10572_v30  ;;  %v10574_v4 = vpop.f32.mrb[67].mxu1 }
 0x93d   :  { %v10734_v54 = vmul.f32 %v10574_v4, %v10574_v4 }
 0x93e   :  { %v10857_v1 = vpack.c.bf16 %v10733_v3, %v10729_v51 }
 0x93f   :  { %v10858_v28 = vpack.c.bf16 %v10734_v54, %v10730_v13 }
 0x941   :  { %v10578_v2 = vpop.f32.mrb[68].mxu1  ;;  %11375 = vmatprep.mubr.bf16.mxu1 %v10858_v28 }
 0x942   :  { %v10580_v52 = vpop.f32.mrb[69].mxu1  ;;  %11215 = vmatmul.mubr.bf16.vlgmr.msra.gmra.mrb[128].mxu0 %v10855_v57  ;;  %11376 = vmatmul.mubr.bf16.vlgmr.msra.gmra.mrb[128].mxu1 %v10857_v1  ;;  %v10737_v45 = vmul.f32 %v10578_v2, %v10578_v2 }
 0x943   :  { %v10582_v44 = vpop.f32.mrb[70].mxu1  ;;  %11222 = vmatprep.mubr.bf16.mxu0 %v10860_v19  ;;  %v10738_v58 = vmul.f32 %v10580_v52, %v10580_v52 }
 0x944   :  { %v10741_v47 = vmul.f32 %v10582_v44, %v10582_v44  ;;  %v10584_v62 = vpop.f32.mrb[71].mxu1 }
 0x945   :  { %v10742_v5 = vmul.f32 %v10584_v62, %v10584_v62  ;;  %v10475_v30 = vpop.f32.mrb[104].mxu0 }
 0x946   :  { %v10861_v41 = vpack.c.bf16 %v10741_v47, %v10737_v45  ;;  %v10477_v20 = vpop.f32.mrb[105].mxu0  ;;  %v19271_v51 = vmul.f32 %v10475_v30, %v10475_v30 }
 0x947   :  { %v10862_v36 = vpack.c.bf16 %v10742_v5, %v10738_v58  ;;  %v10479_v32 = vpop.f32.mrb[106].mxu0  ;;  %v19275_v57 = vmul.f32 %v10477_v20, %v10477_v20 }
 0x948   :  { %v19273_v22 = vmul.f32 %v10479_v32, %v10479_v32  ;;  %v10481_v38 = vpop.f32.mrb[107].mxu0 }
 0x949   :  { %v19277_v3 = vmul.f32 %v10481_v38, %v10481_v38  ;;  %v10588_v27 = vpop.f32.mrb[72].mxu1  ;;  %11383 = vmatprep.mubr.bf16.mxu1 %v10862_v36 }
 0x94a   :  { %v10895_v25 = vpack.c.bf16 %v19273_v22, %v19271_v51  ;;  %v10590_v19 = vpop.f32.mrb[73].mxu1  ;;  %11223 = vmatmul.mubr.bf16.gmra.mrb[132].mxu0 %v10859_v21  ;;  %11384 = vmatmul.mubr.bf16.gmra.mrb[132].mxu1 %v10861_v41  ;;  %v10745_v54 = vmul.f32 %v10588_v27, %v10588_v27 }
 0x94b   :  { %v10896_v4 = vpack.c.bf16 %v19277_v3, %v19275_v57  ;;  %v10592_v13 = vpop.f32.mrb[74].mxu1  ;;  %11230 = vmatprep.mubr.bf16.mxu0 %v10864_v39  ;;  %v10746_v2 = vmul.f32 %v10590_v19, %v10590_v19 }
 0x94c   :  { %v10749_v1 = vmul.f32 %v10592_v13, %v10592_v13  ;;  %v10594_v28 = vpop.f32.mrb[75].mxu1 }
 0x94d   :  { %v10750_v52 = vmul.f32 %v10594_v28, %v10594_v28 }
 0x94e   :  { %v10865_v44 = vpack.c.bf16 %v10749_v1, %v10745_v54 }
 0x94f   :  { %v10866_v45 = vpack.c.bf16 %v10750_v52, %v10746_v2 }
 0x951   :  { %v10598_v47 = vpop.f32.mrb[76].mxu1  ;;  %11391 = vmatprep.mubr.bf16.mxu1 %v10866_v45 }
 0x952   :  { %v10600_v50 = vpop.f32.mrb[77].mxu1  ;;  %11231 = vmatmul.mubr.bf16.gmra.mrb[136].mxu0 %v10863_v12  ;;  %11392 = vmatmul.mubr.bf16.gmra.mrb[136].mxu1 %v10865_v44  ;;  %v10753_v21 = vmul.f32 %v10598_v47, %v10598_v47  ;;  %v21054_v12 = vpack.c.bf16 %v19083_v15, %v19081_v37  ;;  %v21056_v37 = vpack.c.bf16 %v19130_v53, %v19128_v63 }
 0x953   :  { %v10602_v46 = vpop.f32.mrb[78].mxu1  ;;  %11238 = vmatprep.mubr.bf16.mxu0 %v10868_v48  ;;  %v10754_v39 = vmul.f32 %v10600_v50, %v10600_v50  ;;  %v21058_v63 = vpack.c.bf16 %v19153_v10, %v19151_v49 }
 0x954   :  { %v10757_v24 = vmul.f32 %v10602_v46, %v10602_v46  ;;  %v10604_v7 = vpop.f32.mrb[79].mxu1 }
 0x955   :  { %v10758_v62 = vmul.f32 %v10604_v7, %v10604_v7 }
 0x956   :  { %v10869_v58 = vpack.c.bf16 %v10757_v24, %v10753_v21 }
 0x957   :  { %v10870_v5 = vpack.c.bf16 %v10758_v62, %v10754_v39 }
 0x959   :  { %v10608_v30 = vpop.f32.mrb[80].mxu1  ;;  %11399 = vmatprep.mubr.bf16.mxu1 %v10870_v5 }
 0x95a   :  { %v10610_v41 = vpop.f32.mrb[81].mxu1  ;;  %11239 = vmatmul.mubr.bf16.gmra.mrb[140].mxu0 %v21053_v23  ;;  %11400 = vmatmul.mubr.bf16.gmra.mrb[140].mxu1 %v10869_v58  ;;  %v10761_v14 = vmul.f32 %v10608_v30, %v10608_v30 }
 0x95b   :  { %v10612_v0 = vpop.f32.mrb[82].mxu1  ;;  %11246 = vmatprep.mubr.bf16.mxu0 %v21054_v12  ;;  %v10762_v20 = vmul.f32 %v10610_v41, %v10610_v41 }
 0x95c   :  { %v10765_v33 = vmul.f32 %v10612_v0, %v10612_v0  ;;  %v10614_v48 = vpop.f32.mrb[83].mxu1  ;;  %v21059_v0 = vpack.c.bf16 %v19149_v56, %v19147_v17  ;;  %v21061_v56 = vpack.c.bf16 %v19216_v59, %v19214_v40  ;;  %v21063_v40 = vpack.c.bf16 %v19232_v43, %v19230_v8 }
 0x95d   :  { %v10766_v36 = vmul.f32 %v10614_v48, %v10614_v48  ;;  %v21065_v8 = vpack.c.bf16 %v19248_v11, %v19246_v6 }
 0x95e   :  { %v10873_v32 = vpack.c.bf16 %v10765_v33, %v10761_v14  ;;  %v21060_v33 = vpack.c.bf16 %v19220_v29, %v19218_v61  ;;  %v21062_v61 = vpack.c.bf16 %v19236_v34, %v19234_v35  ;;  %v21064_v35 = vpack.c.bf16 %v19252_v42, %v19250_v26 }
 0x95f   :  { %v10874_v38 = vpack.c.bf16 %v10766_v36, %v10762_v20 }
 0x961   :  { %v10618_v27 = vpop.f32.mrb[84].mxu1  ;;  %11407 = vmatprep.mubr.bf16.mxu1 %v10874_v38 }
 0x962   :  { %v10620_v19 = vpop.f32.mrb[85].mxu1  ;;  %11247 = vmatmul.mubr.bf16.gmra.mrb[144].mxu0 %v21055_v16  ;;  %11408 = vmatmul.mubr.bf16.gmra.mrb[144].mxu1 %v10873_v32  ;;  %v10769_v15 = vmul.f32 %v10618_v27, %v10618_v27 }
 0x963   :  { %v10622_v9 = vpop.f32.mrb[86].mxu1  ;;  %11254 = vmatprep.mubr.bf16.mxu0 %v21056_v37  ;;  %v10770_v1 = vmul.f32 %v10620_v19, %v10620_v19 }
 0x964   :  { %v10773_v13 = vmul.f32 %v10622_v9, %v10622_v9  ;;  %v10624_v54 = vpop.f32.mrb[87].mxu1 }
 0x965   :  { %v10774_v28 = vmul.f32 %v10624_v54, %v10624_v54 }
 0x966   :  { %v10877_v2 = vpack.c.bf16 %v10773_v13, %v10769_v15 }
 0x967   :  { %v10878_v52 = vpack.c.bf16 %v10774_v28, %v10770_v1 }
 0x969   :  { %v10628_v44 = vpop.f32.mrb[88].mxu1  ;;  %11415 = vmatprep.mubr.bf16.mxu1 %v10878_v52 }
 0x96a   :  { %v10630_v45 = vpop.f32.mrb[89].mxu1  ;;  %11255 = vmatmul.mubr.bf16.gmra.mrb[148].mxu0 %v21057_v60  ;;  %11416 = vmatmul.mubr.bf16.gmra.mrb[148].mxu1 %v10877_v2  ;;  %v10777_v53 = vmul.f32 %v10628_v44, %v10628_v44 }
 0x96b   :  { %v10632_v18 = vpop.f32.mrb[90].mxu1  ;;  %11262 = vmatprep.mubr.bf16.mxu0 %v21058_v63  ;;  %v10778_v46 = vmul.f32 %v10630_v45, %v10630_v45 }
 0x96c   :  { %v10781_v47 = vmul.f32 %v10632_v18, %v10632_v18  ;;  %v10634_v50 = vpop.f32.mrb[91].mxu1 }
 0x96d   :  { %v10782_v21 = vmul.f32 %v10634_v50, %v10634_v50  ;;  %v10485_v24 = vpop.f32.mrb[108].mxu0 }
 0x96e   :  { %v10881_v7 = vpack.c.bf16 %v10781_v47, %v10777_v53  ;;  %v10487_v39 = vpop.f32.mrb[109].mxu0  ;;  %v19313_v5 = vmul.f32 %v10485_v24, %v10485_v24 }
 0x96f   :  { %v10882_v62 = vpack.c.bf16 %v10782_v21, %v10778_v46  ;;  %v10489_v58 = vpop.f32.mrb[110].mxu0  ;;  %v19317_v30 = vmul.f32 %v10487_v39, %v10487_v39 }
 0x970   :  { %v19315_v55 = vmul.f32 %v10489_v58, %v10489_v58  ;;  %v10491_v31 = vpop.f32.mrb[111].mxu0 }
 0x971   :  { %v19319_v41 = vmul.f32 %v10491_v31, %v10491_v31  ;;  %v10638_v49 = vpop.f32.mrb[92].mxu1  ;;  %11423 = vmatprep.mubr.bf16.mxu1 %v10882_v62 }
 0x972   :  { %v10899_v10 = vpack.c.bf16 %v19315_v55, %v19313_v5  ;;  %v10640_v23 = vpop.f32.mrb[93].mxu1  ;;  %11263 = vmatmul.mubr.bf16.gmra.mrb[152].mxu0 %v21059_v0  ;;  %11424 = vmatmul.mubr.bf16.gmra.mrb[152].mxu1 %v10881_v7  ;;  %v10785_v48 = vmul.f32 %v10638_v49, %v10638_v49 }
 0x973   :  { %v10900_v12 = vpack.c.bf16 %v19319_v41, %v19317_v30  ;;  %v10642_v14 = vpop.f32.mrb[94].mxu1  ;;  %11270 = vmatprep.mubr.bf16.mxu0 %v21060_v33  ;;  %v10786_v32 = vmul.f32 %v10640_v23, %v10640_v23 }
 0x974   :  { %v10789_v20 = vmul.f32 %v10642_v14, %v10642_v14  ;;  %v10644_v36 = vpop.f32.mrb[95].mxu1 }
 0x975   :  { %v10790_v38 = vmul.f32 %v10644_v36, %v10644_v36 }
 0x976   :  { %v10885_v27 = vpack.c.bf16 %v10789_v20, %v10785_v48 }
 0x977   :  { %v10886_v19 = vpack.c.bf16 %v10790_v38, %v10786_v32 }
 0x979   :  { %v10648_v16 = vpop.f32.mrb[96].mxu1  ;;  %11431 = vmatprep.mubr.bf16.mxu1 %v10886_v19 }
 0x97a   :  { %v10650_v17 = vpop.f32.mrb[97].mxu1  ;;  %11271 = vmatmul.mubr.bf16.gmra.mrb[156].mxu0 %v21061_v56  ;;  %11432 = vmatmul.mubr.bf16.gmra.mrb[156].mxu1 %v10885_v27  ;;  %v10793_v29 = vmul.f32 %v10648_v16, %v10648_v16 }
 0x97b   :  { %v10652_v9 = vpop.f32.mrb[98].mxu1  ;;  %11278 = vmatprep.mubr.bf16.mxu0 %v21062_v61  ;;  %v10794_v13 = vmul.f32 %v10650_v17, %v10650_v17 }
 0x97c   :  { %v10797_v37 = vmul.f32 %v10652_v9, %v10652_v9  ;;  %v10654_v15 = vpop.f32.mrb[99].mxu1 }
 0x97d   :  { %v10798_v54 = vmul.f32 %v10654_v15, %v10654_v15 }
 0x97e   :  { %v10889_v1 = vpack.c.bf16 %v10797_v37, %v10793_v29 }
 0x97f   :  { %v10890_v28 = vpack.c.bf16 %v10798_v54, %v10794_v13 }
 0x981   :  { %v10658_v2 = vpop.f32.mrb[100].mxu1  ;;  %11439 = vmatprep.mubr.bf16.mxu1 %v10890_v28 }
 0x982   :  { %v10660_v52 = vpop.f32.mrb[101].mxu1  ;;  %11279 = vmatmul.mubr.bf16.gmra.mrb[160].mxu0 %v21063_v40  ;;  %11440 = vmatmul.mubr.bf16.gmra.mrb[160].mxu1 %v10889_v1  ;;  %v10801_v34 = vmul.f32 %v10658_v2, %v10658_v2 }
 0x983   :  { %v10662_v59 = vpop.f32.mrb[102].mxu1  ;;  %11286 = vmatprep.mubr.bf16.mxu0 %v21064_v35  ;;  %v10802_v60 = vmul.f32 %v10660_v52, %v10660_v52 }
 0x984   :  { %v10805_v44 = vmul.f32 %v10662_v59, %v10662_v59  ;;  %v10664_v45 = vpop.f32.mrb[103].mxu1 }
 0x985   :  { %v10806_v18 = vmul.f32 %v10664_v45, %v10664_v45 }
 0x986   :  { %v10893_v63 = vpack.c.bf16 %v10805_v44, %v10801_v34 }
 0x987   :  { %v10894_v53 = vpack.c.bf16 %v10806_v18, %v10802_v60 }
 0x989   :  { %v10668_v47 = vpop.f32.mrb[104].mxu1  ;;  %11447 = vmatprep.mubr.bf16.mxu1 %v10894_v53 }
 0x98a   :  { %v10670_v50 = vpop.f32.mrb[105].mxu1  ;;  %11287 = vmatmul.mubr.bf16.gmra.mrb[164].mxu0 %v21065_v8  ;;  %11448 = vmatmul.mubr.bf16.gmra.mrb[164].mxu1 %v10893_v63  ;;  %v10809_v26 = vmul.f32 %v10668_v47, %v10668_v47 }
 0x98b   :  { %v10672_v43 = vpop.f32.mrb[106].mxu1  ;;  %11294 = vmatprep.mubr.bf16.mxu0 %v10896_v4  ;;  %v10810_v21 = vmul.f32 %v10670_v50, %v10670_v50 }
 0x98c   :  { %v10813_v42 = vmul.f32 %v10672_v43, %v10672_v43  ;;  %v10674_v46 = vpop.f32.mrb[107].mxu1 }
 0x98d   :  { %v10814_v24 = vmul.f32 %v10674_v46, %v10674_v46 }
 0x98e   :  { %v10897_v7 = vpack.c.bf16 %v10813_v42, %v10809_v26 }
 0x98f   :  { %v10898_v39 = vpack.c.bf16 %v10814_v24, %v10810_v21 }
 0x991   :  { %v10678_v62 = vpop.f32.mrb[108].mxu1  ;;  %11455 = vmatprep.mubr.bf16.mxu1 %v10898_v39 }
 0x992   :  { %v10680_v58 = vpop.f32.mrb[109].mxu1  ;;  %11295 = vmatmul.mubr.bf16.gmra.mrb[168].mxu0 %v10895_v25  ;;  %11456 = vmatmul.mubr.bf16.gmra.mrb[168].mxu1 %v10897_v7  ;;  %v10817_v11 = vmul.f32 %v10678_v62, %v10678_v62 }
 0x993   :  { %v10682_v6 = vpop.f32.mrb[110].mxu1  ;;  %11302 = vmatprep.mubr.bf16.mxu0 %v10900_v12  ;;  %v10818_v4 = vmul.f32 %v10680_v58, %v10680_v58 }
 0x994   :  { %v10821_v57 = vmul.f32 %v10682_v6, %v10682_v6  ;;  %v10684_v3 = vpop.f32.mrb[111].mxu1 }
 0x995   :  { %v10822_v31 = vmul.f32 %v10684_v3, %v10684_v3  ;;  %v10495_v30 = vpop.f32.mrb[112].mxu0 }
 0x996   :  { %v10901_v41 = vpack.c.bf16 %v10821_v57, %v10817_v11  ;;  %v10497_v49 = vpop.f32.mrb[113].mxu0  ;;  %v10823_v14 = vmul.f32 %v10495_v30, %v10495_v30 }
 0x997   :  { %v10902_v23 = vpack.c.bf16 %v10822_v31, %v10818_v4  ;;  %v10499_v0 = vpop.f32.mrb[114].mxu0  ;;  %v10824_v20 = vmul.f32 %v10497_v49, %v10497_v49 }
 0x998   :  { %v10827_v33 = vmul.f32 %v10499_v0, %v10499_v0  ;;  %v10501_v48 = vpop.f32.mrb[115].mxu0 }
 0x999   :  { %v10828_v36 = vmul.f32 %v10501_v48, %v10501_v48  ;;  %v10688_v51 = vpop.f32.mrb[112].mxu1  ;;  %11463 = vmatprep.mubr.bf16.mxu1 %v10902_v23 }
 0x99a   :  { %v10903_v22 = vpack.c.bf16 %v10827_v33, %v10823_v14  ;;  %v10690_v25 = vpop.f32.mrb[113].mxu1  ;;  %11303 = vmatmul.mubr.bf16.gmra.mrb[172].mxu0 %v10899_v10  ;;  %11464 = vmatmul.mubr.bf16.gmra.mrb[172].mxu1 %v10901_v41  ;;  %v10825_v38 = vmul.f32 %v10688_v51, %v10688_v51 }
 0x99b   :  { %v10904_v12 = vpack.c.bf16 %v10828_v36, %v10824_v20  ;;  %v10692_v32 = vpop.f32.mrb[114].mxu1  ;;  %v10826_v16 = vmul.f32 %v10690_v25, %v10690_v25 }
 0x99c   :  { %v10829_v27 = vmul.f32 %v10692_v32, %v10692_v32  ;;  %v10694_v19 = vpop.f32.mrb[115].mxu1 }
 0x99d   :  { %v10830_v17 = vmul.f32 %v10694_v19, %v10694_v19  ;;  %11310 = vmatprep.mubr.bf16.mxu0 %v10904_v12 }
 0x99e   :  { %v10905_v56 = vpack.c.bf16 %v10829_v27, %v10825_v38 }
 0x99f   :  { %v10906_v9 = vpack.c.bf16 %v10830_v17, %v10826_v16 }
 0x9a1   :  { %11471 = vmatprep.mubr.bf16.mxu1 %v10906_v9 }
 0x9a2   :  { %11311 = vmatmul.mubr.bf16.gmra.mrb[176].mxu0 %v10903_v22  ;;  %11472 = vmatmul.mubr.bf16.gmra.mrb[176].mxu1 %v10905_v56  ;;  %v19358_v56 = vld [vmem:[%s19412_s5] ss:$0 sm:$0xff]  ;;  %s12743_s5 = smov [#allocation7]  }
 0x9a3   :  { %s11541_s30 = sshll.u32 %s12743_s5, 4  ;;  %s11542_s30 = int_to_ptr.vmem [resolvable:$true] %s11541_s30 }
 0x9a4   :  { %s12695_s9 = scalar_lea.vmem %s11542_s30, 4096  ;;  %p12700_p3 = scmp.lt.s32.totalorder %s11542_s30, %s11542_s30 }
 0x9a5   :  { %p12696_p2 = scmp.ne.s32.totalorder %s11542_s30, %s12695_s9  ;;  %p12701_p4 = scmp.lt.s32.totalorder %s12695_s9, %s12695_s9 }
 0x9a7   :  { %p12702_p5 = por %p12701_p4, %p12700_p3 }
 0x9a9   :  { %p12703_p6 = pnand %p12702_p5, %p12696_p2 }
 0x9bd   :  { %v10505_v61 = vpop.f32.mrb[116].mxu0  ;;  %v10698_v29 = vpop.f32.mrb[116].mxu1 }
 0x9be   :  { %v10507_v37 = vpop.f32.mrb[117].mxu0  ;;  %v10700_v15 = vpop.f32.mrb[117].mxu1  ;;  %v10831_v10 = vmul.f32 %v10505_v61, %v10505_v61  ;;  %v10833_v13 = vmul.f32 %v10698_v29, %v10698_v29 }
 0x9bf   :  { %v10509_v5 = vpop.f32.mrb[118].mxu0  ;;  %v10702_v55 = vpop.f32.mrb[118].mxu1  ;;  %v10832_v52 = vmul.f32 %v10507_v37, %v10507_v37  ;;  %v10834_v40 = vmul.f32 %v10700_v15, %v10700_v15 }
 0x9c0   :  { %v10835_v54 = vmul.f32 %v10509_v5, %v10509_v5  ;;  %v10837_v1 = vmul.f32 %v10702_v55, %v10702_v55  ;;  %v10511_v28 = vpop.f32.mrb[119].mxu0  ;;  %v10704_v2 = vpop.f32.mrb[119].mxu1 }
 0x9c1   :  { %v10836_v59 = vmul.f32 %v10511_v28, %v10511_v28  ;;  %v10838_v35 = vmul.f32 %v10704_v2, %v10704_v2 }
 0x9c2   :  { %v10907_v34 = vpack.c.bf16 %v10835_v54, %v10831_v10  ;;  %v10909_v44 = vpack.c.bf16 %v10837_v1, %v10833_v13 }
 0x9c3   :  { %v10908_v45 = vpack.c.bf16 %v10836_v59, %v10832_v52  ;;  %v10910_v60 = vpack.c.bf16 %v10838_v35, %v10834_v40 }
 0x9c5   :  { %11318 = vmatprep.mubr.bf16.mxu0 %v10908_v45  ;;  %11479 = vmatprep.mubr.bf16.mxu1 %v10910_v60 }
 0x9c6   :  { %11319 = vmatmul.mubr.bf16.gmra.mrb[180].mxu0 %v10907_v34  ;;  %11480 = vmatmul.mubr.bf16.gmra.mrb[180].mxu1 %v10909_v44 }
 0x9e5   :  { %v10515_v18 = vpop.f32.mrb[120].mxu0  ;;  %v10708_v63 = vpop.f32.mrb[120].mxu1 }
 0x9e6   :  { %v10517_v53 = vpop.f32.mrb[121].mxu0  ;;  %v10710_v47 = vpop.f32.mrb[121].mxu1  ;;  %v10839_v43 = vmul.f32 %v10515_v18, %v10515_v18  ;;  %v10841_v26 = vmul.f32 %v10708_v63, %v10708_v63 }
 0x9e7   :  { %v10519_v50 = vpop.f32.mrb[122].mxu0  ;;  %v10712_v8 = vpop.f32.mrb[122].mxu1  ;;  %v10840_v7 = vmul.f32 %v10517_v53, %v10517_v53  ;;  %v10842_v39 = vmul.f32 %v10710_v47, %v10710_v47 }
 0x9e8   :  { %v10843_v42 = vmul.f32 %v10519_v50, %v10519_v50  ;;  %v10845_v46 = vmul.f32 %v10712_v8, %v10712_v8  ;;  %v10521_v21 = vpop.f32.mrb[123].mxu0  ;;  %v10714_v24 = vpop.f32.mrb[123].mxu1 }
 0x9e9   :  { %v10844_v62 = vmul.f32 %v10521_v21, %v10521_v21  ;;  %v10846_v58 = vmul.f32 %v10714_v24, %v10714_v24 }
 0x9ea   :  { %v10911_v6 = vpack.c.bf16 %v10843_v42, %v10839_v43  ;;  %v10913_v11 = vpack.c.bf16 %v10845_v46, %v10841_v26 }
 0x9eb   :  { %v10912_v57 = vpack.c.bf16 %v10844_v62, %v10840_v7  ;;  %v10914_v3 = vpack.c.bf16 %v10846_v58, %v10842_v39 }
 0x9ed   :  { %11326 = vmatprep.mubr.bf16.mxu0 %v10912_v57  ;;  %11487 = vmatprep.mubr.bf16.mxu1 %v10914_v3 }
 0x9ee   :  { %11327 = vmatmul.mubr.bf16.gmra.mrb[184].mxu0 %v10911_v6  ;;  %11488 = vmatmul.mubr.bf16.gmra.mrb[184].mxu1 %v10913_v11 }
 0xa0d   :  { %v10525_v4 = vpop.f32.mrb[124].mxu0  ;;  %v10718_v31 = vpop.f32.mrb[124].mxu1 }
 0xa0e   :  { %v10527_v30 = vpop.f32.mrb[125].mxu0  ;;  %v10720_v41 = vpop.f32.mrb[125].mxu1  ;;  %v10847_v0 = vmul.f32 %v10525_v4, %v10525_v4  ;;  %v10849_v14 = vmul.f32 %v10718_v31, %v10718_v31 }
 0xa0f   :  { %v10529_v49 = vpop.f32.mrb[126].mxu0  ;;  %v10722_v23 = vpop.f32.mrb[126].mxu1  ;;  %v10848_v51 = vmul.f32 %v10527_v30, %v10527_v30  ;;  %v10850_v22 = vmul.f32 %v10720_v41, %v10720_v41 }
 0xa10   :  { %v10851_v33 = vmul.f32 %v10529_v49, %v10529_v49  ;;  %v10853_v48 = vmul.f32 %v10722_v23, %v10722_v23  ;;  %v10531_v20 = vpop.f32.mrb[127].mxu0  ;;  %v10724_v36 = vpop.f32.mrb[127].mxu1 }
 0xa11   :  { %v10852_v25 = vmul.f32 %v10531_v20, %v10531_v20  ;;  %v10854_v12 = vmul.f32 %v10724_v36, %v10724_v36 }
 0xa12   :  { %v10915_v32 = vpack.c.bf16 %v10851_v33, %v10847_v0  ;;  %v10917_v38 = vpack.c.bf16 %v10853_v48, %v10849_v14 }
 0xa13   :  { %v10916_v27 = vpack.c.bf16 %v10852_v25, %v10848_v51  ;;  %v10918_v19 = vpack.c.bf16 %v10854_v12, %v10850_v22 }
 0xa15   :  { %v11959_v16 = vpop.f32.mrb[128].mxu0  ;;  %11334 = vmatprep.mubr.bf16.mxu0 %v10916_v27  ;;  %v12071_v17 = vpop.f32.mrb[128].mxu1  ;;  %11495 = vmatprep.mubr.bf16.mxu1 %v10918_v19 }
 0xa16   :  { %v11960_v9 = vpop.f32.mrb[129].mxu0  ;;  %11335 = vmatmul.mubr.bf16.gmra.mrb[188].mxu0 %v10915_v32  ;;  %v12072_v61 = vpop.f32.mrb[129].mxu1  ;;  %11496 = vmatmul.mubr.bf16.gmra.mrb[188].mxu1 %v10917_v38 }
 0xa17   :  { %v11961_v29 = vadd.f32 %v11960_v9, %v11959_v16  ;;  %v12073_v37 = vadd.f32 %v12072_v61, %v12071_v17  ;;  %v11962_v15 = vpop.f32.mrb[130].mxu0  ;;  %v12074_v5 = vpop.f32.mrb[130].mxu1 }
 0xa18   :  { %v11963_v55 = vpop.f32.mrb[131].mxu0  ;;  %v12075_v10 = vpop.f32.mrb[131].mxu1 }
 0xa19   :  { %v11217_v13 = vadd.f32 %v11961_v29, %v19358_v56  ;;  %v11964_v54 = vadd.f32 %v11963_v55, %v11962_v15  ;;  %v12076_v1 = vadd.f32 %v12075_v10, %v12074_v5 }
 0xa1b   :  { %v11378_v28 = vadd.f32 %v12073_v37, %v11217_v13  ;;  %v11220_v2 = vadd.f32 %v11964_v54, %v19358_v56 }
 0xa1d   :  { %11504 = vst [vmem:[#allocation7] sm:$0xff] %v11378_v28  ;;  %v11381_v52 = vadd.f32 %v12076_v1, %v11220_v2  ;;  %v11965_v40 = vpop.f32.mrb[132].mxu0  ;;  %v12077_v59 = vpop.f32.mrb[132].mxu1 }
 0xa1e   :  { %v11966_v35 = vpop.f32.mrb[133].mxu0  ;;  %v12078_v34 = vpop.f32.mrb[133].mxu1 }
 0xa1f   :  { %11505 = vst [vmem:[#allocation7 + $0x8] sm:$0xff] %v11381_v52  ;;  %v11967_v44 = vadd.f32 %v11966_v35, %v11965_v40  ;;  %v12079_v45 = vadd.f32 %v12078_v34, %v12077_v59  ;;  %v11968_v60 = vpop.f32.mrb[134].mxu0  ;;  %v12080_v18 = vpop.f32.mrb[134].mxu1 }
 0xa20   :  { %v11969_v63 = vpop.f32.mrb[135].mxu0  ;;  %v12081_v53 = vpop.f32.mrb[135].mxu1 }
 0xa21   :  { %v11225_v47 = vadd.f32 %v11967_v44, %v19358_v56  ;;  %v11970_v50 = vadd.f32 %v11969_v63, %v11968_v60  ;;  %v12082_v8 = vadd.f32 %v12081_v53, %v12080_v18 }
 0xa23   :  { %v11386_v43 = vadd.f32 %v12079_v45, %v11225_v47  ;;  %v11228_v26 = vadd.f32 %v11970_v50, %v19358_v56 }
 0xa25   :  { %11506 = vst [vmem:[#allocation7 + $0x10] sm:$0xff] %v11386_v43  ;;  %v11389_v42 = vadd.f32 %v12082_v8, %v11228_v26  ;;  %v11971_v46 = vpop.f32.mrb[136].mxu0  ;;  %v12083_v21 = vpop.f32.mrb[136].mxu1 }
 0xa26   :  { %v11972_v24 = vpop.f32.mrb[137].mxu0  ;;  %v12084_v7 = vpop.f32.mrb[137].mxu1 }
 0xa27   :  { %11507 = vst [vmem:[#allocation7 + $0x18] sm:$0xff] %v11389_v42  ;;  %v11973_v39 = vadd.f32 %v11972_v24, %v11971_v46  ;;  %v12085_v62 = vadd.f32 %v12084_v7, %v12083_v21  ;;  %v11974_v58 = vpop.f32.mrb[138].mxu0  ;;  %v12086_v6 = vpop.f32.mrb[138].mxu1 }
 0xa28   :  { %v11975_v11 = vpop.f32.mrb[139].mxu0  ;;  %v12087_v57 = vpop.f32.mrb[139].mxu1 }
 0xa29   :  { %v11233_v3 = vadd.f32 %v11973_v39, %v19358_v56  ;;  %v11976_v4 = vadd.f32 %v11975_v11, %v11974_v58  ;;  %v12088_v31 = vadd.f32 %v12087_v57, %v12086_v6 }
 0xa2b   :  { %v11394_v30 = vadd.f32 %v12085_v62, %v11233_v3  ;;  %v11236_v41 = vadd.f32 %v11976_v4, %v19358_v56 }
 0xa2d   :  { %11508 = vst [vmem:[#allocation7 + $0x20] sm:$0xff] %v11394_v30  ;;  %v11397_v49 = vadd.f32 %v12088_v31, %v11236_v41  ;;  %v11977_v23 = vpop.f32.mrb[140].mxu0  ;;  %v12089_v0 = vpop.f32.mrb[140].mxu1 }
 0xa2e   :  { %v11978_v14 = vpop.f32.mrb[141].mxu0  ;;  %v12090_v33 = vpop.f32.mrb[141].mxu1 }
 0xa2f   :  { %11509 = vst [vmem:[#allocation7 + $0x28] sm:$0xff] %v11397_v49  ;;  %v11979_v48 = vadd.f32 %v11978_v14, %v11977_v23  ;;  %v12091_v20 = vadd.f32 %v12090_v33, %v12089_v0  ;;  %v11980_v36 = vpop.f32.mrb[142].mxu0  ;;  %v12092_v51 = vpop.f32.mrb[142].mxu1 }
 0xa30   :  { %v11981_v22 = vpop.f32.mrb[143].mxu0  ;;  %v12093_v25 = vpop.f32.mrb[143].mxu1 }
 0xa31   :  { %v11241_v12 = vadd.f32 %v11979_v48, %v19358_v56  ;;  %v11982_v32 = vadd.f32 %v11981_v22, %v11980_v36  ;;  %v12094_v38 = vadd.f32 %v12093_v25, %v12092_v51 }
 0xa33   :  { %v11402_v27 = vadd.f32 %v12091_v20, %v11241_v12  ;;  %v11244_v19 = vadd.f32 %v11982_v32, %v19358_v56 }
 0xa35   :  { %11510 = vst [vmem:[#allocation7 + $0x30] sm:$0xff] %v11402_v27  ;;  %v11405_v16 = vadd.f32 %v12094_v38, %v11244_v19  ;;  %v11983_v17 = vpop.f32.mrb[144].mxu0  ;;  %v12095_v9 = vpop.f32.mrb[144].mxu1 }
 0xa36   :  { %v11984_v61 = vpop.f32.mrb[145].mxu0  ;;  %v12096_v29 = vpop.f32.mrb[145].mxu1 }
 0xa37   :  { %11511 = vst [vmem:[#allocation7 + $0x38] sm:$0xff] %v11405_v16  ;;  %v11985_v37 = vadd.f32 %v11984_v61, %v11983_v17  ;;  %v12097_v15 = vadd.f32 %v12096_v29, %v12095_v9  ;;  %v11986_v5 = vpop.f32.mrb[146].mxu0  ;;  %v12098_v55 = vpop.f32.mrb[146].mxu1 }
 0xa38   :  { %v11987_v10 = vpop.f32.mrb[147].mxu0  ;;  %v12099_v13 = vpop.f32.mrb[147].mxu1 }
 0xa39   :  { %v11249_v54 = vadd.f32 %v11985_v37, %v19358_v56  ;;  %v11988_v1 = vadd.f32 %v11987_v10, %v11986_v5  ;;  %v12100_v28 = vadd.f32 %v12099_v13, %v12098_v55 }
 0xa3b   :  { %v11410_v2 = vadd.f32 %v12097_v15, %v11249_v54  ;;  %v11252_v52 = vadd.f32 %v11988_v1, %v19358_v56 }
 0xa3d   :  { %11512 = vst [vmem:[#allocation7 + $0x40] sm:$0xff] %v11410_v2  ;;  %v11413_v40 = vadd.f32 %v12100_v28, %v11252_v52  ;;  %v11989_v59 = vpop.f32.mrb[148].mxu0  ;;  %v12101_v35 = vpop.f32.mrb[148].mxu1 }
 0xa3e   :  { %v11990_v34 = vpop.f32.mrb[149].mxu0  ;;  %v12102_v44 = vpop.f32.mrb[149].mxu1 }
 0xa3f   :  { %11513 = vst [vmem:[#allocation7 + $0x48] sm:$0xff] %v11413_v40  ;;  %v11991_v45 = vadd.f32 %v11990_v34, %v11989_v59  ;;  %v12103_v60 = vadd.f32 %v12102_v44, %v12101_v35  ;;  %v11992_v18 = vpop.f32.mrb[150].mxu0  ;;  %v12104_v63 = vpop.f32.mrb[150].mxu1 }
 0xa40   :  { %v11993_v53 = vpop.f32.mrb[151].mxu0  ;;  %v12105_v47 = vpop.f32.mrb[151].mxu1 }
 0xa41   :  { %v11257_v50 = vadd.f32 %v11991_v45, %v19358_v56  ;;  %v11994_v8 = vadd.f32 %v11993_v53, %v11992_v18  ;;  %v12106_v43 = vadd.f32 %v12105_v47, %v12104_v63 }
 0xa43   :  { %v11418_v26 = vadd.f32 %v12103_v60, %v11257_v50  ;;  %v11260_v42 = vadd.f32 %v11994_v8, %v19358_v56 }
 0xa45   :  { %11514 = vst [vmem:[#allocation7 + $0x50] sm:$0xff] %v11418_v26  ;;  %v11421_v46 = vadd.f32 %v12106_v43, %v11260_v42  ;;  %v11995_v21 = vpop.f32.mrb[152].mxu0  ;;  %v12107_v24 = vpop.f32.mrb[152].mxu1 }
 0xa46   :  { %v11996_v7 = vpop.f32.mrb[153].mxu0  ;;  %v12108_v39 = vpop.f32.mrb[153].mxu1 }
 0xa47   :  { %11515 = vst [vmem:[#allocation7 + $0x58] sm:$0xff] %v11421_v46  ;;  %v11997_v62 = vadd.f32 %v11996_v7, %v11995_v21  ;;  %v12109_v58 = vadd.f32 %v12108_v39, %v12107_v24  ;;  %v11998_v6 = vpop.f32.mrb[154].mxu0  ;;  %v12110_v11 = vpop.f32.mrb[154].mxu1 }
 0xa48   :  { %v11999_v57 = vpop.f32.mrb[155].mxu0  ;;  %v12111_v3 = vpop.f32.mrb[155].mxu1 }
 0xa49   :  { %v11265_v4 = vadd.f32 %v11997_v62, %v19358_v56  ;;  %v12000_v31 = vadd.f32 %v11999_v57, %v11998_v6  ;;  %v12112_v30 = vadd.f32 %v12111_v3, %v12110_v11 }
 0xa4b   :  { %v11426_v41 = vadd.f32 %v12109_v58, %v11265_v4  ;;  %v11268_v49 = vadd.f32 %v12000_v31, %v19358_v56 }
 0xa4d   :  { %11516 = vst [vmem:[#allocation7 + $0x60] sm:$0xff] %v11426_v41  ;;  %v11429_v23 = vadd.f32 %v12112_v30, %v11268_v49  ;;  %v12001_v0 = vpop.f32.mrb[156].mxu0  ;;  %v12113_v14 = vpop.f32.mrb[156].mxu1 }
 0xa4e   :  { %v12002_v33 = vpop.f32.mrb[157].mxu0  ;;  %v12114_v48 = vpop.f32.mrb[157].mxu1 }
 0xa4f   :  { %11517 = vst [vmem:[#allocation7 + $0x68] sm:$0xff] %v11429_v23  ;;  %v12003_v20 = vadd.f32 %v12002_v33, %v12001_v0  ;;  %v12115_v36 = vadd.f32 %v12114_v48, %v12113_v14  ;;  %v12004_v51 = vpop.f32.mrb[158].mxu0  ;;  %v12116_v22 = vpop.f32.mrb[158].mxu1 }
 0xa50   :  { %v12005_v25 = vpop.f32.mrb[159].mxu0  ;;  %v12117_v12 = vpop.f32.mrb[159].mxu1 }
 0xa51   :  { %v11273_v32 = vadd.f32 %v12003_v20, %v19358_v56  ;;  %v12006_v38 = vadd.f32 %v12005_v25, %v12004_v51  ;;  %v12118_v27 = vadd.f32 %v12117_v12, %v12116_v22 }
 0xa53   :  { %v11434_v19 = vadd.f32 %v12115_v36, %v11273_v32  ;;  %v11276_v16 = vadd.f32 %v12006_v38, %v19358_v56 }
 0xa55   :  { %11518 = vst [vmem:[#allocation7 + $0x70] sm:$0xff] %v11434_v19  ;;  %v11437_v17 = vadd.f32 %v12118_v27, %v11276_v16  ;;  %v12007_v9 = vpop.f32.mrb[160].mxu0  ;;  %v12119_v61 = vpop.f32.mrb[160].mxu1 }
 0xa56   :  { %v12008_v29 = vpop.f32.mrb[161].mxu0  ;;  %v12120_v37 = vpop.f32.mrb[161].mxu1 }
 0xa57   :  { %11519 = vst [vmem:[#allocation7 + $0x78] sm:$0xff] %v11437_v17  ;;  %v12009_v15 = vadd.f32 %v12008_v29, %v12007_v9  ;;  %v12121_v5 = vadd.f32 %v12120_v37, %v12119_v61  ;;  %v12010_v55 = vpop.f32.mrb[162].mxu0  ;;  %v12122_v10 = vpop.f32.mrb[162].mxu1 }
 0xa58   :  { %v12011_v13 = vpop.f32.mrb[163].mxu0  ;;  %v12123_v54 = vpop.f32.mrb[163].mxu1 }
 0xa59   :  { %v11281_v1 = vadd.f32 %v12009_v15, %v19358_v56  ;;  %v12012_v28 = vadd.f32 %v12011_v13, %v12010_v55  ;;  %v12124_v2 = vadd.f32 %v12123_v54, %v12122_v10 }
 0xa5b   :  { %v11442_v52 = vadd.f32 %v12121_v5, %v11281_v1  ;;  %v11284_v40 = vadd.f32 %v12012_v28, %v19358_v56 }
 0xa5d   :  { %11520 = vst [vmem:[#allocation7 + $0x80] sm:$0xff] %v11442_v52  ;;  %v11445_v59 = vadd.f32 %v12124_v2, %v11284_v40  ;;  %v12013_v35 = vpop.f32.mrb[164].mxu0  ;;  %v12125_v34 = vpop.f32.mrb[164].mxu1 }
 0xa5e   :  { %v12014_v44 = vpop.f32.mrb[165].mxu0  ;;  %v12126_v45 = vpop.f32.mrb[165].mxu1 }
 0xa5f   :  { %11521 = vst [vmem:[#allocation7 + $0x88] sm:$0xff] %v11445_v59  ;;  %v12015_v60 = vadd.f32 %v12014_v44, %v12013_v35  ;;  %v12127_v18 = vadd.f32 %v12126_v45, %v12125_v34  ;;  %v12016_v63 = vpop.f32.mrb[166].mxu0  ;;  %v12128_v53 = vpop.f32.mrb[166].mxu1 }
 0xa60   :  { %v12017_v47 = vpop.f32.mrb[167].mxu0  ;;  %v12129_v50 = vpop.f32.mrb[167].mxu1 }
 0xa61   :  { %v11289_v8 = vadd.f32 %v12015_v60, %v19358_v56  ;;  %v12018_v43 = vadd.f32 %v12017_v47, %v12016_v63  ;;  %v12130_v26 = vadd.f32 %v12129_v50, %v12128_v53 }
 0xa63   :  { %v11450_v42 = vadd.f32 %v12127_v18, %v11289_v8  ;;  %v11292_v46 = vadd.f32 %v12018_v43, %v19358_v56 }
 0xa65   :  { %11522 = vst [vmem:[#allocation7 + $0x90] sm:$0xff] %v11450_v42  ;;  %v11453_v21 = vadd.f32 %v12130_v26, %v11292_v46  ;;  %v12019_v24 = vpop.f32.mrb[168].mxu0  ;;  %v12131_v7 = vpop.f32.mrb[168].mxu1 }
 0xa66   :  { %v12020_v39 = vpop.f32.mrb[169].mxu0  ;;  %v12132_v62 = vpop.f32.mrb[169].mxu1 }
 0xa67   :  { %11523 = vst [vmem:[#allocation7 + $0x98] sm:$0xff] %v11453_v21  ;;  %v12021_v58 = vadd.f32 %v12020_v39, %v12019_v24  ;;  %v12133_v6 = vadd.f32 %v12132_v62, %v12131_v7  ;;  %v12022_v11 = vpop.f32.mrb[170].mxu0  ;;  %v12134_v57 = vpop.f32.mrb[170].mxu1 }
 0xa68   :  { %v12023_v3 = vpop.f32.mrb[171].mxu0  ;;  %v12135_v4 = vpop.f32.mrb[171].mxu1 }
 0xa69   :  { %v11297_v31 = vadd.f32 %v12021_v58, %v19358_v56  ;;  %v12024_v30 = vadd.f32 %v12023_v3, %v12022_v11  ;;  %v12136_v41 = vadd.f32 %v12135_v4, %v12134_v57 }
 0xa6b   :  { %v11458_v49 = vadd.f32 %v12133_v6, %v11297_v31  ;;  %v11300_v23 = vadd.f32 %v12024_v30, %v19358_v56 }
 0xa6d   :  { %11524 = vst [vmem:[#allocation7 + $0xa0] sm:$0xff] %v11458_v49  ;;  %v11461_v0 = vadd.f32 %v12136_v41, %v11300_v23  ;;  %v12025_v14 = vpop.f32.mrb[172].mxu0  ;;  %v12137_v33 = vpop.f32.mrb[172].mxu1 }
 0xa6e   :  { %v12026_v48 = vpop.f32.mrb[173].mxu0  ;;  %v12138_v20 = vpop.f32.mrb[173].mxu1 }
 0xa6f   :  { %11525 = vst [vmem:[#allocation7 + $0xa8] sm:$0xff] %v11461_v0  ;;  %v12027_v36 = vadd.f32 %v12026_v48, %v12025_v14  ;;  %v12139_v51 = vadd.f32 %v12138_v20, %v12137_v33  ;;  %v12028_v22 = vpop.f32.mrb[174].mxu0  ;;  %v12140_v25 = vpop.f32.mrb[174].mxu1 }
 0xa70   :  { %v12029_v12 = vpop.f32.mrb[175].mxu0  ;;  %v12141_v32 = vpop.f32.mrb[175].mxu1 }
 0xa71   :  { %v11305_v38 = vadd.f32 %v12027_v36, %v19358_v56  ;;  %v12030_v27 = vadd.f32 %v12029_v12, %v12028_v22  ;;  %v12142_v19 = vadd.f32 %v12141_v32, %v12140_v25 }
 0xa73   :  { %v11466_v16 = vadd.f32 %v12139_v51, %v11305_v38  ;;  %v11308_v17 = vadd.f32 %v12030_v27, %v19358_v56 }
 0xa75   :  { %11526 = vst [vmem:[#allocation7 + $0xb0] sm:$0xff] %v11466_v16  ;;  %v11469_v9 = vadd.f32 %v12142_v19, %v11308_v17  ;;  %v12031_v61 = vpop.f32.mrb[176].mxu0  ;;  %v12143_v29 = vpop.f32.mrb[176].mxu1 }
 0xa76   :  { %v12032_v37 = vpop.f32.mrb[177].mxu0  ;;  %v12144_v15 = vpop.f32.mrb[177].mxu1 }
 0xa77   :  { %11527 = vst [vmem:[#allocation7 + $0xb8] sm:$0xff] %v11469_v9  ;;  %v12033_v5 = vadd.f32 %v12032_v37, %v12031_v61  ;;  %v12145_v55 = vadd.f32 %v12144_v15, %v12143_v29  ;;  %v12034_v10 = vpop.f32.mrb[178].mxu0  ;;  %v12146_v13 = vpop.f32.mrb[178].mxu1 }
 0xa78   :  { %v12035_v54 = vpop.f32.mrb[179].mxu0  ;;  %v12147_v1 = vpop.f32.mrb[179].mxu1 }
 0xa79   :  { %v11313_v28 = vadd.f32 %v12033_v5, %v19358_v56  ;;  %v12036_v2 = vadd.f32 %v12035_v54, %v12034_v10  ;;  %v12148_v52 = vadd.f32 %v12147_v1, %v12146_v13 }
 0xa7b   :  { %v11474_v40 = vadd.f32 %v12145_v55, %v11313_v28  ;;  %v11316_v59 = vadd.f32 %v12036_v2, %v19358_v56 }
 0xa7d   :  { %11528 = vst [vmem:[#allocation7 + $0xc0] sm:$0xff] %v11474_v40  ;;  %v11477_v35 = vadd.f32 %v12148_v52, %v11316_v59 }
 0xa7f   :  { %11529 = vst [vmem:[#allocation7 + $0xc8] sm:$0xff] %v11477_v35 }
 0xa99   :  { %v12037_v34 = vpop.f32.mrb[180].mxu0  ;;  %v12149_v44 = vpop.f32.mrb[180].mxu1 }
 0xa9a   :  { %v12038_v45 = vpop.f32.mrb[181].mxu0  ;;  %v12150_v60 = vpop.f32.mrb[181].mxu1 }
 0xa9b   :  { %v12039_v18 = vadd.f32 %v12038_v45, %v12037_v34  ;;  %v12151_v63 = vadd.f32 %v12150_v60, %v12149_v44  ;;  %v12040_v53 = vpop.f32.mrb[182].mxu0  ;;  %v12152_v47 = vpop.f32.mrb[182].mxu1 }
 0xa9c   :  { %v12041_v50 = vpop.f32.mrb[183].mxu0  ;;  %v12153_v8 = vpop.f32.mrb[183].mxu1 }
 0xa9d   :  { %v11321_v43 = vadd.f32 %v12039_v18, %v19358_v56  ;;  %v12042_v26 = vadd.f32 %v12041_v50, %v12040_v53  ;;  %v12154_v42 = vadd.f32 %v12153_v8, %v12152_v47 }
 0xa9f   :  { %v11482_v46 = vadd.f32 %v12151_v63, %v11321_v43  ;;  %v11324_v21 = vadd.f32 %v12042_v26, %v19358_v56 }
 0xaa1   :  { %11530 = vst [vmem:[#allocation7 + $0xd0] sm:$0xff] %v11482_v46  ;;  %v11485_v24 = vadd.f32 %v12154_v42, %v11324_v21 }
 0xaa3   :  { %11531 = vst [vmem:[#allocation7 + $0xd8] sm:$0xff] %v11485_v24 }
 0xac1   :  { %v12043_v7 = vpop.f32.mrb[184].mxu0  ;;  %v12155_v39 = vpop.f32.mrb[184].mxu1 }
 0xac2   :  { %v12044_v62 = vpop.f32.mrb[185].mxu0  ;;  %v12156_v58 = vpop.f32.mrb[185].mxu1 }
 0xac3   :  { %v12045_v6 = vadd.f32 %v12044_v62, %v12043_v7  ;;  %v12157_v11 = vadd.f32 %v12156_v58, %v12155_v39  ;;  %v12046_v57 = vpop.f32.mrb[186].mxu0  ;;  %v12158_v3 = vpop.f32.mrb[186].mxu1 }
 0xac4   :  { %v12047_v4 = vpop.f32.mrb[187].mxu0  ;;  %v12159_v31 = vpop.f32.mrb[187].mxu1 }
 0xac5   :  { %v11329_v30 = vadd.f32 %v12045_v6, %v19358_v56  ;;  %v12048_v41 = vadd.f32 %v12047_v4, %v12046_v57  ;;  %v12160_v49 = vadd.f32 %v12159_v31, %v12158_v3 }
 0xac7   :  { %v11490_v23 = vadd.f32 %v12157_v11, %v11329_v30  ;;  %v11332_v0 = vadd.f32 %v12048_v41, %v19358_v56 }
 0xac9   :  { %11532 = vst [vmem:[#allocation7 + $0xe0] sm:$0xff] %v11490_v23  ;;  %v11493_v14 = vadd.f32 %v12160_v49, %v11332_v0 }
 0xacb   :  { %11533 = vst [vmem:[#allocation7 + $0xe8] sm:$0xff] %v11493_v14 }
 0xae9   :  { %v12049_v33 = vpop.f32.mrb[188].mxu0  ;;  %v12161_v48 = vpop.f32.mrb[188].mxu1 }
 0xaea   :  { %v12050_v20 = vpop.f32.mrb[189].mxu0  ;;  %v12162_v36 = vpop.f32.mrb[189].mxu1 }
 0xaeb   :  { %v12051_v51 = vadd.f32 %v12050_v20, %v12049_v33  ;;  %v12163_v22 = vadd.f32 %v12162_v36, %v12161_v48  ;;  %v12052_v25 = vpop.f32.mrb[190].mxu0  ;;  %v12164_v12 = vpop.f32.mrb[190].mxu1 }
 0xaec   :  { %v12053_v32 = vpop.f32.mrb[191].mxu0  ;;  %v12165_v38 = vpop.f32.mrb[191].mxu1 }
 0xaed   :  { %v11337_v27 = vadd.f32 %v12051_v51, %v19358_v56  ;;  %v12054_v19 = vadd.f32 %v12053_v32, %v12052_v25  ;;  %v12166_v16 = vadd.f32 %v12165_v38, %v12164_v12 }
 0xaef   :  { %v11498_v17 = vadd.f32 %v12163_v22, %v11337_v27  ;;  %v11340_v9 = vadd.f32 %v12054_v19, %v19358_v56 }
 0xaf1   :  { %11534 = vst [vmem:[#allocation7 + $0xf0] sm:$0xff] %v11498_v17  ;;  %v11501_v61 = vadd.f32 %v12166_v16, %v11340_v9 }
 0xaf3   :  { %11535 = vst [vmem:[#allocation7 + $0xf8] sm:$0xff] %v11501_v61 }
 0xaf4   :  { %12706 = shalt.err (!%p12703_p6)
}
 0xaf5   :  { %s12707_s12 = scalar_lea.hbm %s19413_s6, 4096 }
 0xaf6   :  { %p12708_p7 = scmp.ne.s32.totalorder %s19413_s6, %s12707_s12  ;;  %p12711_p8 = scmp.lt.u32.totalorder %s12707_s12, %s19413_s6 }
 0xaf8   :  { %p12713_p9 = pnand %p12711_p8, %p12708_p7 }
 0xafa   :  { %12716 = shalt.err (!%p12713_p9)
}
 0xafb   :  { %11547 = dma.vmem_to_hbm [thread:$0]  %s11542_s30, 4096, %s19413_s6, [#allocation4], %s12724_s7, %s12724_s7, %s12725_s8  }
 0xafc   :  { %12721 = dma.done.wait [#allocation4], 4096  }
 0xafd   :  { %12722 = vsyncadd [#allocation4], 4294963200 }
 0xafe   :  { %11551 = vsyncpa [#allocation3], 1 }
 0xaff   :  { %11552 = vsyncpa [#allocation6], 1 }
 0xb00   :  { %11553 = vsyncpa [#allocation4], 1 }

</bundles_post_ra>
